<compile_context>
chip_gen: v5e
topology: v5e:2x2
jax: 0.10.0
libtpu: 0.0.40
codegen_flags: <defaults>
</compile_context>

<pallas_src>
import jax
import jax.numpy as jnp
from jax import lax
from jax.experimental import pallas as pl
from jax.experimental.pallas import tpu as pltpu

EPS = 1e-5


def _round_up(x, m):
    return ((x + m - 1) // m) * m


def _row_tile(h, target=8):
    """Largest divisor of h that is <= target (row-block height for pass C)."""
    th = 1
    for t in range(1, min(h, target) + 1):
        if h % t == 0:
            th = t
    return th


def _vmem_limit_bytes():
    """Generation-aware VMEM budget (leave headroom on 64 MiB parts)."""
    try:
        cap = pltpu.get_tpu_info().vmem_capacity_bytes
    except Exception:
        cap = 64 * 1024 * 1024
    return (40 << 20) if cap <= (64 << 20) else (64 << 20)


def _fill_tap_register(reg_ref, v):
    """Shift-register im2col along the width axis (bf16 scratch).

    reg_ref : VMEM scratch of shape (H+2, W, 3*Cv).  After this call
        reg_ref[h, x, dx*Cv + c] == zero_pad1(v)[h, x + dx, c]
    so the dy-th row tap of a 3x3 SAME conv is the contiguous slice
    reg_ref[dy:dy+H] with contraction depth K = 3*Cv.  Only the 1-pixel halo
    strips are zeroed — no full-buffer memset.
    """
    H, W, Cv = v.shape
    dt = reg_ref.dtype
    v = v.astype(dt)
    zrow = jnp.zeros((1, W, 3 * Cv), dt)
    zcol = jnp.zeros((H, 1, Cv), dt)
    reg_ref[0:1, :, :] = zrow                     # top padding row
    reg_ref[H + 1:H + 2, :, :] = zrow             # bottom padding row
    # dx = 0 (left neighbour)
    reg_ref[1:H + 1, 0:1, 0:Cv] = zcol
    reg_ref[1:H + 1, 1:W, 0:Cv] = v[:, 0:W - 1, :]
    # dx = 1 (centre)
    reg_ref[1:H + 1, 0:W, Cv:2 * Cv] = v
    # dx = 2 (right neighbour)
    reg_ref[1:H + 1, 0:W - 1, 2 * Cv:3 * Cv] = v[:, 1:W, :]
    reg_ref[1:H + 1, W - 1:W, 2 * Cv:3 * Cv] = zcol


def _conv3x3(reg_ref, w_ref, H, W, K):
    """3 row-tap bf16 MXU matmuls with fused K = 3*C_in, f32 accumulation."""
    acc = jnp.dot(reg_ref[0:H, :, :].reshape(H * W, K), w_ref[0],
                  preferred_element_type=jnp.float32)
    for dy in (1, 2):
        tap = reg_ref[dy:dy + H, :, :].reshape(H * W, K)
        acc = acc + jnp.dot(tap, w_ref[dy], preferred_element_type=jnp.float32)
    return acc


def _channel_stats(acc):
    """(rows, C) f32 -> (2, C) = [per-channel sum, per-channel sum of squares].

    TODO(synk): mean-shifted / Welford combine would be more robust than raw
    sum + sum_sq when |mean| >> std over very large N*H*W.
    """
    return jnp.concatenate([jnp.sum(acc, axis=0, keepdims=True),
                            jnp.sum(acc * acc, axis=0, keepdims=True)], axis=0)


# -------------------- pass A: conv1 + skip batch stats ----------------------
def _conv1_skipstats_kernel(x_ref, w1_ref, ws_ref, c1_ref, s1_ref, ss_ref,
                            reg_ref):
    _, H, W, Ci = x_ref.shape
    C = c1_ref.shape[3]
    x = x_ref[0]                                            # bf16 (H, W, Ci)

    _fill_tap_register(reg_ref, x)
    acc = _conv3x3(reg_ref, w1_ref, H, W, 3 * Ci)           # conv1, f32 acc

    sk = jnp.dot(x.reshape(H * W, Ci), ws_ref[...],         # 1x1 skip (stats only)
                 preferred_element_type=jnp.float32)

    s1_ref[0] = _channel_stats(acc)                         # f32 per-tile stats
    ss_ref[0] = _channel_stats(sk)
    c1_ref[0] = acc.reshape(H, W, C).astype(c1_ref.dtype)   # bf16 lane-dense store


# ----------------- pass B: folded BN1 + ReLU, then conv2 --------------------
def _bnrelu_conv2_kernel(c1_ref, sc1_ref, sh1_ref, w2_ref, c2_ref, s2_ref,
                         reg_ref):
    _, H, W, C = c1_ref.shape
    scale = sc1_ref[...].reshape(1, 1, C)
    shift = sh1_ref[...].reshape(1, 1, C)
    r = jnp.maximum(c1_ref[0].astype(jnp.float32) * scale + shift, 0.0)

    _fill_tap_register(reg_ref, r)                          # cast to bf16 inside
    acc = _conv3x3(reg_ref, w2_ref, H, W, 3 * C)            # conv2, f32 acc

    s2_ref[0] = _channel_stats(acc)
    c2_ref[0] = acc.reshape(H, W, C).astype(c2_ref.dtype)


# ---- pass C: folded BN2 + recomputed 1x1 skip + folded BN_skip + ReLU ------
def _bn_skip_add_relu_kernel(c2_ref, x_ref, ws_ref, sc2_ref, sh2_ref,
                             scs_ref, shs_ref, o_ref):
    _, TH, W, C = o_ref.shape
    Ci = x_ref.shape[3]
    sk = jnp.dot(x_ref[0].reshape(TH * W, Ci), ws_ref[...],
                 preferred_element_type=jnp.float32).reshape(TH, W, C)
    sc2 = sc2_ref[...].reshape(1, 1, C)
    sh2 = sh2_ref[...].reshape(1, 1, C)
    scs = scs_ref[...].reshape(1, 1, C)
    shs = shs_ref[...].reshape(1, 1, C)
    o_ref[0] = jnp.maximum(c2_ref[0].astype(jnp.float32) * sc2 + sh2 +
                           sk * scs + shs, 0.0)


def _fold_bn(stats, gamma, beta, count):
    """Reduce per-tile (sum, sum_sq) -> per-channel (scale, shift), f32."""
    s = jnp.sum(stats, axis=0)                              # (2, C)
    mean = s[0] / count
    var = jnp.maximum(s[1] / count - mean * mean, 0.0)      # biased, like PyTorch
    scale = gamma.reshape(-1) * lax.rsqrt(var + EPS)
    shift = beta.reshape(-1) - mean * scale
    return scale.reshape(1, -1), shift.reshape(1, -1)


def residual_forward(x_nchw, p):
    """x_nchw: (N, Cin, H, W) float32 -> (N, Cout, H, W) float32.

    TODO(synk): keep the surrounding model NHWC end-to-end to drop the two
    NCHW<->NHWC transposes; retained only for PyTorch API parity.
    """
    x = jnp.transpose(x_nchw, (0, 2, 3, 1))                 # NCHW -> NHWC
    N, H, W, Cin = x.shape
    Cout = p["w1"].shape[-1]
    C = _round_up(Cout, 128)                                # lane-dense out chans
    Ci = _round_up(Cin, 128)                                # lane-dense in chans
    pc, pci = C - Cout, Ci - Cin

    # bf16 MXU operands, pre-cast/padded once outside the grid.  Padded
    # channels stay exactly zero end-to-end (gamma/beta padded with 0 =>
    # scale = shift = 0 for padded channels).
    xb = jnp.pad(x.astype(jnp.bfloat16), ((0, 0), (0, 0), (0, 0), (0, pci)))
    w1r = jnp.pad(p["w1"], ((0, 0), (0, 0), (0, pci), (0, pc))) \
             .reshape(3, 3 * Ci, C).astype(jnp.bfloat16)
    w2r = jnp.pad(p["w2"], ((0, 0), (0, 0), (0, pc), (0, pc))) \
             .reshape(3, 3 * C, C).astype(jnp.bfloat16)
    wsr = jnp.pad(p["ws"], ((0, pci), (0, pc))).astype(jnp.bfloat16)
    g1, b1 = jnp.pad(p["g1"], ((0, 0), (0, pc))), jnp.pad(p["b1"], ((0, 0), (0, pc)))
    g2, b2 = jnp.pad(p["g2"], ((0, 0), (0, pc))), jnp.pad(p["b2"], ((0, 0), (0, pc)))
    gs, bs = jnp.pad(p["gs"], ((0, 0), (0, pc))), jnp.pad(p["bs"], ((0, 0), (0, pc)))

    vl = _vmem_limit_bytes()
    cp1 = pltpu.CompilerParams(dimension_semantics=("parallel",),
                               vmem_limit_bytes=vl)

    img = lambda ch: pl.BlockSpec((1, H, W, ch), lambda n: (n, 0, 0, 0))
    stat = pl.BlockSpec((1, 2, C), lambda n: (n, 0, 0))
    vec1 = pl.BlockSpec((1, C), lambda n: (0, 0))

    # ---- pass A: conv1 (3x3) + its BN stats + skip(1x1) BN stats ----
    c1, st1, sts = pl.pallas_call(
        _conv1_skipstats_kernel,
        grid=(N,),
        in_specs=[img(Ci),
                  pl.BlockSpec((3, 3 * Ci, C), lambda n: (0, 0, 0)),
                  pl.BlockSpec((Ci, C), lambda n: (0, 0))],
        out_specs=(img(C), stat, stat),
        out_shape=(jax.ShapeDtypeStruct((N, H, W, C), jnp.bfloat16),
                   jax.ShapeDtypeStruct((N, 2, C), jnp.float32),
                   jax.ShapeDtypeStruct((N, 2, C), jnp.float32)),
        scratch_shapes=[pltpu.VMEM((H + 2, W, 3 * Ci), jnp.bfloat16)],
        compiler_params=cp1,
    )(xb, w1r, wsr)

    cnt = N * H * W
    sc1, sh1 = _fold_bn(st1, g1, b1, cnt)
    scs_, shs_ = _fold_bn(sts, gs, bs, cnt)

    # ---- pass B: folded BN1 + ReLU, conv2 (3x3) + its BN stats ----
    c2, st2 = pl.pallas_call(
        _bnrelu_conv2_kernel,
        grid=(N,),
        in_specs=[img(C), vec1, vec1,
                  pl.BlockSpec((3, 3 * C, C), lambda n: (0, 0, 0))],
        out_specs=(img(C), stat),
        out_shape=(jax.ShapeDtypeStruct((N, H, W, C), jnp.bfloat16),
                   jax.ShapeDtypeStruct((N, 2, C), jnp.float32)),
        scratch_shapes=[pltpu.VMEM((H + 2, W, 3 * C), jnp.bfloat16)],
        compiler_params=cp1,
    )(c1, sc1, sh1, w2r)

    sc2, sh2 = _fold_bn(st2, g2, b2, cnt)

    # ---- pass C: folded BN2 + recomputed 1x1 skip + folded BN_skip + ReLU ----
    TH = _row_tile(H)
    rowspec = lambda ch: pl.BlockSpec((1, TH, W, ch), lambda n, r: (n, r, 0, 0))
    vec2 = pl.BlockSpec((1, C), lambda n, r: (0, 0))
    out_p = pl.pallas_call(
        _bn_skip_add_relu_kernel,
        grid=(N, H // TH),
        in_specs=[rowspec(C), rowspec(Ci),
                  pl.BlockSpec((Ci, C), lambda n, r: (0, 0)),
                  vec2, vec2, vec2, vec2],
        out_specs=rowspec(C),
        out_shape=jax.ShapeDtypeStruct((N, H, W, C), jnp.float32),
        compiler_params=pltpu.CompilerParams(
            dimension_semantics=("parallel", "parallel"),
            vmem_limit_bytes=vl),
    )(c2, xb, wsr, sc2, sh2, scs_, shs_)

    # drop channel padding and go back to NCHW (single fused XLA copy)
    return jnp.transpose(out_p[..., :Cout], (0, 3, 1, 2))


# ---------------- pure-JAX f32 reference (for correctness check) ------------
def _bn_train(x, g, b):
    mu = jnp.mean(x, axis=(0, 1, 2), keepdims=True)
    var = jnp.mean((x - mu) ** 2, axis=(0, 1, 2), keepdims=True)
    return (x - mu) * lax.rsqrt(var + EPS) * g.reshape(1, 1, 1, -1) + b.reshape(1, 1, 1, -1)


def residual_reference(x_nchw, p):
    x = jnp.transpose(x_nchw, (0, 2, 3, 1))
    dn = ("NHWC", "HWIO", "NHWC")
    c1 = lax.conv_general_dilated(x, p["w1"], (1, 1), "SAME", dimension_numbers=dn)
    r1 = jnp.maximum(_bn_train(c1, p["g1"], p["b1"]), 0.0)
    c2 = lax.conv_general_dilated(r1, p["w2"], (1, 1), "SAME", dimension_numbers=dn)
    b2 = _bn_train(c2, p["g2"], p["b2"])
    Cin, Cout = p["ws"].shape
    cs = lax.conv_general_dilated(x, p["ws"].reshape(1, 1, Cin, Cout), (1, 1),
                                  "SAME", dimension_numbers=dn)
    sk = _bn_train(cs, p["gs"], p["bs"])
    return jnp.transpose(jnp.maximum(b2 + sk, 0.0), (0, 3, 1, 2))


if __name__ == "__main__":
    N, Cin, Cout, H, W = 2, 4, 8, 16, 16

    key = jax.random.PRNGKey(0)
    k = jax.random.split(key, 9)
    params = {
        # conv weights stored in HWIO (kernel-friendly); BN params as (1, C)
        "w1": 0.1 * jax.random.normal(k[0], (3, 3, Cin, Cout), jnp.float32),
        "w2": 0.1 * jax.random.normal(k[1], (3, 3, Cout, Cout), jnp.float32),
        "ws": 0.1 * jax.random.normal(k[2], (Cin, Cout), jnp.float32),
        "g1": 1.0 + 0.1 * jax.random.normal(k[3], (1, Cout), jnp.float32),
        "b1": 0.1 * jax.random.normal(k[4], (1, Cout), jnp.float32),
        "g2": 1.0 + 0.1 * jax.random.normal(k[5], (1, Cout), jnp.float32),
        "b2": 0.1 * jax.random.normal(k[6], (1, Cout), jnp.float32),
        "gs": 1.0 + 0.1 * jax.random.normal(k[7], (1, Cout), jnp.float32),
        "bs": 0.1 * jax.random.normal(k[8], (1, Cout), jnp.float32),
    }

    x = jax.random.normal(jax.random.PRNGKey(42), (N, Cin, H, W), jnp.float32)

    out = jax.block_until_ready(jax.jit(residual_forward)(x, params))
    ref = jax.block_until_ready(residual_reference(x, params))

    assert out.shape == (N, Cout, H, W)
    # bf16 MXU operands + bf16 inter-pass intermediates (per perf review), so
    # the check against the pure-f32 XLA reference uses a bf16-scale tolerance
    # (semantic/structural bugs would show errors orders of magnitude larger).
    err = float(jnp.max(jnp.abs(out - ref)))
    assert jnp.allclose(out, ref, rtol=5e-2, atol=1e-1), f"max abs err = {err}"

    print("KERNEL_OK")
</pallas_src>

<mosaic_0001>
module attributes {stable_mosaic.version = 11 : i64} {
  func.func @_conv1_skipstats_kernel(%arg0: i32, %arg1: memref<1x16x16x128xbf16, #tpu.memory_space<vmem>>, %arg2: memref<3x384x128xbf16, #tpu.memory_space<vmem>>, %arg3: memref<128x128xbf16, #tpu.memory_space<vmem>>, %arg4: memref<1x16x16x128xbf16, #tpu.memory_space<vmem>>, %arg5: memref<1x2x128xf32, #tpu.memory_space<vmem>>, %arg6: memref<1x2x128xf32, #tpu.memory_space<vmem>>, %arg7: memref<18x16x384xbf16, #tpu.memory_space<vmem>>) attributes {dimension_semantics = [#tpu.dimension_semantics<parallel>], iteration_bounds = array<i64: 2>, scalar_prefetch = 0 : i64, scratch_operands = 1 : i64, tpu.core_type = #tpu.core_type<tc>, window_params = [{transform_indices = @transform_0, window_bounds = array<i64: 1, 16, 16, 128>}, {pipeline_mode = #tpu.pipeline_mode<synchronous>, transform_indices = @transform_1, window_bounds = array<i64: 3, 384, 128>}, {pipeline_mode = #tpu.pipeline_mode<synchronous>, transform_indices = @transform_2, window_bounds = array<i64: 128, 128>}, {transform_indices = @transform_3, window_bounds = array<i64: 1, 16, 16, 128>}, {transform_indices = @transform_4, window_bounds = array<i64: 1, 2, 128>}, {transform_indices = @transform_5, window_bounds = array<i64: 1, 2, 128>}]} {
    %c0 = arith.constant 0 : index
    %c0_0 = arith.constant 0 : index
    %c0_1 = arith.constant 0 : index
    %c0_2 = arith.constant 0 : index
    %0 = vector.load %arg1[%c0, %c0_0, %c0_1, %c0_2] : memref<1x16x16x128xbf16, #tpu.memory_space<vmem>>, vector<1x16x16x128xbf16>
    %1 = vector.shape_cast %0 : vector<1x16x16x128xbf16> to vector<16x16x128xbf16>
    %cst = arith.constant 0.000000e+00 : bf16
    %2 = vector.broadcast %cst : bf16 to vector<1x16x384xbf16>
    %cst_3 = arith.constant 0.000000e+00 : bf16
    %3 = vector.broadcast %cst_3 : bf16 to vector<16x1x128xbf16>
    %c0_4 = arith.constant 0 : index
    %c0_5 = arith.constant 0 : index
    %c0_6 = arith.constant 0 : index
    %4 = vector.load %arg7[%c0_4, %c0_5, %c0_6] : memref<18x16x384xbf16, #tpu.memory_space<vmem>>, vector<1x16x384xbf16>
    tpu.vector_store %arg7[%c0_4, %c0_5, %c0_6], %2 {strides = array<i32>} : memref<18x16x384xbf16, #tpu.memory_space<vmem>>, vector<1x16x384xbf16>,
    %c17 = arith.constant 17 : index
    %c0_7 = arith.constant 0 : index
    %c0_8 = arith.constant 0 : index
    %5 = vector.load %arg7[%c17, %c0_7, %c0_8] : memref<18x16x384xbf16, #tpu.memory_space<vmem>>, vector<1x16x384xbf16>
    tpu.vector_store %arg7[%c17, %c0_7, %c0_8], %2 {strides = array<i32>} : memref<18x16x384xbf16, #tpu.memory_space<vmem>>, vector<1x16x384xbf16>,
    %c1 = arith.constant 1 : index
    %c0_9 = arith.constant 0 : index
    %c0_10 = arith.constant 0 : index
    %6 = vector.load %arg7[%c1, %c0_9, %c0_10] : memref<18x16x384xbf16, #tpu.memory_space<vmem>>, vector<16x1x128xbf16>
    tpu.vector_store %arg7[%c1, %c0_9, %c0_10], %3 {strides = array<i32>} : memref<18x16x384xbf16, #tpu.memory_space<vmem>>, vector<16x1x128xbf16>,
    %7 = vector.extract_strided_slice %1 {offsets = [0, 0, 0], sizes = [16, 15, 128], strides = [1, 1, 1]} : vector<16x16x128xbf16> to vector<16x15x128xbf16>
    %c1_11 = arith.constant 1 : index
    %c1_12 = arith.constant 1 : index
    %c0_13 = arith.constant 0 : index
    %8 = vector.load %arg7[%c1_11, %c1_12, %c0_13] : memref<18x16x384xbf16, #tpu.memory_space<vmem>>, vector<16x15x128xbf16>
    tpu.vector_store %arg7[%c1_11, %c1_12, %c0_13], %7 {strides = array<i32>} : memref<18x16x384xbf16, #tpu.memory_space<vmem>>, vector<16x15x128xbf16>,
    %c1_14 = arith.constant 1 : index
    %c0_15 = arith.constant 0 : index
    %c128 = arith.constant 128 : index
    %9 = vector.load %arg7[%c1_14, %c0_15, %c128] : memref<18x16x384xbf16, #tpu.memory_space<vmem>>, vector<16x16x128xbf16>
    tpu.vector_store %arg7[%c1_14, %c0_15, %c128], %1 {strides = array<i32>} : memref<18x16x384xbf16, #tpu.memory_space<vmem>>, vector<16x16x128xbf16>,
    %10 = vector.extract_strided_slice %1 {offsets = [0, 1, 0], sizes = [16, 15, 128], strides = [1, 1, 1]} : vector<16x16x128xbf16> to vector<16x15x128xbf16>
    %c1_16 = arith.constant 1 : index
    %c0_17 = arith.constant 0 : index
    %c256 = arith.constant 256 : index
    %11 = vector.load %arg7[%c1_16, %c0_17, %c256] : memref<18x16x384xbf16, #tpu.memory_space<vmem>>, vector<16x15x128xbf16>
    tpu.vector_store %arg7[%c1_16, %c0_17, %c256], %10 {strides = array<i32>} : memref<18x16x384xbf16, #tpu.memory_space<vmem>>, vector<16x15x128xbf16>,
    %c1_18 = arith.constant 1 : index
    %c15 = arith.constant 15 : index
    %c256_19 = arith.constant 256 : index
    %12 = vector.load %arg7[%c1_18, %c15, %c256_19] : memref<18x16x384xbf16, #tpu.memory_space<vmem>>, vector<16x1x128xbf16>
    tpu.vector_store %arg7[%c1_18, %c15, %c256_19], %3 {strides = array<i32>} : memref<18x16x384xbf16, #tpu.memory_space<vmem>>, vector<16x1x128xbf16>,
    %c0_20 = arith.constant 0 : index
    %c0_21 = arith.constant 0 : index
    %c0_22 = arith.constant 0 : index
    %13 = vector.load %arg7[%c0_20, %c0_21, %c0_22] : memref<18x16x384xbf16, #tpu.memory_space<vmem>>, vector<16x16x384xbf16>
    %14 = vector.shape_cast %13 : vector<16x16x384xbf16> to vector<256x384xbf16>
    %c0_23 = arith.constant 0 : index
    %c0_24 = arith.constant 0 : index
    %c0_25 = arith.constant 0 : index
    %15 = vector.load %arg2[%c0_23, %c0_24, %c0_25] : memref<3x384x128xbf16, #tpu.memory_space<vmem>>, vector<1x384x128xbf16>
    %16 = vector.shape_cast %15 : vector<1x384x128xbf16> to vector<384x128xbf16>
    %cst_26 = arith.constant dense<0.000000e+00> : vector<256x128xf32>
    %17 = tpu.matmul %14, %16, %cst_26 {dimension_numbers = #tpu.dot_dimension_numbers<[1], [0], [0], [1], [0, 0, 1, 1], [], []>} : vector<256x384xbf16>, vector<384x128xbf16>, vector<256x128xf32> -> vector<256x128xf32>
    %c1_27 = arith.constant 1 : index
    %c0_28 = arith.constant 0 : index
    %c0_29 = arith.constant 0 : index
    %18 = vector.load %arg7[%c1_27, %c0_28, %c0_29] : memref<18x16x384xbf16, #tpu.memory_space<vmem>>, vector<16x16x384xbf16>
    %19 = vector.shape_cast %18 : vector<16x16x384xbf16> to vector<256x384xbf16>
    %c1_30 = arith.constant 1 : index
    %c0_31 = arith.constant 0 : index
    %c0_32 = arith.constant 0 : index
    %20 = vector.load %arg2[%c1_30, %c0_31, %c0_32] : memref<3x384x128xbf16, #tpu.memory_space<vmem>>, vector<1x384x128xbf16>
    %21 = vector.shape_cast %20 : vector<1x384x128xbf16> to vector<384x128xbf16>
    %cst_33 = arith.constant dense<0.000000e+00> : vector<256x128xf32>
    %22 = tpu.matmul %19, %21, %cst_33 {dimension_numbers = #tpu.dot_dimension_numbers<[1], [0], [0], [1], [0, 0, 1, 1], [], []>} : vector<256x384xbf16>, vector<384x128xbf16>, vector<256x128xf32> -> vector<256x128xf32>
    %23 = arith.addf %17, %22 : vector<256x128xf32>
    %c2 = arith.constant 2 : index
    %c0_34 = arith.constant 0 : index
    %c0_35 = arith.constant 0 : index
    %24 = vector.load %arg7[%c2, %c0_34, %c0_35] : memref<18x16x384xbf16, #tpu.memory_space<vmem>>, vector<16x16x384xbf16>
    %25 = vector.shape_cast %24 : vector<16x16x384xbf16> to vector<256x384xbf16>
    %c2_36 = arith.constant 2 : index
    %c0_37 = arith.constant 0 : index
    %c0_38 = arith.constant 0 : index
    %26 = vector.load %arg2[%c2_36, %c0_37, %c0_38] : memref<3x384x128xbf16, #tpu.memory_space<vmem>>, vector<1x384x128xbf16>
    %27 = vector.shape_cast %26 : vector<1x384x128xbf16> to vector<384x128xbf16>
    %cst_39 = arith.constant dense<0.000000e+00> : vector<256x128xf32>
    %28 = tpu.matmul %25, %27, %cst_39 {dimension_numbers = #tpu.dot_dimension_numbers<[1], [0], [0], [1], [0, 0, 1, 1], [], []>} : vector<256x384xbf16>, vector<384x128xbf16>, vector<256x128xf32> -> vector<256x128xf32>
    %29 = arith.addf %23, %28 : vector<256x128xf32>
    %30 = vector.shape_cast %1 : vector<16x16x128xbf16> to vector<256x128xbf16>
    %c0_40 = arith.constant 0 : index
    %c0_41 = arith.constant 0 : index
    %31 = vector.load %arg3[%c0_40, %c0_41] : memref<128x128xbf16, #tpu.memory_space<vmem>>, vector<128x128xbf16>
    %cst_42 = arith.constant dense<0.000000e+00> : vector<256x128xf32>
    %32 = tpu.matmul %30, %31, %cst_42 {dimension_numbers = #tpu.dot_dimension_numbers<[1], [0], [0], [1], [0, 0, 1, 1], [], []>} : vector<256x128xbf16>, vector<128x128xbf16>, vector<256x128xf32> -> vector<256x128xf32>
    %cst_43 = arith.constant dense<0.000000e+00> : vector<128xf32>
    %33 = vector.multi_reduction <add>, %29, %cst_43 [0] : vector<256x128xf32> to vector<128xf32>
    %34 = vector.shape_cast %33 : vector<128xf32> to vector<1x128xf32>
    %35 = arith.mulf %29, %29 : vector<256x128xf32>
    %cst_44 = arith.constant dense<0.000000e+00> : vector<128xf32>
    %36 = vector.multi_reduction <add>, %35, %cst_44 [0] : vector<256x128xf32> to vector<128xf32>
    %37 = vector.shape_cast %36 : vector<128xf32> to vector<1x128xf32>
    %38 = tpu.concatenate %34, %37 in 0 : vector<1x128xf32>, vector<1x128xf32> -> vector<2x128xf32>
    %c0_45 = arith.constant 0 : index
    %c0_46 = arith.constant 0 : index
    %c0_47 = arith.constant 0 : index
    %39 = vector.load %arg5[%c0_45, %c0_46, %c0_47] : memref<1x2x128xf32, #tpu.memory_space<vmem>>, vector<1x2x128xf32>
    %40 = vector.shape_cast %39 : vector<1x2x128xf32> to vector<2x128xf32>
    %41 = vector.shape_cast %38 : vector<2x128xf32> to vector<1x2x128xf32>
    tpu.vector_store %arg5[%c0_45, %c0_46, %c0_47], %41 {strides = array<i32>} : memref<1x2x128xf32, #tpu.memory_space<vmem>>, vector<1x2x128xf32>,
    %cst_48 = arith.constant dense<0.000000e+00> : vector<128xf32>
    %42 = vector.multi_reduction <add>, %32, %cst_48 [0] : vector<256x128xf32> to vector<128xf32>
    %43 = vector.shape_cast %42 : vector<128xf32> to vector<1x128xf32>
    %44 = arith.mulf %32, %32 : vector<256x128xf32>
    %cst_49 = arith.constant dense<0.000000e+00> : vector<128xf32>
    %45 = vector.multi_reduction <add>, %44, %cst_49 [0] : vector<256x128xf32> to vector<128xf32>
    %46 = vector.shape_cast %45 : vector<128xf32> to vector<1x128xf32>
    %47 = tpu.concatenate %43, %46 in 0 : vector<1x128xf32>, vector<1x128xf32> -> vector<2x128xf32>
    %c0_50 = arith.constant 0 : index
    %c0_51 = arith.constant 0 : index
    %c0_52 = arith.constant 0 : index
    %48 = vector.load %arg6[%c0_50, %c0_51, %c0_52] : memref<1x2x128xf32, #tpu.memory_space<vmem>>, vector<1x2x128xf32>
    %49 = vector.shape_cast %48 : vector<1x2x128xf32> to vector<2x128xf32>
    %50 = vector.shape_cast %47 : vector<2x128xf32> to vector<1x2x128xf32>
    tpu.vector_store %arg6[%c0_50, %c0_51, %c0_52], %50 {strides = array<i32>} : memref<1x2x128xf32, #tpu.memory_space<vmem>>, vector<1x2x128xf32>,
    %51 = vector.shape_cast %29 : vector<256x128xf32> to vector<16x16x128xf32>
    %52 = arith.truncf %51 : vector<16x16x128xf32> to vector<16x16x128xbf16>
    %c0_53 = arith.constant 0 : index
    %c0_54 = arith.constant 0 : index
    %c0_55 = arith.constant 0 : index
    %c0_56 = arith.constant 0 : index
    %53 = vector.load %arg4[%c0_53, %c0_54, %c0_55, %c0_56] : memref<1x16x16x128xbf16, #tpu.memory_space<vmem>>, vector<1x16x16x128xbf16>
    %54 = vector.shape_cast %53 : vector<1x16x16x128xbf16> to vector<16x16x128xbf16>
    %55 = vector.shape_cast %52 : vector<16x16x128xbf16> to vector<1x16x16x128xbf16>
    tpu.vector_store %arg4[%c0_53, %c0_54, %c0_55, %c0_56], %55 {strides = array<i32>} : memref<1x16x16x128xbf16, #tpu.memory_space<vmem>>, vector<1x16x16x128xbf16>,
    return
  }
  func.func @transform_0(%arg0: i32) -> (i32, i32, i32, i32) {
    %c0_i32 = arith.constant 0 : i32
    %c0_i32_0 = arith.constant 0 : i32
    %c0_i32_1 = arith.constant 0 : i32
    %c0_i32_2 = arith.constant 0 : i32
    return %arg0, %c0_i32, %c0_i32_0, %c0_i32_1 : i32, i32, i32, i32
  }
  func.func @transform_1(%arg0: i32) -> (i32, i32, i32) {
    %c0_i32 = arith.constant 0 : i32
    %c0_i32_0 = arith.constant 0 : i32
    %c0_i32_1 = arith.constant 0 : i32
    %c0_i32_2 = arith.constant 0 : i32
    return %c0_i32, %c0_i32_0, %c0_i32_1 : i32, i32, i32
  }
  func.func @transform_2(%arg0: i32) -> (i32, i32) {
    %c0_i32 = arith.constant 0 : i32
    %c0_i32_0 = arith.constant 0 : i32
    %c0_i32_1 = arith.constant 0 : i32
    return %c0_i32, %c0_i32_0 : i32, i32
  }
  func.func @transform_3(%arg0: i32) -> (i32, i32, i32, i32) {
    %c0_i32 = arith.constant 0 : i32
    %c0_i32_0 = arith.constant 0 : i32
    %c0_i32_1 = arith.constant 0 : i32
    %c0_i32_2 = arith.constant 0 : i32
    return %arg0, %c0_i32, %c0_i32_0, %c0_i32_1 : i32, i32, i32, i32
  }
  func.func @transform_4(%arg0: i32) -> (i32, i32, i32) {
    %c0_i32 = arith.constant 0 : i32
    %c0_i32_0 = arith.constant 0 : i32
    %c0_i32_1 = arith.constant 0 : i32
    return %arg0, %c0_i32, %c0_i32_0 : i32, i32, i32
  }
  func.func @transform_5(%arg0: i32) -> (i32, i32, i32) {
    %c0_i32 = arith.constant 0 : i32
    %c0_i32_0 = arith.constant 0 : i32
    %c0_i32_1 = arith.constant 0 : i32
    return %arg0, %c0_i32, %c0_i32_0 : i32, i32, i32
  }
}

module attributes {stable_mosaic.version = 11 : i64} {
  func.func @_bnrelu_conv2_kernel(%arg0: i32, %arg1: memref<1x16x16x128xbf16, #tpu.memory_space<vmem>>, %arg2: memref<1x128xf32, #tpu.memory_space<vmem>>, %arg3: memref<1x128xf32, #tpu.memory_space<vmem>>, %arg4: memref<3x384x128xbf16, #tpu.memory_space<vmem>>, %arg5: memref<1x16x16x128xbf16, #tpu.memory_space<vmem>>, %arg6: memref<1x2x128xf32, #tpu.memory_space<vmem>>, %arg7: memref<18x16x384xbf16, #tpu.memory_space<vmem>>) attributes {dimension_semantics = [#tpu.dimension_semantics<parallel>], iteration_bounds = array<i64: 2>, scalar_prefetch = 0 : i64, scratch_operands = 1 : i64, tpu.core_type = #tpu.core_type<tc>, window_params = [{transform_indices = @transform_0, window_bounds = array<i64: 1, 16, 16, 128>}, {pipeline_mode = #tpu.pipeline_mode<synchronous>, transform_indices = @transform_1, window_bounds = array<i64: 1, 128>}, {pipeline_mode = #tpu.pipeline_mode<synchronous>, transform_indices = @transform_2, window_bounds = array<i64: 1, 128>}, {pipeline_mode = #tpu.pipeline_mode<synchronous>, transform_indices = @transform_3, window_bounds = array<i64: 3, 384, 128>}, {transform_indices = @transform_4, window_bounds = array<i64: 1, 16, 16, 128>}, {transform_indices = @transform_5, window_bounds = array<i64: 1, 2, 128>}]} {
    %c0 = arith.constant 0 : index
    %c0_0 = arith.constant 0 : index
    %0 = vector.load %arg2[%c0, %c0_0] : memref<1x128xf32, #tpu.memory_space<vmem>>, vector<1x128xf32>
    %1 = vector.shape_cast %0 : vector<1x128xf32> to vector<1x1x128xf32>
    %c0_1 = arith.constant 0 : index
    %c0_2 = arith.constant 0 : index
    %2 = vector.load %arg3[%c0_1, %c0_2] : memref<1x128xf32, #tpu.memory_space<vmem>>, vector<1x128xf32>
    %3 = vector.shape_cast %2 : vector<1x128xf32> to vector<1x1x128xf32>
    %c0_3 = arith.constant 0 : index
    %c0_4 = arith.constant 0 : index
    %c0_5 = arith.constant 0 : index
    %c0_6 = arith.constant 0 : index
    %4 = vector.load %arg1[%c0_3, %c0_4, %c0_5, %c0_6] : memref<1x16x16x128xbf16, #tpu.memory_space<vmem>>, vector<1x16x16x128xbf16>
    %5 = vector.shape_cast %4 : vector<1x16x16x128xbf16> to vector<16x16x128xbf16>
    %6 = arith.extf %5 : vector<16x16x128xbf16> to vector<16x16x128xf32>
    %7 = vector.broadcast %1 : vector<1x1x128xf32> to vector<16x16x128xf32>
    %8 = arith.mulf %6, %7 : vector<16x16x128xf32>
    %9 = vector.broadcast %3 : vector<1x1x128xf32> to vector<16x16x128xf32>
    %10 = arith.addf %8, %9 : vector<16x16x128xf32>
    %cst = arith.constant 0.000000e+00 : f32
    %11 = vector.broadcast %cst : f32 to vector<16x16x128xf32>
    %12 = arith.maximumf %10, %11 : vector<16x16x128xf32>
    %13 = arith.truncf %12 : vector<16x16x128xf32> to vector<16x16x128xbf16>
    %cst_7 = arith.constant 0.000000e+00 : bf16
    %14 = vector.broadcast %cst_7 : bf16 to vector<1x16x384xbf16>
    %cst_8 = arith.constant 0.000000e+00 : bf16
    %15 = vector.broadcast %cst_8 : bf16 to vector<16x1x128xbf16>
    %c0_9 = arith.constant 0 : index
    %c0_10 = arith.constant 0 : index
    %c0_11 = arith.constant 0 : index
    %16 = vector.load %arg7[%c0_9, %c0_10, %c0_11] : memref<18x16x384xbf16, #tpu.memory_space<vmem>>, vector<1x16x384xbf16>
    tpu.vector_store %arg7[%c0_9, %c0_10, %c0_11], %14 {strides = array<i32>} : memref<18x16x384xbf16, #tpu.memory_space<vmem>>, vector<1x16x384xbf16>,
    %c17 = arith.constant 17 : index
    %c0_12 = arith.constant 0 : index
    %c0_13 = arith.constant 0 : index
    %17 = vector.load %arg7[%c17, %c0_12, %c0_13] : memref<18x16x384xbf16, #tpu.memory_space<vmem>>, vector<1x16x384xbf16>
    tpu.vector_store %arg7[%c17, %c0_12, %c0_13], %14 {strides = array<i32>} : memref<18x16x384xbf16, #tpu.memory_space<vmem>>, vector<1x16x384xbf16>,
    %c1 = arith.constant 1 : index
    %c0_14 = arith.constant 0 : index
    %c0_15 = arith.constant 0 : index
    %18 = vector.load %arg7[%c1, %c0_14, %c0_15] : memref<18x16x384xbf16, #tpu.memory_space<vmem>>, vector<16x1x128xbf16>
    tpu.vector_store %arg7[%c1, %c0_14, %c0_15], %15 {strides = array<i32>} : memref<18x16x384xbf16, #tpu.memory_space<vmem>>, vector<16x1x128xbf16>,
    %19 = vector.extract_strided_slice %13 {offsets = [0, 0, 0], sizes = [16, 15, 128], strides = [1, 1, 1]} : vector<16x16x128xbf16> to vector<16x15x128xbf16>
    %c1_16 = arith.constant 1 : index
    %c1_17 = arith.constant 1 : index
    %c0_18 = arith.constant 0 : index
    %20 = vector.load %arg7[%c1_16, %c1_17, %c0_18] : memref<18x16x384xbf16, #tpu.memory_space<vmem>>, vector<16x15x128xbf16>
    tpu.vector_store %arg7[%c1_16, %c1_17, %c0_18], %19 {strides = array<i32>} : memref<18x16x384xbf16, #tpu.memory_space<vmem>>, vector<16x15x128xbf16>,
    %c1_19 = arith.constant 1 : index
    %c0_20 = arith.constant 0 : index
    %c128 = arith.constant 128 : index
    %21 = vector.load %arg7[%c1_19, %c0_20, %c128] : memref<18x16x384xbf16, #tpu.memory_space<vmem>>, vector<16x16x128xbf16>
    tpu.vector_store %arg7[%c1_19, %c0_20, %c128], %13 {strides = array<i32>} : memref<18x16x384xbf16, #tpu.memory_space<vmem>>, vector<16x16x128xbf16>,
    %22 = vector.extract_strided_slice %13 {offsets = [0, 1, 0], sizes = [16, 15, 128], strides = [1, 1, 1]} : vector<16x16x128xbf16> to vector<16x15x128xbf16>
    %c1_21 = arith.constant 1 : index
    %c0_22 = arith.constant 0 : index
    %c256 = arith.constant 256 : index
    %23 = vector.load %arg7[%c1_21, %c0_22, %c256] : memref<18x16x384xbf16, #tpu.memory_space<vmem>>, vector<16x15x128xbf16>
    tpu.vector_store %arg7[%c1_21, %c0_22, %c256], %22 {strides = array<i32>} : memref<18x16x384xbf16, #tpu.memory_space<vmem>>, vector<16x15x128xbf16>,
    %c1_23 = arith.constant 1 : index
    %c15 = arith.constant 15 : index
    %c256_24 = arith.constant 256 : index
    %24 = vector.load %arg7[%c1_23, %c15, %c256_24] : memref<18x16x384xbf16, #tpu.memory_space<vmem>>, vector<16x1x128xbf16>
    tpu.vector_store %arg7[%c1_23, %c15, %c256_24], %15 {strides = array<i32>} : memref<18x16x384xbf16, #tpu.memory_space<vmem>>, vector<16x1x128xbf16>,
    %c0_25 = arith.constant 0 : index
    %c0_26 = arith.constant 0 : index
    %c0_27 = arith.constant 0 : index
    %25 = vector.load %arg7[%c0_25, %c0_26, %c0_27] : memref<18x16x384xbf16, #tpu.memory_space<vmem>>, vector<16x16x384xbf16>
    %26 = vector.shape_cast %25 : vector<16x16x384xbf16> to vector<256x384xbf16>
    %c0_28 = arith.constant 0 : index
    %c0_29 = arith.constant 0 : index
    %c0_30 = arith.constant 0 : index
    %27 = vector.load %arg4[%c0_28, %c0_29, %c0_30] : memref<3x384x128xbf16, #tpu.memory_space<vmem>>, vector<1x384x128xbf16>
    %28 = vector.shape_cast %27 : vector<1x384x128xbf16> to vector<384x128xbf16>
    %cst_31 = arith.constant dense<0.000000e+00> : vector<256x128xf32>
    %29 = tpu.matmul %26, %28, %cst_31 {dimension_numbers = #tpu.dot_dimension_numbers<[1], [0], [0], [1], [0, 0, 1, 1], [], []>} : vector<256x384xbf16>, vector<384x128xbf16>, vector<256x128xf32> -> vector<256x128xf32>
    %c1_32 = arith.constant 1 : index
    %c0_33 = arith.constant 0 : index
    %c0_34 = arith.constant 0 : index
    %30 = vector.load %arg7[%c1_32, %c0_33, %c0_34] : memref<18x16x384xbf16, #tpu.memory_space<vmem>>, vector<16x16x384xbf16>
    %31 = vector.shape_cast %30 : vector<16x16x384xbf16> to vector<256x384xbf16>
    %c1_35 = arith.constant 1 : index
    %c0_36 = arith.constant 0 : index
    %c0_37 = arith.constant 0 : index
    %32 = vector.load %arg4[%c1_35, %c0_36, %c0_37] : memref<3x384x128xbf16, #tpu.memory_space<vmem>>, vector<1x384x128xbf16>
    %33 = vector.shape_cast %32 : vector<1x384x128xbf16> to vector<384x128xbf16>
    %cst_38 = arith.constant dense<0.000000e+00> : vector<256x128xf32>
    %34 = tpu.matmul %31, %33, %cst_38 {dimension_numbers = #tpu.dot_dimension_numbers<[1], [0], [0], [1], [0, 0, 1, 1], [], []>} : vector<256x384xbf16>, vector<384x128xbf16>, vector<256x128xf32> -> vector<256x128xf32>
    %35 = arith.addf %29, %34 : vector<256x128xf32>
    %c2 = arith.constant 2 : index
    %c0_39 = arith.constant 0 : index
    %c0_40 = arith.constant 0 : index
    %36 = vector.load %arg7[%c2, %c0_39, %c0_40] : memref<18x16x384xbf16, #tpu.memory_space<vmem>>, vector<16x16x384xbf16>
    %37 = vector.shape_cast %36 : vector<16x16x384xbf16> to vector<256x384xbf16>
    %c2_41 = arith.constant 2 : index
    %c0_42 = arith.constant 0 : index
    %c0_43 = arith.constant 0 : index
    %38 = vector.load %arg4[%c2_41, %c0_42, %c0_43] : memref<3x384x128xbf16, #tpu.memory_space<vmem>>, vector<1x384x128xbf16>
    %39 = vector.shape_cast %38 : vector<1x384x128xbf16> to vector<384x128xbf16>
    %cst_44 = arith.constant dense<0.000000e+00> : vector<256x128xf32>
    %40 = tpu.matmul %37, %39, %cst_44 {dimension_numbers = #tpu.dot_dimension_numbers<[1], [0], [0], [1], [0, 0, 1, 1], [], []>} : vector<256x384xbf16>, vector<384x128xbf16>, vector<256x128xf32> -> vector<256x128xf32>
    %41 = arith.addf %35, %40 : vector<256x128xf32>
    %cst_45 = arith.constant dense<0.000000e+00> : vector<128xf32>
    %42 = vector.multi_reduction <add>, %41, %cst_45 [0] : vector<256x128xf32> to vector<128xf32>
    %43 = vector.shape_cast %42 : vector<128xf32> to vector<1x128xf32>
    %44 = arith.mulf %41, %41 : vector<256x128xf32>
    %cst_46 = arith.constant dense<0.000000e+00> : vector<128xf32>
    %45 = vector.multi_reduction <add>, %44, %cst_46 [0] : vector<256x128xf32> to vector<128xf32>
    %46 = vector.shape_cast %45 : vector<128xf32> to vector<1x128xf32>
    %47 = tpu.concatenate %43, %46 in 0 : vector<1x128xf32>, vector<1x128xf32> -> vector<2x128xf32>
    %c0_47 = arith.constant 0 : index
    %c0_48 = arith.constant 0 : index
    %c0_49 = arith.constant 0 : index
    %48 = vector.load %arg6[%c0_47, %c0_48, %c0_49] : memref<1x2x128xf32, #tpu.memory_space<vmem>>, vector<1x2x128xf32>
    %49 = vector.shape_cast %48 : vector<1x2x128xf32> to vector<2x128xf32>
    %50 = vector.shape_cast %47 : vector<2x128xf32> to vector<1x2x128xf32>
    tpu.vector_store %arg6[%c0_47, %c0_48, %c0_49], %50 {strides = array<i32>} : memref<1x2x128xf32, #tpu.memory_space<vmem>>, vector<1x2x128xf32>,
    %51 = vector.shape_cast %41 : vector<256x128xf32> to vector<16x16x128xf32>
    %52 = arith.truncf %51 : vector<16x16x128xf32> to vector<16x16x128xbf16>
    %c0_50 = arith.constant 0 : index
    %c0_51 = arith.constant 0 : index
    %c0_52 = arith.constant 0 : index
    %c0_53 = arith.constant 0 : index
    %53 = vector.load %arg5[%c0_50, %c0_51, %c0_52, %c0_53] : memref<1x16x16x128xbf16, #tpu.memory_space<vmem>>, vector<1x16x16x128xbf16>
    %54 = vector.shape_cast %53 : vector<1x16x16x128xbf16> to vector<16x16x128xbf16>
    %55 = vector.shape_cast %52 : vector<16x16x128xbf16> to vector<1x16x16x128xbf16>
    tpu.vector_store %arg5[%c0_50, %c0_51, %c0_52, %c0_53], %55 {strides = array<i32>} : memref<1x16x16x128xbf16, #tpu.memory_space<vmem>>, vector<1x16x16x128xbf16>,
    return
  }
  func.func @transform_0(%arg0: i32) -> (i32, i32, i32, i32) {
    %c0_i32 = arith.constant 0 : i32
    %c0_i32_0 = arith.constant 0 : i32
    %c0_i32_1 = arith.constant 0 : i32
    %c0_i32_2 = arith.constant 0 : i32
    return %arg0, %c0_i32, %c0_i32_0, %c0_i32_1 : i32, i32, i32, i32
  }
  func.func @transform_1(%arg0: i32) -> (i32, i32) {
    %c0_i32 = arith.constant 0 : i32
    %c0_i32_0 = arith.constant 0 : i32
    %c0_i32_1 = arith.constant 0 : i32
    return %c0_i32, %c0_i32_0 : i32, i32
  }
  func.func @transform_2(%arg0: i32) -> (i32, i32) {
    %c0_i32 = arith.constant 0 : i32
    %c0_i32_0 = arith.constant 0 : i32
    %c0_i32_1 = arith.constant 0 : i32
    return %c0_i32, %c0_i32_0 : i32, i32
  }
  func.func @transform_3(%arg0: i32) -> (i32, i32, i32) {
    %c0_i32 = arith.constant 0 : i32
    %c0_i32_0 = arith.constant 0 : i32
    %c0_i32_1 = arith.constant 0 : i32
    %c0_i32_2 = arith.constant 0 : i32
    return %c0_i32, %c0_i32_0, %c0_i32_1 : i32, i32, i32
  }
  func.func @transform_4(%arg0: i32) -> (i32, i32, i32, i32) {
    %c0_i32 = arith.constant 0 : i32
    %c0_i32_0 = arith.constant 0 : i32
    %c0_i32_1 = arith.constant 0 : i32
    %c0_i32_2 = arith.constant 0 : i32
    return %arg0, %c0_i32, %c0_i32_0, %c0_i32_1 : i32, i32, i32, i32
  }
  func.func @transform_5(%arg0: i32) -> (i32, i32, i32) {
    %c0_i32 = arith.constant 0 : i32
    %c0_i32_0 = arith.constant 0 : i32
    %c0_i32_1 = arith.constant 0 : i32
    return %arg0, %c0_i32, %c0_i32_0 : i32, i32, i32
  }
}

module attributes {stable_mosaic.version = 11 : i64} {
  func.func @_bn_skip_add_relu_kernel(%arg0: i32, %arg1: i32, %arg2: memref<1x8x16x128xbf16, #tpu.memory_space<vmem>>, %arg3: memref<1x8x16x128xbf16, #tpu.memory_space<vmem>>, %arg4: memref<128x128xbf16, #tpu.memory_space<vmem>>, %arg5: memref<1x128xf32, #tpu.memory_space<vmem>>, %arg6: memref<1x128xf32, #tpu.memory_space<vmem>>, %arg7: memref<1x128xf32, #tpu.memory_space<vmem>>, %arg8: memref<1x128xf32, #tpu.memory_space<vmem>>, %arg9: memref<1x8x16x128xf32, #tpu.memory_space<vmem>>) attributes {dimension_semantics = [#tpu.dimension_semantics<parallel>, #tpu.dimension_semantics<parallel>], iteration_bounds = array<i64: 2, 2>, scalar_prefetch = 0 : i64, scratch_operands = 0 : i64, tpu.core_type = #tpu.core_type<tc>, window_params = [{transform_indices = @transform_0, window_bounds = array<i64: 1, 8, 16, 128>}, {transform_indices = @transform_1, window_bounds = array<i64: 1, 8, 16, 128>}, {pipeline_mode = #tpu.pipeline_mode<synchronous>, transform_indices = @transform_2, window_bounds = array<i64: 128, 128>}, {pipeline_mode = #tpu.pipeline_mode<synchronous>, transform_indices = @transform_3, window_bounds = array<i64: 1, 128>}, {pipeline_mode = #tpu.pipeline_mode<synchronous>, transform_indices = @transform_4, window_bounds = array<i64: 1, 128>}, {pipeline_mode = #tpu.pipeline_mode<synchronous>, transform_indices = @transform_5, window_bounds = array<i64: 1, 128>}, {pipeline_mode = #tpu.pipeline_mode<synchronous>, transform_indices = @transform_6, window_bounds = array<i64: 1, 128>}, {transform_indices = @transform_7, window_bounds = array<i64: 1, 8, 16, 128>}]} {
    %c0 = arith.constant 0 : index
    %c0_0 = arith.constant 0 : index
    %c0_1 = arith.constant 0 : index
    %c0_2 = arith.constant 0 : index
    %0 = vector.load %arg3[%c0, %c0_0, %c0_1, %c0_2] : memref<1x8x16x128xbf16, #tpu.memory_space<vmem>>, vector<1x8x16x128xbf16>
    %1 = vector.shape_cast %0 : vector<1x8x16x128xbf16> to vector<8x16x128xbf16>
    %2 = vector.shape_cast %1 : vector<8x16x128xbf16> to vector<128x128xbf16>
    %c0_3 = arith.constant 0 : index
    %c0_4 = arith.constant 0 : index
    %3 = vector.load %arg4[%c0_3, %c0_4] : memref<128x128xbf16, #tpu.memory_space<vmem>>, vector<128x128xbf16>
    %cst = arith.constant dense<0.000000e+00> : vector<128x128xf32>
    %4 = tpu.matmul %2, %3, %cst {dimension_numbers = #tpu.dot_dimension_numbers<[1], [0], [0], [1], [0, 0, 1, 1], [], []>} : vector<128x128xbf16>, vector<128x128xbf16>, vector<128x128xf32> -> vector<128x128xf32>
    %5 = vector.shape_cast %4 : vector<128x128xf32> to vector<8x16x128xf32>
    %c0_5 = arith.constant 0 : index
    %c0_6 = arith.constant 0 : index
    %6 = vector.load %arg5[%c0_5, %c0_6] : memref<1x128xf32, #tpu.memory_space<vmem>>, vector<1x128xf32>
    %7 = vector.shape_cast %6 : vector<1x128xf32> to vector<1x1x128xf32>
    %c0_7 = arith.constant 0 : index
    %c0_8 = arith.constant 0 : index
    %8 = vector.load %arg6[%c0_7, %c0_8] : memref<1x128xf32, #tpu.memory_space<vmem>>, vector<1x128xf32>
    %9 = vector.shape_cast %8 : vector<1x128xf32> to vector<1x1x128xf32>
    %c0_9 = arith.constant 0 : index
    %c0_10 = arith.constant 0 : index
    %10 = vector.load %arg7[%c0_9, %c0_10] : memref<1x128xf32, #tpu.memory_space<vmem>>, vector<1x128xf32>
    %11 = vector.shape_cast %10 : vector<1x128xf32> to vector<1x1x128xf32>
    %c0_11 = arith.constant 0 : index
    %c0_12 = arith.constant 0 : index
    %12 = vector.load %arg8[%c0_11, %c0_12] : memref<1x128xf32, #tpu.memory_space<vmem>>, vector<1x128xf32>
    %13 = vector.shape_cast %12 : vector<1x128xf32> to vector<1x1x128xf32>
    %c0_13 = arith.constant 0 : index
    %c0_14 = arith.constant 0 : index
    %c0_15 = arith.constant 0 : index
    %c0_16 = arith.constant 0 : index
    %14 = vector.load %arg2[%c0_13, %c0_14, %c0_15, %c0_16] : memref<1x8x16x128xbf16, #tpu.memory_space<vmem>>, vector<1x8x16x128xbf16>
    %15 = vector.shape_cast %14 : vector<1x8x16x128xbf16> to vector<8x16x128xbf16>
    %16 = arith.extf %15 : vector<8x16x128xbf16> to vector<8x16x128xf32>
    %17 = vector.broadcast %7 : vector<1x1x128xf32> to vector<8x16x128xf32>
    %18 = arith.mulf %16, %17 : vector<8x16x128xf32>
    %19 = vector.broadcast %9 : vector<1x1x128xf32> to vector<8x16x128xf32>
    %20 = arith.addf %18, %19 : vector<8x16x128xf32>
    %21 = vector.broadcast %11 : vector<1x1x128xf32> to vector<8x16x128xf32>
    %22 = arith.mulf %5, %21 : vector<8x16x128xf32>
    %23 = arith.addf %20, %22 : vector<8x16x128xf32>
    %24 = vector.broadcast %13 : vector<1x1x128xf32> to vector<8x16x128xf32>
    %25 = arith.addf %23, %24 : vector<8x16x128xf32>
    %cst_17 = arith.constant 0.000000e+00 : f32
    %26 = vector.broadcast %cst_17 : f32 to vector<8x16x128xf32>
    %27 = arith.maximumf %25, %26 : vector<8x16x128xf32>
    %c0_18 = arith.constant 0 : index
    %c0_19 = arith.constant 0 : index
    %c0_20 = arith.constant 0 : index
    %c0_21 = arith.constant 0 : index
    %28 = vector.load %arg9[%c0_18, %c0_19, %c0_20, %c0_21] : memref<1x8x16x128xf32, #tpu.memory_space<vmem>>, vector<1x8x16x128xf32>
    %29 = vector.shape_cast %28 : vector<1x8x16x128xf32> to vector<8x16x128xf32>
    %30 = vector.shape_cast %27 : vector<8x16x128xf32> to vector<1x8x16x128xf32>
    tpu.vector_store %arg9[%c0_18, %c0_19, %c0_20, %c0_21], %30 {strides = array<i32>} : memref<1x8x16x128xf32, #tpu.memory_space<vmem>>, vector<1x8x16x128xf32>,
    return
  }
  func.func @transform_0(%arg0: i32, %arg1: i32) -> (i32, i32, i32, i32) {
    %c0_i32 = arith.constant 0 : i32
    %c0_i32_0 = arith.constant 0 : i32
    %c0_i32_1 = arith.constant 0 : i32
    return %arg0, %arg1, %c0_i32, %c0_i32_0 : i32, i32, i32, i32
  }
  func.func @transform_1(%arg0: i32, %arg1: i32) -> (i32, i32, i32, i32) {
    %c0_i32 = arith.constant 0 : i32
    %c0_i32_0 = arith.constant 0 : i32
    %c0_i32_1 = arith.constant 0 : i32
    return %arg0, %arg1, %c0_i32, %c0_i32_0 : i32, i32, i32, i32
  }
  func.func @transform_2(%arg0: i32, %arg1: i32) -> (i32, i32) {
    %c0_i32 = arith.constant 0 : i32
    %c0_i32_0 = arith.constant 0 : i32
    %c0_i32_1 = arith.constant 0 : i32
    return %c0_i32, %c0_i32_0 : i32, i32
  }
  func.func @transform_3(%arg0: i32, %arg1: i32) -> (i32, i32) {
    %c0_i32 = arith.constant 0 : i32
    %c0_i32_0 = arith.constant 0 : i32
    %c0_i32_1 = arith.constant 0 : i32
    return %c0_i32, %c0_i32_0 : i32, i32
  }
  func.func @transform_4(%arg0: i32, %arg1: i32) -> (i32, i32) {
    %c0_i32 = arith.constant 0 : i32
    %c0_i32_0 = arith.constant 0 : i32
    %c0_i32_1 = arith.constant 0 : i32
    return %c0_i32, %c0_i32_0 : i32, i32
  }
  func.func @transform_5(%arg0: i32, %arg1: i32) -> (i32, i32) {
    %c0_i32 = arith.constant 0 : i32
    %c0_i32_0 = arith.constant 0 : i32
    %c0_i32_1 = arith.constant 0 : i32
    return %c0_i32, %c0_i32_0 : i32, i32
  }
  func.func @transform_6(%arg0: i32, %arg1: i32) -> (i32, i32) {
    %c0_i32 = arith.constant 0 : i32
    %c0_i32_0 = arith.constant 0 : i32
    %c0_i32_1 = arith.constant 0 : i32
    return %c0_i32, %c0_i32_0 : i32, i32
  }
  func.func @transform_7(%arg0: i32, %arg1: i32) -> (i32, i32, i32, i32) {
    %c0_i32 = arith.constant 0 : i32
    %c0_i32_0 = arith.constant 0 : i32
    %c0_i32_1 = arith.constant 0 : i32
    return %arg0, %arg1, %c0_i32, %c0_i32_0 : i32, i32, i32, i32
  }
}

</mosaic_0001>

<bundles_post_ra>
// kernel: residual_forward.5
= control target key start
LH: loop header
LB: loop body
LE: loop exit
PB: predicated region body
PF: predicated region fallthrough
CT: control target
= control target key end

     0   :  { %s1105_s24 = smov 0   ;;  %s1107_s25 = smov 0   ;;  %s1322_s0 = inlined_call_operand.vmem [shape: bf16[2,16,16,128], index: 0, kind: input, shape index: {}]   ;;  %s1323_s1 = inlined_call_operand.vmem [shape: bf16[2,16,16,128], index: 1, kind: input, shape index: {}]   ;;  %s1324_s2 = inlined_call_operand.vmem [shape: bf16[128,128], index: 2, kind: input, shape index: {}]   ;;  %s1325_s3 = inlined_call_operand.vmem [shape: f32[1,128], index: 3, kind: input, shape index: {}]   ;;  %s1326_s4 = inlined_call_operand.vmem [shape: f32[1,128], index: 4, kind: input, shape index: {}]   ;;  %s1327_s5 = inlined_call_operand.vmem [shape: f32[1,128], index: 5, kind: input, shape index: {}]   ;;  %s1328_s6 = inlined_call_operand.vmem [shape: f32[1,128], index: 6, kind: input, shape index: {}]   ;;  %s1329_s7 = inlined_call_operand.vmem [shape: f32[2,16,16,128], index: 7, kind: output, shape index: {}]  }
   0x1   :  { %s1109_s26 = smov 0   ;;  %s1111_s27 = smov 0  }
   0x2   :  { %s1113_s28 = smov 0  }
   0x3 LB: > { %s26_s29 = sadd.s32 1, %s1055_s26  ;;  %s29_s30 = sadd.s32 1, %s1059_s27  ;;  %s1063_s28 = sphi %s1113_s28, %s17_s28   ;;  %s1059_s27 = sphi %s1111_s27, %s1333_s27   ;;  %s1055_s26 = sphi %s1109_s26, %s1332_s26   ;;  %s1051_s25 = sphi %s1107_s25, %s1331_s25   ;;  %s1047_s24 = sphi %s1105_s24, %s1330_s24  }
   0x4   : > { %p27_p0 = scmp.ge.s32.totalorder %s26_s29, 2  ;;  %p823_p1 = scmp.ge.s32.totalorder %s1063_s28, 1 }
   0x5   : > { %p277_p2 = scmp.lt.s32.totalorder %s1063_s28, 5 }
   0x6   : > { %s1335_s29 = smov (%p27_p0, %s26_s29), 0  ;;  %s1337_s30 = smov (!%p27_p0, %s29_s30), %s1059_s27 }
   0x7   : > { %p278_p3 = pnand %p823_p1, %p277_p2  ;;  %p31_p4 = scmp.ge.s32.totalorder %s1337_s30, 2 }
   0x8   : > { %s824_s14 = sshll.u32 (!%p278_p3), %s1047_s24, 3  ;;  %p330_p5 = scmp.lt.s32.totalorder (!%p278_p3), %s1051_s25, 1 }
   0x9   : > { %s1339_s30 = smov (%p31_p4, %s1337_s30), 0  ;;  %281 = sbr.rel (%p278_p3) target bundleno = 213 (0xd5), region = 48 }
   0xa   : > { %p332_p6 = scmp.lt.s32.totalorder (!%p278_p3), %s824_s14, 15 }
   0xe   : > { %v917_v0 = vld [vmem:[%s1324_s2 + $0x38] sm:$0xff]  ;;  %v916_v1 = vld [vmem:[%s1324_s2 + $0x30] sm:$0xff]  ;;  %v915_v2 = vld [vmem:[%s1324_s2 + $0x28] sm:$0xff]  ;;  %s1341_s25 = smov (!%p330_p5, %s1051_s25), 1  ;;  %s1343_s14 = smov (!%p332_p6, %s824_s14), 15 }
   0xf   : > { %490 = vmatpush.bf16.msra.mxu0 %v917_v0  ;;  %957 = vmatpush.bf16.msra.mxu1 %v917_v0  ;;  %v914_v3 = vld [vmem:[%s1324_s2 + $0x20] sm:$0xff]  ;;  %v913_v4 = vld [vmem:[%s1324_s2 + $0x18] sm:$0xff]  ;;  %s825_s19 = sshll.u32 %s1343_s14, 1  ;;  %s826_s20 = sshll.u32 %s1341_s25, 5  ;;  %v912_v5 = vld [vmem:[%s1324_s2 + $0x10] sm:$0xff] }
  0x10   : > { %958 = vmatpush.bf16.msra.mxu2 %v917_v0  ;;  %959 = vmatpush.bf16.msra.mxu3 %v917_v0  ;;  %s1160_s23 = sadd.s32 %s826_s20, %s825_s19  ;;  %v911_v6 = vld [vmem:[%s1324_s2 + $0x8] sm:$0xff]  ;;  %v910_v7 = vld [vmem:[%s1324_s2] sm:$0xff] }
  0x11   : > { %s827_s25 = sshll.u32 %s1160_s23, 2  ;;  %v1182_v19 = vld [vmem:[%s1325_s3] ss:$0 sm:$0xff] }
  0x12   : > { %s349_s13 = scalar_lea.vmem %s1323_s1, %s827_s25  ;;  %s1175_s16 = scalar_lea.vmem %s1322_s0, %s827_s25  ;;  %v1188_v22 = vld [vmem:[%s1326_s4] ss:$0 sm:$0xff] }
  0x13   : > { %491 = vmatpush.bf16.msra.mxu0 %v916_v1  ;;  %960 = vmatpush.bf16.msra.mxu1 %v916_v1  ;;  %v902_v8 = vld [vmem:[%s349_s13] sm:$0xff]  ;;  %v904_v9 = vld [vmem:[%s349_s13 + $0x10] sm:$0xff]  ;;  %v903_v12 = vld [vmem:[%s349_s13 + $0x8] sm:$0xff]  ;;  %s835_s25 = sshll.u32 %s1160_s23, 3 }
  0x14   : > { %961 = vmatpush.bf16.msra.mxu2 %v916_v1  ;;  %962 = vmatpush.bf16.msra.mxu3 %v916_v1  ;;  %v906_v10 = vld [vmem:[%s349_s13 + $0x20] sm:$0xff]  ;;  %v908_v11 = vld [vmem:[%s349_s13 + $0x30] sm:$0xff]  ;;  %v905_v13 = vld [vmem:[%s349_s13 + $0x18] sm:$0xff]  ;;  %s1223_s11 = scalar_lea.vmem %s1329_s7, %s835_s25 }
  0x15   : > { %v907_v14 = vld [vmem:[%s349_s13 + $0x28] sm:$0xff]  ;;  %v909_v15 = vld [vmem:[%s349_s13 + $0x38] sm:$0xff]  ;;  %v919_v16 = vld [vmem:[%s1175_s16] sm:$0xff]  }
  0x16   : > { %v951_v17 = vld [vmem:[%s1175_s16 + $0x10] sm:$0xff]   ;;  %v920_v18 = vunpack.c.l.bf16 %v919_v16  ;;  %v953_v24 = vld [vmem:[%s1175_s16 + $0x20] sm:$0xff]   ;;  %v921_v29 = vunpack.c.h.bf16 %v919_v16  ;;  %v1213_v46 = vld [vmem:[%s1175_s16 + $0x8] sm:$0xff]  }
  0x17   : > { %492 = vmatpush.bf16.msra.mxu0 %v915_v2  ;;  %963 = vmatpush.bf16.msra.mxu1 %v915_v2  ;;  %v928_v20 = vunpack.c.l.bf16 %v951_v17  ;;  %v955_v25 = vld [vmem:[%s1175_s16 + $0x30] sm:$0xff]   ;;  %v1196_v26 = vld [vmem:[%s1327_s5] ss:$0 sm:$0xff]  ;;  %v936_v27 = vunpack.c.l.bf16 %v953_v24  ;;  %v929_v30 = vunpack.c.h.bf16 %v951_v17  ;;  %v937_v44 = vunpack.c.h.bf16 %v953_v24  ;;  %v1216_v47 = vld [vmem:[%s1175_s16 + $0x18] sm:$0xff]  }
  0x18   : > { %964 = vmatpush.bf16.msra.mxu2 %v915_v2  ;;  %965 = vmatpush.bf16.msra.mxu3 %v915_v2  ;;  %v578_v21 = vmul.f32 %v1182_v19, %v920_v18  ;;  %v944_v28 = vunpack.c.l.bf16 %v955_v25  ;;  %v1204_v36 = vld [vmem:[%s1328_s6] ss:$0 sm:$0xff]  ;;  %v579_v40 = vmul.f32 %v1182_v19, %v921_v29  ;;  %v945_v45 = vunpack.c.h.bf16 %v955_v25 }
  0x19   : > { %v582_v23 = vmul.f32 %v1182_v19, %v928_v20  ;;  %v586_v38 = vmul.f32 %v1182_v19, %v936_v27  ;;  %v583_v41 = vmul.f32 %v1182_v19, %v929_v30  ;;  %v924_v58 = vunpack.c.l.bf16 %v1213_v46 }
  0x1a   : > { %v597_v31 = vadd.f32 %v1188_v22, %v578_v21  ;;  %v590_v39 = vmul.f32 %v1182_v19, %v944_v28  ;;  %v598_v52 = vadd.f32 %v1188_v22, %v579_v40  ;;  %v932_v59 = vunpack.c.l.bf16 %v1216_v47 }
  0x1b   : > { %493 = vmatpush.bf16.msra.mxu0 %v914_v3  ;;  %966 = vmatpush.bf16.msra.mxu1 %v914_v3  ;;  %v601_v32 = vadd.f32 %v1188_v22, %v582_v23  ;;  %v605_v50 = vadd.f32 %v1188_v22, %v586_v38  ;;  %v602_v53 = vadd.f32 %v1188_v22, %v583_v41  ;;  %v925_v24 = vunpack.c.h.bf16 %v1213_v46 }
  0x1c   : > { %967 = vmatpush.bf16.msra.mxu2 %v914_v3  ;;  %968 = vmatpush.bf16.msra.mxu3 %v914_v3  ;;  %v609_v51 = vadd.f32 %v1188_v22, %v590_v39  ;;  %v587_v0 = vmul.f32 %v1182_v19, %v937_v44  ;;  %v591_v1 = vmul.f32 %v1182_v19, %v945_v45  ;;  %v933_v25 = vunpack.c.h.bf16 %v1216_v47 }
  0x1d   : > { %v581_v46 = vmul.f32 %v1182_v19, %v925_v24 }
  0x1e   : > { %v585_v47 = vmul.f32 %v1182_v19, %v933_v25 }
  0x1f   : > { %494 = vmatpush.bf16.msra.mxu0 %v913_v4  ;;  %969 = vmatpush.bf16.msra.mxu1 %v913_v4 }
  0x20   : > { %970 = vmatpush.bf16.msra.mxu2 %v913_v4  ;;  %971 = vmatpush.bf16.msra.mxu3 %v913_v4 }
  0x23   : > { %495 = vmatpush.bf16.msra.mxu0 %v912_v5  ;;  %972 = vmatpush.bf16.msra.mxu1 %v912_v5 }
  0x24   : > { %973 = vmatpush.bf16.msra.mxu2 %v912_v5  ;;  %974 = vmatpush.bf16.msra.mxu3 %v912_v5 }
  0x27   : > { %496 = vmatpush.bf16.msra.mxu0 %v911_v6  ;;  %975 = vmatpush.bf16.msra.mxu1 %v911_v6 }
  0x28   : > { %976 = vmatpush.bf16.msra.mxu2 %v911_v6  ;;  %977 = vmatpush.bf16.msra.mxu3 %v911_v6  ;;  %v1240_v6 = vld [vmem:[%s1175_s16 + $0x28] sm:$0xff]  }
  0x29   : > { %v940_v18 = vunpack.c.l.bf16 %v1240_v6 }
  0x2b   : > { %497 = vmatpush.bf16.msra.mxu0 %v910_v7  ;;  %978 = vmatpush.bf16.msra.mxu1 %v910_v7  ;;  %v588_v40 = vmul.f32 %v1182_v19, %v940_v18 }
  0x2c   : > { %979 = vmatpush.bf16.msra.mxu2 %v910_v7  ;;  %980 = vmatpush.bf16.msra.mxu3 %v910_v7  ;;  %v1243_v7 = vld [vmem:[%s1175_s16 + $0x38] sm:$0xff]  }
  0x2d   : > { %v948_v20 = vunpack.c.l.bf16 %v1243_v7 }
  0x2e   : > { %498 = vmatmul.bf16.vlgmr.msra.gmra.mxu0 %v902_v8  ;;  %508 = vmatmul.bf16.vlgmr.msra.gmra.mxu1 %v904_v9 }
  0x2f   : > { %518 = vmatmul.bf16.vlgmr.msra.gmra.mxu2 %v906_v10  ;;  %528 = vmatmul.bf16.vlgmr.msra.gmra.mxu3 %v908_v11  ;;  %v580_v10 = vmul.f32 %v1182_v19, %v924_v58  ;;  %v584_v11 = vmul.f32 %v1182_v19, %v932_v59  ;;  %v592_v41 = vmul.f32 %v1182_v19, %v948_v20 }
  0x3e   : > { %503 = vmatmul.bf16.gmra.mxu0 %v903_v12  ;;  %513 = vmatmul.bf16.gmra.mxu1 %v905_v13 }
  0x3f   : > { %523 = vmatmul.bf16.gmra.mxu2 %v907_v14  ;;  %533 = vmatmul.bf16.gmra.mxu3 %v909_v15  ;;  %v606_v14 = vadd.f32 %v1188_v22, %v587_v0  ;;  %v610_v15 = vadd.f32 %v1188_v22, %v591_v1 }
  0xab   : > { %v499_v33 = vpop.f32.mrf.mxu0  ;;  %v509_v34 = vpop.f32.mrf.mxu1 }
  0xac   : > { %v616_v35 = vmul.f32 %v1196_v26, %v499_v33  ;;  %v620_v37 = vmul.f32 %v1196_v26, %v509_v34 }
  0xae   : > { %v632_v42 = vadd.f32 %v616_v35, %v597_v31  ;;  %v636_v43 = vadd.f32 %v620_v37, %v601_v32  ;;  %v599_v31 = vadd.f32 %v1188_v22, %v580_v10  ;;  %v603_v32 = vadd.f32 %v1188_v22, %v584_v11 }
  0xb0   : > { %v651_v48 = vadd.f32 %v1204_v36, %v632_v42  ;;  %v655_v49 = vadd.f32 %v1204_v36, %v636_v43 }
  0xb2   : > { %v667_v54 = vmax.f32 %v651_v48, 0.0  ;;  %v671_v55 = vmax.f32 %v655_v49, 0.0  ;;  %v519_v56 = vpop.f32.mrf.mxu2  ;;  %v529_v57 = vpop.f32.mrf.mxu3 }
  0xb3   : > { %v624_v60 = vmul.f32 %v1196_v26, %v519_v56  ;;  %v628_v61 = vmul.f32 %v1196_v26, %v529_v57  ;;  %v501_v62 = vpop.f32.mrf.mxu0  ;;  %v511_v63 = vpop.f32.mrf.mxu1  ;;  %v941_v56 = vunpack.c.h.bf16 %v1240_v6  ;;  %v949_v57 = vunpack.c.h.bf16 %v1243_v7 }
  0xb4   : > { %683 = vst [vmem:[%s1223_s11] sm:$0xff] %v667_v54  ;;  %v617_v2 = vmul.f32 %v1196_v26, %v501_v62  ;;  %v621_v3 = vmul.f32 %v1196_v26, %v511_v63  ;;  %v600_v62 = vadd.f32 %v1188_v22, %v581_v46  ;;  %v604_v63 = vadd.f32 %v1188_v22, %v585_v47 }
  0xb5   : > { %687 = vst [vmem:[%s1223_s11 + $0x20] sm:$0xff] %v671_v55  ;;  %v640_v4 = vadd.f32 %v624_v60, %v605_v50  ;;  %v644_v5 = vadd.f32 %v628_v61, %v609_v51 }
  0xb6   : > { %v633_v8 = vadd.f32 %v617_v2, %v598_v52  ;;  %v637_v9 = vadd.f32 %v621_v3, %v602_v53  ;;  %v607_v52 = vadd.f32 %v1188_v22, %v588_v40  ;;  %v611_v53 = vadd.f32 %v1188_v22, %v592_v41 }
  0xb7   : > { %v659_v12 = vadd.f32 %v1204_v36, %v640_v4  ;;  %v663_v13 = vadd.f32 %v1204_v36, %v644_v5 }
  0xb8   : > { %v652_v16 = vadd.f32 %v1204_v36, %v633_v8  ;;  %v656_v17 = vadd.f32 %v1204_v36, %v637_v9  ;;  %v589_v8 = vmul.f32 %v1182_v19, %v941_v56  ;;  %v593_v9 = vmul.f32 %v1182_v19, %v949_v57 }
  0xb9   : > { %v675_v21 = vmax.f32 %v659_v12, 0.0  ;;  %v679_v23 = vmax.f32 %v663_v13, 0.0 }
  0xba   : > { %v668_v27 = vmax.f32 %v652_v16, 0.0  ;;  %v672_v28 = vmax.f32 %v656_v17, 0.0  ;;  %v521_v29 = vpop.f32.mrf.mxu2  ;;  %v531_v30 = vpop.f32.mrf.mxu3  ;;  %v608_v18 = vadd.f32 %v1188_v22, %v589_v8  ;;  %v612_v19 = vadd.f32 %v1188_v22, %v593_v9 }
  0xbb   : > { %691 = vst [vmem:[%s1223_s11 + $0x40] sm:$0xff] %v675_v21  ;;  %v625_v33 = vmul.f32 %v1196_v26, %v521_v29  ;;  %v629_v34 = vmul.f32 %v1196_v26, %v531_v30  ;;  %v504_v35 = vpop.f32.mrf.mxu0  ;;  %v514_v37 = vpop.f32.mrf.mxu1 }
  0xbc   : > { %695 = vst [vmem:[%s1223_s11 + $0x60] sm:$0xff] %v679_v23  ;;  %v618_v38 = vmul.f32 %v1196_v26, %v504_v35  ;;  %v622_v39 = vmul.f32 %v1196_v26, %v514_v37 }
  0xbd   : > { %684 = vst [vmem:[%s1223_s11 + $0x8] sm:$0xff] %v668_v27  ;;  %v641_v42 = vadd.f32 %v625_v33, %v606_v14  ;;  %v645_v43 = vadd.f32 %v629_v34, %v610_v15 }
  0xbe   : > { %688 = vst [vmem:[%s1223_s11 + $0x28] sm:$0xff] %v672_v28  ;;  %v634_v44 = vadd.f32 %v618_v38, %v599_v31  ;;  %v638_v45 = vadd.f32 %v622_v39, %v603_v32 }
  0xbf   : > { %v660_v48 = vadd.f32 %v1204_v36, %v641_v42  ;;  %v664_v49 = vadd.f32 %v1204_v36, %v645_v43 }
  0xc0   : > { %v653_v50 = vadd.f32 %v1204_v36, %v634_v44  ;;  %v657_v51 = vadd.f32 %v1204_v36, %v638_v45 }
  0xc1   : > { %v676_v54 = vmax.f32 %v660_v48, 0.0  ;;  %v680_v55 = vmax.f32 %v664_v49, 0.0 }
  0xc2   : > { %v669_v58 = vmax.f32 %v653_v50, 0.0  ;;  %v673_v59 = vmax.f32 %v657_v51, 0.0  ;;  %v524_v60 = vpop.f32.mrf.mxu2  ;;  %v534_v61 = vpop.f32.mrf.mxu3 }
  0xc3   : > { %692 = vst [vmem:[%s1223_s11 + $0x48] sm:$0xff] %v676_v54  ;;  %v626_v0 = vmul.f32 %v1196_v26, %v524_v60  ;;  %v630_v1 = vmul.f32 %v1196_v26, %v534_v61  ;;  %v506_v2 = vpop.f32.mrf.mxu0  ;;  %v516_v3 = vpop.f32.mrf.mxu1 }
  0xc4   : > { %696 = vst [vmem:[%s1223_s11 + $0x68] sm:$0xff] %v680_v55  ;;  %v619_v4 = vmul.f32 %v1196_v26, %v506_v2  ;;  %v623_v5 = vmul.f32 %v1196_v26, %v516_v3 }
  0xc5   : > { %685 = vst [vmem:[%s1223_s11 + $0x10] sm:$0xff] %v669_v58  ;;  %v642_v6 = vadd.f32 %v626_v0, %v607_v52  ;;  %v646_v7 = vadd.f32 %v630_v1, %v611_v53 }
  0xc6   : > { %689 = vst [vmem:[%s1223_s11 + $0x30] sm:$0xff] %v673_v59  ;;  %v635_v10 = vadd.f32 %v619_v4, %v600_v62  ;;  %v639_v11 = vadd.f32 %v623_v5, %v604_v63 }
  0xc7   : > { %v661_v12 = vadd.f32 %v1204_v36, %v642_v6  ;;  %v665_v13 = vadd.f32 %v1204_v36, %v646_v7 }
  0xc8   : > { %v654_v14 = vadd.f32 %v1204_v36, %v635_v10  ;;  %v658_v15 = vadd.f32 %v1204_v36, %v639_v11 }
  0xc9   : > { %v677_v16 = vmax.f32 %v661_v12, 0.0  ;;  %v681_v17 = vmax.f32 %v665_v13, 0.0 }
  0xca   : > { %v670_v20 = vmax.f32 %v654_v14, 0.0  ;;  %v674_v21 = vmax.f32 %v658_v15, 0.0  ;;  %v526_v23 = vpop.f32.mrf.mxu2  ;;  %v536_v24 = vpop.f32.mrf.mxu3 }
  0xcb   : > { %693 = vst [vmem:[%s1223_s11 + $0x50] sm:$0xff] %v677_v16  ;;  %v627_v25 = vmul.f32 %v1196_v26, %v526_v23  ;;  %v631_v27 = vmul.f32 %v1196_v26, %v536_v24 }
  0xcc   : > { %697 = vst [vmem:[%s1223_s11 + $0x70] sm:$0xff] %v681_v17 }
  0xcd   : > { %686 = vst [vmem:[%s1223_s11 + $0x18] sm:$0xff] %v670_v20  ;;  %v643_v28 = vadd.f32 %v627_v25, %v608_v18  ;;  %v647_v29 = vadd.f32 %v631_v27, %v612_v19 }
  0xce   : > { %690 = vst [vmem:[%s1223_s11 + $0x38] sm:$0xff] %v674_v21 }
  0xcf   : > { %v662_v30 = vadd.f32 %v1204_v36, %v643_v28  ;;  %v666_v22 = vadd.f32 %v1204_v36, %v647_v29 }
  0xd1   : > { %v678_v31 = vmax.f32 %v662_v30, 0.0  ;;  %v682_v32 = vmax.f32 %v666_v22, 0.0 }
  0xd3   : > { %694 = vst [vmem:[%s1223_s11 + $0x58] sm:$0xff] %v678_v31 }
  0xd4   : > { %698 = vst [vmem:[%s1223_s11 + $0x78] sm:$0xff] %v682_v32 }
  0xd5 PF: > { %s17_s28 = sadd.s32 1, %s1063_s28   ;;  %s1330_s24 = smov %s1055_s26 }
  0xd6   : > { %p14_p7 = scmp.ge.s32.totalorder %s17_s28, 6   ;;  %s1331_s25 = smov %s1059_s27 }
  0xd7   : > { %s1332_s26 = smov %s1335_s29  ;;  %s1333_s27 = smov %s1339_s30 }
  0xd8   :  { %16 = sbr.rel (!%p14_p7) target bundleno = 3 (0x3), region = 81 }

// kernel: residual_forward.3
= control target key start
LH: loop header
LB: loop body
LE: loop exit
PB: predicated region body
PF: predicated region fallthrough
CT: control target
= control target key end

     0   :  { %s5513_s18 = smov 0   ;;  %s6713_s0 = inlined_call_operand.vmem [shape: bf16[2,16,16,128], index: 0, kind: input, shape index: {}]   ;;  %s6714_s1 = inlined_call_operand.vmem [shape: bf16[3,384,128], index: 1, kind: input, shape index: {}]   ;;  %s6715_s2 = inlined_call_operand.vmem [shape: bf16[128,128], index: 2, kind: input, shape index: {}]   ;;  %s6716_s3 = inlined_call_operand.vmem [shape: bf16[2,16,16,128], index: 3, kind: output, shape index: {0}]   ;;  %s6717_s4 = inlined_call_operand.vmem [shape: f32[2,2,128], index: 4, kind: output, shape index: {1}]   ;;  %s6718_s5 = inlined_call_operand.vmem [shape: f32[2,2,128], index: 5, kind: output, shape index: {2}]  }
   0x1 LB: > { %s4043_s19 = sadd.s32 4294967295, %s5480_s18   ;;  %p4047_p0 = scmp.ge.s32.totalorder %s5480_s18, 1  ;;  %s5480_s18 = sphi %s5513_s18, %s16_s18  }
   0x2   : > { %p192_p1 = scmp.lt.s32.totalorder %s5480_s18, 3 }
   0x4   : > { %p193_p2 = pnand %p4047_p0, %p192_p1 }
   0x6   : > { %196 = sbr.rel (%p193_p2) target bundleno = 834 (0x342), region = 32 }
   0xb   : > { %v5257_v0 = vld [vmem:[%s6714_s1 + $0xf8] sm:$0xff]  ;;  %p228_p3 = scmp.lt.s32.totalorder %s4043_s19, 1  ;;  %v5256_v2 = vld [vmem:[%s6714_s1 + $0xf0] sm:$0xff]  ;;  %vm289_vm0 = vcmask 1040384   ;;  %vm290_vm1 = vsmask.f32 256 }
   0xc   : > { %v5265_v1 = vld [vmem:[%s6714_s1 + $0x138] sm:$0xff]  ;;  %1649 = vmatpush.bf16.msra.mxu0 %v5257_v0  ;;  %5449 = vmatpush.bf16.msra.mxu2 %v5257_v0  ;;  %v5264_v3 = vld [vmem:[%s6714_s1 + $0x130] sm:$0xff]  ;;  %v5255_v4 = vld [vmem:[%s6714_s1 + $0xe8] sm:$0xff]  ;;  %vm630_vm2 = vcmask 1043456   ;;  %vm340_vm4 = vsmask.f32 4368 }
   0xd   : > { %s6858_s19 = smov (!%p228_p3, %s4043_s19), 1  ;;  %1738 = vmatpush.bf16.msra.mxu1 %v5265_v1  ;;  %5457 = vmatpush.bf16.msra.mxu3 %v5265_v1  ;;  %vm5548_vm3 = vmand %vm289_vm0, %vm290_vm1  ;;  %v292_v6 = vld [vmem:[#allocation2 + $0x18] sm:$0x1]  ;;  %vm631_vm5 = vsmask.f32 7938  ;;  %v5263_v7 = vld [vmem:[%s6714_s1 + $0x128] sm:$0xff] }
   0xe   : > { %s5112_s30 = sshll.u32 %s6858_s19, 7  ;;  %v293_v10 = vsel %vm5548_vm3, 0, %v292_v6  ;;  %v5254_v15 = vld [vmem:[%s6714_s1 + $0xe0] sm:$0xff]  ;;  %v316_v20 = vld [vmem:[#allocation2 + $0xd8] sm:$0x1]  ;;  %vm5584_vm6 = vmor %vm290_vm1, %vm340_vm4  ;;  %vm973_vm11 = vcmask 1043459  }
   0xf   : > { %s5544_s8 = scalar_lea.vmem %s6713_s0, %s5112_s30  ;;  %294 = vst [vmem:[#allocation2 + $0x18] sm:$0x1] %v293_v10  ;;  %v317_v22 = vsel %vm5548_vm3, 0, %v316_v20  ;;  %v5262_v26 = vld [vmem:[%s6714_s1 + $0x120] sm:$0xff]  ;;  %v5253_v31 = vld [vmem:[%s6714_s1 + $0xd8] sm:$0xff]  ;;  %vm5607_vm7 = vmand %vm630_vm2, %vm631_vm5  ;;  %s6621_s14 = scalar_lea.vmem %s6716_s3, %s5112_s30 }
  0x10   : > { %1650 = vmatpush.bf16.msra.mxu0 %v5256_v2  ;;  %5450 = vmatpush.bf16.msra.mxu2 %v5256_v2  ;;  %v5556_v8 = vld [vmem:[%s5544_s8] sm:$0xf]  ;;  %v5559_v9 = vld [vmem:[%s5544_s8 + $0x4] sm:$0xf]  ;;  %318 = vst [vmem:[#allocation2 + $0xd8] sm:$0x1] %v317_v22 }
  0x11   : > { %1739 = vmatpush.bf16.msra.mxu1 %v5264_v3  ;;  %5458 = vmatpush.bf16.msra.mxu3 %v5264_v3  ;;  %v343_v11 = vshrl.u32 %v5556_v8, 16  ;;  %v346_v12 = vshll.u32 %v5556_v8, 16  ;;  %v351_v13 = vshrl.u32 %v5559_v9, 16  ;;  %v354_v14 = vshll.u32 %v5559_v9, 16  ;;  %697 = vst [vmem:[#allocation2 + $0x1c] sm:$0xf] %v5556_v8 }
  0x12   : > { %v5572_v16 = vld [vmem:[%s5544_s8 + $0x40] sm:$0xf]  ;;  %v5575_v17 = vld [vmem:[%s5544_s8 + $0x44] sm:$0xf]  ;;  %698 = vst [vmem:[#allocation2 + $0x28] sm:$0xf] %v5559_v9 }
  0x13   : > { %v345_v18 = vrot.slane %v343_v11, 7  ;;  %v353_v19 = vrot.slane %v351_v13, 7  ;;  %v6732_v23 = vshrl.u32 %v5572_v16, 16  ;;  %v6731_v24 = vshll.u32 %v5572_v16, 16  ;;  %713 = vst [vmem:[#allocation2 + $0xdc] sm:$0xf] %v5572_v16 }
  0x14   : > { %1651 = vmatpush.bf16.msra.mxu0 %v5255_v4  ;;  %5451 = vmatpush.bf16.msra.mxu2 %v5255_v4  ;;  %v6733_v25 = vshrl.u32 %v5575_v17, 16  ;;  %v6734_v30 = vshll.u32 %v5575_v17, 16  ;;  %714 = vst [vmem:[#allocation2 + $0xe8] sm:$0xf] %v5575_v17  ;;  %v5619_v36 = vld [vmem:[%s5544_s8 + $0x8] sm:$0xf] }
  0x15   : > { %1740 = vmatpush.bf16.msra.mxu1 %v5263_v7  ;;  %5459 = vmatpush.bf16.msra.mxu3 %v5263_v7  ;;  %v348_v27 = vor.u32 %v346_v12, %v345_v18  ;;  %v349_v28 = vrot.slane %v345_v18, 4  ;;  %v356_v29 = vor.u32 %v354_v14, %v353_v19  ;;  %v473_v33 = vrot.slane %v6732_v23, 7  ;;  %v5622_v37 = vld [vmem:[%s5544_s8 + $0xc] sm:$0xf]  ;;  %v295_v38 = vld [vmem:[#allocation2 + $0x30] sm:$0x1] }
  0x16   : > { %v481_v34 = vrot.slane %v6733_v25, 7  ;;  %v633_v39 = vld [vmem:[#allocation2 + $0x18] sm:$0xf]  ;;  %v296_v42 = vsel %vm5548_vm3, 0, %v295_v38  ;;  %v359_v46 = vshrl.u32 %v5619_v36, 16  ;;  %v6773_v47 = vshll.u32 %v5619_v36, 16 }
  0x17   : > { %v357_v35 = vsel %vm5584_vm6, %v349_v28, %v356_v29  ;;  %v477_v40 = vrot.slane %v473_v33, 4  ;;  %v5261_v43 = vld [vmem:[%s6714_s1 + $0x118] sm:$0xff]  ;;  %v634_v44 = vsel %vm5607_vm7, %v348_v27, %v633_v39  ;;  %v476_v45 = vor.u32 %v6731_v24, %v473_v33  ;;  %297 = vst [vmem:[#allocation2 + $0x30] sm:$0x1] %v296_v42  ;;  %v5252_v52 = vld [vmem:[%s6714_s1 + $0xd0] sm:$0xff]  ;;  %v5251_v0 = vld [vmem:[%s6714_s1 + $0xc8] sm:$0xff] }
  0x18   : > { %1652 = vmatpush.bf16.msra.mxu0 %v5254_v15  ;;  %5452 = vmatpush.bf16.msra.mxu2 %v5254_v15  ;;  %636 = vst [vmem:[#allocation2 + $0x24] sm:$0xf] %v357_v35  ;;  %v484_v41 = vor.u32 %v6734_v30, %v481_v34  ;;  %v367_v49 = vshrl.u32 %v5622_v37, 16  ;;  %v370_v50 = vshll.u32 %v5622_v37, 16  ;;  %v361_v51 = vrot.slane %v359_v46, 7  ;;  %v5260_v55 = vld [vmem:[%s6714_s1 + $0x110] sm:$0xff] }
  0x19   : > { %1741 = vmatpush.bf16.msra.mxu1 %v5262_v26  ;;  %5460 = vmatpush.bf16.msra.mxu3 %v5262_v26  ;;  %635 = vst [vmem:[#allocation2 + $0x18] sm:$0xf] %v634_v44  ;;  %v665_v53 = vld [vmem:[#allocation2 + $0xd8] sm:$0xf]  ;;  %v5660_v60 = vld [vmem:[%s5544_s8 + $0x48] sm:$0xf] }
  0x1a   : > { %v485_v48 = vsel %vm5584_vm6, %v477_v40, %v484_v41  ;;  %v369_v54 = vrot.slane %v367_v49, 7  ;;  %699 = vst [vmem:[#allocation2 + $0x34] sm:$0xf] %v5619_v36  ;;  %v666_v56 = vsel %vm5607_vm7, %v476_v45, %v665_v53  ;;  %v364_v57 = vor.u32 %v6773_v47, %v361_v51  ;;  %v5663_v61 = vld [vmem:[%s5544_s8 + $0x4c] sm:$0xf]  ;;  %v5250_v18 = vld [vmem:[%s6714_s1 + $0xc0] sm:$0xff] }
  0x1b   : > { %668 = vst [vmem:[#allocation2 + $0xe4] sm:$0xf] %v485_v48  ;;  %v365_v58 = vrot.slane %v361_v51, 4  ;;  %v319_v62 = vld [vmem:[#allocation2 + $0xf0] sm:$0x1]  ;;  %v6728_v63 = vshrl.u32 %v5660_v60, 16 }
  0x1c   : > { %1653 = vmatpush.bf16.msra.mxu0 %v5253_v31  ;;  %5453 = vmatpush.bf16.msra.mxu2 %v5253_v31  ;;  %700 = vst [vmem:[#allocation2 + $0x40] sm:$0xf] %v5622_v37  ;;  %v372_v59 = vor.u32 %v370_v50, %v369_v54  ;;  %v320_v3 = vsel %vm5548_vm3, 0, %v319_v62  ;;  %v6729_v4 = vshrl.u32 %v5663_v61, 16  ;;  %v6730_v6 = vshll.u32 %v5663_v61, 16  ;;  %v5259_v7 = vld [vmem:[%s6714_s1 + $0x108] sm:$0xff] }
  0x1d   : > { %1742 = vmatpush.bf16.msra.mxu1 %v5261_v43  ;;  %5461 = vmatpush.bf16.msra.mxu3 %v5261_v43  ;;  %667 = vst [vmem:[#allocation2 + $0xd8] sm:$0xf] %v666_v56  ;;  %v489_v15 = vrot.slane %v6728_v63, 7  ;;  %v6727_v20 = vshll.u32 %v5660_v60, 16  ;;  %v5258_v26 = vld [vmem:[%s6714_s1 + $0x100] sm:$0xff]  ;;  %v5273_v38 = vld [vmem:[%s6714_s1 + $0x178] sm:$0xff] }
  0x1e   : > { %v373_v1 = vsel %vm5584_vm6, %v365_v58, %v372_v59  ;;  %v637_v2 = vld [vmem:[#allocation2 + $0x30] sm:$0xf]  ;;  %v497_v22 = vrot.slane %v6729_v4, 7  ;;  %v5202_v28 = vld [vmem:[#allocation2 + $0x1c] sm:$0xf]  ;;  %v5266_v32 = vld [vmem:[%s6714_s1 + $0x140] sm:$0xff] }
  0x1f   : > { %v638_v10 = vsel %vm5607_vm7, %v364_v57, %v637_v2  ;;  %640 = vst [vmem:[#allocation2 + $0x3c] sm:$0xf] %v373_v1  ;;  %v5203_v19 = vld [vmem:[#allocation2 + $0x20] sm:$0xf0]  ;;  %v4106_v29 = vld [vmem:[#allocation2 + $0x24] sm:$0xf0]  ;;  %v492_v45 = vor.u32 %v6727_v20, %v489_v15 }
  0x20   : > { %1654 = vmatpush.bf16.msra.mxu0 %v5252_v52  ;;  %5454 = vmatpush.bf16.msra.mxu2 %v5252_v52  ;;  %639 = vst [vmem:[#allocation2 + $0x30] sm:$0xf] %v638_v10  ;;  %v4104_v27 = vld [vmem:[#allocation2 + $0x18] sm:$0xf]  ;;  %v5226_v31 = vld [vmem:[#allocation2 + $0xdc] sm:$0xf]  ;;  %v500_v39 = vor.u32 %v6730_v6, %v497_v22  ;;  %v4109_v57 = vor.u32 %v5202_v28, %v4106_v29 }
  0x21   : > { %1743 = vmatpush.bf16.msra.mxu1 %v5260_v55  ;;  %5462 = vmatpush.bf16.msra.mxu3 %v5260_v55  ;;  %v4202_v33 = vld [vmem:[#allocation2 + $0xe4] sm:$0xf0]  ;;  %321 = vst [vmem:[#allocation2 + $0xf0] sm:$0x1] %v320_v3  ;;  %v493_v34 = vrot.slane %v489_v15, 4  ;;  %v4105_v43 = vor.u32 %v5203_v19, %v4104_v27  ;;  %v5185_v44 = vld [vmem:[%s6714_s1 + $0x38] sm:$0xff] }
  0x22   : > { %v5227_v35 = vld [vmem:[#allocation2 + $0xe0] sm:$0xf0]  ;;  %715 = vst [vmem:[#allocation2 + $0xf4] sm:$0xf] %v5660_v60  ;;  %v5698_v40 = vld [vmem:[%s5544_s8 + $0x10] sm:$0xf]  ;;  %v4205_v58 = vor.u32 %v5226_v31, %v4202_v33 }
  0x23   : > { %716 = vst [vmem:[#allocation2 + $0x100] sm:$0xf] %v5663_v61  ;;  %v5702_v42 = vld [vmem:[%s5544_s8 + $0x14] sm:$0xf]  ;;  %v501_v48 = vsel %vm5584_vm6, %v493_v34, %v500_v39  ;;  %v298_v51 = vld [vmem:[#allocation2 + $0x48] sm:$0x1] }
  0x24   : > { %1655 = vmatpush.bf16.msra.mxu0 %v5251_v0  ;;  %5455 = vmatpush.bf16.msra.mxu2 %v5251_v0  ;;  %v4200_v41 = vld [vmem:[#allocation2 + $0xd8] sm:$0xf]  ;;  %v6762_v52 = vshrl.u32 %v5698_v40, 16  ;;  %701 = vst [vmem:[#allocation2 + $0x4c] sm:$0xf] %v5698_v40  ;;  %v299_v54 = vsel %vm5548_vm3, 0, %v298_v51 }
  0x25   : > { %1744 = vmatpush.bf16.msra.mxu1 %v5259_v7  ;;  %5463 = vmatpush.bf16.msra.mxu3 %v5259_v7  ;;  %v4201_v53 = vor.u32 %v5227_v35, %v4200_v41  ;;  %672 = vst [vmem:[#allocation2 + $0xfc] sm:$0xf] %v501_v48  ;;  %v6770_v55 = vshrl.u32 %v5702_v42, 16  ;;  %v6772_v56 = vshll.u32 %v5702_v42, 16  ;;  %v6761_v62 = vshll.u32 %v5698_v40, 16  ;;  %v5193_v0 = vld [vmem:[%s6714_s1 + $0x78] sm:$0xff] }
  0x26   : > { %300 = vst [vmem:[#allocation2 + $0x48] sm:$0x1] %v299_v54  ;;  %v377_v59 = vrot.slane %v6762_v52, 7  ;;  %v5201_v1 = vld [vmem:[%s6714_s1 + $0xb8] sm:$0xff]  ;;  %v5272_v2 = vld [vmem:[%s6714_s1 + $0x170] sm:$0xff]  ;;  %v5271_v48 = vld [vmem:[%s6714_s1 + $0x168] sm:$0xff] }
  0x27   : > { %v385_v3 = vrot.slane %v6770_v55, 7  ;;  %702 = vst [vmem:[#allocation2 + $0x58] sm:$0xf] %v5702_v42  ;;  %v5184_v10 = vld [vmem:[%s6714_s1 + $0x30] sm:$0xff]  ;;  %v322_v27 = vld [vmem:[#allocation2 + $0x108] sm:$0x1] }
  0x28   : > { %1656 = vmatpush.bf16.msra.mxu0 %v5250_v18  ;;  %5456 = vmatpush.bf16.msra.mxu2 %v5250_v18  ;;  %v669_v7 = vld [vmem:[#allocation2 + $0xf0] sm:$0xf]  ;;  %v381_v15 = vrot.slane %v377_v59, 4  ;;  %v380_v28 = vor.u32 %v6761_v62, %v377_v59  ;;  %v323_v29 = vsel %vm5548_vm3, 0, %v322_v27  ;;  %v5183_v54 = vld [vmem:[%s6714_s1 + $0x28] sm:$0xff]  ;;  %v738_v55 = vrot.slane %v351_v13, 4 }
  0x29   : > { %1745 = vmatpush.bf16.msra.mxu1 %v5258_v26  ;;  %5464 = vmatpush.bf16.msra.mxu3 %v5258_v26  ;;  %v5736_v18 = vld [vmem:[%s5544_s8 + $0x50] sm:$0xf]  ;;  %v670_v19 = vsel %vm5607_vm7, %v492_v45, %v669_v7  ;;  %v388_v22 = vor.u32 %v6772_v56, %v385_v3  ;;  %v5743_v26 = vld [vmem:[%s5544_s8 + $0x54] sm:$0xf]  ;;  %324 = vst [vmem:[#allocation2 + $0x108] sm:$0x1] %v323_v29 }
  0x2a   : > { %671 = vst [vmem:[#allocation2 + $0xf0] sm:$0xf] %v670_v19  ;;  %v6720_v31 = vshrl.u32 %v5736_v18, 16  ;;  %v5192_v33 = vld [vmem:[%s6714_s1 + $0x70] sm:$0xff]  ;;  %v6725_v39 = vshrl.u32 %v5743_v26, 16  ;;  %v5191_v59 = vld [vmem:[%s6714_s1 + $0x68] sm:$0xff] }
  0x2b   : > { %1657 = vmatmul.bf16.vlgmr.msra.gmra.mxu0 %v4105_v43  ;;  %1697 = vmatmul.bf16.vlgmr.msra.gmra.mxu2 %v4201_v53  ;;  %v5200_v34 = vld [vmem:[%s6714_s1 + $0xb0] sm:$0xff]  ;;  %v389_v35 = vsel %vm5584_vm6, %v381_v15, %v388_v22  ;;  %v6726_v43 = vshll.u32 %v5743_v26, 16  ;;  %717 = vst [vmem:[#allocation2 + $0x10c] sm:$0xf] %v5736_v18  ;;  %v5206_v3 = vld [vmem:[#allocation2 + $0x38] sm:$0xf0] }
  0x2c   : > { %1827 = vmatpush.bf16.msrb.mxu2 %v5273_v38  ;;  %1746 = vmatmul.bf16.vlgmr.msra.gmra.mxu1 %v4109_v57  ;;  %v6719_v38 = vshll.u32 %v5736_v18, 16  ;;  %644 = vst [vmem:[#allocation2 + $0x54] sm:$0xf] %v389_v35  ;;  %v505_v41 = vrot.slane %v6720_v31, 7  ;;  %v513_v45 = vrot.slane %v6725_v39, 7  ;;  %v5194_v8 = vld [vmem:[%s6714_s1 + $0x80] sm:$0xff] }
  0x2d   : > { %2316 = vmatpush.bf16.msrb.mxu3 %v5185_v44  ;;  %2405 = vmatpush.bf16.msrb.mxu0 %v5193_v0  ;;  %v641_v44 = vld [vmem:[#allocation2 + $0x48] sm:$0xf]  ;;  %718 = vst [vmem:[#allocation2 + $0x118] sm:$0xf] %v5743_v26  ;;  %v5230_v7 = vld [vmem:[#allocation2 + $0xf8] sm:$0xf0] }
  0x2e   : > { %1786 = vmatmul.bf16.vlgmr.msra.gmra.mxu3 %v4205_v58  ;;  %2494 = vmatpush.bf16.msrb.mxu1 %v5201_v1  ;;  %v642_v51 = vsel %vm5607_vm7, %v380_v28, %v641_v44  ;;  %v509_v53 = vrot.slane %v505_v41, 4  ;;  %v508_v57 = vor.u32 %v6719_v38, %v505_v41  ;;  %v516_v58 = vor.u32 %v6726_v43, %v513_v45  ;;  %v5199_v0 = vld [vmem:[%s6714_s1 + $0xa8] sm:$0xff]  ;;  %v5786_v1 = vld [vmem:[%s5544_s8 + $0x18] sm:$0xf]  ;;  %v301_v15 = vld [vmem:[#allocation2 + $0x60] sm:$0x1] }
  0x2f   : > { %643 = vst [vmem:[#allocation2 + $0x48] sm:$0xf] %v642_v51  ;;  %v6748_v19 = vshrl.u32 %v5786_v1, 16  ;;  %v5205_v27 = vld [vmem:[#allocation2 + $0x34] sm:$0xf]  ;;  %s4052_s30 = sshll.u32 %s6858_s19, 1 }
  0x30   : > { %1828 = vmatpush.bf16.msrb.mxu2 %v5272_v2  ;;  %v4116_v2 = vld [vmem:[#allocation2 + $0x30] sm:$0xf]  ;;  %v4118_v28 = vld [vmem:[#allocation2 + $0x3c] sm:$0xf0]  ;;  %v5229_v29 = vld [vmem:[#allocation2 + $0xf4] sm:$0xf]  ;;  %s245_s16 = scalar_lea.vmem %s6718_s5, %s4052_s30  ;;  %s241_s20 = scalar_lea.vmem %s6717_s4, %s4052_s30 }
  0x31   : > { %2317 = vmatpush.bf16.msrb.mxu3 %v5184_v10  ;;  %2406 = vmatpush.bf16.msrb.mxu0 %v5192_v33  ;;  %v5789_v10 = vld [vmem:[%s5544_s8 + $0x1c] sm:$0xf]  ;;  %v4212_v22 = vld [vmem:[#allocation2 + $0xf0] sm:$0xf]  ;;  %v517_v33 = vsel %vm5584_vm6, %v509_v53, %v516_v58  ;;  %v673_v44 = vld [vmem:[#allocation2 + $0x108] sm:$0xf] }
  0x32   : > { %2495 = vmatpush.bf16.msrb.mxu1 %v5200_v34  ;;  %v302_v34 = vsel %vm5548_vm3, 0, %v301_v15  ;;  %v6759_v35 = vshrl.u32 %v5789_v10, 16  ;;  %v6760_v41 = vshll.u32 %v5789_v10, 16  ;;  %676 = vst [vmem:[#allocation2 + $0x114] sm:$0xf] %v517_v33  ;;  %v393_v45 = vrot.slane %v6748_v19, 7 }
  0x33   : > { %v674_v51 = vsel %vm5607_vm7, %v508_v57, %v673_v44  ;;  %303 = vst [vmem:[#allocation2 + $0x60] sm:$0x1] %v302_v34  ;;  %v6747_v53 = vshll.u32 %v5786_v1, 16  ;;  %v4117_v15 = vor.u32 %v5206_v3, %v4116_v2  ;;  %v4213_v33 = vor.u32 %v5230_v7, %v4212_v22  ;;  %v5809_v31 = vld [vmem:[%s5544_s8 + $0x58] sm:$0xf] }
  0x34   : > { %1829 = vmatpush.bf16.msrb.mxu2 %v5271_v48  ;;  %v4214_v48 = vld [vmem:[#allocation2 + $0xfc] sm:$0xf0]  ;;  %675 = vst [vmem:[#allocation2 + $0x108] sm:$0xf] %v674_v51  ;;  %v397_v58 = vrot.slane %v393_v45, 4  ;;  %v4121_v57 = vor.u32 %v5205_v27, %v4118_v28  ;;  %v6722_v7 = vshrl.u32 %v5809_v31, 16 }
  0x35   : > { %2318 = vmatpush.bf16.msrb.mxu3 %v5183_v54  ;;  %2407 = vmatpush.bf16.msrb.mxu0 %v5191_v59  ;;  %v401_v54 = vrot.slane %v6759_v35, 7  ;;  %703 = vst [vmem:[#allocation2 + $0x64] sm:$0xf] %v5786_v1  ;;  %v4217_v59 = vor.u32 %v5229_v29, %v4214_v48  ;;  %v396_v34 = vor.u32 %v6747_v53, %v393_v45  ;;  %v325_v3 = vld [vmem:[#allocation2 + $0x120] sm:$0x1] }
  0x36   : > { %2496 = vmatpush.bf16.msrb.mxu1 %v5199_v0  ;;  %704 = vst [vmem:[#allocation2 + $0x70] sm:$0xf] %v5789_v10  ;;  %v5813_v0 = vld [vmem:[%s5544_s8 + $0x5c] sm:$0xf]  ;;  %v326_v22 = vsel %vm5548_vm3, 0, %v325_v3  ;;  %v521_v29 = vrot.slane %v6722_v7, 7 }
  0x37   : > { %v404_v38 = vor.u32 %v6760_v41, %v401_v54  ;;  %719 = vst [vmem:[#allocation2 + $0x124] sm:$0xf] %v5809_v31  ;;  %v6723_v27 = vshrl.u32 %v5813_v0, 16  ;;  %v6724_v28 = vshll.u32 %v5813_v0, 16  ;;  %v5270_v48 = vld [vmem:[%s6714_s1 + $0x160] sm:$0xff] }
  0x38   : > { %327 = vst [vmem:[#allocation2 + $0x120] sm:$0x1] %v326_v22  ;;  %v525_v54 = vrot.slane %v521_v29, 4  ;;  %1830 = vmatpush.bf16.msrb.mxu2 %v5270_v48  ;;  %v304_v22 = vld [vmem:[#allocation2 + $0x78] sm:$0x1] }
  0x39   : > { %v405_v2 = vsel %vm5584_vm6, %v397_v58, %v404_v38  ;;  %v6721_v38 = vshll.u32 %v5809_v31, 16  ;;  %v529_v45 = vrot.slane %v6723_v27, 7  ;;  %720 = vst [vmem:[#allocation2 + $0x130] sm:$0xf] %v5813_v0  ;;  %v5182_v58 = vld [vmem:[%s6714_s1 + $0x20] sm:$0xff] }
  0x3a   : > { %648 = vst [vmem:[#allocation2 + $0x6c] sm:$0xf] %v405_v2  ;;  %v645_v44 = vld [vmem:[#allocation2 + $0x60] sm:$0xf]  ;;  %2319 = vmatpush.bf16.msrb.mxu3 %v5182_v58  ;;  %v5853_v2 = vld [vmem:[%s5544_s8 + $0x24] sm:$0xf] }
  0x3b   : > { %1662 = vmatmul.bf16.gmra.mxu0 %v4117_v15  ;;  %1702 = vmatmul.bf16.gmra.mxu2 %v4213_v33  ;;  %v646_v51 = vsel %vm5607_vm7, %v396_v34, %v645_v44  ;;  %v5190_v15 = vld [vmem:[%s6714_s1 + $0x60] sm:$0xff]  ;;  %v532_v33 = vor.u32 %v6724_v28, %v529_v45  ;;  %v4128_v45 = vld [vmem:[#allocation2 + $0x48] sm:$0xf]  ;;  %v5209_v48 = vld [vmem:[#allocation2 + $0x50] sm:$0xf0]  ;;  %v6743_v58 = vshrl.u32 %v5853_v2, 16 }
  0x3c   : > { %1751 = vmatmul.bf16.gmra.mxu1 %v4121_v57  ;;  %647 = vst [vmem:[#allocation2 + $0x60] sm:$0xf] %v646_v51  ;;  %v5198_v57 = vld [vmem:[%s6714_s1 + $0xa0] sm:$0xff]  ;;  %2408 = vmatpush.bf16.msrb.mxu0 %v5190_v15  ;;  %v305_v51 = vsel %vm5548_vm3, 0, %v304_v22  ;;  %v5233_v15 = vld [vmem:[#allocation2 + $0x110] sm:$0xf0]  ;;  %v4129_v4 = vor.u32 %v5209_v48, %v4128_v45 }
  0x3d   : > { %v5850_v34 = vld [vmem:[%s5544_s8 + $0x20] sm:$0xf]  ;;  %v533_v3 = vsel %vm5584_vm6, %v525_v54, %v532_v33  ;;  %2497 = vmatpush.bf16.msrb.mxu1 %v5198_v57  ;;  %306 = vst [vmem:[#allocation2 + $0x78] sm:$0x1] %v305_v51  ;;  %v6746_v33 = vshll.u32 %v5853_v2, 16  ;;  %v417_v28 = vrot.slane %v6743_v58, 7 }
  0x3e   : > { %1791 = vmatmul.bf16.gmra.mxu3 %v4217_v59  ;;  %v524_v59 = vor.u32 %v6721_v38, %v521_v29  ;;  %v6742_v44 = vshrl.u32 %v5850_v34, 16  ;;  %680 = vst [vmem:[#allocation2 + $0x12c] sm:$0xf] %v533_v3  ;;  %v6741_v29 = vshll.u32 %v5850_v34, 16  ;;  %v4224_v57 = vld [vmem:[#allocation2 + $0x108] sm:$0xf] }
  0x3f   : > { %v677_v38 = vld [vmem:[#allocation2 + $0x120] sm:$0xf]  ;;  %v5208_v7 = vld [vmem:[#allocation2 + $0x4c] sm:$0xf]  ;;  %v4130_v3 = vld [vmem:[#allocation2 + $0x54] sm:$0xf0]  ;;  %v420_v20 = vor.u32 %v6746_v33, %v417_v28  ;;  %v4225_v24 = vor.u32 %v5233_v15, %v4224_v57 }
  0x40   : > { %v409_v54 = vrot.slane %v6742_v44, 7  ;;  %v5232_v27 = vld [vmem:[#allocation2 + $0x10c] sm:$0xf]  ;;  %v678_v22 = vsel %vm5607_vm7, %v524_v59, %v677_v38  ;;  %705 = vst [vmem:[#allocation2 + $0x7c] sm:$0xf] %v5850_v34  ;;  %v4133_v48 = vor.u32 %v5208_v7, %v4130_v3  ;;  %v5269_v3 = vld [vmem:[%s6714_s1 + $0x158] sm:$0xff] }
  0x41   : > { %679 = vst [vmem:[#allocation2 + $0x120] sm:$0xf] %v678_v22  ;;  %v5871_v39 = vld [vmem:[%s5544_s8 + $0x60] sm:$0xf]  ;;  %v4226_v43 = vld [vmem:[#allocation2 + $0x114] sm:$0xf0]  ;;  %1831 = vmatpush.bf16.msrb.mxu2 %v5269_v3 }
  0x42   : > { %v413_v51 = vrot.slane %v409_v54, 4  ;;  %706 = vst [vmem:[#allocation2 + $0x88] sm:$0xf] %v5853_v2  ;;  %v5877_v63 = vld [vmem:[%s5544_s8 + $0x64] sm:$0xf]  ;;  %v412_v38 = vor.u32 %v6741_v29, %v409_v54  ;;  %v6736_v6 = vshrl.u32 %v5871_v39, 16  ;;  %v4229_v54 = vor.u32 %v5232_v27, %v4226_v43 }
  0x43   : > { %v328_v59 = vld [vmem:[#allocation2 + $0x138] sm:$0x1]  ;;  %v6737_v22 = vshrl.u32 %v5877_v63, 16  ;;  %v6738_v25 = vshll.u32 %v5877_v63, 16  ;;  %721 = vst [vmem:[#allocation2 + $0x13c] sm:$0xf] %v5871_v39 }
  0x44   : > { %v421_v23 = vsel %vm5584_vm6, %v413_v51, %v420_v20  ;;  %v329_v28 = vsel %vm5548_vm3, 0, %v328_v59  ;;  %v307_v45 = vld [vmem:[#allocation2 + $0x90] sm:$0x1]  ;;  %v537_v30 = vrot.slane %v6736_v6, 7  ;;  %v649_v57 = vld [vmem:[#allocation2 + $0x78] sm:$0xf] }
  0x45   : > { %652 = vst [vmem:[#allocation2 + $0x84] sm:$0xf] %v421_v23  ;;  %v545_v15 = vrot.slane %v6737_v22, 7  ;;  %v6735_v20 = vshll.u32 %v5871_v39, 16  ;;  %v308_v51 = vsel %vm5548_vm3, 0, %v307_v45  ;;  %v650_v59 = vsel %vm5607_vm7, %v412_v38, %v649_v57  ;;  %v5181_v38 = vld [vmem:[%s6714_s1 + $0x18] sm:$0xff] }
  0x46   : > { %330 = vst [vmem:[#allocation2 + $0x138] sm:$0x1] %v329_v28  ;;  %v541_v7 = vrot.slane %v537_v30, 4  ;;  %v5902_v43 = vld [vmem:[%s5544_s8 + $0x28] sm:$0xf]  ;;  %v5197_v28 = vld [vmem:[%s6714_s1 + $0x98] sm:$0xff]  ;;  %2320 = vmatpush.bf16.msrb.mxu3 %v5181_v38 }
  0x47   : > { %v548_v23 = vor.u32 %v6738_v25, %v545_v15  ;;  %722 = vst [vmem:[#allocation2 + $0x148] sm:$0xf] %v5877_v63  ;;  %v5921_v45 = vld [vmem:[%s5544_s8 + $0x2c] sm:$0xf]  ;;  %2498 = vmatpush.bf16.msrb.mxu1 %v5197_v28  ;;  %v5929_v57 = vld [vmem:[%s5544_s8 + $0x68] sm:$0xf] }
  0x48   : > { %651 = vst [vmem:[#allocation2 + $0x78] sm:$0xf] %v650_v59  ;;  %v6745_v15 = vshll.u32 %v5921_v45, 16  ;;  %v331_v3 = vld [vmem:[#allocation2 + $0x150] sm:$0x1]  ;;  %v6749_v44 = vshll.u32 %v5929_v57, 16 }
  0x49   : > { %v549_v27 = vsel %vm5584_vm6, %v541_v7, %v548_v23  ;;  %309 = vst [vmem:[#allocation2 + $0x90] sm:$0x1] %v308_v51  ;;  %v4140_v38 = vld [vmem:[#allocation2 + $0x60] sm:$0xf]  ;;  %v5236_v28 = vld [vmem:[#allocation2 + $0x128] sm:$0xf0] }
  0x4a   : > { %684 = vst [vmem:[#allocation2 + $0x144] sm:$0xf] %v549_v27  ;;  %v5939_v27 = vld [vmem:[%s5544_s8 + $0x6c] sm:$0xf]  ;;  %v4142_v6 = vld [vmem:[#allocation2 + $0x6c] sm:$0xf0] }
  0x4b   : > { %1667 = vmatmul.bf16.gmra.mxu0 %v4129_v4  ;;  %1707 = vmatmul.bf16.gmra.mxu2 %v4225_v24  ;;  %v540_v24 = vor.u32 %v6735_v20, %v537_v30  ;;  %v5189_v4 = vld [vmem:[%s6714_s1 + $0x58] sm:$0xff]  ;;  %v6740_v30 = vshrl.u32 %v5921_v45, 16  ;;  %707 = vst [vmem:[#allocation2 + $0x94] sm:$0xf] %v5902_v43  ;;  %v5211_v20 = vld [vmem:[#allocation2 + $0x64] sm:$0xf] }
  0x4c   : > { %1756 = vmatmul.bf16.gmra.mxu1 %v4133_v48  ;;  %v6739_v48 = vshrl.u32 %v5902_v43, 16  ;;  %2409 = vmatpush.bf16.msrb.mxu0 %v5189_v4  ;;  %708 = vst [vmem:[#allocation2 + $0xa0] sm:$0xf] %v5921_v45  ;;  %v5212_v4 = vld [vmem:[#allocation2 + $0x68] sm:$0xf0]  ;;  %v4145_v53 = vor.u32 %v5211_v20, %v4142_v6 }
  0x4d   : > { %v681_v51 = vld [vmem:[#allocation2 + $0x138] sm:$0xf]  ;;  %v433_v7 = vrot.slane %v6740_v30, 7  ;;  %v5235_v30 = vld [vmem:[#allocation2 + $0x124] sm:$0xf] }
  0x4e   : > { %1796 = vmatmul.bf16.gmra.mxu3 %v4229_v54  ;;  %v6744_v54 = vshll.u32 %v5902_v43, 16  ;;  %v425_v59 = vrot.slane %v6739_v48, 7  ;;  %v682_v23 = vsel %vm5607_vm7, %v540_v24, %v681_v51  ;;  %v332_v24 = vsel %vm5548_vm3, 0, %v331_v3  ;;  %v4236_v58 = vld [vmem:[#allocation2 + $0x120] sm:$0xf] }
  0x4f   : > { %683 = vst [vmem:[#allocation2 + $0x138] sm:$0xf] %v682_v23  ;;  %v436_v48 = vor.u32 %v6745_v15, %v433_v7  ;;  %v6750_v51 = vshrl.u32 %v5929_v57, 16  ;;  %v6752_v7 = vshll.u32 %v5939_v27, 16  ;;  %v4238_v15 = vld [vmem:[#allocation2 + $0x12c] sm:$0xf0] }
  0x50   : > { %v428_v22 = vor.u32 %v6744_v54, %v425_v59  ;;  %v429_v25 = vrot.slane %v425_v59, 4  ;;  %v653_v29 = vld [vmem:[#allocation2 + $0x90] sm:$0xf]  ;;  %333 = vst [vmem:[#allocation2 + $0x150] sm:$0x1] %v332_v24  ;;  %v6751_v59 = vshrl.u32 %v5939_v27, 16  ;;  %v4241_v24 = vor.u32 %v5235_v30, %v4238_v15 }
  0x51   : > { %v553_v3 = vrot.slane %v6750_v51, 7  ;;  %723 = vst [vmem:[#allocation2 + $0x154] sm:$0xf] %v5929_v57  ;;  %v5970_v6 = vld [vmem:[%s5544_s8 + $0x30] sm:$0xf] }
  0x52   : > { %v437_v23 = vsel %vm5584_vm6, %v429_v25, %v436_v48  ;;  %v654_v54 = vsel %vm5607_vm7, %v428_v22, %v653_v29  ;;  %v561_v33 = vrot.slane %v6751_v59, 7  ;;  %v4141_v25 = vor.u32 %v5212_v4, %v4140_v38  ;;  %v310_v22 = vld [vmem:[#allocation2 + $0xa8] sm:$0x1]  ;;  %724 = vst [vmem:[#allocation2 + $0x160] sm:$0xf] %v5939_v27  ;;  %v5180_v4 = vld [vmem:[%s6714_s1 + $0x10] sm:$0xff] }
  0x53   : > { %655 = vst [vmem:[#allocation2 + $0x90] sm:$0xf] %v654_v54  ;;  %v4237_v48 = vor.u32 %v5236_v28, %v4236_v58  ;;  %v557_v29 = vrot.slane %v553_v3, 4  ;;  %v556_v54 = vor.u32 %v6749_v44, %v553_v3  ;;  %v5973_v20 = vld [vmem:[%s5544_s8 + $0x34] sm:$0xf]  ;;  %v6754_v15 = vshrl.u32 %v5970_v6, 16  ;;  %2321 = vmatpush.bf16.msrb.mxu3 %v5180_v4 }
  0x54   : > { %656 = vst [vmem:[#allocation2 + $0x9c] sm:$0xf] %v437_v23  ;;  %v564_v19 = vor.u32 %v6752_v7, %v561_v33  ;;  %v311_v23 = vsel %vm5548_vm3, 0, %v310_v22  ;;  %v6755_v33 = vshrl.u32 %v5973_v20, 16  ;;  %v6753_v28 = vshll.u32 %v5970_v6, 16 }
  0x55   : > { %312 = vst [vmem:[#allocation2 + $0xa8] sm:$0x1] %v311_v23  ;;  %v6756_v3 = vshll.u32 %v5973_v20, 16  ;;  %v334_v22 = vld [vmem:[#allocation2 + $0x168] sm:$0x1] }
  0x56   : > { %v565_v58 = vsel %vm5584_vm6, %v557_v29, %v564_v19  ;;  %v5268_v19 = vld [vmem:[%s6714_s1 + $0x150] sm:$0xff]  ;;  %v449_v29 = vrot.slane %v6755_v33, 7  ;;  %709 = vst [vmem:[#allocation2 + $0xac] sm:$0xf] %v5970_v6  ;;  %v4152_v59 = vld [vmem:[#allocation2 + $0x78] sm:$0xf] }
  0x57   : > { %v685_v30 = vld [vmem:[#allocation2 + $0x150] sm:$0xf]  ;;  %688 = vst [vmem:[#allocation2 + $0x15c] sm:$0xf] %v565_v58  ;;  %1832 = vmatpush.bf16.msrb.mxu2 %v5268_v19  ;;  %v335_v19 = vsel %vm5548_vm3, 0, %v334_v22 }
  0x58   : > { %v686_v38 = vsel %vm5607_vm7, %v556_v54, %v685_v30  ;;  %710 = vst [vmem:[#allocation2 + $0xb8] sm:$0xf] %v5973_v20  ;;  %v452_v58 = vor.u32 %v6756_v3, %v449_v29  ;;  %v6007_v30 = vld [vmem:[%s5544_s8 + $0x74] sm:$0xf]  ;;  %v5214_v7 = vld [vmem:[#allocation2 + $0x7c] sm:$0xf] }
  0x59   : > { %687 = vst [vmem:[#allocation2 + $0x150] sm:$0xf] %v686_v38  ;;  %v6763_v51 = vshll.u32 %v6007_v30, 16  ;;  %v5238_v22 = vld [vmem:[#allocation2 + $0x13c] sm:$0xf] }
  0x5a   : > { %336 = vst [vmem:[#allocation2 + $0x168] sm:$0x1] %v335_v19  ;;  %v313_v35 = vld [vmem:[#allocation2 + $0xc0] sm:$0x1]  ;;  %v6069_v5 = vld [vmem:[%s5544_s8 + $0x7c] sm:$0xf] }
  0x5b   : > { %1672 = vmatmul.bf16.gmra.mxu0 %v4141_v25  ;;  %1712 = vmatmul.bf16.gmra.mxu2 %v4237_v48  ;;  %v5196_v25 = vld [vmem:[%s6714_s1 + $0x90] sm:$0xff]  ;;  %v441_v48 = vrot.slane %v6754_v15, 7  ;;  %726 = vst [vmem:[#allocation2 + $0x178] sm:$0xf] %v6007_v30  ;;  %v314_v52 = vsel %vm5548_vm3, 0, %v313_v35  ;;  %v5179_v35 = vld [vmem:[%s6714_s1 + $0x8] sm:$0xff] }
  0x5c   : > { %1761 = vmatmul.bf16.gmra.mxu1 %v4145_v53  ;;  %v5188_v53 = vld [vmem:[%s6714_s1 + $0x50] sm:$0xff]  ;;  %v657_v38 = vld [vmem:[#allocation2 + $0xa8] sm:$0xf]  ;;  %315 = vst [vmem:[#allocation2 + $0xc0] sm:$0x1] %v314_v52  ;;  %2322 = vmatpush.bf16.msrb.mxu3 %v5179_v35  ;;  %v6775_v35 = vshll.u32 %v6069_v5, 16 }
  0x5d   : > { %2410 = vmatpush.bf16.msrb.mxu0 %v5188_v53  ;;  %2499 = vmatpush.bf16.msrb.mxu1 %v5196_v25  ;;  %v444_v54 = vor.u32 %v6753_v28, %v441_v48  ;;  %v445_v23 = vrot.slane %v441_v48, 4  ;;  %v6758_v53 = vshrl.u32 %v6007_v30, 16  ;;  %v5215_v25 = vld [vmem:[#allocation2 + $0x80] sm:$0xf0]  ;;  %v4154_v28 = vld [vmem:[#allocation2 + $0x84] sm:$0xf0] }
  0x5e   : > { %1801 = vmatmul.bf16.gmra.mxu3 %v4241_v24  ;;  %v6000_v24 = vld [vmem:[%s5544_s8 + $0x70] sm:$0xf]  ;;  %v4153_v3 = vor.u32 %v5215_v25, %v4152_v59  ;;  %v4157_v41 = vor.u32 %v5214_v7, %v4154_v28  ;;  %v6039_v59 = vld [vmem:[%s5544_s8 + $0x3c] sm:$0xf]  ;;  %v5267_v7 = vld [vmem:[%s6714_s1 + $0x148] sm:$0xff] }
  0x5f   : > { %725 = vst [vmem:[#allocation2 + $0x16c] sm:$0xf] %v6000_v24  ;;  %v6757_v4 = vshrl.u32 %v6000_v24, 16  ;;  %v453_v44 = vsel %vm5584_vm6, %v445_v23, %v452_v58  ;;  %v658_v48 = vsel %vm5607_vm7, %v444_v54, %v657_v38  ;;  %v6764_v29 = vshll.u32 %v6000_v24, 16  ;;  %v4248_v23 = vld [vmem:[#allocation2 + $0x138] sm:$0xf]  ;;  %1833 = vmatpush.bf16.msrb.mxu2 %v5267_v7 }
  0x60   : > { %659 = vst [vmem:[#allocation2 + $0xa8] sm:$0xf] %v658_v48  ;;  %v577_v33 = vrot.slane %v6758_v53, 7  ;;  %v5239_v58 = vld [vmem:[#allocation2 + $0x140] sm:$0xf0]  ;;  %v5195_v28 = vld [vmem:[%s6714_s1 + $0x88] sm:$0xff] }
  0x61   : > { %v569_v15 = vrot.slane %v6757_v4, 7  ;;  %660 = vst [vmem:[#allocation2 + $0xb4] sm:$0xf] %v453_v44  ;;  %v4250_v54 = vld [vmem:[#allocation2 + $0x144] sm:$0xf0]  ;;  %v4249_v4 = vor.u32 %v5239_v58, %v4248_v23  ;;  %v6769_v52 = vshll.u32 %v6039_v59, 16  ;;  %2500 = vmatpush.bf16.msrb.mxu1 %v5195_v28 }
  0x62   : > { %v580_v19 = vor.u32 %v6763_v51, %v577_v33  ;;  %v4253_v44 = vor.u32 %v5238_v22, %v4250_v54  ;;  %v689_v62 = vld [vmem:[#allocation2 + $0x168] sm:$0xf]  ;;  %v6036_v51 = vld [vmem:[%s5544_s8 + $0x38] sm:$0xf]  ;;  %712 = vst [vmem:[#allocation2 + $0xd0] sm:$0xf] %v6039_v59 }
  0x63   : > { %v573_v38 = vrot.slane %v569_v15, 4  ;;  %v572_v48 = vor.u32 %v6764_v29, %v569_v15  ;;  %v337_v15 = vld [vmem:[#allocation2 + $0x180] sm:$0x1]  ;;  %711 = vst [vmem:[#allocation2 + $0xc4] sm:$0xf] %v6036_v51  ;;  %1834 = vmatpush.bf16.msrb.mxu2 %v5266_v32  ;;  %v6788_v32 = vshll.u32 %v5619_v36, 16 }
  0x64   : > { %v6061_v25 = vld [vmem:[%s5544_s8 + $0x78] sm:$0xf]  ;;  %728 = vst [vmem:[#allocation2 + $0x190] sm:$0xf] %v6069_v5  ;;  %v5217_v28 = vld [vmem:[#allocation2 + $0x94] sm:$0xf] }
  0x65   : > { %v581_v53 = vsel %vm5584_vm6, %v573_v38, %v580_v19  ;;  %v690_v33 = vsel %vm5607_vm7, %v572_v48, %v689_v62  ;;  %v5187_v62 = vld [vmem:[%s6714_s1 + $0x48] sm:$0xff]  ;;  %v6767_v58 = vshrl.u32 %v6061_v25, 16  ;;  %v6774_v54 = vshll.u32 %v6061_v25, 16  ;;  %727 = vst [vmem:[#allocation2 + $0x184] sm:$0xf] %v6061_v25  ;;  %2501 = vmatpush.bf16.msrb.mxu1 %v5194_v8  ;;  %v5337_v8 = vld [vmem:[%s6714_s1 + $0x1f8] sm:$0xff] }
  0x66   : > { %692 = vst [vmem:[#allocation2 + $0x174] sm:$0xf] %v581_v53  ;;  %v338_v53 = vsel %vm5548_vm3, 0, %v337_v15  ;;  %2411 = vmatpush.bf16.msrb.mxu0 %v5187_v62  ;;  %v5218_v15 = vld [vmem:[#allocation2 + $0x98] sm:$0xf0] }
  0x67   : > { %691 = vst [vmem:[#allocation2 + $0x168] sm:$0xf] %v690_v33  ;;  %v4164_v33 = vld [vmem:[#allocation2 + $0x90] sm:$0xf]  ;;  %v585_v7 = vrot.slane %v6767_v58, 7  ;;  %v5345_v36 = vld [vmem:[%s6714_s1 + $0x238] sm:$0xff] }
  0x68   : > { %339 = vst [vmem:[#allocation2 + $0x180] sm:$0x1] %v338_v53  ;;  %v5242_v62 = vld [vmem:[#allocation2 + $0x158] sm:$0xf0]  ;;  %v4166_v53 = vld [vmem:[#allocation2 + $0x9c] sm:$0xf0]  ;;  %v4165_v56 = vor.u32 %v5218_v15, %v4164_v33 }
  0x69   : > { %vm729_vm8 = vsmask.f32 3328  ;;  %v910_v9 = vld [vmem:[#allocation2 + $0x2c] sm:$0xf]  ;;  %v4169_v13 = vor.u32 %v5217_v28, %v4166_v53  ;;  %vm730_vm10 = vsmask.f32 7440 }
  0x6a   : > { %vm6101_vm9 = vmand %vm630_vm2, %vm729_vm8  ;;  %vm974_vm13 = vsmask.f32 7950  ;;  %v747_v28 = vrot.slane %v367_v49, 4  ;;  %v4176_v53 = vld [vmem:[#allocation2 + $0xa8] sm:$0xf] }
  0x6b   : > { %1677 = vmatmul.bf16.gmra.mxu0 %v4153_v3  ;;  %1717 = vmatmul.bf16.gmra.mxu2 %v4249_v4  ;;  %v6765_v3 = vshll.u32 %v6036_v51, 16  ;;  %v6768_v4 = vshrl.u32 %v6039_v59, 16  ;;  %vm6126_vm12 = vmor %vm729_vm8, %vm730_vm10 }
  0x6c   : > { %1766 = vmatmul.bf16.gmra.mxu1 %v4157_v41  ;;  %v6766_v41 = vshrl.u32 %v6036_v51, 16  ;;  %vm6132_vm14 = vmand %vm973_vm11, %vm974_vm13 }
  0x6d   : > { %v465_v23 = vrot.slane %v6768_v4, 7  ;;  %v588_v4 = vor.u32 %v6774_v54, %v585_v7 }
  0x6e   : > { %1806 = vmatmul.bf16.gmra.mxu3 %v4253_v44  ;;  %v457_v22 = vrot.slane %v6766_v41, 7  ;;  %v6771_v44 = vshrl.u32 %v6069_v5, 16  ;;  %v4260_v41 = vld [vmem:[#allocation2 + $0x150] sm:$0xf] }
  0x6f   : > { %v468_v48 = vor.u32 %v6769_v52, %v465_v23  ;;  %v661_v23 = vld [vmem:[#allocation2 + $0xc0] sm:$0xf]  ;;  %v589_v52 = vrot.slane %v585_v7, 4  ;;  %v4261_v47 = vor.u32 %v5242_v62, %v4260_v41  ;;  %v732_v41 = vrot.slane %v343_v11, 4 }
  0x70   : > { %v460_v38 = vor.u32 %v6765_v3, %v457_v22  ;;  %v461_v19 = vrot.slane %v457_v22, 4  ;;  %v593_v29 = vrot.slane %v6771_v44, 7  ;;  %v736_v3 = vrot.slane %v354_v14, 5  ;;  %v5330_v7 = vld [vmem:[%s6714_s1 + $0x1c0] sm:$0xff] }
  0x71   : > { %v745_v62 = vrot.slane %v370_v50, 5 }
  0x72   : > { %v469_v22 = vsel %vm5584_vm6, %v461_v19, %v468_v48  ;;  %v662_v58 = vsel %vm5607_vm7, %v460_v38, %v661_v23  ;;  %v5241_v19 = vld [vmem:[#allocation2 + $0x154] sm:$0xf]  ;;  %v4262_v48 = vld [vmem:[#allocation2 + $0x15c] sm:$0xf0]  ;;  %v596_v44 = vor.u32 %v6775_v35, %v593_v29  ;;  %v739_v14 = vor.u32 %v738_v55, %v736_v3 }
  0x73   : > { %664 = vst [vmem:[#allocation2 + $0xcc] sm:$0xf] %v469_v22  ;;  %v693_v22 = vld [vmem:[#allocation2 + $0x180] sm:$0xf]  ;;  %v5221_v23 = vld [vmem:[#allocation2 + $0xb0] sm:$0xf0] }
  0x74   : > { %663 = vst [vmem:[#allocation2 + $0xc0] sm:$0xf] %v662_v58  ;;  %v597_v38 = vsel %vm5584_vm6, %v589_v52, %v596_v44  ;;  %v4265_v58 = vor.u32 %v5241_v19, %v4262_v48  ;;  %v694_v29 = vsel %vm5607_vm7, %v588_v4, %v693_v22  ;;  %v740_v55 = vrot.slane %v739_v14, 4  ;;  %v5178_v4 = vld [vmem:[%s6714_s1] sm:$0xff]  ;;  %v5220_v19 = vld [vmem:[#allocation2 + $0xac] sm:$0xf] }
  0x75   : > { %696 = vst [vmem:[#allocation2 + $0x18c] sm:$0xf] %v597_v38  ;;  %v733_v52 = vrot.slane %v346_v12, 5  ;;  %2323 = vmatpush.bf16.msrb.mxu3 %v5178_v4  ;;  %v4178_v48 = vld [vmem:[#allocation2 + $0xb4] sm:$0xf0]  ;;  %v4177_v37 = vor.u32 %v5221_v23, %v4176_v53  ;;  %v742_v4 = vrot.slane %v6788_v32, 5 }
  0x76   : > { %695 = vst [vmem:[#allocation2 + $0x180] sm:$0xf] %v694_v29  ;;  %v911_v21 = vsel %vm6101_vm9, %v740_v55, %v910_v9  ;;  %v4272_v38 = vld [vmem:[#allocation2 + $0x168] sm:$0xf]  ;;  %v5245_v22 = vld [vmem:[#allocation2 + $0x170] sm:$0xf0]  ;;  %v748_v9 = vor.u32 %v747_v28, %v745_v62  ;;  %v4181_v55 = vor.u32 %v5220_v19, %v4178_v48 }
  0x77   : > { %912 = vst [vmem:[#allocation2 + $0x2c] sm:$0xf] %v911_v21  ;;  %v734_v11 = vor.u32 %v733_v52, %v732_v41  ;;  %v4273_v49 = vor.u32 %v5245_v22, %v4272_v38  ;;  %v914_v29 = vld [vmem:[#allocation2 + $0x44] sm:$0xf]  ;;  %v741_v52 = vrot.slane %v359_v46, 4  ;;  %v6790_v28 = vshrl.u32 %v5702_v42, 16 }
  0x78   : > { %v749_v50 = vrot.slane %v748_v9, 4  ;;  %v5223_v48 = vld [vmem:[#allocation2 + $0xc4] sm:$0xf] }
  0x79   : > { %v735_v12 = vrot.slane %v734_v11, 4  ;;  %v743_v11 = vor.u32 %v742_v4, %v741_v52  ;;  %3186 = vmatpush.bf16.msra.mxu3 %v5337_v8  ;;  %v756_v53 = vrot.slane %v6790_v28, 4  ;;  %v5247_v9 = vld [vmem:[#allocation2 + $0x184] sm:$0xf]  ;;  %v6791_v52 = vshrl.u32 %v5698_v40, 16 }
  0x7a   : > { %v915_v41 = vsel %vm6101_vm9, %v749_v50, %v914_v29  ;;  %v5224_v19 = vld [vmem:[#allocation2 + $0xc8] sm:$0xf0]  ;;  %v6792_v4 = vshll.u32 %v5698_v40, 16 }
  0x7b   : > { %1682 = vmatmul.bf16.gmra.mxu0 %v4165_v56  ;;  %1722 = vmatmul.bf16.gmra.mxu2 %v4261_v47  ;;  %v5186_v47 = vld [vmem:[%s6714_s1 + $0x40] sm:$0xff]  ;;  %v737_v44 = vsel %vm6126_vm12, %v735_v12, %v736_v3  ;;  %v5482_v3 = vmov 0   ;;  %916 = vst [vmem:[#allocation2 + $0x44] sm:$0xf] %v915_v41  ;;  %v744_v12 = vrot.slane %v743_v11, 4  ;;  %v750_v32 = vrot.slane %v6791_v52, 4 }
  0x7c   : > { %1771 = vmatmul.bf16.gmra.mxu1 %v4169_v13  ;;  %2412 = vmatpush.bf16.msrb.mxu0 %v5186_v47  ;;  %908 = vst [vmem:[#allocation2 + $0x20] sm:$0xf] %v737_v44  ;;  %v5244_v13 = vld [vmem:[#allocation2 + $0x16c] sm:$0xf]  ;;  %v5329_v47 = vld [vmem:[%s6714_s1 + $0x1b8] sm:$0xff]  ;;  %v6789_v44 = vshll.u32 %v5702_v42, 16 }
  0x7d   : > { %279 = vst [vmem:[#allocation2] sm:$0xff] %v5482_v3  ;;  %3097 = vmatpush.bf16.msra.mxu2 %v5329_v47  ;;  %v746_v46 = vsel %vm6126_vm12, %v744_v12, %v745_v62  ;;  %v4188_v23 = vld [vmem:[#allocation2 + $0xc0] sm:$0xf]  ;;  %v5248_v38 = vld [vmem:[#allocation2 + $0x188] sm:$0xf0]  ;;  %v751_v47 = vrot.slane %v6792_v4, 5 }
  0x7e   : > { %1811 = vmatmul.bf16.gmra.mxu3 %v4265_v58  ;;  %v976_v15 = vld [vmem:[#allocation2 + $0x2c] sm:$0x8]  ;;  %v4274_v58 = vld [vmem:[#allocation2 + $0x174] sm:$0xf0]  ;;  %281 = vst [vmem:[#allocation2 + $0xc] sm:$0xff] %v5482_v3  ;;  %v6796_v52 = vshll.u32 %v5786_v1, 16 }
  0x7f   : > { %v977_v14 = vsel %vm6132_vm14, 0, %v976_v15  ;;  %280 = vst [vmem:[#allocation2 + $0x8] sm:$0xf] %v5482_v3  ;;  %v4277_v21 = vor.u32 %v5244_v13, %v4274_v58  ;;  %v754_v15 = vrot.slane %v6789_v44, 5  ;;  %v4286_v13 = vld [vmem:[#allocation2 + $0x18c] sm:$0xf0]  ;;  %v752_v8 = vor.u32 %v751_v47, %v750_v32 }
  0x80   : > { %978 = vst [vmem:[#allocation2 + $0x2c] sm:$0x8] %v977_v14  ;;  %v4190_v14 = vld [vmem:[#allocation2 + $0xcc] sm:$0xf0]  ;;  %3275 = vmatpush.bf16.msra.mxu0 %v5345_v36  ;;  %v918_v42 = vld [vmem:[#allocation2 + $0x5c] sm:$0xf] }
  0x81   : > { %282 = vst [vmem:[#allocation2 + $0x14] sm:$0xf] %v5482_v3  ;;  %v757_v62 = vor.u32 %v756_v53, %v754_v15  ;;  %v4193_v29 = vor.u32 %v5223_v48, %v4190_v14  ;;  %v753_v11 = vrot.slane %v752_v8, 4  ;;  %v6793_v44 = vshll.u32 %v5789_v10, 16  ;;  %v5328_v4 = vld [vmem:[%s6714_s1 + $0x1b0] sm:$0xff]  ;;  %v5338_v56 = vld [vmem:[%s6714_s1 + $0x200] sm:$0xff] }
  0x82   : > { %284 = vst [vmem:[#allocation2 + $0x198] sm:$0xff] %v5482_v3  ;;  %v979_v22 = vld [vmem:[#allocation2 + $0x44] sm:$0x8]  ;;  %v6794_v53 = vshrl.u32 %v5789_v10, 16  ;;  %v760_v32 = vrot.slane %v6796_v52, 5  ;;  %v5336_v47 = vld [vmem:[%s6714_s1 + $0x1f0] sm:$0xff]  ;;  %3098 = vmatpush.bf16.msra.mxu2 %v5328_v4 }
  0x83   : > { %285 = vst [vmem:[#allocation2 + $0x1a0] sm:$0xf] %v5482_v3  ;;  %v980_v58 = vsel %vm6132_vm14, 0, %v979_v22  ;;  %v758_v50 = vrot.slane %v757_v62, 4  ;;  %v755_v12 = vsel %vm6126_vm12, %v753_v11, %v754_v15  ;;  %v763_v28 = vrot.slane %v6793_v44, 5  ;;  %3187 = vmatpush.bf16.msra.mxu3 %v5336_v47 }
  0x84   : > { %286 = vst [vmem:[#allocation2 + $0x1a4] sm:$0xff] %v5482_v3  ;;  %v5130_v40 = vld [vmem:[#allocation2 + $0x4] sm:$0xf] }
  0x85   : > { %287 = vst [vmem:[#allocation2 + $0x1ac] sm:$0xf] %v5482_v3  ;;  %v4284_v3 = vld [vmem:[#allocation2 + $0x180] sm:$0xf]  ;;  %v919_v41 = vsel %vm6101_vm9, %v758_v50, %v918_v42  ;;  %v5131_v22 = vld [vmem:[#allocation2 + $0x8] sm:$0xf0] }
  0x86   : > { %913 = vst [vmem:[#allocation2 + $0x38] sm:$0xf] %v746_v46  ;;  %v4112_v46 = vld [vmem:[#allocation2 + $0x20] sm:$0xf]  ;;  %v4400_v15 = vld [vmem:[#allocation2 + $0x8] sm:$0xf] }
  0x87   : > { %981 = vst [vmem:[#allocation2 + $0x44] sm:$0x8] %v980_v58  ;;  %v5204_v14 = vld [vmem:[#allocation2 + $0x28] sm:$0xf0]  ;;  %v922_v50 = vld [vmem:[#allocation2 + $0x74] sm:$0xf] }
  0x88   : > { %920 = vst [vmem:[#allocation2 + $0x5c] sm:$0xf] %v919_v41  ;;  %v5132_v62 = vld [vmem:[#allocation2 + $0x10] sm:$0xf0] }
  0x89   : > { %917 = vst [vmem:[#allocation2 + $0x50] sm:$0xf] %v755_v12  ;;  %v4401_v10 = vor.u32 %v5132_v62, %v4400_v15  ;;  %v5134_v15 = vld [vmem:[#allocation2 + $0x20] sm:$0xf0]  ;;  %v5133_v62 = vld [vmem:[#allocation2 + $0x1c] sm:$0xf] }
  0x8b   : > { %1687 = vmatmul.bf16.gmra.mxu0 %v4177_v37  ;;  %1727 = vmatmul.bf16.gmra.mxu2 %v4273_v49  ;;  %v4189_v37 = vor.u32 %v5224_v19, %v4188_v23  ;;  %v4285_v49 = vor.u32 %v5248_v38, %v4284_v3  ;;  %v765_v23 = vrot.slane %v6794_v53, 4  ;;  %v4392_v19 = vld [vmem:[#allocation2] sm:$0xf]  ;;  %v4394_v3 = vld [vmem:[#allocation2 + $0xc] sm:$0xf0] }
  0x8c   : > { %1776 = vmatmul.bf16.gmra.mxu1 %v4181_v55  ;;  %v4289_v55 = vor.u32 %v5247_v9, %v4286_v13  ;;  %v4113_v13 = vor.u32 %v5204_v14, %v4112_v46  ;;  %v4397_v58 = vor.u32 %v5130_v40, %v4394_v3  ;;  %v5344_v40 = vld [vmem:[%s6714_s1 + $0x230] sm:$0xff]  ;;  %v6798_v3 = vshrl.u32 %v5853_v2, 16 }
  0x8d   : > { %v766_v38 = vor.u32 %v765_v23, %v763_v28  ;;  %3276 = vmatpush.bf16.msra.mxu0 %v5344_v40 }
  0x8e   : > { %1816 = vmatmul.bf16.gmra.mxu3 %v4277_v21  ;;  %v5353_v21 = vld [vmem:[%s6715_s2 + $0x38] sm:$0xff] }
  0x8f   : > { %3556 = vmatpush.bf16.msra.mxu1 %v5353_v21  ;;  %v982_v36 = vld [vmem:[#allocation2 + $0x5c] sm:$0x8]  ;;  %v767_v9 = vrot.slane %v766_v38, 4  ;;  %v6795_v21 = vshrl.u32 %v5786_v1, 16  ;;  %v774_v38 = vrot.slane %v6798_v3, 4 }
  0x90   : > { %v983_v48 = vsel %vm6132_vm14, 0, %v982_v36 }
  0x91   : > { %984 = vst [vmem:[#allocation2 + $0x5c] sm:$0x8] %v983_v48  ;;  %v759_v41 = vrot.slane %v6795_v21, 4  ;;  %v6797_v48 = vshll.u32 %v5853_v2, 16 }
  0x93   : > { %v761_v8 = vor.u32 %v760_v32, %v759_v41  ;;  %v772_v14 = vrot.slane %v6797_v48, 5  ;;  %v926_v41 = vld [vmem:[#allocation2 + $0x8c] sm:$0xf] }
  0x95   : > { %v762_v46 = vrot.slane %v761_v8, 4  ;;  %v5352_v8 = vld [vmem:[%s6715_s2 + $0x30] sm:$0xff] }
  0x96   : > { %3557 = vmatpush.bf16.msra.mxu1 %v5352_v8 }
  0x97   : > { %v764_v53 = vsel %vm6126_vm12, %v762_v46, %v763_v28  ;;  %v4406_v28 = vld [vmem:[#allocation2 + $0x24] sm:$0xf0] }
  0x98   : > { %921 = vst [vmem:[#allocation2 + $0x68] sm:$0xf] %v764_v53  ;;  %v4409_v2 = vor.u32 %v5133_v62, %v4406_v28  ;;  %v6800_v53 = vshll.u32 %v5850_v34, 16  ;;  %v4136_v28 = vld [vmem:[#allocation2 + $0x50] sm:$0xf] }
  0x9b   : > { %1692 = vmatmul.bf16.gmra.mxu0 %v4189_v37  ;;  %1732 = vmatmul.bf16.gmra.mxu2 %v4285_v49  ;;  %v4393_v49 = vor.u32 %v5131_v22, %v4392_v19  ;;  %v4124_v19 = vld [vmem:[#allocation2 + $0x38] sm:$0xf] }
  0x9c   : > { %1781 = vmatmul.bf16.gmra.mxu1 %v4193_v29  ;;  %v923_v29 = vsel %vm6101_vm9, %v767_v9, %v922_v50  ;;  %v4404_v22 = vld [vmem:[#allocation2 + $0x18] sm:$0xf]  ;;  %v775_v50 = vor.u32 %v774_v38, %v772_v14 }
  0x9d   : > { %924 = vst [vmem:[#allocation2 + $0x74] sm:$0xf] %v923_v29  ;;  %v4405_v4 = vor.u32 %v5134_v15, %v4404_v22 }
  0x9e   : > { %1821 = vmatmul.bf16.gmra.mxu3 %v4289_v55 }
  0xa4   : > { %v985_v9 = vld [vmem:[#allocation2 + $0x74] sm:$0x8] }
  0xa8   : > { %v1658_v37 = vpop.f32.mrf.mxu0 }
  0xa9   : > { %v1747_v42 = vpop.f32.mrf.mxu1 }
  0xaa   : > { %v6184_v55 = vadd.f32 %v1747_v42, %v1658_v37  ;;  %v4412_v37 = vld [vmem:[#allocation2 + $0x20] sm:$0xf]  ;;  %v776_v42 = vrot.slane %v775_v50, 4 }
  0xab   : > { %1835 = vmatmul.bf16.vlgmr.msrb.gmra.mxu2 %v4113_v13  ;;  %2413 = vmatmul.bf16.vlgmr.msrb.gmra.mxu0 %v4397_v58  ;;  %v5207_v13 = vld [vmem:[#allocation2 + $0x40] sm:$0xf0]  ;;  %v986_v58 = vsel %vm6132_vm14, 0, %v985_v9 }
  0xac   : > { %2502 = vmatmul.bf16.vlgmr.msrb.gmra.mxu1 %v4401_v10  ;;  %987 = vst [vmem:[#allocation2 + $0x74] sm:$0x8] %v986_v58  ;;  %v4125_v21 = vor.u32 %v5207_v13, %v4124_v19  ;;  %v769_v19 = vrot.slane %v6800_v53, 5  ;;  %v6801_v58 = vshll.u32 %v5921_v45, 16 }
  0xae   : > { %2324 = vmatmul.bf16.vlgmr.msrb.gmra.mxu3 %v4393_v49  ;;  %v1698_v11 = vpop.f32.mrf.mxu2  ;;  %v5135_v49 = vld [vmem:[#allocation2 + $0x28] sm:$0xf0]  ;;  %v781_v50 = vrot.slane %v6801_v58, 5 }
  0xaf   : > { %v4413_v47 = vor.u32 %v5135_v49, %v4412_v37  ;;  %v6802_v37 = vshrl.u32 %v5921_v45, 16  ;;  %v5335_v58 = vld [vmem:[%s6714_s1 + $0x1e8] sm:$0xff] }
  0xb0   : > { %v1660_v1 = vpop.f32.mrf.mxu0  ;;  %3188 = vmatpush.bf16.msra.mxu3 %v5335_v58  ;;  %v934_v58 = vld [vmem:[#allocation2 + $0xbc] sm:$0xf] }
  0xb1   : > { %v1787_v12 = vpop.f32.mrf.mxu3  ;;  %v1749_v44 = vpop.f32.mrf.mxu1  ;;  %v783_v49 = vrot.slane %v6802_v37, 4 }
  0xb2   : > { %v6196_v36 = vadd.f32 %v1787_v12, %v1698_v11  ;;  %v6200_v23 = vadd.f32 %v1749_v44, %v1660_v1  ;;  %v927_v11 = vsel %vm6101_vm9, %v776_v42, %v926_v41  ;;  %v6799_v1 = vshrl.u32 %v5850_v34, 16  ;;  %v5136_v42 = vld [vmem:[#allocation2 + $0x34] sm:$0xf]  ;;  %v5137_v41 = vld [vmem:[#allocation2 + $0x38] sm:$0xf0] }
  0xb3   : > { %928 = vst [vmem:[#allocation2 + $0x8c] sm:$0xf] %v927_v11 }
  0xb4   : > { %v768_v44 = vrot.slane %v6799_v1, 4 }
  0xb6   : > { %v1700_v10 = vpop.f32.mrf.mxu2  ;;  %v770_v40 = vor.u32 %v769_v19, %v768_v44  ;;  %v930_v44 = vld [vmem:[#allocation2 + $0xa4] sm:$0xf] }
  0xb8   : > { %v1663_v32 = vpop.f32.mrf.mxu0  ;;  %v771_v38 = vrot.slane %v770_v40, 4 }
  0xb9   : > { %v1789_v29 = vpop.f32.mrf.mxu3  ;;  %v1752_v12 = vpop.f32.mrf.mxu1 }
  0xba   : > { %v6211_v52 = vadd.f32 %v1789_v29, %v1700_v10  ;;  %v6218_v46 = vadd.f32 %v1752_v12, %v1663_v32  ;;  %v773_v9 = vsel %vm6126_vm12, %v771_v38, %v772_v14  ;;  %v988_v34 = vld [vmem:[#allocation2 + $0x8c] sm:$0x8]  ;;  %v4416_v10 = vld [vmem:[#allocation2 + $0x30] sm:$0xf]  ;;  %v784_v14 = vor.u32 %v783_v49, %v781_v50  ;;  %v4424_v32 = vld [vmem:[#allocation2 + $0x38] sm:$0xf] }
  0xbb   : > { %1840 = vmatmul.bf16.gmra.mxu2 %v4125_v21  ;;  %2418 = vmatmul.bf16.gmra.mxu0 %v4409_v2  ;;  %925 = vst [vmem:[#allocation2 + $0x80] sm:$0xf] %v773_v9  ;;  %v989_v29 = vsel %vm6132_vm14, 0, %v988_v34  ;;  %v5210_v21 = vld [vmem:[#allocation2 + $0x58] sm:$0xf0]  ;;  %v4417_v19 = vor.u32 %v5137_v41, %v4416_v10  ;;  %v6804_v9 = vshll.u32 %v5902_v43, 16 }
  0xbc   : > { %2507 = vmatmul.bf16.gmra.mxu1 %v4413_v47  ;;  %v4418_v2 = vld [vmem:[#allocation2 + $0x3c] sm:$0xf0]  ;;  %990 = vst [vmem:[#allocation2 + $0x8c] sm:$0x8] %v989_v29  ;;  %v785_v8 = vrot.slane %v784_v14, 4  ;;  %v4137_v12 = vor.u32 %v5210_v21, %v4136_v28  ;;  %v5327_v34 = vld [vmem:[%s6714_s1 + $0x1a8] sm:$0xff] }
  0xbd   : > { %v4421_v1 = vor.u32 %v5136_v42, %v4418_v2  ;;  %v778_v28 = vrot.slane %v6804_v9, 5  ;;  %3099 = vmatpush.bf16.msra.mxu2 %v5327_v34  ;;  %v4148_v41 = vld [vmem:[#allocation2 + $0x68] sm:$0xf] }
  0xbe   : > { %2329 = vmatmul.bf16.gmra.mxu3 %v4405_v4  ;;  %v1703_v48 = vpop.f32.mrf.mxu2  ;;  %v5138_v4 = vld [vmem:[#allocation2 + $0x40] sm:$0xf0] }
  0xbf   : > { %v4425_v40 = vor.u32 %v5138_v4, %v4424_v32  ;;  %v5343_v32 = vld [vmem:[%s6714_s1 + $0x228] sm:$0xff]  ;;  %v6805_v4 = vshll.u32 %v5973_v20, 16 }
  0xc0   : > { %v1665_v15 = vpop.f32.mrf.mxu0  ;;  %3277 = vmatpush.bf16.msra.mxu0 %v5343_v32 }
  0xc1   : > { %v1792_v3 = vpop.f32.mrf.mxu3  ;;  %v1754_v62 = vpop.f32.mrf.mxu1 }
  0xc2   : > { %v6224_v22 = vadd.f32 %v1792_v3, %v1703_v48  ;;  %v6228_v13 = vadd.f32 %v1754_v62, %v1665_v15  ;;  %v931_v3 = vsel %vm6101_vm9, %v785_v8, %v930_v44  ;;  %v6803_v15 = vshrl.u32 %v5902_v43, 16  ;;  %v5139_v44 = vld [vmem:[#allocation2 + $0x4c] sm:$0xf] }
  0xc3   : > { %932 = vst [vmem:[#allocation2 + $0xa4] sm:$0xf] %v931_v3  ;;  %v6806_v8 = vshrl.u32 %v5973_v20, 16  ;;  %v4436_v3 = vld [vmem:[#allocation2 + $0x50] sm:$0xf] }
  0xc4   : > { %v777_v62 = vrot.slane %v6803_v15, 4  ;;  %v5141_v15 = vld [vmem:[#allocation2 + $0x58] sm:$0xf0] }
  0xc6   : > { %v1705_v47 = vpop.f32.mrf.mxu2  ;;  %v779_v37 = vor.u32 %v778_v28, %v777_v62 }
  0xc8   : > { %v1668_v53 = vpop.f32.mrf.mxu0  ;;  %v780_v42 = vrot.slane %v779_v37, 4 }
  0xc9   : > { %v1794_v11 = vpop.f32.mrf.mxu3  ;;  %v1757_v48 = vpop.f32.mrf.mxu1 }
  0xca   : > { %v6236_v45 = vadd.f32 %v1794_v11, %v1705_v47  ;;  %v6240_v38 = vadd.f32 %v1757_v48, %v1668_v53  ;;  %v782_v2 = vsel %vm6126_vm12, %v780_v42, %v781_v50  ;;  %v790_v47 = vrot.slane %v6805_v4, 5  ;;  %v991_v53 = vld [vmem:[#allocation2 + $0xa4] sm:$0x8]  ;;  %v4430_v50 = vld [vmem:[#allocation2 + $0x54] sm:$0xf0] }
  0xcb   : > { %1845 = vmatmul.bf16.gmra.mxu2 %v4137_v12  ;;  %2423 = vmatmul.bf16.gmra.mxu0 %v4421_v1  ;;  %929 = vst [vmem:[#allocation2 + $0x98] sm:$0xf] %v782_v2  ;;  %v792_v11 = vrot.slane %v6806_v8, 4  ;;  %v4428_v12 = vld [vmem:[#allocation2 + $0x48] sm:$0xf]  ;;  %v4433_v20 = vor.u32 %v5139_v44, %v4430_v50  ;;  %v4437_v42 = vor.u32 %v5141_v15, %v4436_v3  ;;  %v6808_v8 = vshll.u32 %v5970_v6, 16 }
  0xcc   : > { %2512 = vmatmul.bf16.gmra.mxu1 %v4425_v40  ;;  %v5140_v1 = vld [vmem:[#allocation2 + $0x50] sm:$0xf0]  ;;  %v992_v40 = vsel %vm6132_vm14, 0, %v991_v53  ;;  %v4160_v15 = vld [vmem:[#allocation2 + $0x80] sm:$0xf] }
  0xcd   : > { %v793_v48 = vor.u32 %v792_v11, %v790_v47  ;;  %993 = vst [vmem:[#allocation2 + $0xa4] sm:$0x8] %v992_v40  ;;  %v787_v11 = vrot.slane %v6808_v8, 5 }
  0xce   : > { %2334 = vmatmul.bf16.gmra.mxu3 %v4417_v19  ;;  %v1708_v49 = vpop.f32.mrf.mxu2  ;;  %v5213_v19 = vld [vmem:[#allocation2 + $0x70] sm:$0xf0] }
  0xcf   : > { %v794_v9 = vrot.slane %v793_v48, 4  ;;  %v4149_v34 = vor.u32 %v5213_v19, %v4148_v41  ;;  %v6807_v41 = vshrl.u32 %v5970_v6, 16 }
  0xd0   : > { %v1670_v43 = vpop.f32.mrf.mxu0 }
  0xd1   : > { %v1797_v10 = vpop.f32.mrf.mxu3  ;;  %v1759_v21 = vpop.f32.mrf.mxu1  ;;  %v786_v4 = vrot.slane %v6807_v41, 4 }
  0xd2   : > { %v6252_v29 = vadd.f32 %v1797_v10, %v1708_v49  ;;  %v6256_v14 = vadd.f32 %v1759_v21, %v1670_v43  ;;  %v4429_v10 = vor.u32 %v5140_v1, %v4428_v12  ;;  %v5351_v43 = vld [vmem:[%s6715_s2 + $0x28] sm:$0xff]  ;;  %v935_v21 = vsel %vm6101_vm9, %v794_v9, %v934_v58  ;;  %v5142_v58 = vld [vmem:[#allocation2 + $0x64] sm:$0xf] }
  0xd3   : > { %3558 = vmatpush.bf16.msra.mxu1 %v5351_v43  ;;  %936 = vst [vmem:[#allocation2 + $0xbc] sm:$0xf] %v935_v21  ;;  %v788_v12 = vor.u32 %v787_v11, %v786_v4  ;;  %v5143_v43 = vld [vmem:[#allocation2 + $0x68] sm:$0xf0]  ;;  %v4448_v21 = vld [vmem:[#allocation2 + $0x68] sm:$0xf] }
  0xd5   : > { %v789_v53 = vrot.slane %v788_v12, 4 }
  0xd6   : > { %v1710_v62 = vpop.f32.mrf.mxu2 }
  0xd7   : > { %v791_v48 = vsel %vm6126_vm12, %v789_v53, %v790_v47 }
  0xd8   : > { %v1673_v49 = vpop.f32.mrf.mxu0  ;;  %933 = vst [vmem:[#allocation2 + $0xb0] sm:$0xf] %v791_v48 }
  0xd9   : > { %v1799_v28 = vpop.f32.mrf.mxu3  ;;  %v1762_v2 = vpop.f32.mrf.mxu1 }
  0xda   : > { %v6267_v37 = vadd.f32 %v1799_v28, %v1710_v62  ;;  %v6274_v32 = vadd.f32 %v1762_v2, %v1673_v49  ;;  %v994_v6 = vld [vmem:[#allocation2 + $0xbc] sm:$0x8]  ;;  %v6809_v62 = vshll.u32 %v6039_v59, 16  ;;  %v6810_v28 = vshrl.u32 %v6039_v59, 16  ;;  %v5144_v2 = vld [vmem:[#allocation2 + $0x70] sm:$0xf0] }
  0xdb   : > { %1850 = vmatmul.bf16.gmra.mxu2 %v4149_v34  ;;  %2428 = vmatmul.bf16.gmra.mxu0 %v4433_v20  ;;  %v4440_v20 = vld [vmem:[#allocation2 + $0x60] sm:$0xf]  ;;  %v995_v49 = vsel %vm6132_vm14, 0, %v994_v6 }
  0xdc   : > { %2517 = vmatmul.bf16.gmra.mxu1 %v4437_v42  ;;  %v799_v9 = vrot.slane %v6809_v62, 5  ;;  %v801_v34 = vrot.slane %v6810_v28, 4  ;;  %v4442_v42 = vld [vmem:[#allocation2 + $0x6c] sm:$0xf0]  ;;  %996 = vst [vmem:[#allocation2 + $0xbc] sm:$0x8] %v995_v49  ;;  %v4441_v53 = vor.u32 %v5143_v43, %v4440_v20 }
  0xdd   : > { %v4445_v12 = vor.u32 %v5142_v58, %v4442_v42  ;;  %v6811_v62 = vshrl.u32 %v6036_v51, 16  ;;  %v5326_v20 = vld [vmem:[%s6714_s1 + $0x1a0] sm:$0xff] }
  0xde   : > { %2339 = vmatmul.bf16.gmra.mxu3 %v4429_v10  ;;  %v1713_v1 = vpop.f32.mrf.mxu2  ;;  %v5216_v10 = vld [vmem:[#allocation2 + $0x88] sm:$0xf0]  ;;  %v802_v47 = vor.u32 %v801_v34, %v799_v9  ;;  %v5334_v58 = vld [vmem:[%s6714_s1 + $0x1e0] sm:$0xff]  ;;  %3100 = vmatpush.bf16.msra.mxu2 %v5326_v20 }
  0xdf   : > { %v4161_v11 = vor.u32 %v5216_v10, %v4160_v15  ;;  %v795_v28 = vrot.slane %v6811_v62, 4  ;;  %v6812_v15 = vshll.u32 %v6036_v51, 16  ;;  %3189 = vmatpush.bf16.msra.mxu3 %v5334_v58  ;;  %v5219_v62 = vld [vmem:[#allocation2 + $0xa0] sm:$0xf0]  ;;  %v5147_v20 = vld [vmem:[#allocation2 + $0x88] sm:$0xf0] }
  0xe0   : > { %v1675_v50 = vpop.f32.mrf.mxu0  ;;  %v803_v4 = vrot.slane %v802_v47, 4 }
  0xe1   : > { %v1802_v44 = vpop.f32.mrf.mxu3  ;;  %v1764_v40 = vpop.f32.mrf.mxu1  ;;  %v796_v34 = vrot.slane %v6812_v15, 5 }
  0xe2   : > { %v6280_v19 = vadd.f32 %v1802_v44, %v1713_v1  ;;  %v6284_v3 = vadd.f32 %v1764_v40, %v1675_v50  ;;  %v938_v1 = vld [vmem:[#allocation2 + $0xd4] sm:$0xf]  ;;  %v4449_v50 = vor.u32 %v5144_v2, %v4448_v21 }
  0xe3   : > { %v939_v48 = vsel %vm6101_vm9, %v803_v4, %v938_v1  ;;  %v797_v49 = vor.u32 %v796_v34, %v795_v28  ;;  %v4172_v4 = vld [vmem:[#allocation2 + $0x98] sm:$0xf]  ;;  %v6814_v1 = vshrl.u32 %v5575_v17, 16  ;;  %v4460_v34 = vld [vmem:[#allocation2 + $0x80] sm:$0xf] }
  0xe4   : > { %940 = vst [vmem:[#allocation2 + $0xd4] sm:$0xf] %v939_v48 }
  0xe5   : > { %v798_v47 = vrot.slane %v797_v49, 4 }
  0xe6   : > { %v1715_v41 = vpop.f32.mrf.mxu2 }
  0xe7   : > { %v800_v2 = vsel %vm6126_vm12, %v798_v47, %v799_v9  ;;  %v4454_v9 = vld [vmem:[#allocation2 + $0x84] sm:$0xf0]  ;;  %v942_v47 = vld [vmem:[#allocation2 + $0xec] sm:$0xf] }
  0xe8   : > { %v1678_v44 = vpop.f32.mrf.mxu0  ;;  %937 = vst [vmem:[#allocation2 + $0xc8] sm:$0xf] %v800_v2 }
  0xe9   : > { %v1804_v8 = vpop.f32.mrf.mxu3  ;;  %v1767_v40 = vpop.f32.mrf.mxu1 }
  0xea   : > { %v6292_v59 = vadd.f32 %v1804_v8, %v1715_v41  ;;  %v6296_v6 = vadd.f32 %v1767_v40, %v1678_v44  ;;  %v5342_v8 = vld [vmem:[%s6714_s1 + $0x220] sm:$0xff]  ;;  %v810_v44 = vrot.slane %v6814_v1, 4  ;;  %v5145_v40 = vld [vmem:[#allocation2 + $0x7c] sm:$0xf] }
  0xeb   : > { %1855 = vmatmul.bf16.gmra.mxu2 %v4161_v11  ;;  %2433 = vmatmul.bf16.gmra.mxu0 %v4445_v12  ;;  %v6813_v11 = vshll.u32 %v5575_v17, 16  ;;  %v997_v48 = vld [vmem:[#allocation2 + $0xd4] sm:$0x8]  ;;  %v4457_v17 = vor.u32 %v5145_v40, %v4454_v9 }
  0xec   : > { %2522 = vmatmul.bf16.gmra.mxu1 %v4449_v50  ;;  %v5146_v50 = vld [vmem:[#allocation2 + $0x80] sm:$0xf0]  ;;  %3278 = vmatpush.bf16.msra.mxu0 %v5342_v8  ;;  %v998_v28 = vsel %vm6132_vm14, 0, %v997_v48 }
  0xed   : > { %v808_v12 = vrot.slane %v6813_v11, 5  ;;  %999 = vst [vmem:[#allocation2 + $0xd4] sm:$0x8] %v998_v28  ;;  %v4461_v11 = vor.u32 %v5147_v20, %v4460_v34  ;;  %v5350_v8 = vld [vmem:[%s6715_s2 + $0x20] sm:$0xff] }
  0xee   : > { %2344 = vmatmul.bf16.gmra.mxu3 %v4441_v53  ;;  %v1718_v10 = vpop.f32.mrf.mxu2  ;;  %v4452_v53 = vld [vmem:[#allocation2 + $0x78] sm:$0xf]  ;;  %3559 = vmatpush.bf16.msra.mxu1 %v5350_v8  ;;  %v5148_v8 = vld [vmem:[#allocation2 + $0x94] sm:$0xf] }
  0xef   : > { %v811_v15 = vor.u32 %v810_v44, %v808_v12  ;;  %v4453_v2 = vor.u32 %v5146_v50, %v4452_v53 }
  0xf0   : > { %v1680_v51 = vpop.f32.mrf.mxu0 }
  0xf1   : > { %v1807_v42 = vpop.f32.mrf.mxu3  ;;  %v1769_v21 = vpop.f32.mrf.mxu1  ;;  %v812_v49 = vrot.slane %v811_v15, 4 }
  0xf2   : > { %v6308_v43 = vadd.f32 %v1807_v42, %v1718_v10  ;;  %v6312_v41 = vadd.f32 %v1769_v21, %v1680_v51  ;;  %v4173_v42 = vor.u32 %v5219_v62, %v4172_v4  ;;  %v6815_v4 = vshrl.u32 %v5572_v16, 16 }
  0xf3   : > { %v943_v1 = vsel %vm6101_vm9, %v812_v49, %v942_v47  ;;  %v6816_v62 = vshll.u32 %v5572_v16, 16 }
  0xf4   : > { %v804_v40 = vrot.slane %v6815_v4, 4  ;;  %944 = vst [vmem:[#allocation2 + $0xec] sm:$0xf] %v943_v1  ;;  %v4466_v4 = vld [vmem:[#allocation2 + $0x9c] sm:$0xf0] }
  0xf5   : > { %v805_v53 = vrot.slane %v6816_v62, 5  ;;  %v4472_v62 = vld [vmem:[#allocation2 + $0x98] sm:$0xf] }
  0xf6   : > { %v1720_v58 = vpop.f32.mrf.mxu2 }
  0xf7   : > { %v806_v50 = vor.u32 %v805_v53, %v804_v40  ;;  %v5149_v40 = vld [vmem:[#allocation2 + $0x98] sm:$0xf0]  ;;  %v5150_v53 = vld [vmem:[#allocation2 + $0xa0] sm:$0xf0] }
  0xf8   : > { %v1683_v21 = vpop.f32.mrf.mxu0 }
  0xf9   : > { %v1809_v10 = vpop.f32.mrf.mxu3  ;;  %v1772_v44 = vpop.f32.mrf.mxu1  ;;  %v807_v15 = vrot.slane %v806_v50, 4 }
  0xfa   : > { %v6323_v51 = vadd.f32 %v1809_v10, %v1720_v58  ;;  %v6330_v48 = vadd.f32 %v1772_v44, %v1683_v21  ;;  %v6818_v21 = vshrl.u32 %v5663_v61, 16  ;;  %v5222_v44 = vld [vmem:[#allocation2 + $0xb8] sm:$0xf0] }
  0xfb   : > { %1860 = vmatmul.bf16.gmra.mxu2 %v4173_v42  ;;  %2438 = vmatmul.bf16.gmra.mxu0 %v4457_v17  ;;  %v809_v49 = vsel %vm6126_vm12, %v807_v15, %v808_v12  ;;  %v4184_v42 = vld [vmem:[#allocation2 + $0xb0] sm:$0xf]  ;;  %v1000_v16 = vld [vmem:[#allocation2 + $0xec] sm:$0x8]  ;;  %v6817_v17 = vshll.u32 %v5663_v61, 16 }
  0xfc   : > { %2527 = vmatmul.bf16.gmra.mxu1 %v4461_v11  ;;  %941 = vst [vmem:[#allocation2 + $0xe0] sm:$0xf] %v809_v49  ;;  %v4464_v11 = vld [vmem:[#allocation2 + $0x90] sm:$0xf]  ;;  %v1001_v1 = vsel %vm6132_vm14, 0, %v1000_v16  ;;  %v4185_v15 = vor.u32 %v5222_v44, %v4184_v42  ;;  %v6821_v42 = vshll.u32 %v5660_v60, 16 }
  0xfd   : > { %v817_v47 = vrot.slane %v6817_v17, 5  ;;  %1002 = vst [vmem:[#allocation2 + $0xec] sm:$0x8] %v1001_v1  ;;  %v4465_v17 = vor.u32 %v5149_v40, %v4464_v11  ;;  %v5325_v11 = vld [vmem:[%s6714_s1 + $0x198] sm:$0xff] }
  0xfe   : > { %2349 = vmatmul.bf16.gmra.mxu3 %v4453_v2  ;;  %v1723_v9 = vpop.f32.mrf.mxu2  ;;  %v819_v2 = vrot.slane %v6818_v21, 4  ;;  %v4473_v21 = vor.u32 %v5150_v53, %v4472_v62  ;;  %v5333_v44 = vld [vmem:[%s6714_s1 + $0x1d8] sm:$0xff]  ;;  %3101 = vmatpush.bf16.msra.mxu2 %v5325_v11  ;;  %v4484_v11 = vld [vmem:[#allocation2 + $0xb0] sm:$0xf] }
  0xff   : > { %3190 = vmatpush.bf16.msra.mxu3 %v5333_v44 }
 0x100   : > { %v1685_v20 = vpop.f32.mrf.mxu0  ;;  %v820_v12 = vor.u32 %v819_v2, %v817_v47  ;;  %v6820_v2 = vshrl.u32 %v5660_v60, 16 }
 0x101   : > { %v1812_v28 = vpop.f32.mrf.mxu3  ;;  %v1774_v58 = vpop.f32.mrf.mxu1 }
 0x102   : > { %v6336_v34 = vadd.f32 %v1812_v28, %v1723_v9  ;;  %v6340_v10 = vadd.f32 %v1774_v58, %v1685_v20  ;;  %v821_v9 = vrot.slane %v820_v12, 4  ;;  %v4469_v20 = vor.u32 %v5148_v8, %v4466_v4  ;;  %v946_v58 = vld [vmem:[#allocation2 + $0x104] sm:$0xf] }
 0x103   : > { %v813_v12 = vrot.slane %v6820_v2, 4  ;;  %v814_v8 = vrot.slane %v6821_v42, 5  ;;  %v5151_v2 = vld [vmem:[#allocation2 + $0xac] sm:$0xf] }
 0x104   : > { %v947_v16 = vsel %vm6101_vm9, %v821_v9, %v946_v58 }
 0x105   : > { %948 = vst [vmem:[#allocation2 + $0x104] sm:$0xf] %v947_v16  ;;  %v5152_v16 = vld [vmem:[#allocation2 + $0xb0] sm:$0xf0] }
 0x106   : > { %v1725_v50 = vpop.f32.mrf.mxu2 }
 0x108   : > { %v1688_v49 = vpop.f32.mrf.mxu0 }
 0x109   : > { %v1814_v28 = vpop.f32.mrf.mxu3  ;;  %v1777_v54 = vpop.f32.mrf.mxu1 }
 0x10a   : > { %v6348_v61 = vadd.f32 %v1814_v28, %v1725_v50  ;;  %v6352_v1 = vadd.f32 %v1777_v54, %v1688_v49  ;;  %v815_v54 = vor.u32 %v814_v8, %v813_v12  ;;  %v6824_v49 = vshrl.u32 %v5743_v26, 16  ;;  %v4478_v12 = vld [vmem:[#allocation2 + $0xb4] sm:$0xf0]  ;;  %v5225_v8 = vld [vmem:[#allocation2 + $0xd0] sm:$0xf0] }
 0x10b   : > { %1865 = vmatmul.bf16.gmra.mxu2 %v4185_v15  ;;  %2443 = vmatmul.bf16.gmra.mxu0 %v4469_v20  ;;  %v4196_v15 = vld [vmem:[#allocation2 + $0xc8] sm:$0xf]  ;;  %v6823_v20 = vshll.u32 %v5743_v26, 16 }
 0x10c   : > { %6819 = vst [vmem:[#allocation3_spill] sm:$0xff] %v6348_v61  ;;  %2532 = vmatmul.bf16.gmra.mxu1 %v4473_v21  ;;  %v816_v62 = vrot.slane %v815_v54, 4  ;;  %v4476_v21 = vld [vmem:[#allocation2 + $0xa8] sm:$0xf]  ;;  %v1003_v42 = vld [vmem:[#allocation2 + $0x104] sm:$0x8] }
 0x10d   : > { %v826_v58 = vrot.slane %v6823_v20, 5  ;;  %v5153_v54 = vld [vmem:[#allocation2 + $0xb8] sm:$0xf0]  ;;  %v4477_v35 = vor.u32 %v5152_v16, %v4476_v21 }
 0x10e   : > { %2354 = vmatmul.bf16.gmra.mxu3 %v4465_v17  ;;  %v1728_v4 = vpop.f32.mrf.mxu2  ;;  %v818_v9 = vsel %vm6126_vm12, %v816_v62, %v817_v47  ;;  %v828_v17 = vrot.slane %v6824_v49, 4  ;;  %v1004_v47 = vsel %vm6132_vm14, 0, %v1003_v42  ;;  %v5349_v21 = vld [vmem:[%s6715_s2 + $0x18] sm:$0xff] }
 0x10f   : > { %945 = vst [vmem:[#allocation2 + $0xf8] sm:$0xf] %v818_v9  ;;  %v950_v9 = vld [vmem:[#allocation2 + $0x11c] sm:$0xf]  ;;  %3560 = vmatpush.bf16.msra.mxu1 %v5349_v21  ;;  %v5156_v21 = vld [vmem:[#allocation2 + $0xd0] sm:$0xf0] }
 0x110   : > { %v1690_v60 = vpop.f32.mrf.mxu0  ;;  %v829_v44 = vor.u32 %v828_v17, %v826_v58  ;;  %1005 = vst [vmem:[#allocation2 + $0x104] sm:$0x8] %v1004_v47  ;;  %v6826_v47 = vshrl.u32 %v5736_v18, 16 }
 0x111   : > { %v1817_v40 = vpop.f32.mrf.mxu3  ;;  %v1779_v50 = vpop.f32.mrf.mxu1 }
 0x112   : > { %v6364_v53 = vadd.f32 %v1817_v40, %v1728_v4  ;;  %v6368_v28 = vadd.f32 %v1779_v50, %v1690_v60  ;;  %v5341_v4 = vld [vmem:[%s6714_s1 + $0x218] sm:$0xff]  ;;  %v830_v26 = vrot.slane %v829_v44, 4  ;;  %v4197_v60 = vor.u32 %v5225_v8, %v4196_v15 }
 0x113   : > { %v4481_v50 = vor.u32 %v5151_v2, %v4478_v12  ;;  %3279 = vmatpush.bf16.msra.mxu0 %v5341_v4  ;;  %v822_v44 = vrot.slane %v6826_v47, 4  ;;  %v6827_v15 = vshll.u32 %v5736_v18, 16  ;;  %v5228_v47 = vld [vmem:[#allocation2 + $0xe8] sm:$0xf0] }
 0x114   : > { %6822 = vst [vmem:[#allocation4_spill] sm:$0xff] %v6364_v53  ;;  %v4485_v53 = vor.u32 %v5153_v54, %v4484_v11  ;;  %v951_v17 = vsel %vm6101_vm9, %v830_v26, %v950_v9 }
 0x115   : > { %v823_v2 = vrot.slane %v6827_v15, 5  ;;  %952 = vst [vmem:[#allocation2 + $0x11c] sm:$0xf] %v951_v17  ;;  %v5154_v17 = vld [vmem:[#allocation2 + $0xc4] sm:$0xf] }
 0x116   : > { %v1730_v40 = vpop.f32.mrf.mxu2  ;;  %v5155_v15 = vld [vmem:[#allocation2 + $0xc8] sm:$0xf0] }
 0x117   : > { %v824_v16 = vor.u32 %v823_v2, %v822_v44  ;;  %v4490_v44 = vld [vmem:[#allocation2 + $0xcc] sm:$0xf0]  ;;  %v4496_v2 = vld [vmem:[#allocation2 + $0xc8] sm:$0xf] }
 0x118   : > { %v1693_v49 = vpop.f32.mrf.mxu0 }
 0x119   : > { %v1819_v62 = vpop.f32.mrf.mxu3  ;;  %v1782_v42 = vpop.f32.mrf.mxu1  ;;  %v825_v11 = vrot.slane %v824_v16, 4 }
 0x11a   : > { %v6379_v20 = vadd.f32 %v1819_v62, %v1730_v40  ;;  %v6383_v61 = vadd.f32 %v1782_v42, %v1693_v49  ;;  %v6829_v62 = vshll.u32 %v5813_v0, 16  ;;  %v4488_v49 = vld [vmem:[#allocation2 + $0xc0] sm:$0xf] }
 0x11b   : > { %1870 = vmatmul.bf16.gmra.mxu2 %v4197_v60  ;;  %2448 = vmatmul.bf16.gmra.mxu0 %v4481_v50  ;;  %v827_v18 = vsel %vm6126_vm12, %v825_v11, %v826_v58  ;;  %v6830_v50 = vshrl.u32 %v5813_v0, 16 }
 0x11c   : > { %6825 = vst [vmem:[#allocation5_spill] sm:$0xff] %v6379_v20  ;;  %2537 = vmatmul.bf16.gmra.mxu1 %v4485_v53  ;;  %v1006_v53 = vld [vmem:[#allocation2 + $0x11c] sm:$0x8]  ;;  %v835_v60 = vrot.slane %v6829_v62, 5  ;;  %v4489_v62 = vor.u32 %v5155_v15, %v4488_v49  ;;  %v5332_v49 = vld [vmem:[%s6714_s1 + $0x1d0] sm:$0xff] }
 0x11d   : > { %949 = vst [vmem:[#allocation2 + $0x110] sm:$0xf] %v827_v18  ;;  %v837_v9 = vrot.slane %v6830_v50, 4  ;;  %v1007_v42 = vsel %vm6132_vm14, 0, %v1006_v53  ;;  %v4497_v50 = vor.u32 %v5156_v21, %v4496_v2  ;;  %3191 = vmatpush.bf16.msra.mxu3 %v5332_v49 }
 0x11e   : > { %2359 = vmatmul.bf16.gmra.mxu3 %v4477_v35  ;;  %v1733_v12 = vpop.f32.mrf.mxu2  ;;  %v4208_v35 = vld [vmem:[#allocation2 + $0xe0] sm:$0xf]  ;;  %1008 = vst [vmem:[#allocation2 + $0x11c] sm:$0x8] %v1007_v42 }
 0x11f   : > { %v838_v58 = vor.u32 %v837_v9, %v835_v60  ;;  %v4209_v11 = vor.u32 %v5228_v47, %v4208_v35  ;;  %v6832_v9 = vshrl.u32 %v5809_v31, 16  ;;  %v5324_v35 = vld [vmem:[%s6714_s1 + $0x190] sm:$0xff] }
 0x120   : > { %v1695_v4 = vpop.f32.mrf.mxu0  ;;  %3102 = vmatpush.bf16.msra.mxu2 %v5324_v35  ;;  %v4508_v35 = vld [vmem:[#allocation2 + $0xe0] sm:$0xf] }
 0x121   : > { %v1822_v8 = vpop.f32.mrf.mxu3  ;;  %v1784_v40 = vpop.f32.mrf.mxu1  ;;  %v831_v42 = vrot.slane %v6832_v9, 4  ;;  %v4502_v9 = vld [vmem:[#allocation2 + $0xe4] sm:$0xf0] }
 0x122   : > { %v6392_v54 = vadd.f32 %v1822_v8, %v1733_v12  ;;  %v6396_v26 = vadd.f32 %v1784_v40, %v1695_v4  ;;  %v839_v12 = vrot.slane %v838_v58, 4  ;;  %v4493_v4 = vor.u32 %v5154_v17, %v4490_v44  ;;  %v954_v40 = vld [vmem:[#allocation2 + $0x134] sm:$0xf] }
 0x123   : > { %v6833_v58 = vshll.u32 %v5809_v31, 16 }
 0x124   : > { %6828 = vst [vmem:[#allocation6_spill] sm:$0xff] %v6392_v54  ;;  %v955_v53 = vsel %vm6101_vm9, %v839_v12, %v954_v40 }
 0x125   : > { %v832_v20 = vrot.slane %v6833_v58, 5  ;;  %956 = vst [vmem:[#allocation2 + $0x134] sm:$0xf] %v955_v53  ;;  %v5157_v53 = vld [vmem:[#allocation2 + $0xdc] sm:$0xf] }
 0x126   : > { %v1735_v16 = vpop.f32.mrf.mxu2  ;;  %v5231_v58 = vld [vmem:[#allocation2 + $0x100] sm:$0xf0] }
 0x127   : > { %v833_v17 = vor.u32 %v832_v20, %v831_v42  ;;  %v6835_v20 = vshrl.u32 %v5877_v63, 16 }
 0x128   : > { %v2414_v18 = vpop.f32.mrf.mxu0 }
 0x129   : > { %v1824_v8 = vpop.f32.mrf.mxu3  ;;  %v2503_v54 = vpop.f32.mrf.mxu1  ;;  %v834_v31 = vrot.slane %v833_v17, 4  ;;  %v846_v40 = vrot.slane %v6835_v20, 4 }
 0x12a   : > { %v6404_v0 = vadd.f32 %v1824_v8, %v1735_v16  ;;  %v4220_v8 = vld [vmem:[#allocation2 + $0xf8] sm:$0xf] }
 0x12b   : > { %1875 = vmatmul.bf16.gmra.mxu2 %v4209_v11  ;;  %2453 = vmatmul.bf16.gmra.mxu0 %v4493_v4  ;;  %v836_v12 = vsel %vm6126_vm12, %v834_v31, %v835_v60  ;;  %v6834_v11 = vshll.u32 %v5877_v63, 16  ;;  %v5340_v63 = vld [vmem:[%s6714_s1 + $0x210] sm:$0xff] }
 0x12c   : > { %6831 = vst [vmem:[#allocation7_spill] sm:$0xff] %v6404_v0  ;;  %2542 = vmatmul.bf16.gmra.mxu1 %v4497_v50  ;;  %v5158_v50 = vld [vmem:[#allocation2 + $0xe0] sm:$0xf0]  ;;  %v1009_v42 = vld [vmem:[#allocation2 + $0x134] sm:$0x8]  ;;  %3280 = vmatpush.bf16.msra.mxu0 %v5340_v63 }
 0x12d   : > { %953 = vst [vmem:[#allocation2 + $0x128] sm:$0xf] %v836_v12  ;;  %v844_v4 = vrot.slane %v6834_v11, 5  ;;  %v1010_v49 = vsel %vm6132_vm14, 0, %v1009_v42  ;;  %v4505_v12 = vor.u32 %v5157_v53, %v4502_v9  ;;  %v958_v11 = vld [vmem:[#allocation2 + $0x14c] sm:$0xf] }
 0x12e   : > { %2364 = vmatmul.bf16.gmra.mxu3 %v4489_v62  ;;  %v1836_v47 = vpop.f32.mrf.mxu2  ;;  %1011 = vst [vmem:[#allocation2 + $0x134] sm:$0x8] %v1010_v49  ;;  %v6837_v49 = vshrl.u32 %v5871_v39, 16 }
 0x12f   : > { %v1837_v44 = vadd.f32 %v1836_v47, %v6184_v55  ;;  %v4500_v55 = vld [vmem:[#allocation2 + $0xd8] sm:$0xf]  ;;  %v847_v60 = vor.u32 %v846_v40, %v844_v4  ;;  %v5159_v47 = vld [vmem:[#allocation2 + $0xe8] sm:$0xf0] }
 0x130   : > { %v2416_v2 = vpop.f32.mrf.mxu0  ;;  %v4501_v42 = vor.u32 %v5158_v50, %v4500_v55  ;;  %v4509_v40 = vor.u32 %v5159_v47, %v4508_v35  ;;  %v5348_v55 = vld [vmem:[%s6715_s2 + $0x10] sm:$0xff] }
 0x131   : > { %v2325_v15 = vpop.f32.mrf.mxu3  ;;  %v2505_v16 = vpop.f32.mrf.mxu1  ;;  %3561 = vmatpush.bf16.msra.mxu1 %v5348_v55 }
 0x132   : > { %v2326_v21 = vadd.f32 %v2325_v15, %v1837_v44  ;;  %v848_v44 = vrot.slane %v847_v60, 4  ;;  %v840_v60 = vrot.slane %v6837_v49, 4  ;;  %v5161_v49 = vld [vmem:[#allocation2 + $0xf8] sm:$0xf0] }
 0x134   : > { %v2415_v62 = vadd.f32 %v2414_v18, %v2326_v21  ;;  %v4221_v21 = vor.u32 %v5231_v58, %v4220_v8 }
 0x136   : > { %v6427_v17 = vadd.f32 %v2503_v54, %v2415_v62  ;;  %v1838_v18 = vpop.f32.mrf.mxu2  ;;  %v959_v54 = vsel %vm6101_vm9, %v848_v44, %v958_v11  ;;  %v4232_v44 = vld [vmem:[#allocation2 + $0x110] sm:$0xf]  ;;  %v5160_v11 = vld [vmem:[#allocation2 + $0xf4] sm:$0xf] }
 0x137   : > { %v1839_v15 = vadd.f32 %v1838_v18, %v6200_v23  ;;  %v6838_v23 = vshll.u32 %v5871_v39, 16  ;;  %960 = vst [vmem:[#allocation2 + $0x14c] sm:$0xf] %v959_v54  ;;  %v4514_v54 = vld [vmem:[#allocation2 + $0xfc] sm:$0xf0] }
 0x138   : > { %6836 = vst [vmem:[#allocation8_spill] sm:$0xff] %v6427_v17  ;;  %v2419_v20 = vpop.f32.mrf.mxu0 }
 0x139   : > { %v2327_v31 = vpop.f32.mrf.mxu3  ;;  %v2508_v17 = vpop.f32.mrf.mxu1  ;;  %v841_v8 = vrot.slane %v6838_v23, 5  ;;  %v5162_v23 = vld [vmem:[#allocation2 + $0x100] sm:$0xf0] }
 0x13a   : > { %v2328_v62 = vadd.f32 %v2327_v31, %v1839_v15  ;;  %v6840_v31 = vshrl.u32 %v5939_v27, 16 }
 0x13b   : > { %1880 = vmatmul.bf16.gmra.mxu2 %v4221_v21  ;;  %2458 = vmatmul.bf16.gmra.mxu0 %v4505_v12  ;;  %v842_v50 = vor.u32 %v841_v8, %v840_v60  ;;  %v4520_v60 = vld [vmem:[#allocation2 + $0xf8] sm:$0xf] }
 0x13c   : > { %v2417_v0 = vadd.f32 %v2416_v2, %v2328_v62  ;;  %2547 = vmatmul.bf16.gmra.mxu1 %v4509_v40  ;;  %v855_v21 = vrot.slane %v6840_v31, 4  ;;  %v5234_v40 = vld [vmem:[#allocation2 + $0x118] sm:$0xf0]  ;;  %v6841_v31 = vshrl.u32 %v5929_v57, 16 }
 0x13d   : > { %v843_v35 = vrot.slane %v842_v50, 4 }
 0x13e   : > { %2369 = vmatmul.bf16.gmra.mxu3 %v4501_v42  ;;  %v6439_v53 = vadd.f32 %v2505_v16, %v2417_v0  ;;  %v1841_v9 = vpop.f32.mrf.mxu2  ;;  %v1012_v0 = vld [vmem:[#allocation2 + $0x14c] sm:$0x8]  ;;  %v6839_v16 = vshll.u32 %v5939_v27, 16 }
 0x13f   : > { %v1842_v2 = vadd.f32 %v1841_v9, %v6218_v46  ;;  %v845_v18 = vsel %vm6126_vm12, %v843_v35, %v844_v4  ;;  %v4512_v46 = vld [vmem:[#allocation2 + $0xf0] sm:$0xf]  ;;  %v1013_v42 = vsel %vm6132_vm14, 0, %v1012_v0  ;;  %v4517_v9 = vor.u32 %v5160_v11, %v4514_v54 }
 0x140   : > { %v2421_v47 = vpop.f32.mrf.mxu0  ;;  %957 = vst [vmem:[#allocation2 + $0x140] sm:$0xf] %v845_v18  ;;  %v853_v15 = vrot.slane %v6839_v16, 5  ;;  %v4513_v35 = vor.u32 %v5161_v49, %v4512_v46  ;;  %v5323_v46 = vld [vmem:[%s6714_s1 + $0x188] sm:$0xff] }
 0x141   : > { %v2330_v58 = vpop.f32.mrf.mxu3  ;;  %v2510_v39 = vpop.f32.mrf.mxu1  ;;  %1014 = vst [vmem:[#allocation2 + $0x14c] sm:$0x8] %v1013_v42  ;;  %3103 = vmatpush.bf16.msra.mxu2 %v5323_v46 }
 0x142   : > { %v2331_v63 = vadd.f32 %v2330_v58, %v1842_v2  ;;  %v856_v62 = vor.u32 %v855_v21, %v853_v15  ;;  %v962_v2 = vld [vmem:[#allocation2 + $0x164] sm:$0xf]  ;;  %v849_v21 = vrot.slane %v6841_v31, 4 }
 0x144   : > { %v2420_v12 = vadd.f32 %v2419_v20, %v2331_v63  ;;  %v857_v55 = vrot.slane %v856_v62, 4  ;;  %v4233_v20 = vor.u32 %v5234_v40, %v4232_v44  ;;  %v4521_v63 = vor.u32 %v5162_v23, %v4520_v60  ;;  %v4244_v23 = vld [vmem:[#allocation2 + $0x128] sm:$0xf] }
 0x146   : > { %v6453_v4 = vadd.f32 %v2508_v17, %v2420_v12  ;;  %v1843_v8 = vpop.f32.mrf.mxu2  ;;  %v963_v17 = vsel %vm6101_vm9, %v857_v55, %v962_v2  ;;  %v5163_v2 = vld [vmem:[#allocation2 + $0x10c] sm:$0xf] }
 0x147   : > { %v1844_v27 = vadd.f32 %v1843_v8, %v6228_v13  ;;  %v6842_v13 = vshll.u32 %v5929_v57, 16  ;;  %964 = vst [vmem:[#allocation2 + $0x164] sm:$0xf] %v963_v17  ;;  %v6843_v8 = vshll.u32 %v6007_v30, 16  ;;  %v4532_v17 = vld [vmem:[#allocation2 + $0x110] sm:$0xf] }
 0x148   : > { %v2424_v58 = vpop.f32.mrf.mxu0 }
 0x149   : > { %v2332_v50 = vpop.f32.mrf.mxu3  ;;  %v2513_v0 = vpop.f32.mrf.mxu1  ;;  %v850_v12 = vrot.slane %v6842_v13, 5  ;;  %v862_v55 = vrot.slane %v6843_v8, 5 }
 0x14a   : > { %v2333_v18 = vadd.f32 %v2332_v50, %v1844_v27  ;;  %v6844_v27 = vshrl.u32 %v6007_v30, 16  ;;  %v5339_v30 = vld [vmem:[%s6714_s1 + $0x208] sm:$0xff] }
 0x14b   : > { %1885 = vmatmul.bf16.gmra.mxu2 %v4233_v20  ;;  %2463 = vmatmul.bf16.gmra.mxu0 %v4517_v9  ;;  %v851_v11 = vor.u32 %v850_v12, %v849_v21  ;;  %v5164_v9 = vld [vmem:[#allocation2 + $0x110] sm:$0xf0]  ;;  %v5165_v21 = vld [vmem:[#allocation2 + $0x118] sm:$0xf0] }
 0x14c   : > { %v2422_v16 = vadd.f32 %v2421_v47, %v2333_v18  ;;  %2552 = vmatmul.bf16.gmra.mxu1 %v4521_v63  ;;  %v5331_v47 = vld [vmem:[%s6714_s1 + $0x1c8] sm:$0xff]  ;;  %v864_v50 = vrot.slane %v6844_v27, 4  ;;  %v5237_v18 = vld [vmem:[#allocation2 + $0x130] sm:$0xf0]  ;;  %3281 = vmatpush.bf16.msra.mxu0 %v5339_v30  ;;  %v6845_v27 = vshrl.u32 %v6000_v24, 16 }
 0x14d   : > { %3192 = vmatpush.bf16.msra.mxu3 %v5331_v47  ;;  %v852_v57 = vrot.slane %v851_v11, 4  ;;  %v4245_v47 = vor.u32 %v5237_v18, %v4244_v23 }
 0x14e   : > { %2374 = vmatmul.bf16.gmra.mxu3 %v4513_v35  ;;  %v6462_v44 = vadd.f32 %v2510_v39, %v2422_v16  ;;  %v1846_v42 = vpop.f32.mrf.mxu2  ;;  %v4526_v35 = vld [vmem:[#allocation2 + $0x114] sm:$0xf0]  ;;  %v1015_v63 = vld [vmem:[#allocation2 + $0x164] sm:$0x8] }
 0x14f   : > { %v1847_v40 = vadd.f32 %v1846_v42, %v6240_v38  ;;  %v854_v60 = vsel %vm6126_vm12, %v852_v57, %v853_v15  ;;  %v4524_v38 = vld [vmem:[#allocation2 + $0x108] sm:$0xf]  ;;  %v1016_v16 = vsel %vm6132_vm14, 0, %v1015_v63  ;;  %v865_v15 = vor.u32 %v864_v50, %v862_v55  ;;  %v966_v42 = vld [vmem:[#allocation2 + $0x17c] sm:$0xf] }
 0x150   : > { %v2426_v62 = vpop.f32.mrf.mxu0  ;;  %961 = vst [vmem:[#allocation2 + $0x158] sm:$0xf] %v854_v60  ;;  %v4529_v11 = vor.u32 %v5163_v2, %v4526_v35  ;;  %v4533_v57 = vor.u32 %v5165_v21, %v4532_v17  ;;  %v858_v50 = vrot.slane %v6845_v27, 4  ;;  %v6847_v21 = vshll.u32 %v6069_v5, 16  ;;  %3282 = vmatpush.bf16.msra.mxu0 %v5338_v56 }
 0x151   : > { %v2335_v54 = vpop.f32.mrf.mxu3  ;;  %v2515_v39 = vpop.f32.mrf.mxu1  ;;  %1017 = vst [vmem:[#allocation2 + $0x164] sm:$0x8] %v1016_v16  ;;  %v866_v13 = vrot.slane %v865_v15, 4  ;;  %v4256_v15 = vld [vmem:[#allocation2 + $0x140] sm:$0xf]  ;;  %3193 = vmatpush.bf16.msra.mxu3 %v5330_v7 }
 0x152   : > { %v2336_v49 = vadd.f32 %v2335_v54, %v1847_v40  ;;  %v4525_v54 = vor.u32 %v5164_v9, %v4524_v38  ;;  %v5347_v38 = vld [vmem:[%s6715_s2 + $0x8] sm:$0xff]  ;;  %v871_v30 = vrot.slane %v6847_v21, 5  ;;  %v5322_v21 = vld [vmem:[%s6714_s1 + $0x180] sm:$0xff] }
 0x153   : > { %3562 = vmatpush.bf16.msra.mxu1 %v5347_v38  ;;  %3104 = vmatpush.bf16.msra.mxu2 %v5322_v21 }
 0x154   : > { %v2425_v20 = vadd.f32 %v2424_v58, %v2336_v49 }
 0x156   : > { %v6479_v31 = vadd.f32 %v2513_v0, %v2425_v20  ;;  %v1848_v58 = vpop.f32.mrf.mxu2  ;;  %v967_v0 = vsel %vm6101_vm9, %v866_v13, %v966_v42  ;;  %v4538_v42 = vld [vmem:[#allocation2 + $0x12c] sm:$0xf0] }
 0x157   : > { %v1849_v12 = vadd.f32 %v1848_v58, %v6256_v14  ;;  %v6846_v14 = vshll.u32 %v6000_v24, 16  ;;  %968 = vst [vmem:[#allocation2 + $0x17c] sm:$0xf] %v967_v0  ;;  %v6848_v58 = vshrl.u32 %v6069_v5, 16  ;;  %v4544_v0 = vld [vmem:[#allocation2 + $0x128] sm:$0xf] }
 0x158   : > { %v2429_v40 = vpop.f32.mrf.mxu0 }
 0x159   : > { %v2337_v46 = vpop.f32.mrf.mxu3  ;;  %v2518_v60 = vpop.f32.mrf.mxu1  ;;  %v859_v23 = vrot.slane %v6846_v14, 5  ;;  %v873_v13 = vrot.slane %v6848_v58, 4 }
 0x15a   : > { %v2338_v49 = vadd.f32 %v2337_v46, %v1849_v12  ;;  %v5166_v46 = vld [vmem:[#allocation2 + $0x124] sm:$0xf] }
 0x15b   : > { %1890 = vmatmul.bf16.gmra.mxu2 %v4245_v47  ;;  %2468 = vmatmul.bf16.gmra.mxu0 %v4529_v11  ;;  %v860_v9 = vor.u32 %v859_v23, %v858_v50  ;;  %v5240_v11 = vld [vmem:[#allocation2 + $0x148] sm:$0xf0]  ;;  %v4541_v14 = vor.u32 %v5166_v46, %v4538_v42  ;;  %v970_v23 = vld [vmem:[#allocation2 + $0x194] sm:$0xf] }
 0x15c   : > { %v2427_v8 = vadd.f32 %v2426_v62, %v2338_v49  ;;  %2557 = vmatmul.bf16.gmra.mxu1 %v4533_v57  ;;  %v5167_v57 = vld [vmem:[#allocation2 + $0x128] sm:$0xf0]  ;;  %v5168_v49 = vld [vmem:[#allocation2 + $0x130] sm:$0xf0] }
 0x15d   : > { %v861_v63 = vrot.slane %v860_v9, 4 }
 0x15e   : > { %2379 = vmatmul.bf16.gmra.mxu3 %v4525_v54  ;;  %v6491_v20 = vadd.f32 %v2515_v39, %v2427_v8  ;;  %v1851_v2 = vpop.f32.mrf.mxu2  ;;  %v1018_v39 = vld [vmem:[#allocation2 + $0x17c] sm:$0x8]  ;;  %v874_v54 = vor.u32 %v873_v13, %v871_v30 }
 0x15f   : > { %v1852_v62 = vadd.f32 %v1851_v2, %v6274_v32  ;;  %v863_v16 = vsel %vm6126_vm12, %v861_v63, %v862_v55  ;;  %v4536_v32 = vld [vmem:[#allocation2 + $0x120] sm:$0xf]  ;;  %v1019_v47 = vsel %vm6132_vm14, 0, %v1018_v39  ;;  %v4545_v2 = vor.u32 %v5168_v49, %v4544_v0  ;;  %v5169_v0 = vld [vmem:[#allocation2 + $0x13c] sm:$0xf] }
 0x160   : > { %v2431_v18 = vpop.f32.mrf.mxu0  ;;  %965 = vst [vmem:[#allocation2 + $0x170] sm:$0xf] %v863_v16  ;;  %v875_v27 = vrot.slane %v874_v54, 4  ;;  %v4537_v9 = vor.u32 %v5167_v57, %v4536_v32  ;;  %v4548_v54 = vld [vmem:[#allocation2 + $0x138] sm:$0xf] }
 0x161   : > { %v2340_v35 = vpop.f32.mrf.mxu3  ;;  %v2520_v24 = vpop.f32.mrf.mxu1  ;;  %1020 = vst [vmem:[#allocation2 + $0x17c] sm:$0x8] %v1019_v47  ;;  %v5170_v57 = vld [vmem:[#allocation2 + $0x140] sm:$0xf0]  ;;  %v4550_v49 = vld [vmem:[#allocation2 + $0x144] sm:$0xf0] }
 0x162   : > { %v2341_v17 = vadd.f32 %v2340_v35, %v1852_v62 }
 0x164   : > { %v2430_v12 = vadd.f32 %v2429_v40, %v2341_v17  ;;  %v4257_v40 = vor.u32 %v5240_v11, %v4256_v15  ;;  %v6849_v17 = vshrl.u32 %v6061_v25, 16  ;;  %v4268_v11 = vld [vmem:[#allocation2 + $0x158] sm:$0xf] }
 0x166   : > { %v6505_v55 = vadd.f32 %v2518_v60, %v2430_v12  ;;  %v1853_v8 = vpop.f32.mrf.mxu2  ;;  %v971_v60 = vsel %vm6101_vm9, %v875_v27, %v970_v23  ;;  %v867_v16 = vrot.slane %v6849_v17, 4  ;;  %v5243_v27 = vld [vmem:[#allocation2 + $0x160] sm:$0xf0] }
 0x167   : > { %v1854_v5 = vadd.f32 %v1853_v8, %v6284_v3  ;;  %v6850_v3 = vshll.u32 %v6061_v25, 16  ;;  %972 = vst [vmem:[#allocation2 + $0x194] sm:$0xf] %v971_v60 }
 0x168   : > { %v2434_v38 = vpop.f32.mrf.mxu0 }
 0x169   : > { %v2342_v50 = vpop.f32.mrf.mxu3  ;;  %v2523_v35 = vpop.f32.mrf.mxu1  ;;  %v868_v39 = vrot.slane %v6850_v3, 5 }
 0x16a   : > { %v2343_v62 = vadd.f32 %v2342_v50, %v1854_v5 }
 0x16b   : > { %1895 = vmatmul.bf16.gmra.mxu2 %v4257_v40  ;;  %2473 = vmatmul.bf16.gmra.mxu0 %v4541_v14  ;;  %v5171_v40 = vld [vmem:[#allocation2 + $0x148] sm:$0xf0] }
 0x16c   : > { %v2432_v63 = vadd.f32 %v2431_v18, %v2343_v62  ;;  %2562 = vmatmul.bf16.gmra.mxu1 %v4545_v2  ;;  %v869_v18 = vor.u32 %v868_v39, %v867_v16  ;;  %v4549_v62 = vor.u32 %v5170_v57, %v4548_v54 }
 0x16e   : > { %2384 = vmatmul.bf16.gmra.mxu3 %v4537_v9  ;;  %v6514_v15 = vadd.f32 %v2520_v24, %v2432_v63  ;;  %v1856_v58 = vpop.f32.mrf.mxu2  ;;  %v870_v25 = vrot.slane %v869_v18, 4  ;;  %v1021_v8 = vld [vmem:[#allocation2 + $0x194] sm:$0x8]  ;;  %v4553_v9 = vor.u32 %v5169_v0, %v4550_v49 }
 0x16f   : > { %v1857_v13 = vadd.f32 %v1856_v58, %v6296_v6  ;;  %v4556_v6 = vld [vmem:[#allocation2 + $0x140] sm:$0xf]  ;;  %v1022_v5 = vsel %vm6132_vm14, 0, %v1021_v8 }
 0x170   : > { %v2436_v32 = vpop.f32.mrf.mxu0  ;;  %v872_v47 = vsel %vm6126_vm12, %v870_v25, %v871_v30  ;;  %1023 = vst [vmem:[#allocation2 + $0x194] sm:$0x8] %v1022_v5  ;;  %v4557_v60 = vor.u32 %v5171_v40, %v4556_v6  ;;  %v5246_v25 = vld [vmem:[#allocation2 + $0x178] sm:$0xf0] }
 0x171   : > { %v2345_v12 = vpop.f32.mrf.mxu3  ;;  %v2525_v24 = vpop.f32.mrf.mxu1  ;;  %969 = vst [vmem:[#allocation2 + $0x188] sm:$0xf] %v872_v47  ;;  %v5173_v47 = vld [vmem:[#allocation2 + $0x158] sm:$0xf0] }
 0x172   : > { %v2346_v46 = vadd.f32 %v2345_v12, %v1857_v13  ;;  %v4280_v13 = vld [vmem:[#allocation2 + $0x170] sm:$0xf] }
 0x173   : > { %v4560_v12 = vld [vmem:[#allocation2 + $0x150] sm:$0xf]  ;;  %v4281_v0 = vor.u32 %v5246_v25, %v4280_v13 }
 0x174   : > { %v2435_v42 = vadd.f32 %v2434_v38, %v2346_v46  ;;  %v4269_v38 = vor.u32 %v5243_v27, %v4268_v11  ;;  %v4562_v46 = vld [vmem:[#allocation2 + $0x15c] sm:$0xf0]  ;;  %v4568_v11 = vld [vmem:[#allocation2 + $0x158] sm:$0xf]  ;;  %v4561_v27 = vor.u32 %v5173_v47, %v4560_v12 }
 0x176   : > { %v6527_v50 = vadd.f32 %v2523_v35, %v2435_v42  ;;  %v1858_v30 = vpop.f32.mrf.mxu2  ;;  %v5174_v42 = vld [vmem:[#allocation2 + $0x160] sm:$0xf0] }
 0x177   : > { %v1859_v14 = vadd.f32 %v1858_v30, %v6312_v41  ;;  %v5346_v41 = vld [vmem:[%s6715_s2] sm:$0xff]  ;;  %v4569_v6 = vor.u32 %v5174_v42, %v4568_v11 }
 0x178   : > { %v2439_v2 = vpop.f32.mrf.mxu0  ;;  %3563 = vmatpush.bf16.msra.mxu1 %v5346_v41  ;;  %v4574_v41 = vld [vmem:[#allocation2 + $0x174] sm:$0xf0] }
 0x179   : > { %v2347_v23 = vpop.f32.mrf.mxu3  ;;  %v2528_v63 = vpop.f32.mrf.mxu1 }
 0x17a   : > { %v2348_v33 = vadd.f32 %v2347_v23, %v1859_v14 }
 0x17b   : > { %1900 = vmatmul.bf16.gmra.mxu2 %v4269_v38  ;;  %2478 = vmatmul.bf16.gmra.mxu0 %v4553_v9 }
 0x17c   : > { %v2437_v35 = vadd.f32 %v2436_v32, %v2348_v33  ;;  %2567 = vmatmul.bf16.gmra.mxu1 %v4557_v60  ;;  %v5172_v32 = vld [vmem:[#allocation2 + $0x154] sm:$0xf]  ;;  %v4292_v60 = vld [vmem:[#allocation2 + $0x188] sm:$0xf] }
 0x17d   : > { %v4565_v49 = vor.u32 %v5172_v32, %v4562_v46  ;;  %v4572_v33 = vld [vmem:[#allocation2 + $0x168] sm:$0xf] }
 0x17e   : > { %2389 = vmatmul.bf16.gmra.mxu3 %v4549_v62  ;;  %v6533_v17 = vadd.f32 %v2525_v24, %v2437_v35  ;;  %v1861_v16 = vpop.f32.mrf.mxu2  ;;  %v5175_v35 = vld [vmem:[#allocation2 + $0x16c] sm:$0xf] }
 0x17f   : > { %v1862_v3 = vadd.f32 %v1861_v16, %v6330_v48  ;;  %v4577_v13 = vor.u32 %v5175_v35, %v4574_v41 }
 0x180   : > { %v2441_v21 = vpop.f32.mrf.mxu0 }
 0x181   : > { %v2350_v39 = vpop.f32.mrf.mxu3  ;;  %v2530_v18 = vpop.f32.mrf.mxu1 }
 0x182   : > { %v2351_v7 = vadd.f32 %v2350_v39, %v1862_v3  ;;  %v5176_v3 = vld [vmem:[#allocation2 + $0x170] sm:$0xf0]  ;;  %v4580_v39 = vld [vmem:[#allocation2 + $0x170] sm:$0xf] }
 0x183   : > { %v4573_v25 = vor.u32 %v5176_v3, %v4572_v33  ;;  %v5114_v33 = vld [vmem:[%s5544_s8] sm:$0xff] }
 0x184   : > { %v2440_v58 = vadd.f32 %v2439_v2, %v2351_v7 }
 0x186   : > { %v6539_v24 = vadd.f32 %v2528_v63, %v2440_v58  ;;  %v1863_v54 = vpop.f32.mrf.mxu2  ;;  %v5249_v63 = vld [vmem:[#allocation2 + $0x190] sm:$0xf0] }
 0x187   : > { %v1864_v57 = vadd.f32 %v1863_v54, %v6340_v10 }
 0x188   : > { %v2444_v8 = vpop.f32.mrf.mxu0 }
 0x189   : > { %v2352_v48 = vpop.f32.mrf.mxu3  ;;  %v2533_v40 = vpop.f32.mrf.mxu1 }
 0x18a   : > { %v2353_v5 = vadd.f32 %v2352_v48, %v1864_v57 }
 0x18b   : > { %1905 = vmatmul.bf16.gmra.mxu2 %v4281_v0  ;;  %2483 = vmatmul.bf16.gmra.mxu0 %v4565_v49 }
 0x18c   : > { %v2442_v56 = vadd.f32 %v2441_v21, %v2353_v5  ;;  %2572 = vmatmul.bf16.gmra.mxu1 %v4569_v6  ;;  %v5177_v21 = vld [vmem:[#allocation2 + $0x178] sm:$0xf0]  ;;  %v4736_v5 = vld [vmem:[#allocation2 + $0x38] sm:$0xf] }
 0x18d   : > { %v4581_v32 = vor.u32 %v5177_v21, %v4580_v39  ;;  %v5275_v6 = vld [vmem:[#allocation2 + $0x38] sm:$0xf0] }
 0x18e   : > { %2394 = vmatmul.bf16.gmra.mxu3 %v4561_v27  ;;  %v6542_v30 = vadd.f32 %v2530_v18, %v2442_v56  ;;  %v1866_v14 = vpop.f32.mrf.mxu2  ;;  %v4728_v27 = vld [vmem:[#allocation2 + $0x30] sm:$0xf] }
 0x18f   : > { %v1867_v23 = vadd.f32 %v1866_v14, %v6352_v1  ;;  %v4293_v1 = vor.u32 %v5249_v63, %v4292_v60  ;;  %v5274_v14 = vld [vmem:[#allocation2 + $0x34] sm:$0xf] }
 0x190   : > { %v2446_v10 = vpop.f32.mrf.mxu0 }
 0x191   : > { %v2355_v38 = vpop.f32.mrf.mxu3  ;;  %v2535_v2 = vpop.f32.mrf.mxu1 }
 0x192   : > { %v2356_v9 = vadd.f32 %v2355_v38, %v1867_v23  ;;  %v4730_v23 = vld [vmem:[#allocation2 + $0x3c] sm:$0xf0] }
 0x193   : > { %v4733_v60 = vor.u32 %v5274_v14, %v4730_v23 }
 0x194   : > { %v2445_v62 = vadd.f32 %v2444_v8, %v2356_v9 }
 0x196   : > { %v6545_v16 = vadd.f32 %v2533_v40, %v2445_v62  ;;  %v1868_v7 = vpop.f32.mrf.mxu2  ;;  %v5276_v40 = vld [vmem:[#allocation2 + $0x40] sm:$0xf0] }
 0x197   : > { %v1869_v18 = vadd.f32 %v1868_v7, %v6368_v28 }
 0x198   : > { %v2449_v12 = vpop.f32.mrf.mxu0 }
 0x199   : > { %v2357_v58 = vpop.f32.mrf.mxu3  ;;  %v2538_v47 = vpop.f32.mrf.mxu1 }
 0x19a   : > { %v2358_v46 = vadd.f32 %v2357_v58, %v1869_v18 }
 0x19b   : > { %1910 = vmatmul.bf16.gmra.mxu2 %v4293_v1  ;;  %2488 = vmatmul.bf16.gmra.mxu0 %v4577_v13  ;;  %v4740_v13 = vld [vmem:[#allocation2 + $0x48] sm:$0xf] }
 0x19c   : > { %v2447_v11 = vadd.f32 %v2446_v10, %v2358_v46  ;;  %2577 = vmatmul.bf16.gmra.mxu1 %v4581_v32  ;;  %v5279_v32 = vld [vmem:[#allocation2 + $0x58] sm:$0xf0] }
 0x19e   : > { %2399 = vmatmul.bf16.gmra.mxu3 %v4573_v25  ;;  %v6548_v42 = vadd.f32 %v2535_v2, %v2447_v11  ;;  %v1871_v54 = vpop.f32.mrf.mxu2  ;;  %v4729_v2 = vor.u32 %v5275_v6, %v4728_v27  ;;  %v4748_v25 = vld [vmem:[#allocation2 + $0x50] sm:$0xf]  ;;  %v4742_v11 = vld [vmem:[#allocation2 + $0x54] sm:$0xf0] }
 0x19f   : > { %v1872_v57 = vadd.f32 %v1871_v54, %v6383_v61  ;;  %v4737_v61 = vor.u32 %v5276_v40, %v4736_v5 }
 0x1a0   : > { %v2451_v28 = vpop.f32.mrf.mxu0 }
 0x1a1   : > { %v2360_v48 = vpop.f32.mrf.mxu3  ;;  %v2540_v49 = vpop.f32.mrf.mxu1 }
 0x1a2   : > { %v2361_v0 = vadd.f32 %v2360_v48, %v1872_v57 }
 0x1a4   : > { %v2450_v8 = vadd.f32 %v2449_v12, %v2361_v0  ;;  %v5278_v12 = vld [vmem:[#allocation2 + $0x50] sm:$0xf0] }
 0x1a6   : > { %v6551_v56 = vadd.f32 %v2538_v47, %v2450_v8  ;;  %v1873_v38 = vpop.f32.mrf.mxu2  ;;  %v5277_v47 = vld [vmem:[#allocation2 + $0x4c] sm:$0xf] }
 0x1a7   : > { %v1874_v10 = vadd.f32 %v1873_v38, %v6396_v26  ;;  %v5115_v8 = vld [vmem:[%s5544_s8 + $0x8] sm:$0xff] }
 0x1a8   : > { %v2454_v62 = vpop.f32.mrf.mxu0 }
 0x1a9   : > { %v2362_v9 = vpop.f32.mrf.mxu3  ;;  %v2543_v35 = vpop.f32.mrf.mxu1 }
 0x1aa   : > { %v2363_v63 = vadd.f32 %v2362_v9, %v1874_v10 }
 0x1ab   : > { %3105 = vmatmul.bf16.vlgmr.msra.gmra.mxu2 %v4729_v2  ;;  %3283 = vmatmul.bf16.vlgmr.msra.gmra.mxu0 %v4737_v61  ;;  %v4752_v61 = vld [vmem:[#allocation2 + $0x60] sm:$0xf] }
 0x1ac   : > { %v2452_v41 = vadd.f32 %v2451_v28, %v2363_v63  ;;  %3564 = vmatmul.bf16.vlgmr.msra.gmra.mxu1 %v5114_v33  ;;  %v4741_v28 = vor.u32 %v5278_v12, %v4740_v13  ;;  %v5282_v33 = vld [vmem:[#allocation2 + $0x70] sm:$0xf0] }
 0x1ae   : > { %3194 = vmatmul.bf16.vlgmr.msra.gmra.mxu3 %v4733_v60  ;;  %v6555_v3 = vadd.f32 %v2540_v49, %v2452_v41  ;;  %v1876_v39 = vpop.f32.mrf.mxu2  ;;  %v4745_v49 = vor.u32 %v5277_v47, %v4742_v11  ;;  %v4760_v60 = vld [vmem:[#allocation2 + $0x68] sm:$0xf]  ;;  %v4754_v41 = vld [vmem:[#allocation2 + $0x6c] sm:$0xf0] }
 0x1af   : > { %v1877_v21 = vadd.f32 %v1876_v39, %v6196_v36  ;;  %v4749_v36 = vor.u32 %v5279_v32, %v4748_v25 }
 0x1b0   : > { %v2456_v26 = vpop.f32.mrf.mxu0 }
 0x1b1   : > { %v2365_v7 = vpop.f32.mrf.mxu3  ;;  %v2545_v58 = vpop.f32.mrf.mxu1 }
 0x1b2   : > { %v2366_v18 = vadd.f32 %v2365_v7, %v1877_v21 }
 0x1b4   : > { %v2455_v1 = vadd.f32 %v2454_v62, %v2366_v18  ;;  %v5281_v62 = vld [vmem:[#allocation2 + $0x68] sm:$0xf0] }
 0x1b6   : > { %v6558_v46 = vadd.f32 %v2543_v35, %v2455_v1  ;;  %v1878_v54 = vpop.f32.mrf.mxu2  ;;  %v5280_v35 = vld [vmem:[#allocation2 + $0x64] sm:$0xf]  ;;  %v5116_v1 = vld [vmem:[%s5544_s8 + $0x10] sm:$0xff] }
 0x1b7   : > { %v1879_v57 = vadd.f32 %v1878_v54, %v6211_v52 }
 0x1b8   : > { %v2459_v0 = vpop.f32.mrf.mxu0 }
 0x1b9   : > { %v2367_v48 = vpop.f32.mrf.mxu3  ;;  %v2548_v6 = vpop.f32.mrf.mxu1 }
 0x1ba   : > { %v2368_v27 = vadd.f32 %v2367_v48, %v1879_v57 }
 0x1bb   : > { %3110 = vmatmul.bf16.gmra.mxu2 %v4741_v28  ;;  %3288 = vmatmul.bf16.gmra.mxu0 %v4749_v36  ;;  %v4764_v36 = vld [vmem:[#allocation2 + $0x78] sm:$0xf] }
 0x1bc   : > { %v2457_v5 = vadd.f32 %v2456_v26, %v2368_v27  ;;  %3569 = vmatmul.bf16.gmra.mxu1 %v5115_v8  ;;  %v4753_v26 = vor.u32 %v5281_v62, %v4752_v61  ;;  %v5285_v8 = vld [vmem:[#allocation2 + $0x88] sm:$0xf0] }
 0x1be   : > { %3199 = vmatmul.bf16.gmra.mxu3 %v4745_v49  ;;  %v6562_v40 = vadd.f32 %v2545_v58, %v2457_v5  ;;  %v1881_v14 = vpop.f32.mrf.mxu2  ;;  %v4757_v58 = vor.u32 %v5280_v35, %v4754_v41  ;;  %v4772_v49 = vld [vmem:[#allocation2 + $0x80] sm:$0xf]  ;;  %v4766_v5 = vld [vmem:[#allocation2 + $0x84] sm:$0xf0] }
 0x1bf   : > { %v1882_v23 = vadd.f32 %v1881_v14, %v6224_v22  ;;  %v4761_v22 = vor.u32 %v5282_v33, %v4760_v60 }
 0x1c0   : > { %v2461_v52 = vpop.f32.mrf.mxu0 }
 0x1c1   : > { %v2370_v38 = vpop.f32.mrf.mxu3  ;;  %v2550_v9 = vpop.f32.mrf.mxu1 }
 0x1c2   : > { %v2371_v10 = vadd.f32 %v2370_v38, %v1882_v23 }
 0x1c4   : > { %v2460_v2 = vadd.f32 %v2459_v0, %v2371_v10  ;;  %v5284_v0 = vld [vmem:[#allocation2 + $0x80] sm:$0xf0] }
 0x1c6   : > { %v6565_v63 = vadd.f32 %v2548_v6, %v2460_v2  ;;  %v1883_v39 = vpop.f32.mrf.mxu2  ;;  %v5283_v6 = vld [vmem:[#allocation2 + $0x7c] sm:$0xf] }
 0x1c7   : > { %v1884_v21 = vadd.f32 %v1883_v39, %v6236_v45  ;;  %v5117_v2 = vld [vmem:[%s5544_s8 + $0x18] sm:$0xff] }
 0x1c8   : > { %v2464_v18 = vpop.f32.mrf.mxu0 }
 0x1c9   : > { %v2372_v7 = vpop.f32.mrf.mxu3  ;;  %v2553_v12 = vpop.f32.mrf.mxu1 }
 0x1ca   : > { %v2373_v13 = vadd.f32 %v2372_v7, %v1884_v21 }
 0x1cb   : > { %3115 = vmatmul.bf16.gmra.mxu2 %v4753_v26  ;;  %3293 = vmatmul.bf16.gmra.mxu0 %v4761_v22  ;;  %v4776_v22 = vld [vmem:[#allocation2 + $0x90] sm:$0xf] }
 0x1cc   : > { %v2462_v25 = vadd.f32 %v2461_v52, %v2373_v13  ;;  %3574 = vmatmul.bf16.gmra.mxu1 %v5116_v1  ;;  %v4765_v52 = vor.u32 %v5284_v0, %v4764_v36  ;;  %v5288_v1 = vld [vmem:[#allocation2 + $0xa0] sm:$0xf0] }
 0x1ce   : > { %3204 = vmatmul.bf16.gmra.mxu3 %v4757_v58  ;;  %v6569_v32 = vadd.f32 %v2550_v9, %v2462_v25  ;;  %v1886_v47 = vpop.f32.mrf.mxu2  ;;  %v4769_v9 = vor.u32 %v5283_v6, %v4766_v5  ;;  %v4784_v58 = vld [vmem:[#allocation2 + $0x98] sm:$0xf]  ;;  %v4778_v25 = vld [vmem:[#allocation2 + $0x9c] sm:$0xf0] }
 0x1cf   : > { %v1887_v11 = vadd.f32 %v1886_v47, %v6252_v29  ;;  %v4773_v29 = vor.u32 %v5285_v8, %v4772_v49 }
 0x1d0   : > { %v2466_v45 = vpop.f32.mrf.mxu0 }
 0x1d1   : > { %v2375_v54 = vpop.f32.mrf.mxu3  ;;  %v2555_v48 = vpop.f32.mrf.mxu1 }
 0x1d2   : > { %v2376_v57 = vadd.f32 %v2375_v54, %v1887_v11 }
 0x1d4   : > { %v2465_v28 = vadd.f32 %v2464_v18, %v2376_v57  ;;  %v5287_v18 = vld [vmem:[#allocation2 + $0x98] sm:$0xf0] }
 0x1d6   : > { %v6572_v27 = vadd.f32 %v2553_v12, %v2465_v28  ;;  %v1888_v14 = vpop.f32.mrf.mxu2  ;;  %v5286_v12 = vld [vmem:[#allocation2 + $0x94] sm:$0xf]  ;;  %v5118_v28 = vld [vmem:[%s5544_s8 + $0x20] sm:$0xff] }
 0x1d7   : > { %v1889_v23 = vadd.f32 %v1888_v14, %v6267_v37 }
 0x1d8   : > { %v2469_v10 = vpop.f32.mrf.mxu0 }
 0x1d9   : > { %v2377_v38 = vpop.f32.mrf.mxu3  ;;  %v2558_v62 = vpop.f32.mrf.mxu1 }
 0x1da   : > { %v2378_v61 = vadd.f32 %v2377_v38, %v1889_v23 }
 0x1db   : > { %3120 = vmatmul.bf16.gmra.mxu2 %v4765_v52  ;;  %3298 = vmatmul.bf16.gmra.mxu0 %v4773_v29  ;;  %v4788_v29 = vld [vmem:[#allocation2 + $0xa8] sm:$0xf] }
 0x1dc   : > { %v2467_v60 = vadd.f32 %v2466_v45, %v2378_v61  ;;  %3579 = vmatmul.bf16.gmra.mxu1 %v5117_v2  ;;  %v4777_v45 = vor.u32 %v5287_v18, %v4776_v22  ;;  %v5291_v2 = vld [vmem:[#allocation2 + $0xb8] sm:$0xf0] }
 0x1de   : > { %3209 = vmatmul.bf16.gmra.mxu3 %v4769_v9  ;;  %v6576_v33 = vadd.f32 %v2555_v48, %v2467_v60  ;;  %v1891_v35 = vpop.f32.mrf.mxu2  ;;  %v4781_v48 = vor.u32 %v5286_v12, %v4778_v25  ;;  %v4796_v9 = vld [vmem:[#allocation2 + $0xb0] sm:$0xf]  ;;  %v4790_v60 = vld [vmem:[#allocation2 + $0xb4] sm:$0xf0] }
 0x1df   : > { %v1892_v41 = vadd.f32 %v1891_v35, %v6280_v19  ;;  %v4785_v19 = vor.u32 %v5288_v1, %v4784_v58 }
 0x1e0   : > { %v2471_v37 = vpop.f32.mrf.mxu0 }
 0x1e1   : > { %v2380_v39 = vpop.f32.mrf.mxu3  ;;  %v2560_v7 = vpop.f32.mrf.mxu1 }
 0x1e2   : > { %v2381_v21 = vadd.f32 %v2380_v39, %v1892_v41 }
 0x1e4   : > { %v2470_v26 = vadd.f32 %v2469_v10, %v2381_v21  ;;  %v5290_v10 = vld [vmem:[#allocation2 + $0xb0] sm:$0xf0] }
 0x1e6   : > { %v6579_v13 = vadd.f32 %v2558_v62, %v2470_v26  ;;  %v1893_v47 = vpop.f32.mrf.mxu2  ;;  %v5289_v62 = vld [vmem:[#allocation2 + $0xac] sm:$0xf] }
 0x1e7   : > { %v1894_v11 = vadd.f32 %v1893_v47, %v6292_v59  ;;  %v5119_v26 = vld [vmem:[%s5544_s8 + $0x28] sm:$0xff] }
 0x1e8   : > { %v2474_v57 = vpop.f32.mrf.mxu0 }
 0x1e9   : > { %v2382_v54 = vpop.f32.mrf.mxu3  ;;  %v2563_v0 = vpop.f32.mrf.mxu1 }
 0x1ea   : > { %v2383_v36 = vadd.f32 %v2382_v54, %v1894_v11 }
 0x1eb   : > { %3125 = vmatmul.bf16.gmra.mxu2 %v4777_v45  ;;  %3303 = vmatmul.bf16.gmra.mxu0 %v4785_v19  ;;  %v4800_v19 = vld [vmem:[#allocation2 + $0xc0] sm:$0xf] }
 0x1ec   : > { %v2472_v49 = vadd.f32 %v2471_v37, %v2383_v36  ;;  %3584 = vmatmul.bf16.gmra.mxu1 %v5118_v28  ;;  %v4789_v37 = vor.u32 %v5290_v10, %v4788_v29  ;;  %v5294_v28 = vld [vmem:[#allocation2 + $0xd0] sm:$0xf0] }
 0x1ed   : > { %v5120_v29 = vld [vmem:[%s5544_s8 + $0x30] sm:$0xff] }
 0x1ee   : > { %3214 = vmatmul.bf16.gmra.mxu3 %v4781_v48  ;;  %v6583_v8 = vadd.f32 %v2560_v7, %v2472_v49  ;;  %v1896_v6 = vpop.f32.mrf.mxu2  ;;  %v4793_v7 = vor.u32 %v5289_v62, %v4790_v60  ;;  %v4808_v48 = vld [vmem:[#allocation2 + $0xc8] sm:$0xf]  ;;  %v4802_v49 = vld [vmem:[#allocation2 + $0xcc] sm:$0xf0] }
 0x1ef   : > { %v1897_v5 = vadd.f32 %v1896_v6, %v6308_v43  ;;  %v4797_v43 = vor.u32 %v5291_v2, %v4796_v9 }
 0x1f0   : > { %v2476_v59 = vpop.f32.mrf.mxu0 }
 0x1f1   : > { %v2385_v14 = vpop.f32.mrf.mxu3  ;;  %v2565_v38 = vpop.f32.mrf.mxu1 }
 0x1f2   : > { %v2386_v23 = vadd.f32 %v2385_v14, %v1897_v5  ;;  %v6851_v5 = vld [vmem:[#allocation3_spill] sm:$0xff] }
 0x1f4   : > { %v2475_v52 = vadd.f32 %v2474_v57, %v2386_v23  ;;  %v5293_v57 = vld [vmem:[#allocation2 + $0xc8] sm:$0xf0] }
 0x1f5   : > { %v4801_v23 = vor.u32 %v5293_v57, %v4800_v19 }
 0x1f6   : > { %v6586_v61 = vadd.f32 %v2563_v0, %v2475_v52  ;;  %v1898_v35 = vpop.f32.mrf.mxu2  ;;  %v5292_v0 = vld [vmem:[#allocation2 + $0xc4] sm:$0xf] }
 0x1f7   : > { %v1899_v41 = vadd.f32 %v1898_v35, %v6323_v51  ;;  %v4805_v52 = vor.u32 %v5292_v0, %v4802_v49  ;;  %v6852_v35 = vld [vmem:[#allocation4_spill] sm:$0xff] }
 0x1f8   : > { %v2479_v21 = vpop.f32.mrf.mxu0  ;;  %v5121_v0 = vld [vmem:[%s5544_s8 + $0x38] sm:$0xff] }
 0x1f9   : > { %v2387_v39 = vpop.f32.mrf.mxu3  ;;  %v2568_v18 = vpop.f32.mrf.mxu1 }
 0x1fa   : > { %v2388_v22 = vadd.f32 %v2387_v39, %v1899_v41 }
 0x1fb   : > { %3130 = vmatmul.bf16.gmra.mxu2 %v4789_v37  ;;  %3308 = vmatmul.bf16.gmra.mxu0 %v4797_v43 }
 0x1fc   : > { %v2477_v58 = vadd.f32 %v2476_v59, %v2388_v22  ;;  %3589 = vmatmul.bf16.gmra.mxu1 %v5119_v26  ;;  %v4812_v26 = vld [vmem:[#allocation2 + $0xd8] sm:$0xf]  ;;  %v5296_v22 = vld [vmem:[#allocation2 + $0xe0] sm:$0xf0] }
 0x1fd   : > { %v4813_v19 = vor.u32 %v5296_v22, %v4812_v26 }
 0x1fe   : > { %3219 = vmatmul.bf16.gmra.mxu3 %v4793_v7  ;;  %v6590_v1 = vadd.f32 %v2565_v38, %v2477_v58  ;;  %v1901_v12 = vpop.f32.mrf.mxu2  ;;  %v5297_v58 = vld [vmem:[#allocation2 + $0xe8] sm:$0xf0] }
 0x1ff   : > { %v1902_v25 = vadd.f32 %v1901_v12, %v6336_v34  ;;  %v4809_v34 = vor.u32 %v5294_v28, %v4808_v48 }
 0x200   : > { %v2481_v51 = vpop.f32.mrf.mxu0 }
 0x201   : > { %v2390_v47 = vpop.f32.mrf.mxu3  ;;  %v2570_v54 = vpop.f32.mrf.mxu1 }
 0x202   : > { %v2391_v11 = vadd.f32 %v2390_v47, %v1902_v25  ;;  %v5295_v25 = vld [vmem:[#allocation2 + $0xdc] sm:$0xf]  ;;  %v4814_v47 = vld [vmem:[#allocation2 + $0xe4] sm:$0xf0] }
 0x203   : > { %v4817_v28 = vor.u32 %v5295_v25, %v4814_v47 }
 0x204   : > { %v2480_v45 = vadd.f32 %v2479_v21, %v2391_v11  ;;  %v6853_v11 = vld [vmem:[#allocation5_spill] sm:$0xff] }
 0x206   : > { %v6593_v36 = vadd.f32 %v2568_v18, %v2480_v45  ;;  %v1903_v6 = vpop.f32.mrf.mxu2  ;;  %v4820_v18 = vld [vmem:[#allocation2 + $0xe0] sm:$0xf] }
 0x207   : > { %v1904_v14 = vadd.f32 %v1903_v6, %v6851_v5  ;;  %v4821_v57 = vor.u32 %v5297_v58, %v4820_v18 }
 0x208   : > { %v2484_v38 = vpop.f32.mrf.mxu0 }
 0x209   : > { %v2392_v59 = vpop.f32.mrf.mxu3  ;;  %v2573_v9 = vpop.f32.mrf.mxu1 }
 0x20a   : > { %v2393_v10 = vadd.f32 %v2392_v59, %v1904_v14 }
 0x20b   : > { %3135 = vmatmul.bf16.gmra.mxu2 %v4801_v23  ;;  %3313 = vmatmul.bf16.gmra.mxu0 %v4809_v34  ;;  %v6854_v23 = vld [vmem:[#allocation6_spill] sm:$0xff] }
 0x20c   : > { %v2482_v2 = vadd.f32 %v2481_v51, %v2393_v10  ;;  %3594 = vmatmul.bf16.gmra.mxu1 %v5120_v29 }
 0x20e   : > { %3224 = vmatmul.bf16.gmra.mxu3 %v4805_v52  ;;  %v6597_v62 = vadd.f32 %v2570_v54, %v2482_v2  ;;  %v1906_v60 = vpop.f32.mrf.mxu2  ;;  %v4824_v2 = vld [vmem:[#allocation2 + $0xf0] sm:$0xf] }
 0x20f   : > { %v1907_v41 = vadd.f32 %v1906_v60, %v6852_v35  ;;  %v5299_v60 = vld [vmem:[#allocation2 + $0xf8] sm:$0xf0]  ;;  %v4832_v35 = vld [vmem:[#allocation2 + $0xf8] sm:$0xf] }
 0x210   : > { %v2486_v37 = vpop.f32.mrf.mxu0  ;;  %v4825_v18 = vor.u32 %v5299_v60, %v4824_v2  ;;  %v4838_v2 = vld [vmem:[#allocation2 + $0x114] sm:$0xf0] }
 0x211   : > { %v2395_v39 = vpop.f32.mrf.mxu3  ;;  %v2575_v21 = vpop.f32.mrf.mxu1 }
 0x212   : > { %v2396_v43 = vadd.f32 %v2395_v39, %v1907_v41  ;;  %v5300_v41 = vld [vmem:[#allocation2 + $0x100] sm:$0xf0] }
 0x213   : > { %v4833_v58 = vor.u32 %v5300_v41, %v4832_v35 }
 0x214   : > { %v2485_v7 = vadd.f32 %v2484_v38, %v2396_v43  ;;  %v4826_v43 = vld [vmem:[#allocation2 + $0xfc] sm:$0xf0] }
 0x216   : > { %v6600_v12 = vadd.f32 %v2573_v9, %v2485_v7  ;;  %v1908_v51 = vpop.f32.mrf.mxu2 }
 0x217   : > { %v1909_v54 = vadd.f32 %v1908_v51, %v6853_v11  ;;  %v5122_v51 = vld [vmem:[%s5544_s8 + $0x40] sm:$0xff] }
 0x218   : > { %v2489_v48 = vpop.f32.mrf.mxu0 }
 0x219   : > { %v2397_v45 = vpop.f32.mrf.mxu3  ;;  %v2578_v6 = vpop.f32.mrf.mxu1 }
 0x21a   : > { %v2398_v49 = vadd.f32 %v2397_v45, %v1909_v54 }
 0x21b   : > { %3140 = vmatmul.bf16.gmra.mxu2 %v4813_v19  ;;  %3318 = vmatmul.bf16.gmra.mxu0 %v4821_v57 }
 0x21c   : > { %v2487_v5 = vadd.f32 %v2486_v37, %v2398_v49  ;;  %3599 = vmatmul.bf16.gmra.mxu1 %v5121_v0  ;;  %v5298_v37 = vld [vmem:[#allocation2 + $0xf4] sm:$0xf] }
 0x21d   : > { %v4829_v47 = vor.u32 %v5298_v37, %v4826_v43 }
 0x21e   : > { %3229 = vmatmul.bf16.gmra.mxu3 %v4817_v28  ;;  %v6604_v14 = vadd.f32 %v2575_v21, %v2487_v5  ;;  %v1911_v59 = vpop.f32.mrf.mxu2  ;;  %v6855_v21 = vld [vmem:[#allocation7_spill] sm:$0xff] }
 0x21f   : > { %v1912_v34 = vadd.f32 %v1911_v59, %v6854_v23  ;;  %v4836_v23 = vld [vmem:[#allocation2 + $0x108] sm:$0xf] }
 0x220   : > { %v2491_v52 = vpop.f32.mrf.mxu0 }
 0x221   : > { %v2400_v38 = vpop.f32.mrf.mxu3  ;;  %v2580_v10 = vpop.f32.mrf.mxu1 }
 0x222   : > { %v2401_v29 = vadd.f32 %v2400_v38, %v1912_v34  ;;  %v5302_v38 = vld [vmem:[#allocation2 + $0x110] sm:$0xf0] }
 0x223   : > { %v4837_v41 = vor.u32 %v5302_v38, %v4836_v23 }
 0x224   : > { %v2490_v9 = vadd.f32 %v2489_v48, %v2401_v29  ;;  %v4844_v29 = vld [vmem:[#allocation2 + $0x110] sm:$0xf] }
 0x226   : > { %v6607_v39 = vadd.f32 %v2578_v6, %v2490_v9  ;;  %v1913_v7 = vpop.f32.mrf.mxu2  ;;  %v5301_v9 = vld [vmem:[#allocation2 + $0x10c] sm:$0xf] }
 0x227   : > { %v1914_v26 = vadd.f32 %v1913_v7, %v6855_v21  ;;  %v4841_v21 = vor.u32 %v5301_v9, %v4838_v2  ;;  %v5305_v2 = vld [vmem:[#allocation2 + $0x128] sm:$0xf0] }
 0x228   : > { %v3284_v25 = vpop.f32.mrf.mxu0 }
 0x229   : > { %v2402_v22 = vpop.f32.mrf.mxu3  ;;  %v3565_v54 = vpop.f32.mrf.mxu1 }
 0x22a   : > { %v2403_v11 = vadd.f32 %v2402_v22, %v1914_v26  ;;  %v3791_v28 = vmul.f32 %v3565_v54, %v3565_v54  ;;  %v5123_v26 = vld [vmem:[%s5544_s8 + $0x48] sm:$0xff] }
 0x22b   : > { %3145 = vmatmul.bf16.gmra.mxu2 %v4825_v18  ;;  %3323 = vmatmul.bf16.gmra.mxu0 %v4833_v58  ;;  %v6856_v18 = vld [vmem:[#allocation8_spill] sm:$0xff] }
 0x22c   : > { %v2492_v45 = vadd.f32 %v2491_v52, %v2403_v11  ;;  %3604 = vmatmul.bf16.gmra.mxu1 %v5122_v51  ;;  %v5303_v52 = vld [vmem:[#allocation2 + $0x118] sm:$0xf0] }
 0x22d   : > { %v4845_v37 = vor.u32 %v5303_v52, %v4844_v29  ;;  %v4848_v29 = vld [vmem:[#allocation2 + $0x120] sm:$0xf] }
 0x22e   : > { %3234 = vmatmul.bf16.gmra.mxu3 %v4829_v47  ;;  %v6611_v19 = vadd.f32 %v2580_v10, %v2492_v45  ;;  %v3106_v57 = vpop.f32.mrf.mxu2 }
 0x230   : > { %v3286_v0 = vpop.f32.mrf.mxu0 }
 0x231   : > { %v3195_v48 = vpop.f32.mrf.mxu3  ;;  %v3567_v49 = vpop.f32.mrf.mxu1 }
 0x232   : > { %v3196_v6 = vadd.f32 %v3195_v48, %v3106_v57  ;;  %v3754_v5 = vadd.f32 %v3567_v49, %v3565_v54  ;;  %v3792_v59 = vmul.f32 %v3567_v49, %v3567_v49 }
 0x234   : > { %v3823_v34 = vadd.f32 %v3792_v59, %v3791_v28  ;;  %v3285_v60 = vadd.f32 %v3284_v25, %v3196_v6 }
 0x236   : > { %v3108_v35 = vpop.f32.mrf.mxu2  ;;  %v3364_v58 = vadd.f32 %v3285_v60, %v6856_v18  ;;  %v4856_v60 = vld [vmem:[#allocation2 + $0x128] sm:$0xf] }
 0x238   : > { %v3289_v7 = vpop.f32.mrf.mxu0  ;;  %v3682_v45 = vmul.f32 %v3364_v58, %v3364_v58 }
 0x239   : > { %v3197_v10 = vpop.f32.mrf.mxu3  ;;  %v3570_v22 = vpop.f32.mrf.mxu1 }
 0x23a   : > { %v3198_v43 = vadd.f32 %v3197_v10, %v3108_v35  ;;  %v3755_v51 = vadd.f32 %v3754_v5, %v3570_v22  ;;  %v3793_v11 = vmul.f32 %v3570_v22, %v3570_v22  ;;  %v5306_v35 = vld [vmem:[#allocation2 + $0x130] sm:$0xf0]  ;;  %v5304_v10 = vld [vmem:[#allocation2 + $0x124] sm:$0xf]  ;;  %v4849_v22 = vor.u32 %v5305_v2, %v4848_v29 }
 0x23b   : > { %3150 = vmatmul.bf16.gmra.mxu2 %v4837_v41  ;;  %3328 = vmatmul.bf16.gmra.mxu0 %v4845_v37  ;;  %v4850_v41 = vld [vmem:[#allocation2 + $0x12c] sm:$0xf0]  ;;  %v4857_v18 = vor.u32 %v5306_v35, %v4856_v60  ;;  %v4860_v60 = vld [vmem:[#allocation2 + $0x138] sm:$0xf] }
 0x23c   : > { %v3287_v47 = vadd.f32 %v3286_v0, %v3198_v43  ;;  %v3824_v25 = vadd.f32 %v3823_v34, %v3793_v11  ;;  %3609 = vmatmul.bf16.gmra.mxu1 %v5123_v26  ;;  %v5124_v11 = vld [vmem:[%s5544_s8 + $0x50] sm:$0xff] }
 0x23e   : > { %v3365_v54 = vadd.f32 %v3287_v47, %v6439_v53  ;;  %3239 = vmatmul.bf16.gmra.mxu3 %v4841_v21  ;;  %v3111_v0 = vpop.f32.mrf.mxu2 }
 0x240   : > { %v3645_v57 = vadd.f32 %v3365_v54, %v3364_v58  ;;  %v3683_v48 = vmul.f32 %v3365_v54, %v3365_v54  ;;  %v5357_v28 = vpack.c.bf16 %v3365_v54, %v3364_v58  ;;  %v3291_v53 = vpop.f32.mrf.mxu0 }
 0x241   : > { %v3200_v49 = vpop.f32.mrf.mxu3  ;;  %v3572_v59 = vpop.f32.mrf.mxu1 }
 0x242   : > { %v3714_v6 = vadd.f32 %v3683_v48, %v3682_v45  ;;  %5358 = vst [vmem:[%s6621_s14] sm:$0xff] %v5357_v28   ;;  %v3201_v5 = vadd.f32 %v3200_v49, %v3111_v0  ;;  %v3756_v34 = vadd.f32 %v3755_v51, %v3572_v59  ;;  %v3794_v38 = vmul.f32 %v3572_v59, %v3572_v59 }
 0x243   : > { %v4853_v51 = vor.u32 %v5304_v10, %v4850_v41  ;;  %v4868_v10 = vld [vmem:[#allocation2 + $0x140] sm:$0xf]  ;;  %v5309_v41 = vld [vmem:[#allocation2 + $0x148] sm:$0xf0] }
 0x244   : > { %v3290_v23 = vadd.f32 %v3289_v7, %v3201_v5  ;;  %v3825_v9 = vadd.f32 %v3824_v25, %v3794_v38 }
 0x246   : > { %v3366_v52 = vadd.f32 %v3290_v23, %v6453_v4  ;;  %v3113_v21 = vpop.f32.mrf.mxu2 }
 0x248   : > { %v3646_v37 = vadd.f32 %v3645_v57, %v3366_v52  ;;  %v3684_v43 = vmul.f32 %v3366_v52, %v3366_v52  ;;  %v3294_v47 = vpop.f32.mrf.mxu0 }
 0x249   : > { %v3202_v26 = vpop.f32.mrf.mxu3  ;;  %v3575_v54 = vpop.f32.mrf.mxu1 }
 0x24a   : > { %v3715_v58 = vadd.f32 %v3714_v6, %v3684_v43  ;;  %v3203_v7 = vadd.f32 %v3202_v26, %v3113_v21  ;;  %v3757_v25 = vadd.f32 %v3756_v34, %v3575_v54  ;;  %v3795_v45 = vmul.f32 %v3575_v54, %v3575_v54  ;;  %v5125_v54 = vld [vmem:[%s5544_s8 + $0x58] sm:$0xff] }
 0x24b   : > { %3155 = vmatmul.bf16.gmra.mxu2 %v4849_v22  ;;  %3333 = vmatmul.bf16.gmra.mxu0 %v4857_v18 }
 0x24c   : > { %v3292_v4 = vadd.f32 %v3291_v53, %v3203_v7  ;;  %v3826_v57 = vadd.f32 %v3825_v9, %v3795_v45  ;;  %3614 = vmatmul.bf16.gmra.mxu1 %v5124_v11  ;;  %v5308_v9 = vld [vmem:[#allocation2 + $0x140] sm:$0xf0] }
 0x24d   : > { %v4861_v18 = vor.u32 %v5308_v9, %v4860_v60  ;;  %v4872_v60 = vld [vmem:[#allocation2 + $0x150] sm:$0xf] }
 0x24e   : > { %v3367_v48 = vadd.f32 %v3292_v4, %v6462_v44  ;;  %3244 = vmatmul.bf16.gmra.mxu3 %v4853_v51  ;;  %v3116_v6 = vpop.f32.mrf.mxu2 }
 0x250   : > { %v3647_v28 = vadd.f32 %v3646_v37, %v3367_v48  ;;  %v3685_v0 = vmul.f32 %v3367_v48, %v3367_v48  ;;  %v5362_v49 = vpack.c.bf16 %v3367_v48, %v3366_v52  ;;  %v3296_v38 = vpop.f32.mrf.mxu0  ;;  %v5307_v37 = vld [vmem:[#allocation2 + $0x13c] sm:$0xf]  ;;  %v4862_v52 = vld [vmem:[#allocation2 + $0x144] sm:$0xf0] }
 0x251   : > { %v3205_v5 = vpop.f32.mrf.mxu3  ;;  %v3577_v29 = vpop.f32.mrf.mxu1  ;;  %v4865_v11 = vor.u32 %v5307_v37, %v4862_v52  ;;  %v5310_v37 = vld [vmem:[#allocation2 + $0x154] sm:$0xf] }
 0x252   : > { %v3716_v59 = vadd.f32 %v3715_v58, %v3685_v0  ;;  %5434 = vst [vmem:[%s6621_s14 + $0x8] sm:$0xff] %v5362_v49   ;;  %v3206_v23 = vadd.f32 %v3205_v5, %v3116_v6  ;;  %v3758_v34 = vadd.f32 %v3757_v25, %v3577_v29  ;;  %v3796_v2 = vmul.f32 %v3577_v29, %v3577_v29 }
 0x253   : > { %v4869_v58 = vor.u32 %v5309_v41, %v4868_v10  ;;  %v4880_v10 = vld [vmem:[#allocation2 + $0x158] sm:$0xf]  ;;  %v5312_v41 = vld [vmem:[#allocation2 + $0x160] sm:$0xf0] }
 0x254   : > { %v3295_v53 = vadd.f32 %v3294_v47, %v3206_v23  ;;  %v3827_v44 = vadd.f32 %v3826_v57, %v3796_v2 }
 0x256   : > { %v3368_v35 = vadd.f32 %v3295_v53, %v6479_v31  ;;  %v3118_v26 = vpop.f32.mrf.mxu2 }
 0x258   : > { %v3648_v43 = vadd.f32 %v3647_v28, %v3368_v35  ;;  %v3686_v21 = vmul.f32 %v3368_v35, %v3368_v35  ;;  %v3299_v51 = vpop.f32.mrf.mxu0 }
 0x259   : > { %v3207_v22 = vpop.f32.mrf.mxu3  ;;  %v3580_v4 = vpop.f32.mrf.mxu1 }
 0x25a   : > { %v3717_v7 = vadd.f32 %v3716_v59, %v3686_v21  ;;  %v3208_v47 = vadd.f32 %v3207_v22, %v3118_v26  ;;  %v3759_v25 = vadd.f32 %v3758_v34, %v3580_v4  ;;  %v3797_v45 = vmul.f32 %v3580_v4, %v3580_v4 }
 0x25b   : > { %3160 = vmatmul.bf16.gmra.mxu2 %v4861_v18  ;;  %3338 = vmatmul.bf16.gmra.mxu0 %v4869_v58  ;;  %v4881_v18 = vor.u32 %v5312_v41, %v4880_v10  ;;  %v5313_v10 = vld [vmem:[#allocation2 + $0x16c] sm:$0xf] }
 0x25c   : > { %v3297_v31 = vadd.f32 %v3296_v38, %v3208_v47  ;;  %v3828_v57 = vadd.f32 %v3827_v44, %v3797_v45  ;;  %3619 = vmatmul.bf16.gmra.mxu1 %v5125_v54  ;;  %v5311_v44 = vld [vmem:[#allocation2 + $0x158] sm:$0xf0] }
 0x25d   : > { %v4873_v22 = vor.u32 %v5311_v44, %v4872_v60  ;;  %v5314_v60 = vld [vmem:[#allocation2 + $0x170] sm:$0xf0]  ;;  %v5315_v44 = vld [vmem:[#allocation2 + $0x178] sm:$0xf0] }
 0x25e   : > { %v3369_v48 = vadd.f32 %v3297_v31, %v6491_v20  ;;  %3249 = vmatmul.bf16.gmra.mxu3 %v4865_v11  ;;  %v3121_v6 = vpop.f32.mrf.mxu2  ;;  %v5126_v11 = vld [vmem:[%s5544_s8 + $0x60] sm:$0xff] }
 0x260   : > { %v3649_v28 = vadd.f32 %v3648_v43, %v3369_v48  ;;  %v3687_v0 = vmul.f32 %v3369_v48, %v3369_v48  ;;  %v5367_v49 = vpack.c.bf16 %v3369_v48, %v3368_v35  ;;  %v3301_v29 = vpop.f32.mrf.mxu0  ;;  %v4874_v35 = vld [vmem:[#allocation2 + $0x15c] sm:$0xf0] }
 0x261   : > { %v3210_v5 = vpop.f32.mrf.mxu3  ;;  %v3582_v53 = vpop.f32.mrf.mxu1 }
 0x262   : > { %v3718_v59 = vadd.f32 %v3717_v7, %v3687_v0  ;;  %5435 = vst [vmem:[%s6621_s14 + $0x10] sm:$0xff] %v5367_v49   ;;  %v3211_v23 = vadd.f32 %v3210_v5, %v3121_v6  ;;  %v3760_v34 = vadd.f32 %v3759_v25, %v3582_v53  ;;  %v3798_v2 = vmul.f32 %v3582_v53, %v3582_v53 }
 0x264   : > { %v3300_v38 = vadd.f32 %v3299_v51, %v3211_v23  ;;  %v3829_v20 = vadd.f32 %v3828_v57, %v3798_v2  ;;  %v4877_v51 = vor.u32 %v5310_v37, %v4874_v35 }
 0x266   : > { %v3370_v9 = vadd.f32 %v3300_v38, %v6505_v55  ;;  %v3123_v21 = vpop.f32.mrf.mxu2 }
 0x268   : > { %v3650_v52 = vadd.f32 %v3649_v28, %v3370_v9  ;;  %v3688_v43 = vmul.f32 %v3370_v9, %v3370_v9  ;;  %v3304_v47 = vpop.f32.mrf.mxu0 }
 0x269   : > { %v3212_v26 = vpop.f32.mrf.mxu3  ;;  %v3585_v54 = vpop.f32.mrf.mxu1 }
 0x26a   : > { %v3719_v58 = vadd.f32 %v3718_v59, %v3688_v43  ;;  %v3213_v7 = vadd.f32 %v3212_v26, %v3123_v21  ;;  %v3761_v4 = vadd.f32 %v3760_v34, %v3585_v54  ;;  %v3799_v31 = vmul.f32 %v3585_v54, %v3585_v54  ;;  %v4884_v34 = vld [vmem:[#allocation2 + $0x168] sm:$0xf] }
 0x26b   : > { %3165 = vmatmul.bf16.gmra.mxu2 %v4873_v22  ;;  %3343 = vmatmul.bf16.gmra.mxu0 %v4881_v18  ;;  %v4885_v43 = vor.u32 %v5314_v60, %v4884_v34  ;;  %v5318_v34 = vld [vmem:[#allocation2 + $0x190] sm:$0xf0] }
 0x26c   : > { %v3302_v55 = vadd.f32 %v3301_v29, %v3213_v7  ;;  %v3830_v45 = vadd.f32 %v3829_v20, %v3799_v31  ;;  %3624 = vmatmul.bf16.gmra.mxu1 %v5126_v11  ;;  %v4892_v20 = vld [vmem:[#allocation2 + $0x170] sm:$0xf]  ;;  %v5127_v7 = vld [vmem:[%s5544_s8 + $0x68] sm:$0xff] }
 0x26d   : > { %v4893_v21 = vor.u32 %v5315_v44, %v4892_v20 }
 0x26e   : > { %v3371_v25 = vadd.f32 %v3302_v55, %v6514_v15  ;;  %3254 = vmatmul.bf16.gmra.mxu3 %v4877_v51  ;;  %v3126_v0 = vpop.f32.mrf.mxu2 }
 0x270   : > { %v3651_v48 = vadd.f32 %v3650_v52, %v3371_v25  ;;  %v3689_v57 = vmul.f32 %v3371_v25, %v3371_v25  ;;  %v5372_v28 = vpack.c.bf16 %v3371_v25, %v3370_v9  ;;  %v3306_v59 = vpop.f32.mrf.mxu0  ;;  %v4886_v9 = vld [vmem:[#allocation2 + $0x174] sm:$0xf0] }
 0x271   : > { %v3215_v49 = vpop.f32.mrf.mxu3  ;;  %v3587_v23 = vpop.f32.mrf.mxu1 }
 0x272   : > { %v3720_v6 = vadd.f32 %v3719_v58, %v3689_v57  ;;  %5436 = vst [vmem:[%s6621_s14 + $0x18] sm:$0xff] %v5372_v28   ;;  %v3216_v5 = vadd.f32 %v3215_v49, %v3126_v0  ;;  %v3762_v53 = vadd.f32 %v3761_v4, %v3587_v23  ;;  %v3800_v38 = vmul.f32 %v3587_v23, %v3587_v23  ;;  %v4896_v23 = vld [vmem:[#allocation2 + $0x180] sm:$0xf] }
 0x273   : > { %v4889_v58 = vor.u32 %v5313_v10, %v4886_v9 }
 0x274   : > { %v3305_v29 = vadd.f32 %v3304_v47, %v3216_v5  ;;  %v3831_v15 = vadd.f32 %v3830_v45, %v3800_v38  ;;  %v4904_v38 = vld [vmem:[#allocation2 + $0x188] sm:$0xf] }
 0x276   : > { %v3372_v2 = vadd.f32 %v3305_v29, %v6527_v50  ;;  %v3128_v35 = vpop.f32.mrf.mxu2 }
 0x278   : > { %v3652_v41 = vadd.f32 %v3651_v48, %v3372_v2  ;;  %v3690_v37 = vmul.f32 %v3372_v2, %v3372_v2  ;;  %v3309_v18 = vpop.f32.mrf.mxu0 }
 0x279   : > { %v3217_v52 = vpop.f32.mrf.mxu3  ;;  %v3590_v47 = vpop.f32.mrf.mxu1 }
 0x27a   : > { %v3721_v26 = vadd.f32 %v3720_v6, %v3690_v37  ;;  %v3218_v22 = vadd.f32 %v3217_v52, %v3128_v35  ;;  %v3763_v51 = vadd.f32 %v3762_v53, %v3590_v47  ;;  %v3801_v11 = vmul.f32 %v3590_v47, %v3590_v47  ;;  %v5317_v53 = vld [vmem:[#allocation2 + $0x188] sm:$0xf0] }
 0x27b   : > { %3170 = vmatmul.bf16.gmra.mxu2 %v4885_v43  ;;  %3348 = vmatmul.bf16.gmra.mxu0 %v4893_v21  ;;  %v4897_v9 = vor.u32 %v5317_v53, %v4896_v23  ;;  %v5128_v21 = vld [vmem:[%s5544_s8 + $0x70] sm:$0xff]  ;;  %v4910_v23 = vld [vmem:[#allocation2 + $0x1a4] sm:$0xf0] }
 0x27c   : > { %v3307_v50 = vadd.f32 %v3306_v59, %v3218_v22  ;;  %v3832_v55 = vadd.f32 %v3831_v15, %v3801_v11  ;;  %3629 = vmatmul.bf16.gmra.mxu1 %v5127_v7  ;;  %v5316_v15 = vld [vmem:[#allocation2 + $0x184] sm:$0xf] }
 0x27e   : > { %v3373_v54 = vadd.f32 %v3307_v50, %v6533_v17  ;;  %3259 = vmatmul.bf16.gmra.mxu3 %v4889_v58  ;;  %v3131_v45 = vpop.f32.mrf.mxu2 }
 0x280   : > { %v3653_v4 = vadd.f32 %v3652_v41, %v3373_v54  ;;  %v3691_v31 = vmul.f32 %v3373_v54, %v3373_v54  ;;  %v5377_v25 = vpack.c.bf16 %v3373_v54, %v3372_v2  ;;  %v3311_v0 = vpop.f32.mrf.mxu0  ;;  %v4898_v2 = vld [vmem:[#allocation2 + $0x18c] sm:$0xf0]  ;;  %v4905_v41 = vor.u32 %v5318_v34, %v4904_v38 }
 0x281   : > { %v3220_v48 = vpop.f32.mrf.mxu3  ;;  %v3592_v49 = vpop.f32.mrf.mxu1  ;;  %v4901_v43 = vor.u32 %v5316_v15, %v4898_v2 }
 0x282   : > { %v3722_v57 = vadd.f32 %v3721_v26, %v3691_v31  ;;  %5437 = vst [vmem:[%s6621_s14 + $0x20] sm:$0xff] %v5377_v25   ;;  %v3221_v28 = vadd.f32 %v3220_v48, %v3131_v45  ;;  %v3764_v5 = vadd.f32 %v3763_v51, %v3592_v49  ;;  %v3802_v59 = vmul.f32 %v3592_v49, %v3592_v49  ;;  %v5320_v49 = vld [vmem:[#allocation2 + $0x1a0] sm:$0xf0] }
 0x284   : > { %v3310_v6 = vadd.f32 %v3309_v18, %v3221_v28  ;;  %v3833_v17 = vadd.f32 %v3832_v55, %v3802_v59  ;;  %v4908_v28 = vld [vmem:[#allocation2 + $0x198] sm:$0xf]  ;;  %v5319_v59 = vld [vmem:[#allocation2 + $0x19c] sm:$0xf] }
 0x285   : > { %v4909_v34 = vor.u32 %v5320_v49, %v4908_v28 }
 0x286   : > { %v3374_v29 = vadd.f32 %v3310_v6, %v6539_v24  ;;  %v3133_v44 = vpop.f32.mrf.mxu2  ;;  %v4916_v6 = vld [vmem:[#allocation2 + $0x1a0] sm:$0xf] }
 0x288   : > { %v3654_v60 = vadd.f32 %v3653_v4, %v3374_v29  ;;  %v3692_v20 = vmul.f32 %v3374_v29, %v3374_v29  ;;  %v3314_v52 = vpop.f32.mrf.mxu0 }
 0x289   : > { %v3222_v10 = vpop.f32.mrf.mxu3  ;;  %v3595_v26 = vpop.f32.mrf.mxu1 }
 0x28a   : > { %v3723_v37 = vadd.f32 %v3722_v57, %v3692_v20  ;;  %v3223_v35 = vadd.f32 %v3222_v10, %v3133_v44  ;;  %v3765_v22 = vadd.f32 %v3764_v5, %v3595_v26  ;;  %v3803_v18 = vmul.f32 %v3595_v26, %v3595_v26  ;;  %v5321_v5 = vld [vmem:[#allocation2 + $0x1a8] sm:$0xf0]  ;;  %v5129_v10 = vld [vmem:[%s5544_s8 + $0x78] sm:$0xff] }
 0x28b   : > { %3175 = vmatmul.bf16.gmra.mxu2 %v4897_v9  ;;  %3353 = vmatmul.bf16.gmra.mxu0 %v4905_v41  ;;  %v4917_v15 = vor.u32 %v5321_v5, %v4916_v6  ;;  %v4913_v44 = vor.u32 %v5319_v59, %v4910_v23 }
 0x28c   : > { %v3312_v24 = vadd.f32 %v3311_v0, %v3223_v35  ;;  %v3834_v7 = vadd.f32 %v3833_v17, %v3803_v18  ;;  %3634 = vmatmul.bf16.gmra.mxu1 %v5128_v21 }
 0x28e   : > { %v3375_v58 = vadd.f32 %v3312_v24, %v6542_v30  ;;  %3264 = vmatmul.bf16.gmra.mxu3 %v4901_v43  ;;  %v3136_v11 = vpop.f32.mrf.mxu2 }
 0x290   : > { %v3655_v47 = vadd.f32 %v3654_v60, %v3375_v58  ;;  %v3693_v50 = vmul.f32 %v3375_v58, %v3375_v58  ;;  %v5382_v51 = vpack.c.bf16 %v3375_v58, %v3374_v29  ;;  %v3316_v31 = vpop.f32.mrf.mxu0 }
 0x291   : > { %v3225_v54 = vpop.f32.mrf.mxu3  ;;  %v3597_v25 = vpop.f32.mrf.mxu1 }
 0x292   : > { %v3724_v55 = vadd.f32 %v3723_v37, %v3693_v50  ;;  %5438 = vst [vmem:[%s6621_s14 + $0x28] sm:$0xff] %v5382_v51   ;;  %v3226_v4 = vadd.f32 %v3225_v54, %v3136_v11  ;;  %v3766_v48 = vadd.f32 %v3765_v22, %v3597_v25  ;;  %v3804_v57 = vmul.f32 %v3597_v25, %v3597_v25 }
 0x294   : > { %v3315_v45 = vadd.f32 %v3314_v52, %v3226_v4  ;;  %v3835_v30 = vadd.f32 %v3834_v7, %v3804_v57 }
 0x296   : > { %v3376_v0 = vadd.f32 %v3315_v45, %v6545_v16  ;;  %v3138_v53 = vpop.f32.mrf.mxu2 }
 0x298   : > { %v3656_v29 = vadd.f32 %v3655_v47, %v3376_v0  ;;  %v3694_v17 = vmul.f32 %v3376_v0, %v3376_v0  ;;  %v3319_v20 = vpop.f32.mrf.mxu0 }
 0x299   : > { %v3227_v38 = vpop.f32.mrf.mxu3  ;;  %v3600_v9 = vpop.f32.mrf.mxu1 }
 0x29a   : > { %v3725_v2 = vadd.f32 %v3724_v55, %v3694_v17  ;;  %v3228_v60 = vadd.f32 %v3227_v38, %v3138_v53  ;;  %v3767_v41 = vadd.f32 %v3766_v48, %v3600_v9  ;;  %v3805_v37 = vmul.f32 %v3600_v9, %v3600_v9 }
 0x29b   : > { %3180 = vmatmul.bf16.gmra.mxu2 %v4909_v34  ;;  %3358 = vmatmul.bf16.gmra.mxu0 %v4917_v15 }
 0x29c   : > { %v3317_v16 = vadd.f32 %v3316_v31, %v3228_v60  ;;  %v3836_v52 = vadd.f32 %v3835_v30, %v3805_v37  ;;  %3639 = vmatmul.bf16.gmra.mxu1 %v5129_v10 }
 0x29e   : > { %v3377_v35 = vadd.f32 %v3317_v16, %v6548_v42  ;;  %3269 = vmatmul.bf16.gmra.mxu3 %v4913_v44  ;;  %v3141_v24 = vpop.f32.mrf.mxu2 }
 0x2a0   : > { %v3657_v43 = vadd.f32 %v3656_v29, %v3377_v35  ;;  %v3695_v21 = vmul.f32 %v3377_v35, %v3377_v35  ;;  %v5387_v26 = vpack.c.bf16 %v3377_v35, %v3376_v0  ;;  %v3321_v7 = vpop.f32.mrf.mxu0 }
 0x2a1   : > { %v3230_v22 = vpop.f32.mrf.mxu3  ;;  %v3602_v47 = vpop.f32.mrf.mxu1 }
 0x2a2   : > { %v3726_v18 = vadd.f32 %v3725_v2, %v3695_v21  ;;  %5439 = vst [vmem:[%s6621_s14 + $0x30] sm:$0xff] %v5387_v26   ;;  %v3231_v58 = vadd.f32 %v3230_v22, %v3141_v24  ;;  %v3768_v51 = vadd.f32 %v3767_v41, %v3602_v47  ;;  %v3806_v11 = vmul.f32 %v3602_v47, %v3602_v47 }
 0x2a4   : > { %v3320_v50 = vadd.f32 %v3319_v20, %v3231_v58  ;;  %v3837_v55 = vadd.f32 %v3836_v52, %v3806_v11 }
 0x2a6   : > { %v3378_v54 = vadd.f32 %v3320_v50, %v6551_v56  ;;  %v3143_v31 = vpop.f32.mrf.mxu2 }
 0x2a8   : > { %v3658_v42 = vadd.f32 %v3657_v43, %v3378_v54  ;;  %v3696_v4 = vmul.f32 %v3378_v54, %v3378_v54  ;;  %v3324_v57 = vpop.f32.mrf.mxu0 }
 0x2a9   : > { %v3232_v25 = vpop.f32.mrf.mxu3  ;;  %v3605_v28 = vpop.f32.mrf.mxu1 }
 0x2aa   : > { %v3727_v45 = vadd.f32 %v3726_v18, %v3696_v4  ;;  %v3233_v48 = vadd.f32 %v3232_v25, %v3143_v31  ;;  %v3769_v30 = vadd.f32 %v3768_v51, %v3605_v28  ;;  %v3807_v49 = vmul.f32 %v3605_v28, %v3605_v28 }
 0x2ac   : > { %v3322_v0 = vadd.f32 %v3321_v7, %v3233_v48  ;;  %v3838_v5 = vadd.f32 %v3837_v55, %v3807_v49 }
 0x2ae   : > { %v3379_v6 = vadd.f32 %v3322_v0, %v6555_v3  ;;  %v3146_v56 = vpop.f32.mrf.mxu2 }
 0x2b0   : > { %v3659_v59 = vadd.f32 %v3658_v42, %v3379_v6  ;;  %v3697_v23 = vmul.f32 %v3379_v6, %v3379_v6  ;;  %v5392_v29 = vpack.c.bf16 %v3379_v6, %v3378_v54  ;;  %v3326_v34 = vpop.f32.mrf.mxu0 }
 0x2b1   : > { %v3235_v17 = vpop.f32.mrf.mxu3  ;;  %v3607_v15 = vpop.f32.mrf.mxu1 }
 0x2b2   : > { %v3728_v53 = vadd.f32 %v3727_v45, %v3697_v23  ;;  %5440 = vst [vmem:[%s6621_s14 + $0x38] sm:$0xff] %v5392_v29   ;;  %v3236_v38 = vadd.f32 %v3235_v17, %v3146_v56  ;;  %v3770_v60 = vadd.f32 %v3769_v30, %v3607_v15  ;;  %v3808_v20 = vmul.f32 %v3607_v15, %v3607_v15 }
 0x2b4   : > { %v3325_v2 = vadd.f32 %v3324_v57, %v3236_v38  ;;  %v3839_v10 = vadd.f32 %v3838_v5, %v3808_v20 }
 0x2b6   : > { %v3380_v44 = vadd.f32 %v3325_v2, %v6558_v46  ;;  %v3148_v3 = vpop.f32.mrf.mxu2 }
 0x2b8   : > { %v3660_v9 = vadd.f32 %v3659_v59, %v3380_v44  ;;  %v3698_v16 = vmul.f32 %v3380_v44, %v3380_v44  ;;  %v3329_v52 = vpop.f32.mrf.mxu0 }
 0x2b9   : > { %v3237_v41 = vpop.f32.mrf.mxu3  ;;  %v3610_v43 = vpop.f32.mrf.mxu1 }
 0x2ba   : > { %v3729_v37 = vadd.f32 %v3728_v53, %v3698_v16  ;;  %v3238_v35 = vadd.f32 %v3237_v41, %v3148_v3  ;;  %v3771_v26 = vadd.f32 %v3770_v60, %v3610_v43  ;;  %v3809_v24 = vmul.f32 %v3610_v43, %v3610_v43 }
 0x2bc   : > { %v3327_v21 = vadd.f32 %v3326_v34, %v3238_v35  ;;  %v3840_v18 = vadd.f32 %v3839_v10, %v3809_v24 }
 0x2be   : > { %v3381_v22 = vadd.f32 %v3327_v21, %v6562_v40  ;;  %v3151_v46 = vpop.f32.mrf.mxu2 }
 0x2c0   : > { %v3661_v58 = vadd.f32 %v3660_v9, %v3381_v22  ;;  %v3699_v7 = vmul.f32 %v3381_v22, %v3381_v22  ;;  %v5397_v47 = vpack.c.bf16 %v3381_v22, %v3380_v44  ;;  %v3331_v54 = vpop.f32.mrf.mxu0 }
 0x2c1   : > { %v3240_v50 = vpop.f32.mrf.mxu3  ;;  %v3612_v55 = vpop.f32.mrf.mxu1 }
 0x2c2   : > { %v3730_v51 = vadd.f32 %v3729_v37, %v3699_v7  ;;  %5441 = vst [vmem:[%s6621_s14 + $0x40] sm:$0xff] %v5397_v47   ;;  %v3241_v11 = vadd.f32 %v3240_v50, %v3151_v46  ;;  %v3772_v4 = vadd.f32 %v3771_v26, %v3612_v55  ;;  %v3810_v31 = vmul.f32 %v3612_v55, %v3612_v55 }
 0x2c4   : > { %v3330_v42 = vadd.f32 %v3329_v52, %v3241_v11  ;;  %v3841_v45 = vadd.f32 %v3840_v18, %v3810_v31 }
 0x2c6   : > { %v3382_v25 = vadd.f32 %v3330_v42, %v6565_v63  ;;  %v3153_v40 = vpop.f32.mrf.mxu2 }
 0x2c8   : > { %v3662_v48 = vadd.f32 %v3661_v58, %v3382_v25  ;;  %v3700_v57 = vmul.f32 %v3382_v25, %v3382_v25  ;;  %v3334_v49 = vpop.f32.mrf.mxu0 }
 0x2c9   : > { %v3242_v28 = vpop.f32.mrf.mxu3  ;;  %v3615_v6 = vpop.f32.mrf.mxu1 }
 0x2ca   : > { %v3731_v0 = vadd.f32 %v3730_v51, %v3700_v57  ;;  %v3243_v30 = vadd.f32 %v3242_v28, %v3153_v40  ;;  %v6655_v59 = vadd.f32 %v3772_v4, %v3615_v6  ;;  %v3811_v23 = vmul.f32 %v3615_v6, %v3615_v6 }
 0x2cc   : > { %v3332_v5 = vadd.f32 %v3331_v54, %v3243_v30  ;;  %v6658_v56 = vadd.f32 %v3841_v45, %v3811_v23 }
 0x2ce   : > { %v3383_v29 = vadd.f32 %v3332_v5, %v6569_v32  ;;  %v3156_v38 = vpop.f32.mrf.mxu2 }
 0x2d0   : > { %v3663_v17 = vadd.f32 %v3662_v48, %v3383_v29  ;;  %v3701_v63 = vmul.f32 %v3383_v29, %v3383_v29  ;;  %v5402_v53 = vpack.c.bf16 %v3383_v29, %v3382_v25  ;;  %v3336_v60 = vpop.f32.mrf.mxu0 }
 0x2d1   : > { %v3245_v34 = vpop.f32.mrf.mxu3  ;;  %v6661_v20 = vpop.f32.mrf.mxu1 }
 0x2d2   : > { %v3732_v15 = vadd.f32 %v3731_v0, %v3701_v63  ;;  %5442 = vst [vmem:[%s6621_s14 + $0x48] sm:$0xff] %v5402_v53   ;;  %v3246_v2 = vadd.f32 %v3245_v34, %v3156_v38 }
 0x2d4   : > { %v3335_v44 = vadd.f32 %v3334_v49, %v3246_v2 }
 0x2d6   : > { %v3384_v10 = vadd.f32 %v3335_v44, %v6572_v27  ;;  %v3158_v32 = vpop.f32.mrf.mxu2 }
 0x2d8   : > { %v3664_v9 = vadd.f32 %v3663_v17, %v3384_v10  ;;  %v3702_v16 = vmul.f32 %v3384_v10, %v3384_v10  ;;  %v3339_v35 = vpop.f32.mrf.mxu0 }
 0x2d9   : > { %v3247_v3 = vpop.f32.mrf.mxu3  ;;  %v6664_v52 = vpop.f32.mrf.mxu1 }
 0x2da   : > { %v3733_v41 = vadd.f32 %v3732_v15, %v3702_v16  ;;  %v3248_v37 = vadd.f32 %v3247_v3, %v3158_v32 }
 0x2dc   : > { %v3337_v43 = vadd.f32 %v3336_v60, %v3248_v37 }
 0x2de   : > { %v3385_v21 = vadd.f32 %v3337_v43, %v6576_v33  ;;  %v3161_v18 = vpop.f32.mrf.mxu2 }
 0x2e0   : > { %v3665_v26 = vadd.f32 %v3664_v9, %v3385_v21  ;;  %v3703_v24 = vmul.f32 %v3385_v21, %v3385_v21  ;;  %v5407_v22 = vpack.c.bf16 %v3385_v21, %v3384_v10  ;;  %v3341_v47 = vpop.f32.mrf.mxu0 }
 0x2e1   : > { %v3250_v58 = vpop.f32.mrf.mxu3  ;;  %v6668_v46 = vpop.f32.mrf.mxu1 }
 0x2e2   : > { %v3734_v7 = vadd.f32 %v3733_v41, %v3703_v24  ;;  %5443 = vst [vmem:[%s6621_s14 + $0x50] sm:$0xff] %v5407_v22   ;;  %v3251_v27 = vadd.f32 %v3250_v58, %v3161_v18 }
 0x2e4   : > { %v3340_v50 = vadd.f32 %v3339_v35, %v3251_v27 }
 0x2e6   : > { %v3386_v51 = vadd.f32 %v3340_v50, %v6579_v13  ;;  %v3163_v55 = vpop.f32.mrf.mxu2 }
 0x2e8   : > { %v3666_v11 = vadd.f32 %v3665_v26, %v3386_v51  ;;  %v3704_v54 = vmul.f32 %v3386_v51, %v3386_v51  ;;  %v3344_v31 = vpop.f32.mrf.mxu0 }
 0x2e9   : > { %v3252_v42 = vpop.f32.mrf.mxu3  ;;  %v6671_v25 = vpop.f32.mrf.mxu1 }
 0x2ea   : > { %v3735_v33 = vadd.f32 %v3734_v7, %v3704_v54  ;;  %v3253_v4 = vadd.f32 %v3252_v42, %v3163_v55 }
 0x2ec   : > { %v3342_v45 = vadd.f32 %v3341_v47, %v3253_v4  ;;  %v3812_v47 = vmul.f32 %v6661_v20, %v6661_v20 }
 0x2ee   : > { %v3387_v48 = vadd.f32 %v3342_v45, %v6583_v8  ;;  %v3166_v0 = vpop.f32.mrf.mxu2  ;;  %v3843_v4 = vadd.f32 %v6658_v56, %v3812_v47  ;;  %v3814_v45 = vmul.f32 %v6668_v46, %v6668_v46 }
 0x2f0   : > { %v3667_v57 = vadd.f32 %v3666_v11, %v3387_v48  ;;  %v3705_v40 = vmul.f32 %v3387_v48, %v3387_v48  ;;  %v5412_v28 = vpack.c.bf16 %v3387_v48, %v3386_v51  ;;  %v3346_v6 = vpop.f32.mrf.mxu0  ;;  %v3774_v11 = vadd.f32 %v6655_v59, %v6661_v20 }
 0x2f1   : > { %v3255_v30 = vpop.f32.mrf.mxu3  ;;  %v3627_v5 = vpop.f32.mrf.mxu1  ;;  %v3815_v20 = vmul.f32 %v6671_v25, %v6671_v25 }
 0x2f2   : > { %v3736_v49 = vadd.f32 %v3735_v33, %v3705_v40  ;;  %5444 = vst [vmem:[%s6621_s14 + $0x58] sm:$0xff] %v5412_v28   ;;  %v3256_v13 = vadd.f32 %v3255_v30, %v3166_v0 }
 0x2f4   : > { %v3345_v23 = vadd.f32 %v3344_v31, %v3256_v13  ;;  %v3775_v31 = vadd.f32 %v3774_v11, %v6664_v52 }
 0x2f6   : > { %v3388_v29 = vadd.f32 %v3345_v23, %v6586_v61  ;;  %v3168_v53 = vpop.f32.mrf.mxu2  ;;  %v3776_v59 = vadd.f32 %v3775_v31, %v6668_v46 }
 0x2f8   : > { %v3668_v17 = vadd.f32 %v3667_v57, %v3388_v29  ;;  %v3706_v63 = vmul.f32 %v3388_v29, %v3388_v29  ;;  %v3349_v15 = vpop.f32.mrf.mxu0  ;;  %v3777_v56 = vadd.f32 %v3776_v59, %v6671_v25 }
 0x2f9   : > { %v3257_v38 = vpop.f32.mrf.mxu3  ;;  %v3630_v2 = vpop.f32.mrf.mxu1 }
 0x2fa   : > { %v3737_v34 = vadd.f32 %v3736_v49, %v3706_v63  ;;  %v3258_v8 = vadd.f32 %v3257_v38, %v3168_v53  ;;  %v3816_v49 = vmul.f32 %v3627_v5, %v3627_v5  ;;  %v3817_v23 = vmul.f32 %v3630_v2, %v3630_v2 }
 0x2fc   : > { %v3347_v60 = vadd.f32 %v3346_v6, %v3258_v8  ;;  %v3778_v6 = vadd.f32 %v3777_v56, %v3627_v5 }
 0x2fe   : > { %v3389_v44 = vadd.f32 %v3347_v60, %v6590_v1  ;;  %v3171_v32 = vpop.f32.mrf.mxu2  ;;  %v3779_v46 = vadd.f32 %v3778_v6, %v3630_v2 }
 0x300   : > { %v3669_v10 = vadd.f32 %v3668_v17, %v3389_v44  ;;  %v3707_v9 = vmul.f32 %v3389_v44, %v3389_v44  ;;  %v5417_v16 = vpack.c.bf16 %v3389_v44, %v3388_v29  ;;  %v3351_v37 = vpop.f32.mrf.mxu0 }
 0x301   : > { %v3260_v3 = vpop.f32.mrf.mxu3  ;;  %v3632_v35 = vpop.f32.mrf.mxu1 }
 0x302   : > { %v3738_v41 = vadd.f32 %v3737_v34, %v3707_v9  ;;  %5445 = vst [vmem:[%s6621_s14 + $0x60] sm:$0xff] %v5417_v16   ;;  %v3261_v61 = vadd.f32 %v3260_v3, %v3171_v32  ;;  %v3818_v34 = vmul.f32 %v3632_v35, %v3632_v35 }
 0x304   : > { %v3350_v43 = vadd.f32 %v3349_v15, %v3261_v61 }
 0x306   : > { %v3390_v21 = vadd.f32 %v3350_v43, %v6593_v36  ;;  %v3173_v22 = vpop.f32.mrf.mxu2  ;;  %v3813_v36 = vmul.f32 %v6664_v52, %v6664_v52 }
 0x308   : > { %v3670_v26 = vadd.f32 %v3669_v10, %v3390_v21  ;;  %v3708_v24 = vmul.f32 %v3390_v21, %v3390_v21  ;;  %v3354_v50 = vpop.f32.mrf.mxu0  ;;  %v3844_v40 = vadd.f32 %v3843_v4, %v3813_v36  ;;  %v3780_v10 = vadd.f32 %v3779_v46, %v3632_v35 }
 0x309   : > { %v3262_v18 = vpop.f32.mrf.mxu3  ;;  %v3635_v1 = vpop.f32.mrf.mxu1 }
 0x30a   : > { %v3739_v58 = vadd.f32 %v3738_v41, %v3708_v24  ;;  %v3263_v7 = vadd.f32 %v3262_v18, %v3173_v22  ;;  %v3845_v30 = vadd.f32 %v3844_v40, %v3814_v45  ;;  %v3819_v9 = vmul.f32 %v3635_v1, %v3635_v1 }
 0x30b   : > { %v3781_v32 = vadd.f32 %v3780_v10, %v3635_v1 }
 0x30c   : > { %v3352_v27 = vadd.f32 %v3351_v37, %v3263_v7  ;;  %v3846_v13 = vadd.f32 %v3845_v30, %v3815_v20 }
 0x30e   : > { %v3391_v51 = vadd.f32 %v3352_v27, %v6597_v62  ;;  %v3176_v33 = vpop.f32.mrf.mxu2  ;;  %v3847_v38 = vadd.f32 %v3846_v13, %v3816_v49 }
 0x310   : > { %v3671_v54 = vadd.f32 %v3670_v26, %v3391_v51  ;;  %v3709_v55 = vmul.f32 %v3391_v51, %v3391_v51  ;;  %v5422_v42 = vpack.c.bf16 %v3391_v51, %v3390_v21  ;;  %v3356_v29 = vpop.f32.mrf.mxu0  ;;  %v3848_v44 = vadd.f32 %v3847_v38, %v3817_v23 }
 0x311   : > { %v3265_v48 = vpop.f32.mrf.mxu3  ;;  %v3637_v28 = vpop.f32.mrf.mxu1 }
 0x312   : > { %v3740_v57 = vadd.f32 %v3739_v58, %v3709_v55  ;;  %5446 = vst [vmem:[%s6621_s14 + $0x68] sm:$0xff] %v5422_v42   ;;  %v3266_v62 = vadd.f32 %v3265_v48, %v3176_v33  ;;  %v3820_v5 = vmul.f32 %v3637_v28, %v3637_v28  ;;  %v3782_v61 = vadd.f32 %v3781_v32, %v3637_v28 }
 0x314   : > { %v3355_v0 = vadd.f32 %v3354_v50, %v3266_v62 }
 0x316   : > { %v3392_v52 = vadd.f32 %v3355_v0, %v6600_v12  ;;  %v3178_v53 = vpop.f32.mrf.mxu2  ;;  %v3849_v12 = vadd.f32 %v3848_v44, %v3818_v34 }
 0x318   : > { %v3672_v17 = vadd.f32 %v3671_v54, %v3392_v52  ;;  %v3710_v63 = vmul.f32 %v3392_v52, %v3392_v52  ;;  %v3850_v41 = vadd.f32 %v3849_v12, %v3819_v9  ;;  %v3359_v24 = vpop.f32.mrf.mxu0 }
 0x319   : > { %v3267_v8 = vpop.f32.mrf.mxu3  ;;  %v3640_v25 = vpop.f32.mrf.mxu1 }
 0x31a   : > { %v3741_v15 = vadd.f32 %v3740_v57, %v3710_v63  ;;  %v3268_v60 = vadd.f32 %v3267_v8, %v3178_v53  ;;  %v3821_v21 = vmul.f32 %v3640_v25, %v3640_v25  ;;  %v3851_v18 = vadd.f32 %v3850_v41, %v3820_v5 }
 0x31b   : > { %v3783_v58 = vadd.f32 %v3782_v61, %v3640_v25 }
 0x31c   : > { %v3357_v16 = vadd.f32 %v3356_v29, %v3268_v60  ;;  %v3852_v47 = vadd.f32 %v3851_v18, %v3821_v21 }
 0x31e   : > { %v3393_v3 = vadd.f32 %v3357_v16, %v6604_v14  ;;  %v3181_v26 = vpop.f32.mrf.mxu2 }
 0x320   : > { %v3673_v37 = vadd.f32 %v3672_v17, %v3393_v3  ;;  %v3711_v43 = vmul.f32 %v3393_v3, %v3393_v3  ;;  %v5427_v2 = vpack.c.bf16 %v3393_v3, %v3392_v52  ;;  %v3361_v40 = vpop.f32.mrf.mxu0 }
 0x321   : > { %v3270_v22 = vpop.f32.mrf.mxu3  ;;  %v3642_v27 = vpop.f32.mrf.mxu1 }
 0x322   : > { %v3742_v35 = vadd.f32 %v3741_v15, %v3711_v43  ;;  %5447 = vst [vmem:[%s6621_s14 + $0x70] sm:$0xff] %v5427_v2   ;;  %v3271_v7 = vadd.f32 %v3270_v22, %v3181_v26  ;;  %v3784_v50 = vadd.f32 %v3783_v58, %v3642_v27  ;;  %v3822_v51 = vmul.f32 %v3642_v27, %v3642_v27 }
 0x324   : > { %v3360_v1 = vadd.f32 %v3359_v24, %v3271_v7  ;;  %v3785_v11 = vrot.slane %v3784_v50, 4  ;;  %v3853_v36 = vadd.f32 %v3852_v47, %v3822_v51 }
 0x326   : > { %v3394_v14 = vadd.f32 %v3360_v1, %v6607_v39  ;;  %v3786_v42 = vadd.f32 %v3785_v11, %v3784_v50  ;;  %v3854_v33 = vrot.slane %v3853_v36, 4  ;;  %v3183_v4 = vpop.f32.mrf.mxu2 }
 0x328   : > { %v3674_v54 = vadd.f32 %v3673_v37, %v3394_v14  ;;  %v3712_v55 = vmul.f32 %v3394_v14, %v3394_v14  ;;  %v3787_v48 = vrot.slane %v3786_v42, 2  ;;  %v3855_v57 = vadd.f32 %v3854_v33, %v3853_v36 }
 0x329   : > { %v3272_v31 = vpop.f32.mrf.mxu3 }
 0x32a   : > { %v3743_v45 = vadd.f32 %v3742_v35, %v3712_v55  ;;  %v3273_v62 = vadd.f32 %v3272_v31, %v3183_v4  ;;  %v3788_v59 = vadd.f32 %v3787_v48, %v3786_v42  ;;  %v3856_v20 = vrot.slane %v3855_v57, 2 }
 0x32c   : > { %v3362_v28 = vadd.f32 %v3361_v40, %v3273_v62  ;;  %v3789_v0 = vrot.slane %v3788_v59, 1  ;;  %v3857_v39 = vadd.f32 %v3856_v20, %v3855_v57 }
 0x32e   : > { %v3395_v30 = vadd.f32 %v3362_v28, %v6611_v19  ;;  %v3858_v56 = vrot.slane %v3857_v39, 1  ;;  %v3790_v6 = vadd.f32 %v3789_v0, %v3788_v59 }
 0x330   : > { %v3675_v49 = vadd.f32 %v3674_v54, %v3395_v30  ;;  %v3713_v52 = vmul.f32 %v3395_v30, %v3395_v30  ;;  %v5432_v13 = vpack.c.bf16 %v3395_v30, %v3394_v14  ;;  %v3859_v23 = vadd.f32 %v3858_v56, %v3857_v39 }
 0x332   : > { %v3676_v29 = vrot.slane %v3675_v49, 4  ;;  %v3744_v17 = vadd.f32 %v3743_v45, %v3713_v52  ;;  %5448 = vst [vmem:[%s6621_s14 + $0x78] sm:$0xff] %v5432_v13   ;;  %v3860_v63 = vsel %vm289_vm0, %v3790_v6, %v3859_v23 }
 0x333   : > { %3861 = vst [vmem:[%s245_s16] sm:$0x3] %v3860_v63 }
 0x334   : > { %v3677_v53 = vadd.f32 %v3676_v29, %v3675_v49  ;;  %v3745_v38 = vrot.slane %v3744_v17, 4 }
 0x336   : > { %v3678_v19 = vrot.slane %v3677_v53, 2  ;;  %v3746_v46 = vadd.f32 %v3745_v38, %v3744_v17 }
 0x338   : > { %v3679_v34 = vadd.f32 %v3678_v19, %v3677_v53  ;;  %v3747_v8 = vrot.slane %v3746_v46, 2 }
 0x33a   : > { %v3680_v15 = vrot.slane %v3679_v34, 1  ;;  %v3748_v60 = vadd.f32 %v3747_v8, %v3746_v46 }
 0x33c   : > { %v3749_v44 = vrot.slane %v3748_v60, 1  ;;  %v3681_v10 = vadd.f32 %v3680_v15, %v3679_v34 }
 0x33e   : > { %v3750_v9 = vadd.f32 %v3749_v44, %v3748_v60 }
 0x340   : > { %v3752_v25 = vsel %vm289_vm0, %v3681_v10, %v3750_v9 }
 0x341   : > { %3753 = vst [vmem:[%s241_s20] sm:$0x3] %v3752_v25 }
 0x342 PF: > { %s16_s18 = sadd.s32 1, %s5480_s18  }
 0x343   : > { %p13_p4 = scmp.ge.s32.totalorder %s16_s18, 4  }
 0x345   :  { %15 = sbr.rel (!%p13_p4) target bundleno = 1 (0x1), region = 91 }

// kernel: residual_forward.4
= control target key start
LH: loop header
LB: loop body
LE: loop exit
PB: predicated region body
PF: predicated region fallthrough
CT: control target
= control target key end

     0   :  { %s5253_s18 = smov 0   ;;  %s6519_s0 = inlined_call_operand.vmem [shape: bf16[2,16,16,128], index: 0, kind: input, shape index: {}]   ;;  %s6520_s1 = inlined_call_operand.vmem [shape: f32[1,128], index: 1, kind: input, shape index: {}]   ;;  %s6521_s2 = inlined_call_operand.vmem [shape: f32[1,128], index: 2, kind: input, shape index: {}]   ;;  %s6522_s3 = inlined_call_operand.vmem [shape: bf16[3,384,128], index: 3, kind: input, shape index: {}]   ;;  %s6523_s4 = inlined_call_operand.vmem [shape: bf16[2,16,16,128], index: 4, kind: output, shape index: {0}]   ;;  %s6524_s5 = inlined_call_operand.vmem [shape: f32[2,2,128], index: 5, kind: output, shape index: {1}]  }
   0x1 LB: > { %s3813_s19 = sadd.s32 4294967295, %s5220_s18   ;;  %p3817_p0 = scmp.ge.s32.totalorder %s5220_s18, 1  ;;  %s5220_s18 = sphi %s5253_s18, %s16_s18  }
   0x2   : > { %p190_p1 = scmp.lt.s32.totalorder %s5220_s18, 3 }
   0x4   : > { %p191_p2 = pnand %p3817_p0, %p190_p1 }
   0x6   : > { %194 = sbr.rel (%p191_p2) target bundleno = 804 (0x324), region = 36 }
   0xb   : > { %v4914_v0 = vld [vmem:[%s6522_s3 + $0xf8] sm:$0xff]  ;;  %p222_p3 = scmp.lt.s32.totalorder %s3813_s19, 1  ;;  %vm447_vm0 = vcmask 1040384   ;;  %vm448_vm1 = vsmask.f32 256  ;;  %v4913_v1 = vld [vmem:[%s6522_s3 + $0xf0] sm:$0xff] }
   0xc   : > { %1807 = vmatpush.bf16.msra.mxu0 %v4914_v0  ;;  %5177 = vmatpush.bf16.msra.mxu1 %v4914_v0  ;;  %v5273_v2 = vld [vmem:[%s6520_s1] ss:$0 sm:$0xff]  ;;  %vm5277_vm2 = vmand %vm447_vm0, %vm448_vm1  ;;  %v450_v4 = vld [vmem:[#allocation2 + $0x18] sm:$0x1]  ;;  %vm498_vm3 = vsmask.f32 4368 }
   0xd   : > { %s6658_s19 = smov (!%p222_p3, %s3813_s19), 1  ;;  %5178 = vmatpush.bf16.msra.mxu2 %v4914_v0  ;;  %5179 = vmatpush.bf16.msra.mxu3 %v4914_v0  ;;  %v5291_v5 = vld [vmem:[%s6521_s2] ss:$0 sm:$0xff]  ;;  %v451_v6 = vsel %vm5277_vm2, 0, %v450_v4  ;;  %v462_v7 = vld [vmem:[#allocation2 + $0x78] sm:$0x1]  ;;  %vm5363_vm6 = vmor %vm448_vm1, %vm498_vm3 }
   0xe   : > { %s4785_s24 = sshll.u32 %s6658_s19, 7  ;;  %v4912_v8 = vld [vmem:[%s6522_s3 + $0xe8] sm:$0xff]  ;;  %452 = vst [vmem:[#allocation2 + $0x18] sm:$0x1] %v451_v6  ;;  %v463_v11 = vsel %vm5277_vm2, 0, %v462_v7  ;;  %vm788_vm4 = vcmask 1043456  }
   0xf   : > { %s5286_s29 = scalar_lea.vmem %s6519_s0, %s4785_s24  ;;  %464 = vst [vmem:[#allocation2 + $0x78] sm:$0x1] %v463_v11  ;;  %v474_v17 = vld [vmem:[#allocation2 + $0xd8] sm:$0x1]  ;;  %vm789_vm5 = vsmask.f32 7938  ;;  %s6463_s25 = scalar_lea.vmem %s6523_s4, %s4785_s24 }
  0x10   : > { %1808 = vmatpush.bf16.msra.mxu0 %v4913_v1  ;;  %5180 = vmatpush.bf16.msra.mxu1 %v4913_v1  ;;  %v5004_v9 = vld [vmem:[%s5286_s29] sm:$0xff]   ;;  %v475_v21 = vsel %vm5277_vm2, 0, %v474_v17  ;;  %v486_v23 = vld [vmem:[#allocation2 + $0x138] sm:$0x1]  ;;  %v4909_v54 = vld [vmem:[%s6522_s3 + $0xd0] sm:$0xff]  ;;  %vm1131_vm12 = vcmask 1043459  }
  0x11   : > { %v5150_v10 = vld [vmem:[%s5286_s29 + $0x20] sm:$0xff]   ;;  %5181 = vmatpush.bf16.msra.mxu2 %v4913_v1  ;;  %5182 = vmatpush.bf16.msra.mxu3 %v4913_v1  ;;  %v5005_v12 = vunpack.c.l.bf16 %v5004_v9  ;;  %v5006_v13 = vunpack.c.h.bf16 %v5004_v9  ;;  %476 = vst [vmem:[#allocation2 + $0xd8] sm:$0x1] %v475_v21  ;;  %v487_v36 = vsel %vm5277_vm2, 0, %v486_v23  ;;  %v4910_v45 = vld [vmem:[%s6522_s3 + $0xd8] sm:$0xff]  ;;  %vm5379_vm7 = vmand %vm788_vm4, %vm789_vm5  ;;  %s3822_s24 = sshll.u32 %s6658_s19, 1 }
  0x12   : > { %v5021_v14 = vunpack.c.l.bf16 %v5150_v10  ;;  %v5022_v15 = vunpack.c.h.bf16 %v5150_v10  ;;  %v5154_v16 = vld [vmem:[%s5286_s29 + $0x40] sm:$0xff]   ;;  %488 = vst [vmem:[#allocation2 + $0x138] sm:$0x1] %v487_v36  ;;  %vm887_vm8 = vsmask.f32 3328  ;;  %s235_s28 = scalar_lea.vmem %s6524_s5, %s3822_s24 }
  0x13   : > { %v5158_v18 = vld [vmem:[%s5286_s29 + $0x60] sm:$0xff]   ;;  %v5037_v19 = vunpack.c.l.bf16 %v5154_v16  ;;  %v5038_v20 = vunpack.c.h.bf16 %v5154_v16  ;;  %v306_v24 = vmul.f32 %v5273_v2, %v5005_v12  ;;  %v307_v25 = vmul.f32 %v5273_v2, %v5006_v13  ;;  %v4908_v12 = vld [vmem:[%s6522_s3 + $0xc8] sm:$0xff]  ;;  %vm5955_vm11 = vmand %vm788_vm4, %vm887_vm8 }
  0x14   : > { %v5053_v22 = vunpack.c.l.bf16 %v5158_v18  ;;  %v314_v26 = vmul.f32 %v5273_v2, %v5021_v14  ;;  %v315_v27 = vmul.f32 %v5273_v2, %v5022_v15  ;;  %1809 = vmatpush.bf16.msra.mxu0 %v4912_v8  ;;  %5183 = vmatpush.bf16.msra.mxu1 %v4912_v8  ;;  %v4911_v28 = vld [vmem:[%s6522_s3 + $0xe0] sm:$0xff]  ;;  %v5054_v31 = vunpack.c.h.bf16 %v5158_v18  ;;  %v5147_v18 = vld [vmem:[%s5286_s29 + $0x8] sm:$0xff]  }
  0x15   : > { %v322_v29 = vmul.f32 %v5273_v2, %v5037_v19  ;;  %v323_v30 = vmul.f32 %v5273_v2, %v5038_v20  ;;  %5184 = vmatpush.bf16.msra.mxu2 %v4912_v8  ;;  %5185 = vmatpush.bf16.msra.mxu3 %v4912_v8  ;;  %v341_v33 = vadd.f32 %v5291_v5, %v306_v24  ;;  %v791_v63 = vld [vmem:[#allocation2 + $0x18] sm:$0xf]  ;;  %vm888_vm9 = vsmask.f32 7440 }
  0x16   : > { %v330_v32 = vmul.f32 %v5273_v2, %v5053_v22  ;;  %v342_v34 = vadd.f32 %v5291_v5, %v307_v25  ;;  %v349_v35 = vadd.f32 %v5291_v5, %v314_v26  ;;  %v350_v37 = vadd.f32 %v5291_v5, %v315_v27  ;;  %v807_v22 = vld [vmem:[#allocation2 + $0x78] sm:$0xf]  ;;  %vm5925_vm10 = vmor %vm887_vm8, %vm888_vm9 }
  0x17   : > { %v357_v38 = vadd.f32 %v5291_v5, %v322_v29  ;;  %v358_v39 = vadd.f32 %v5291_v5, %v323_v30  ;;  %v331_v40 = vmul.f32 %v5273_v2, %v5054_v31  ;;  %v373_v41 = vmax.f32 %v341_v33, 0.0  ;;  %v5411_v33 = vld [vmem:[#allocation2 + $0x30] sm:$0x1] }
  0x18   : > { %v374_v42 = vmax.f32 %v342_v34, 0.0  ;;  %v381_v43 = vmax.f32 %v349_v35, 0.0  ;;  %v5326_v44 = vadd.f32 %v5291_v5, %v330_v32  ;;  %1810 = vmatpush.bf16.msra.mxu0 %v4911_v28  ;;  %5186 = vmatpush.bf16.msra.mxu1 %v4911_v28  ;;  %v382_v46 = vmax.f32 %v350_v37, 0.0 }
  0x19   : > { %v389_v47 = vmax.f32 %v357_v38, 0.0  ;;  %v390_v48 = vmax.f32 %v358_v39, 0.0  ;;  %v5332_v49 = vadd.f32 %v5291_v5, %v331_v40  ;;  %5187 = vmatpush.bf16.msra.mxu2 %v4911_v28  ;;  %5188 = vmatpush.bf16.msra.mxu3 %v4911_v28  ;;  %v5334_v50 = vpack.c.bf16 %v373_v41, %v373_v41  ;;  %v823_v28 = vld [vmem:[#allocation2 + $0xd8] sm:$0xf]  ;;  %v4907_v38 = vld [vmem:[%s6522_s3 + $0xc0] sm:$0xff] }
  0x1a   : > { %v5336_v51 = vpack.c.bf16 %v374_v42, %v374_v42  ;;  %v5338_v52 = vpack.c.bf16 %v381_v43, %v381_v43  ;;  %v397_v53 = vmax.f32 %v5326_v44, 0.0  ;;  %v5344_v55 = vpack.c.bf16 %v382_v46, %v382_v46  ;;  %v5151_v43 = vld [vmem:[%s5286_s29 + $0x28] sm:$0xff]   ;;  %v5429_v44 = vld [vmem:[#allocation2 + $0x90] sm:$0x1] }
  0x1b   : > { %v5346_v56 = vpack.c.bf16 %v389_v47, %v389_v47  ;;  %v5348_v57 = vpack.c.bf16 %v390_v48, %v390_v48  ;;  %v398_v58 = vmax.f32 %v5332_v49, 0.0  ;;  %v501_v59 = vshrl.u32 %v5334_v50, 16  ;;  %855 = vst [vmem:[#allocation2 + $0x1c] sm:$0xf] %v5334_v50  ;;  %v5155_v49 = vld [vmem:[%s5286_s29 + $0x48] sm:$0xff]  }
  0x1c   : > { %v504_v60 = vshll.u32 %v5334_v50, 16  ;;  %v509_v61 = vshrl.u32 %v5336_v51, 16  ;;  %v512_v62 = vshll.u32 %v5336_v51, 16  ;;  %1811 = vmatpush.bf16.msra.mxu0 %v4910_v45  ;;  %5189 = vmatpush.bf16.msra.mxu1 %v4910_v45  ;;  %856 = vst [vmem:[#allocation2 + $0x28] sm:$0xf] %v5336_v51  ;;  %v6547_v0 = vshrl.u32 %v5338_v52, 16 }
  0x1d   : > { %v6546_v1 = vshll.u32 %v5338_v52, 16  ;;  %v6548_v4 = vshrl.u32 %v5344_v55, 16  ;;  %v6551_v6 = vshll.u32 %v5344_v55, 16  ;;  %5190 = vmatpush.bf16.msra.mxu2 %v4910_v45  ;;  %5191 = vmatpush.bf16.msra.mxu3 %v4910_v45  ;;  %v503_v8 = vrot.slane %v501_v59, 7  ;;  %863 = vst [vmem:[#allocation2 + $0x7c] sm:$0xf] %v5338_v52 }
  0x1e   : > { %v511_v9 = vrot.slane %v509_v61, 7  ;;  %v6537_v10 = vshrl.u32 %v5346_v56, 16  ;;  %v6534_v11 = vshll.u32 %v5346_v56, 16  ;;  %v567_v14 = vrot.slane %v6547_v0, 7  ;;  %864 = vst [vmem:[#allocation2 + $0x88] sm:$0xf] %v5344_v55 }
  0x1f   : > { %v575_v15 = vrot.slane %v6548_v4, 7  ;;  %v6539_v16 = vshrl.u32 %v5348_v57, 16  ;;  %v6540_v17 = vshll.u32 %v5348_v57, 16  ;;  %v506_v19 = vor.u32 %v504_v60, %v503_v8  ;;  %871 = vst [vmem:[#allocation2 + $0xdc] sm:$0xf] %v5346_v56  ;;  %v4918_v0 = vld [vmem:[%s6522_s3 + $0x118] sm:$0xff] }
  0x20   : > { %v507_v20 = vrot.slane %v503_v8, 4  ;;  %v514_v21 = vor.u32 %v512_v62, %v511_v9  ;;  %v631_v23 = vrot.slane %v6537_v10, 7  ;;  %1812 = vmatpush.bf16.msra.mxu0 %v4909_v54  ;;  %5192 = vmatpush.bf16.msra.mxu1 %v4909_v54  ;;  %v570_v24 = vor.u32 %v6546_v1, %v567_v14  ;;  %872 = vst [vmem:[#allocation2 + $0xe8] sm:$0xf] %v5348_v57  ;;  %v5002_v51 = vld [vmem:[%s6522_s3 + $0x238] sm:$0xff] }
  0x21   : > { %v571_v25 = vrot.slane %v567_v14, 4  ;;  %v578_v26 = vor.u32 %v6551_v6, %v575_v15  ;;  %v639_v27 = vrot.slane %v6539_v16, 7  ;;  %5193 = vmatpush.bf16.msra.mxu2 %v4909_v54  ;;  %5194 = vmatpush.bf16.msra.mxu3 %v4909_v54  ;;  %v792_v30 = vsel %vm5379_vm7, %v506_v19, %v791_v63  ;;  %v4922_v14 = vld [vmem:[%s6522_s3 + $0x138] sm:$0xff] }
  0x22   : > { %v515_v29 = vsel %vm5363_vm6, %v507_v20, %v514_v21  ;;  %v634_v31 = vor.u32 %v6534_v11, %v631_v23  ;;  %v635_v32 = vrot.slane %v631_v23, 4  ;;  %793 = vst [vmem:[#allocation2 + $0x18] sm:$0xf] %v792_v30  ;;  %v808_v35 = vsel %vm5379_vm7, %v570_v24, %v807_v22  ;;  %v839_v21 = vld [vmem:[#allocation2 + $0x138] sm:$0xf] }
  0x23   : > { %v579_v34 = vsel %vm5363_vm6, %v571_v25, %v578_v26  ;;  %v642_v36 = vor.u32 %v6540_v17, %v639_v27  ;;  %v5419_v37 = vpack.c.bf16 %v397_v53, %v397_v53  ;;  %794 = vst [vmem:[#allocation2 + $0x24] sm:$0xf] %v515_v29  ;;  %v5426_v40 = vpack.c.bf16 %v398_v58, %v398_v58  ;;  %v4930_v58 = vld [vmem:[%s6522_s3 + $0x178] sm:$0xff]  ;;  %v5160_v17 = vld [vmem:[%s5286_s29 + $0x70] sm:$0xff]  }
  0x24   : > { %v824_v39 = vsel %vm5379_vm7, %v634_v31, %v823_v28  ;;  %v5009_v41 = vunpack.c.l.bf16 %v5147_v18  ;;  %v5010_v42 = vunpack.c.h.bf16 %v5147_v18  ;;  %1813 = vmatpush.bf16.msra.mxu0 %v4908_v12  ;;  %5195 = vmatpush.bf16.msra.mxu1 %v4908_v12  ;;  %809 = vst [vmem:[#allocation2 + $0x78] sm:$0xf] %v808_v35  ;;  %v454_v48 = vsel %vm5277_vm2, 0, %v5411_v33  ;;  %v4850_v22 = vld [vmem:[%s6522_s3 + $0x78] sm:$0xff] }
  0x25   : > { %v643_v45 = vsel %vm5363_vm6, %v635_v32, %v642_v36  ;;  %v6526_v46 = vshrl.u32 %v5419_v37, 16  ;;  %v6525_v47 = vshll.u32 %v5419_v37, 16  ;;  %5196 = vmatpush.bf16.msra.mxu2 %v4908_v12  ;;  %5197 = vmatpush.bf16.msra.mxu3 %v4908_v12  ;;  %810 = vst [vmem:[#allocation2 + $0x84] sm:$0xf] %v579_v34  ;;  %v6527_v53 = vshrl.u32 %v5426_v40, 16  ;;  %v4842_v12 = vld [vmem:[%s6522_s3 + $0x38] sm:$0xff] }
  0x26   : > { %v6528_v54 = vshll.u32 %v5426_v40, 16  ;;  %v308_v63 = vmul.f32 %v5273_v2, %v5009_v41  ;;  %v309_v8 = vmul.f32 %v5273_v2, %v5010_v42  ;;  %825 = vst [vmem:[#allocation2 + $0xd8] sm:$0xf] %v824_v39  ;;  %v5025_v15 = vunpack.c.l.bf16 %v5151_v43  ;;  %v4841_v39 = vld [vmem:[%s6522_s3 + $0x30] sm:$0xff] }
  0x27   : > { %v695_v9 = vrot.slane %v6526_v46, 7  ;;  %v5026_v18 = vunpack.c.h.bf16 %v5151_v43  ;;  %v466_v19 = vsel %vm5277_vm2, 0, %v5429_v44  ;;  %826 = vst [vmem:[#allocation2 + $0xe4] sm:$0xf] %v643_v45  ;;  %v703_v20 = vrot.slane %v6527_v53, 7  ;;  %v5152_v46 = vld [vmem:[%s5286_s29 + $0x30] sm:$0xff]  }
  0x28   : > { %v343_v23 = vadd.f32 %v5291_v5, %v308_v63  ;;  %v344_v24 = vadd.f32 %v5291_v5, %v309_v8  ;;  %v5041_v25 = vunpack.c.l.bf16 %v5155_v49  ;;  %1814 = vmatpush.bf16.msra.mxu0 %v4907_v38  ;;  %5198 = vmatpush.bf16.msra.mxu1 %v4907_v38  ;;  %879 = vst [vmem:[#allocation2 + $0x13c] sm:$0xf] %v5419_v37  ;;  %v5042_v29 = vunpack.c.h.bf16 %v5155_v49 }
  0x29   : > { %v698_v26 = vor.u32 %v6525_v47, %v695_v9  ;;  %v699_v27 = vrot.slane %v695_v9, 4  ;;  %v316_v28 = vmul.f32 %v5273_v2, %v5025_v15  ;;  %5199 = vmatpush.bf16.msra.mxu2 %v4907_v38  ;;  %5200 = vmatpush.bf16.msra.mxu3 %v4907_v38  ;;  %v3873_v30 = vld [vmem:[#allocation2 + $0x18] sm:$0xf]  ;;  %v706_v31 = vor.u32 %v6528_v54, %v703_v20  ;;  %v4929_v38 = vld [vmem:[%s6522_s3 + $0x170] sm:$0xff] }
  0x2a   : > { %880 = vst [vmem:[#allocation2 + $0x148] sm:$0xf] %v5426_v40  ;;  %v375_v32 = vmax.f32 %v343_v23, 0.0  ;;  %v376_v33 = vmax.f32 %v344_v24, 0.0  ;;  %v317_v34 = vmul.f32 %v5273_v2, %v5026_v18  ;;  %v4860_v35 = vld [vmem:[#allocation2 + $0x20] sm:$0xf0]  ;;  %v324_v42 = vmul.f32 %v5273_v2, %v5041_v25 }
  0x2b   : > { %v840_v36 = vsel %vm5379_vm7, %v698_v26, %v839_v21  ;;  %455 = vst [vmem:[#allocation2 + $0x30] sm:$0x1] %v454_v48  ;;  %v351_v41 = vadd.f32 %v5291_v5, %v316_v28  ;;  %v3874_v43 = vor.u32 %v4860_v35, %v3873_v30  ;;  %v3921_v45 = vld [vmem:[#allocation2 + $0x78] sm:$0xf]  ;;  %v707_v49 = vsel %vm5363_vm6, %v699_v27, %v706_v31 }
  0x2c   : > { %841 = vst [vmem:[#allocation2 + $0x138] sm:$0xf] %v840_v36  ;;  %1896 = vmatpush.bf16.msrb.mxu1 %v4922_v14  ;;  %2563 = vmatpush.bf16.msrb.mxu0 %v4850_v22  ;;  %v4872_v63 = vld [vmem:[#allocation2 + $0x80] sm:$0xf0]  ;;  %v5486_v8 = vpack.c.bf16 %v376_v33, %v376_v33  ;;  %v352_v48 = vadd.f32 %v5291_v5, %v317_v34  ;;  %v5494_v22 = vld [vmem:[#allocation2 + $0xf0] sm:$0x1]  ;;  %v5062_v4 = vunpack.c.h.bf16 %v5160_v17 }
  0x2d   : > { %1985 = vmatpush.bf16.msrb.mxu2 %v4930_v58  ;;  %2474 = vmatpush.bf16.msrb.mxu3 %v4842_v12  ;;  %v5484_v58 = vpack.c.bf16 %v375_v32, %v375_v32  ;;  %842 = vst [vmem:[#allocation2 + $0x144] sm:$0xf] %v707_v49  ;;  %v383_v9 = vmax.f32 %v351_v41, 0.0  ;;  %v325_v12 = vmul.f32 %v5273_v2, %v5042_v29  ;;  %v3969_v18 = vld [vmem:[#allocation2 + $0xd8] sm:$0xf]  ;;  %v5509_v32 = vld [vmem:[%s5286_s29 + $0x68] sm:$0xff]  }
  0x2e   : > { %1815 = vmatmul.bf16.vlgmr.msra.gmra.mxu0 %v3874_v43  ;;  %v3922_v15 = vor.u32 %v4872_v63, %v3921_v45  ;;  %v359_v14 = vadd.f32 %v5291_v5, %v324_v42  ;;  %v4884_v23 = vld [vmem:[#allocation2 + $0xe0] sm:$0xf0]  ;;  %v6569_v24 = vshrl.u32 %v5486_v8, 16  ;;  %v6570_v25 = vshll.u32 %v5486_v8, 16  ;;  %858 = vst [vmem:[#allocation2 + $0x40] sm:$0xf] %v5486_v8 }
  0x2f   : > { %v517_v20 = vshrl.u32 %v5484_v58, 16  ;;  %v520_v21 = vshll.u32 %v5484_v58, 16  ;;  %857 = vst [vmem:[#allocation2 + $0x34] sm:$0xf] %v5484_v58  ;;  %v5499_v26 = vpack.c.bf16 %v383_v9, %v383_v9  ;;  %v360_v27 = vadd.f32 %v5291_v5, %v325_v12  ;;  %v5522_v42 = vld [vmem:[#allocation2 + $0x150] sm:$0x1] }
  0x30   : > { %1835 = vmatmul.bf16.vlgmr.msra.gmra.mxu1 %v3922_v15  ;;  %v3970_v28 = vor.u32 %v4884_v23, %v3969_v18  ;;  %v384_v30 = vmax.f32 %v352_v48, 0.0  ;;  %467 = vst [vmem:[#allocation2 + $0x90] sm:$0x1] %v466_v19  ;;  %v391_v31 = vmax.f32 %v359_v14, 0.0  ;;  %v527_v33 = vrot.slane %v6569_v24, 7  ;;  %v4921_v43 = vld [vmem:[%s6522_s3 + $0x130] sm:$0xff] }
  0x31   : > { %1986 = vmatpush.bf16.msrb.mxu2 %v4929_v38  ;;  %2475 = vmatpush.bf16.msrb.mxu3 %v4841_v39  ;;  %v519_v29 = vrot.slane %v517_v20, 7  ;;  %v6542_v34 = vshrl.u32 %v5499_v26, 16  ;;  %v6541_v35 = vshll.u32 %v5499_v26, 16  ;;  %865 = vst [vmem:[#allocation2 + $0x94] sm:$0xf] %v5499_v26  ;;  %v392_v36 = vmax.f32 %v360_v27, 0.0 }
  0x32   : > { %1855 = vmatmul.bf16.vlgmr.msra.gmra.mxu2 %v3970_v28  ;;  %v795_v44 = vld [vmem:[#allocation2 + $0x30] sm:$0xf]  ;;  %v5518_v19 = vpack.c.bf16 %v384_v30, %v384_v30  ;;  %v5520_v41 = vpack.c.bf16 %v391_v31, %v391_v31  ;;  %v4928_v45 = vld [vmem:[%s6522_s3 + $0x168] sm:$0xff]  ;;  %v530_v63 = vor.u32 %v6570_v25, %v527_v33  ;;  %v478_v12 = vsel %vm5277_vm2, 0, %v5494_v22  ;;  %1897 = vmatpush.bf16.msrb.mxu1 %v4921_v43  ;;  %v4839_v43 = vld [vmem:[%s6522_s3 + $0x20] sm:$0xff] }
  0x33   : > { %v522_v38 = vor.u32 %v520_v21, %v519_v29  ;;  %v523_v39 = vrot.slane %v519_v29, 4  ;;  %v4017_v49 = vld [vmem:[#allocation2 + $0x138] sm:$0xf]  ;;  %v583_v48 = vrot.slane %v6542_v34, 7  ;;  %v5534_v9 = vpack.c.bf16 %v392_v36, %v392_v36  ;;  %v4840_v15 = vld [vmem:[%s6522_s3 + $0x28] sm:$0xff]  ;;  %v4849_v18 = vld [vmem:[%s6522_s3 + $0x70] sm:$0xff] }
  0x34   : > { %v4896_v14 = vld [vmem:[#allocation2 + $0x140] sm:$0xf0]  ;;  %v6543_v27 = vshrl.u32 %v5518_v19, 16  ;;  %v6544_v28 = vshll.u32 %v5518_v19, 16  ;;  %866 = vst [vmem:[#allocation2 + $0xa0] sm:$0xf] %v5518_v19  ;;  %v5057_v22 = vunpack.c.l.bf16 %v5509_v32  ;;  %2564 = vmatpush.bf16.msrb.mxu0 %v4849_v18 }
  0x35   : > { %v796_v23 = vsel %vm5379_vm7, %v522_v38, %v795_v44  ;;  %1987 = vmatpush.bf16.msrb.mxu2 %v4928_v45  ;;  %v5148_v29 = vld [vmem:[%s5286_s29 + $0x10] sm:$0xff]   ;;  %v4018_v30 = vor.u32 %v4896_v14, %v4017_v49  ;;  %v531_v31 = vsel %vm5363_vm6, %v523_v39, %v530_v63  ;;  %v586_v33 = vor.u32 %v6541_v35, %v583_v48  ;;  %v4920_v38 = vld [vmem:[%s6522_s3 + $0x128] sm:$0xff]  ;;  %v4927_v44 = vld [vmem:[%s6522_s3 + $0x160] sm:$0xff] }
  0x36   : > { %797 = vst [vmem:[#allocation2 + $0x30] sm:$0xf] %v796_v23  ;;  %v587_v36 = vrot.slane %v583_v48, 4  ;;  %2476 = vmatpush.bf16.msrb.mxu3 %v4840_v15  ;;  %v591_v39 = vrot.slane %v6543_v27, 7  ;;  %v6530_v45 = vshrl.u32 %v5520_v41, 16  ;;  %v6529_v49 = vshll.u32 %v5520_v41, 16  ;;  %1898 = vmatpush.bf16.msrb.mxu1 %v4920_v38 }
  0x37   : > { %798 = vst [vmem:[#allocation2 + $0x3c] sm:$0xf] %v531_v31  ;;  %v6532_v63 = vshrl.u32 %v5534_v9, 16  ;;  %1875 = vmatmul.bf16.vlgmr.msra.gmra.mxu3 %v4018_v30  ;;  %v811_v48 = vld [vmem:[#allocation2 + $0x90] sm:$0xf]  ;;  %v6533_v15 = vshll.u32 %v5534_v9, 16  ;;  %v5058_v14 = vunpack.c.h.bf16 %v5509_v32  ;;  %v332_v23 = vmul.f32 %v5273_v2, %v5057_v22 }
  0x38   : > { %479 = vst [vmem:[#allocation2 + $0xf0] sm:$0x1] %v478_v12  ;;  %v490_v31 = vsel %vm5277_vm2, 0, %v5522_v42  ;;  %v594_v47 = vor.u32 %v6544_v28, %v591_v39  ;;  %v812_v18 = vsel %vm5379_vm7, %v586_v33, %v811_v48  ;;  %v647_v12 = vrot.slane %v6530_v45, 7  ;;  %v4848_v32 = vld [vmem:[%s6522_s3 + $0x68] sm:$0xff]  ;;  %v4847_v35 = vld [vmem:[%s6522_s3 + $0x60] sm:$0xff] }
  0x39   : > { %v655_v30 = vrot.slane %v6532_v63, 7  ;;  %873 = vst [vmem:[#allocation2 + $0xf4] sm:$0xf] %v5520_v41  ;;  %1988 = vmatpush.bf16.msrb.mxu2 %v4927_v44  ;;  %v333_v42 = vmul.f32 %v5273_v2, %v5058_v14  ;;  %v367_v22 = vadd.f32 %v5291_v5, %v332_v23  ;;  %v5013_v33 = vunpack.c.l.bf16 %v5148_v29  ;;  %v456_v48 = vld [vmem:[#allocation2 + $0x48] sm:$0x1]  ;;  %2565 = vmatpush.bf16.msrb.mxu0 %v4848_v32  ;;  %v5149_v34 = vld [vmem:[%s5286_s29 + $0x18] sm:$0xff]  }
  0x3a   : > { %813 = vst [vmem:[#allocation2 + $0x90] sm:$0xf] %v812_v18  ;;  %2477 = vmatpush.bf16.msrb.mxu3 %v4839_v43  ;;  %v5014_v39 = vunpack.c.h.bf16 %v5148_v29  ;;  %v595_v53 = vsel %vm5363_vm6, %v587_v36, %v594_v47  ;;  %v650_v38 = vor.u32 %v6529_v49, %v647_v12  ;;  %v651_v44 = vrot.slane %v647_v12, 4  ;;  %v468_v18 = vld [vmem:[#allocation2 + $0xa8] sm:$0x1]  ;;  %v4915_v25 = vld [vmem:[%s6522_s3 + $0x100] sm:$0xff] }
  0x3b   : > { %v658_v54 = vor.u32 %v6533_v15, %v655_v30  ;;  %874 = vst [vmem:[#allocation2 + $0x100] sm:$0xf] %v5534_v9  ;;  %v368_v43 = vadd.f32 %v5291_v5, %v333_v42  ;;  %v399_v14 = vmax.f32 %v367_v22, 0.0  ;;  %v310_v29 = vmul.f32 %v5273_v2, %v5013_v33 }
  0x3c   : > { %814 = vst [vmem:[#allocation2 + $0x9c] sm:$0xf] %v595_v53  ;;  %v311_v23 = vmul.f32 %v5273_v2, %v5014_v39  ;;  %v457_v12 = vsel %vm5277_vm2, 0, %v456_v48  ;;  %v5029_v30 = vunpack.c.l.bf16 %v5152_v46  ;;  %v5030_v32 = vunpack.c.h.bf16 %v5152_v46  ;;  %v5156_v46 = vld [vmem:[%s5286_s29 + $0x50] sm:$0xff]  }
  0x3d   : > { %v3885_v47 = vld [vmem:[#allocation2 + $0x30] sm:$0xf]  ;;  %v659_v36 = vsel %vm5363_vm6, %v651_v44, %v658_v54  ;;  %491 = vst [vmem:[#allocation2 + $0x150] sm:$0x1] %v490_v31  ;;  %v400_v42 = vmax.f32 %v368_v43, 0.0  ;;  %v5605_v22 = vpack.c.bf16 %v399_v14, %v399_v14  ;;  %v345_v33 = vadd.f32 %v5291_v5, %v310_v29  ;;  %2566 = vmatpush.bf16.msrb.mxu0 %v4847_v35 }
  0x3e   : > { %v4863_v53 = vld [vmem:[#allocation2 + $0x38] sm:$0xf0]  ;;  %830 = vst [vmem:[#allocation2 + $0xfc] sm:$0xf] %v659_v36  ;;  %v346_v39 = vadd.f32 %v5291_v5, %v311_v23  ;;  %v318_v54 = vmul.f32 %v5273_v2, %v5029_v30  ;;  %v319_v31 = vmul.f32 %v5273_v2, %v5030_v32  ;;  %v469_v48 = vsel %vm5277_vm2, 0, %v468_v18 }
  0x3f   : > { %v3886_v49 = vor.u32 %v4863_v53, %v3885_v47  ;;  %v827_v45 = vld [vmem:[#allocation2 + $0xf0] sm:$0xf]  ;;  %458 = vst [vmem:[#allocation2 + $0x48] sm:$0x1] %v457_v12  ;;  %v5616_v43 = vpack.c.bf16 %v400_v42, %v400_v42  ;;  %v6531_v14 = vshrl.u32 %v5605_v22, 16  ;;  %v6535_v29 = vshll.u32 %v5605_v22, 16 }
  0x40   : > { %v828_v44 = vsel %vm5379_vm7, %v650_v38, %v827_v45  ;;  %881 = vst [vmem:[#allocation2 + $0x154] sm:$0xf] %v5605_v22  ;;  %v377_v47 = vmax.f32 %v345_v33, 0.0  ;;  %v378_v36 = vmax.f32 %v346_v39, 0.0  ;;  %v353_v12 = vadd.f32 %v5291_v5, %v318_v54 }
  0x41   : > { %1820 = vmatmul.bf16.gmra.mxu0 %v3886_v49  ;;  %v3933_v23 = vld [vmem:[#allocation2 + $0x90] sm:$0xf]  ;;  %829 = vst [vmem:[#allocation2 + $0xf0] sm:$0xf] %v828_v44  ;;  %v354_v18 = vadd.f32 %v5291_v5, %v319_v31  ;;  %v711_v45 = vrot.slane %v6531_v14, 7  ;;  %v6536_v38 = vshrl.u32 %v5616_v43, 16  ;;  %v5045_v32 = vunpack.c.l.bf16 %v5156_v46 }
  0x42   : > { %v6538_v30 = vshll.u32 %v5616_v43, 16  ;;  %882 = vst [vmem:[#allocation2 + $0x160] sm:$0xf] %v5616_v43  ;;  %v5628_v49 = vpack.c.bf16 %v377_v47, %v377_v47  ;;  %v5630_v42 = vpack.c.bf16 %v378_v36, %v378_v36  ;;  %v385_v33 = vmax.f32 %v353_v12, 0.0 }
  0x43   : > { %v4875_v53 = vld [vmem:[#allocation2 + $0x98] sm:$0xf0]  ;;  %v386_v39 = vmax.f32 %v354_v18, 0.0  ;;  %470 = vst [vmem:[#allocation2 + $0xa8] sm:$0x1] %v469_v48  ;;  %v714_v31 = vor.u32 %v6535_v29, %v711_v45  ;;  %v715_v44 = vrot.slane %v711_v45, 4  ;;  %v5046_v45 = vunpack.c.h.bf16 %v5156_v46 }
  0x44   : > { %v3934_v54 = vor.u32 %v4875_v53, %v3933_v23  ;;  %v719_v14 = vrot.slane %v6536_v38, 7  ;;  %v843_v63 = vld [vmem:[#allocation2 + $0x150] sm:$0xf]  ;;  %v6566_v15 = vshrl.u32 %v5628_v49, 16  ;;  %v6555_v11 = vshll.u32 %v5628_v49, 16 }
  0x45   : > { %v6567_v47 = vshrl.u32 %v5630_v42, 16  ;;  %v6568_v36 = vshll.u32 %v5630_v42, 16  ;;  %v4887_v12 = vld [vmem:[#allocation2 + $0xf8] sm:$0xf0]  ;;  %v844_v23 = vsel %vm5379_vm7, %v714_v31, %v843_v63  ;;  %859 = vst [vmem:[#allocation2 + $0x4c] sm:$0xf] %v5628_v49  ;;  %v5645_v18 = vpack.c.bf16 %v385_v33, %v385_v33 }
  0x46   : > { %1840 = vmatmul.bf16.gmra.mxu1 %v3934_v54  ;;  %v722_v48 = vor.u32 %v6538_v30, %v719_v14  ;;  %v5647_v53 = vld [vmem:[#allocation2 + $0x108] sm:$0x1]  ;;  %845 = vst [vmem:[#allocation2 + $0x150] sm:$0xf] %v844_v23  ;;  %v535_v29 = vrot.slane %v6566_v15, 7  ;;  %v5653_v10 = vpack.c.bf16 %v386_v39, %v386_v39  ;;  %v326_v14 = vmul.f32 %v5273_v2, %v5045_v32  ;;  %v4923_v15 = vld [vmem:[%s6522_s3 + $0x140] sm:$0xff] }
  0x47   : > { %v543_v54 = vrot.slane %v6567_v47, 7  ;;  %v799_v38 = vld [vmem:[#allocation2 + $0x48] sm:$0xf]  ;;  %860 = vst [vmem:[#allocation2 + $0x58] sm:$0xf] %v5630_v42  ;;  %v6545_v46 = vshrl.u32 %v5645_v18, 16  ;;  %v327_v23 = vmul.f32 %v5273_v2, %v5046_v45  ;;  %v5017_v35 = vunpack.c.l.bf16 %v5149_v34 }
  0x48   : > { %v3981_v63 = vld [vmem:[#allocation2 + $0xf0] sm:$0xf]  ;;  %v723_v33 = vsel %vm5363_vm6, %v715_v44, %v722_v48  ;;  %v6549_v31 = vshll.u32 %v5645_v18, 16  ;;  %v5662_v30 = vld [vmem:[#allocation2 + $0x168] sm:$0x1]  ;;  %v538_v32 = vor.u32 %v6555_v11, %v535_v29  ;;  %v539_v16 = vrot.slane %v535_v29, 4 }
  0x49   : > { %v3982_v39 = vor.u32 %v4887_v12, %v3981_v63  ;;  %846 = vst [vmem:[#allocation2 + $0x15c] sm:$0xf] %v723_v33  ;;  %v546_v44 = vor.u32 %v6568_v36, %v543_v54  ;;  %v4919_v48 = vld [vmem:[%s6522_s3 + $0x120] sm:$0xff]  ;;  %v4926_v45 = vld [vmem:[%s6522_s3 + $0x158] sm:$0xff]  ;;  %v599_v63 = vrot.slane %v6545_v46, 7  ;;  %v6550_v29 = vshrl.u32 %v5653_v10, 16 }
  0x4a   : > { %v4838_v12 = vld [vmem:[%s6522_s3 + $0x18] sm:$0xff]  ;;  %v6554_v33 = vshll.u32 %v5653_v10, 16  ;;  %v361_v54 = vadd.f32 %v5291_v5, %v326_v14  ;;  %v800_v28 = vsel %vm5379_vm7, %v538_v32, %v799_v38  ;;  %v815_v46 = vld [vmem:[#allocation2 + $0xa8] sm:$0xf]  ;;  %867 = vst [vmem:[#allocation2 + $0xac] sm:$0xf] %v5645_v18  ;;  %v362_v1 = vadd.f32 %v5291_v5, %v327_v23  ;;  %1899 = vmatpush.bf16.msrb.mxu1 %v4919_v48 }
  0x4b   : > { %1860 = vmatmul.bf16.gmra.mxu2 %v3982_v39  ;;  %v547_v27 = vsel %vm5363_vm6, %v539_v16, %v546_v44  ;;  %v481_v14 = vsel %vm5277_vm2, 0, %v5647_v53  ;;  %801 = vst [vmem:[#allocation2 + $0x48] sm:$0xf] %v800_v28  ;;  %v602_v16 = vor.u32 %v6549_v31, %v599_v63  ;;  %v603_v39 = vrot.slane %v599_v63, 4  ;;  %v4925_v23 = vld [vmem:[%s6522_s3 + $0x150] sm:$0xff]  ;;  %2478 = vmatpush.bf16.msrb.mxu3 %v4838_v12 }
  0x4c   : > { %v607_v38 = vrot.slane %v6550_v29, 7  ;;  %v393_v32 = vmax.f32 %v361_v54, 0.0  ;;  %1989 = vmatpush.bf16.msrb.mxu2 %v4926_v45  ;;  %802 = vst [vmem:[#allocation2 + $0x54] sm:$0xf] %v547_v27  ;;  %v394_v53 = vmax.f32 %v362_v1, 0.0  ;;  %v5061_v44 = vunpack.c.l.bf16 %v5160_v17  ;;  %v4837_v48 = vld [vmem:[%s6522_s3 + $0x10] sm:$0xff] }
  0x4d   : > { %v493_v28 = vsel %vm5277_vm2, 0, %v5662_v30  ;;  %v4846_v45 = vld [vmem:[%s6522_s3 + $0x58] sm:$0xff]  ;;  %v4029_v63 = vld [vmem:[#allocation2 + $0x150] sm:$0xf]  ;;  %v816_v17 = vsel %vm5379_vm7, %v602_v16, %v815_v46  ;;  %868 = vst [vmem:[#allocation2 + $0xb8] sm:$0xf] %v5653_v10  ;;  %v335_v54 = vmul.f32 %v5273_v2, %v5062_v4  ;;  %v5018_v31 = vunpack.c.h.bf16 %v5149_v34 }
  0x4e   : > { %v610_v1 = vor.u32 %v6554_v33, %v607_v38  ;;  %v5720_v27 = vpack.c.bf16 %v393_v32, %v393_v32  ;;  %817 = vst [vmem:[#allocation2 + $0xa8] sm:$0xf] %v816_v17  ;;  %v5722_v30 = vpack.c.bf16 %v394_v53, %v394_v53  ;;  %v334_v12 = vmul.f32 %v5273_v2, %v5061_v44  ;;  %v5727_v29 = vld [vmem:[%s5286_s29 + $0x38] sm:$0xff]  }
  0x4f   : > { %482 = vst [vmem:[#allocation2 + $0x108] sm:$0x1] %v481_v14  ;;  %1900 = vmatpush.bf16.msrb.mxu1 %v4918_v0  ;;  %v312_v32 = vmul.f32 %v5273_v2, %v5017_v35  ;;  %2479 = vmatpush.bf16.msrb.mxu3 %v4837_v48  ;;  %v370_v0 = vadd.f32 %v5291_v5, %v335_v54  ;;  %v5034_v17 = vunpack.c.h.bf16 %v5727_v29  ;;  %v6593_v58 = vshrl.u32 %v5630_v42, 16 }
  0x50   : > { %v4899_v6 = vld [vmem:[#allocation2 + $0x158] sm:$0xf0]  ;;  %v611_v38 = vsel %vm5363_vm6, %v603_v39, %v610_v1  ;;  %v6552_v46 = vshrl.u32 %v5720_v27, 16  ;;  %v6558_v16 = vshll.u32 %v5720_v27, 16  ;;  %1990 = vmatpush.bf16.msrb.mxu2 %v4925_v23  ;;  %v6553_v4 = vshrl.u32 %v5722_v30, 16  ;;  %2567 = vmatpush.bf16.msrb.mxu0 %v4846_v45 }
  0x51   : > { %v4030_v53 = vor.u32 %v4899_v6, %v4029_v63  ;;  %818 = vst [vmem:[#allocation2 + $0xb4] sm:$0xf] %v611_v38  ;;  %v6559_v34 = vshll.u32 %v5722_v30, 16  ;;  %v369_v44 = vadd.f32 %v5291_v5, %v334_v12  ;;  %v313_v39 = vmul.f32 %v5273_v2, %v5018_v31  ;;  %v459_v23 = vld [vmem:[#allocation2 + $0x60] sm:$0x1] }
  0x52   : > { %v663_v14 = vrot.slane %v6552_v46, 7  ;;  %875 = vst [vmem:[#allocation2 + $0x10c] sm:$0xf] %v5720_v27  ;;  %v347_v6 = vadd.f32 %v5291_v5, %v312_v32  ;;  %v3897_v63 = vld [vmem:[#allocation2 + $0x48] sm:$0xf]  ;;  %v671_v1 = vrot.slane %v6553_v4, 7  ;;  %v5033_v45 = vunpack.c.l.bf16 %v5727_v29 }
  0x53   : > { %1880 = vmatmul.bf16.gmra.mxu3 %v4030_v53  ;;  %876 = vst [vmem:[#allocation2 + $0x118] sm:$0xf] %v5722_v30  ;;  %v401_v48 = vmax.f32 %v369_v44, 0.0  ;;  %v4866_v35 = vld [vmem:[#allocation2 + $0x50] sm:$0xf0]  ;;  %v402_v54 = vmax.f32 %v370_v0, 0.0  ;;  %v348_v38 = vadd.f32 %v5291_v5, %v313_v39 }
  0x54   : > { %v666_v12 = vor.u32 %v6558_v16, %v663_v14  ;;  %v667_v31 = vrot.slane %v663_v14, 4  ;;  %494 = vst [vmem:[#allocation2 + $0x168] sm:$0x1] %v493_v28  ;;  %v3898_v32 = vor.u32 %v4866_v35, %v3897_v63  ;;  %v674_v53 = vor.u32 %v6559_v34, %v671_v1  ;;  %v471_v1 = vld [vmem:[#allocation2 + $0xc0] sm:$0x1] }
  0x55   : > { %v5753_v46 = vpack.c.bf16 %v401_v48, %v401_v48  ;;  %v379_v44 = vmax.f32 %v347_v6, 0.0  ;;  %v3945_v4 = vld [vmem:[#allocation2 + $0xa8] sm:$0xf]  ;;  %v5755_v33 = vpack.c.bf16 %v402_v54, %v402_v54  ;;  %v380_v29 = vmax.f32 %v348_v38, 0.0 }
  0x56   : > { %v460_v11 = vsel %vm5277_vm2, 0, %v459_v23  ;;  %v320_v14 = vmul.f32 %v5273_v2, %v5033_v45  ;;  %1825 = vmatmul.bf16.gmra.mxu0 %v3898_v32  ;;  %v675_v28 = vsel %vm5363_vm6, %v667_v31, %v674_v53  ;;  %v831_v0 = vld [vmem:[#allocation2 + $0x108] sm:$0xf]  ;;  %vm1132_vm13 = vsmask.f32 7950 }
  0x57   : > { %v6556_v39 = vshrl.u32 %v5753_v46, 16  ;;  %v6560_v63 = vshll.u32 %v5753_v46, 16  ;;  %883 = vst [vmem:[#allocation2 + $0x16c] sm:$0xf] %v5753_v46  ;;  %v5765_v6 = vpack.c.bf16 %v379_v44, %v379_v44  ;;  %v832_v23 = vsel %vm5379_vm7, %v666_v12, %v831_v0  ;;  %v5157_v44 = vld [vmem:[%s5286_s29 + $0x58] sm:$0xff]   ;;  %vm5978_vm14 = vmand %vm1131_vm12, %vm1132_vm13 }
  0x58   : > { %v4878_v48 = vld [vmem:[#allocation2 + $0xb0] sm:$0xf0]  ;;  %834 = vst [vmem:[#allocation2 + $0x114] sm:$0xf] %v675_v28  ;;  %v6557_v45 = vshrl.u32 %v5755_v33, 16  ;;  %v6561_v35 = vshll.u32 %v5755_v33, 16  ;;  %v5771_v31 = vpack.c.bf16 %v380_v29, %v380_v29  ;;  %v355_v16 = vadd.f32 %v5291_v5, %v320_v14 }
  0x59   : > { %v3946_v54 = vor.u32 %v4878_v48, %v3945_v4  ;;  %833 = vst [vmem:[#allocation2 + $0x108] sm:$0xf] %v832_v23  ;;  %v727_v38 = vrot.slane %v6556_v39, 7  ;;  %v6563_v32 = vshrl.u32 %v5765_v6, 16  ;;  %v6562_v53 = vshll.u32 %v5765_v6, 16  ;;  %v5785_v0 = vld [vmem:[%s5286_s29 + $0x78] sm:$0xff]  }
  0x5a   : > { %v735_v12 = vrot.slane %v6557_v45, 7  ;;  %884 = vst [vmem:[#allocation2 + $0x178] sm:$0xf] %v5755_v33  ;;  %v6564_v28 = vshrl.u32 %v5771_v31, 16  ;;  %v6565_v29 = vshll.u32 %v5771_v31, 16  ;;  %v321_v4 = vmul.f32 %v5273_v2, %v5034_v17 }
  0x5b   : > { %1845 = vmatmul.bf16.gmra.mxu1 %v3946_v54  ;;  %v730_v48 = vor.u32 %v6560_v63, %v727_v38  ;;  %v731_v23 = vrot.slane %v727_v38, 4  ;;  %v847_v39 = vld [vmem:[#allocation2 + $0x168] sm:$0xf]  ;;  %461 = vst [vmem:[#allocation2 + $0x60] sm:$0x1] %v460_v11  ;;  %v551_v45 = vrot.slane %v6563_v32, 7 }
  0x5c   : > { %v738_v34 = vor.u32 %v6561_v35, %v735_v12  ;;  %v559_v2 = vrot.slane %v6564_v28, 7  ;;  %861 = vst [vmem:[#allocation2 + $0x64] sm:$0xf] %v5765_v6  ;;  %v356_v17 = vadd.f32 %v5291_v5, %v321_v4  ;;  %v472_v54 = vsel %vm5277_vm2, 0, %v471_v1  ;;  %v5800_v38 = vld [vmem:[#allocation2 + $0x120] sm:$0x1] }
  0x5d   : > { %v848_v11 = vsel %vm5379_vm7, %v730_v48, %v847_v39  ;;  %v554_v14 = vor.u32 %v6562_v53, %v551_v45  ;;  %v555_v63 = vrot.slane %v551_v45, 4  ;;  %862 = vst [vmem:[#allocation2 + $0x70] sm:$0xf] %v5771_v31  ;;  %v387_v12 = vmax.f32 %v355_v16, 0.0  ;;  %v4917_v39 = vld [vmem:[%s6522_s3 + $0x110] sm:$0xff]  ;;  %v4924_v45 = vld [vmem:[%s6522_s3 + $0x148] sm:$0xff] }
  0x5e   : > { %v739_v35 = vsel %vm5363_vm6, %v731_v23, %v738_v34  ;;  %849 = vst [vmem:[#allocation2 + $0x168] sm:$0xf] %v848_v11  ;;  %v562_v5 = vor.u32 %v6565_v29, %v559_v2  ;;  %v388_v1 = vmax.f32 %v356_v17, 0.0  ;;  %v5049_v4 = vunpack.c.l.bf16 %v5157_v44  ;;  %v4836_v16 = vld [vmem:[%s6522_s3 + $0x8] sm:$0xff]  ;;  %v495_v11 = vld [vmem:[#allocation2 + $0x180] sm:$0x1]  ;;  %1901 = vmatpush.bf16.msrb.mxu1 %v4917_v39  ;;  %1991 = vmatpush.bf16.msrb.mxu2 %v4924_v45 }
  0x5f   : > { %v4890_v48 = vld [vmem:[#allocation2 + $0x110] sm:$0xf0]  ;;  %850 = vst [vmem:[#allocation2 + $0x174] sm:$0xf] %v739_v35  ;;  %v5820_v34 = vpack.c.bf16 %v387_v12, %v387_v12  ;;  %v5050_v23 = vunpack.c.h.bf16 %v5157_v44  ;;  %v484_v2 = vsel %vm5277_vm2, 0, %v5800_v38  ;;  %v5065_v17 = vunpack.c.l.bf16 %v5785_v0  ;;  %v4916_v12 = vld [vmem:[%s6522_s3 + $0x108] sm:$0xff]  ;;  %2480 = vmatpush.bf16.msrb.mxu3 %v4836_v16 }
  0x60   : > { %v4845_v53 = vld [vmem:[%s6522_s3 + $0x50] sm:$0xff]  ;;  %v3993_v32 = vld [vmem:[#allocation2 + $0x108] sm:$0xf]  ;;  %v563_v28 = vsel %vm5363_vm6, %v555_v63, %v562_v5  ;;  %v5831_v29 = vpack.c.bf16 %v388_v1, %v388_v1  ;;  %473 = vst [vmem:[#allocation2 + $0xc0] sm:$0x1] %v472_v54  ;;  %v5066_v38 = vunpack.c.h.bf16 %v5785_v0  ;;  %v4835_v0 = vld [vmem:[%s6522_s3] sm:$0xff] }
  0x61   : > { %v5212_v35 = vld [vmem:[%s6520_s1] ss:$0 sm:$0xff]  ;;  %v3994_v63 = vor.u32 %v4890_v48, %v3993_v32  ;;  %806 = vst [vmem:[#allocation2 + $0x6c] sm:$0xf] %v563_v28  ;;  %v6571_v54 = vshrl.u32 %v5820_v34, 16  ;;  %v6572_v5 = vshll.u32 %v5820_v34, 16  ;;  %2568 = vmatpush.bf16.msrb.mxu0 %v4845_v53 }
  0x62   : > { %v328_v44 = vmul.f32 %v5212_v35, %v5049_v4  ;;  %v329_v1 = vmul.f32 %v5212_v35, %v5050_v23  ;;  %v4844_v4 = vld [vmem:[%s6522_s3 + $0x48] sm:$0xff]  ;;  %v803_v39 = vld [vmem:[#allocation2 + $0x60] sm:$0xf]  ;;  %v621_v47 = vshrl.u32 %v5831_v29, 16  ;;  %v624_v32 = vshll.u32 %v5831_v29, 16  ;;  %1902 = vmatpush.bf16.msrb.mxu1 %v4916_v12  ;;  %1992 = vmatpush.bf16.msrb.mxu2 %v4923_v15 }
  0x63   : > { %869 = vst [vmem:[#allocation2 + $0xc4] sm:$0xf] %v5820_v34  ;;  %v5213_v28 = vld [vmem:[%s6521_s2] ss:$0 sm:$0xff]  ;;  %v336_v16 = vmul.f32 %v5212_v35, %v5065_v17  ;;  %1865 = vmatmul.bf16.gmra.mxu2 %v3994_v63  ;;  %v804_v48 = vsel %vm5379_vm7, %v554_v14, %v803_v39  ;;  %v615_v23 = vrot.slane %v6571_v54, 7  ;;  %v337_v24 = vmul.f32 %v5212_v35, %v5066_v38 }
  0x64   : > { %v363_v45 = vadd.f32 %v5213_v28, %v328_v44  ;;  %870 = vst [vmem:[#allocation2 + $0xd0] sm:$0xf] %v5831_v29  ;;  %v364_v36 = vadd.f32 %v5213_v28, %v329_v1  ;;  %v623_v17 = vrot.slane %v621_v47, 7  ;;  %v496_v14 = vsel %vm5277_vm2, 0, %v495_v11  ;;  %v4843_v63 = vld [vmem:[%s6522_s3 + $0x40] sm:$0xff]  ;;  %2481 = vmatpush.bf16.msrb.mxu3 %v4835_v0 }
  0x65   : > { %805 = vst [vmem:[#allocation2 + $0x60] sm:$0xf] %v804_v48  ;;  %v371_v44 = vadd.f32 %v5213_v28, %v336_v16  ;;  %v4041_v1 = vld [vmem:[#allocation2 + $0x168] sm:$0xf]  ;;  %v618_v35 = vor.u32 %v6572_v5, %v615_v23  ;;  %v619_v38 = vrot.slane %v615_v23, 4  ;;  %v372_v48 = vadd.f32 %v5213_v28, %v337_v24  ;;  %2569 = vmatpush.bf16.msrb.mxu0 %v4844_v4 }
  0x66   : > { %v395_v53 = vmax.f32 %v363_v45, 0.0  ;;  %v396_v39 = vmax.f32 %v364_v36, 0.0  ;;  %485 = vst [vmem:[#allocation2 + $0x120] sm:$0x1] %v484_v2  ;;  %v4902_v45 = vld [vmem:[#allocation2 + $0x170] sm:$0xf0]  ;;  %v626_v3 = vor.u32 %v624_v32, %v623_v17  ;;  %1903 = vmatpush.bf16.msrb.mxu1 %v4915_v25 }
  0x67   : > { %v403_v12 = vmax.f32 %v371_v44, 0.0  ;;  %497 = vst [vmem:[#allocation2 + $0x180] sm:$0x1] %v496_v14  ;;  %v890_v16 = vrot.slane %v501_v59, 4  ;;  %v4042_v54 = vor.u32 %v4902_v45, %v4041_v1  ;;  %v819_v5 = vld [vmem:[#allocation2 + $0xc0] sm:$0xf] }
  0x68   : > { %v5876_v11 = vpack.c.bf16 %v395_v53, %v395_v53  ;;  %v5880_v23 = vpack.c.bf16 %v396_v39, %v396_v39  ;;  %v404_v36 = vmax.f32 %v372_v48, 0.0  ;;  %v891_v24 = vrot.slane %v504_v60, 5  ;;  %v4869_v59 = vld [vmem:[#allocation2 + $0x68] sm:$0xf0] }
  0x69   : > { %v627_v15 = vsel %vm5363_vm6, %v619_v38, %v626_v3  ;;  %v820_v2 = vsel %vm5379_vm7, %v618_v35, %v819_v5  ;;  %1885 = vmatmul.bf16.gmra.mxu3 %v4042_v54  ;;  %v5893_v60 = vpack.c.bf16 %v403_v12, %v403_v12  ;;  %2570 = vmatpush.bf16.msrb.mxu0 %v4843_v63 }
  0x6a   : > { %v6578_v0 = vshrl.u32 %v5876_v11, 16  ;;  %v6577_v4 = vshll.u32 %v5876_v11, 16  ;;  %877 = vst [vmem:[#allocation2 + $0x124] sm:$0xf] %v5876_v11  ;;  %v6579_v28 = vshrl.u32 %v5880_v23, 16  ;;  %v688_v50 = vshll.u32 %v5880_v23, 16 }
  0x6b   : > { %821 = vst [vmem:[#allocation2 + $0xc0] sm:$0xf] %v820_v2  ;;  %v5895_v17 = vpack.c.bf16 %v404_v36, %v404_v36  ;;  %v892_v53 = vor.u32 %v891_v24, %v890_v16  ;;  %v6574_v54 = vshrl.u32 %v5893_v60, 16  ;;  %v6573_v39 = vshll.u32 %v5893_v60, 16 }
  0x6c   : > { %822 = vst [vmem:[#allocation2 + $0xcc] sm:$0xf] %v627_v15  ;;  %v679_v5 = vrot.slane %v6578_v0, 7  ;;  %v3909_v44 = vld [vmem:[#allocation2 + $0x60] sm:$0xf]  ;;  %v687_v25 = vrot.slane %v6579_v28, 7 }
  0x6d   : > { %878 = vst [vmem:[#allocation2 + $0x130] sm:$0xf] %v5880_v23  ;;  %v3910_v14 = vor.u32 %v4869_v59, %v3909_v44  ;;  %v835_v38 = vld [vmem:[#allocation2 + $0x120] sm:$0xf]  ;;  %v743_v48 = vrot.slane %v6574_v54, 7  ;;  %v6575_v45 = vshrl.u32 %v5895_v17, 16  ;;  %3433 = vmatpush.bf16.msra.mxu0 %v5002_v51 }
  0x6e   : > { %v682_v1 = vor.u32 %v6577_v4, %v679_v5  ;;  %v683_v35 = vrot.slane %v679_v5, 4  ;;  %885 = vst [vmem:[#allocation2 + $0x184] sm:$0xf] %v5893_v60  ;;  %v690_v63 = vor.u32 %v688_v50, %v687_v25  ;;  %v6576_v3 = vshll.u32 %v5895_v17, 16  ;;  %v851_v12 = vld [vmem:[#allocation2 + $0x180] sm:$0xf] }
  0x6f   : > { %1830 = vmatmul.bf16.gmra.mxu0 %v3910_v14  ;;  %886 = vst [vmem:[#allocation2 + $0x190] sm:$0xf] %v5895_v17  ;;  %v893_v36 = vrot.slane %v892_v53, 4  ;;  %v894_v24 = vrot.slane %v512_v62, 5  ;;  %v746_v2 = vor.u32 %v6573_v39, %v743_v48  ;;  %v747_v59 = vrot.slane %v743_v48, 4  ;;  %v4986_v62 = vld [vmem:[%s6522_s3 + $0x1b8] sm:$0xff] }
  0x70   : > { %v836_v16 = vsel %vm5379_vm7, %v682_v1, %v835_v38  ;;  %v691_v15 = vsel %vm5363_vm6, %v683_v35, %v690_v63  ;;  %v751_v5 = vrot.slane %v6575_v45, 7  ;;  %v4994_v53 = vld [vmem:[%s6522_s3 + $0x1f8] sm:$0xff]  ;;  %v896_v1 = vrot.slane %v509_v61, 4  ;;  %3255 = vmatpush.bf16.msra.mxu2 %v4986_v62  ;;  %v1072_v51 = vld [vmem:[#allocation2 + $0x44] sm:$0xf] }
  0x71   : > { %837 = vst [vmem:[#allocation2 + $0x120] sm:$0xf] %v836_v16  ;;  %v895_v14 = vsel %vm5925_vm10, %v893_v36, %v894_v24  ;;  %v852_v63 = vsel %vm5379_vm7, %v746_v2, %v851_v12  ;;  %3344 = vmatpush.bf16.msra.mxu3 %v4994_v53  ;;  %v4858_v36 = vld [vmem:[%s6522_s3 + $0xb8] sm:$0xff]  ;;  %v899_v61 = vrot.slane %v517_v20, 4  ;;  %v900_v2 = vrot.slane %v520_v21, 5 }
  0x72   : > { %v3957_v25 = vld [vmem:[#allocation2 + $0xc0] sm:$0xf]  ;;  %838 = vst [vmem:[#allocation2 + $0x12c] sm:$0xf] %v691_v15  ;;  %v754_v38 = vor.u32 %v6576_v3, %v751_v5  ;;  %v897_v16 = vor.u32 %v896_v1, %v894_v24  ;;  %v1068_v24 = vld [vmem:[#allocation2 + $0x2c] sm:$0xf]  ;;  %2652 = vmatpush.bf16.msra.mxu1 %v4858_v36 }
  0x73   : > { %v4881_v35 = vld [vmem:[#allocation2 + $0xc8] sm:$0xf0]  ;;  %1066 = vst [vmem:[#allocation2 + $0x20] sm:$0xf] %v895_v14  ;;  %v5222_v15 = vmov 0   ;;  %v6590_v20 = vshll.u32 %v5486_v8, 16  ;;  %v901_v53 = vor.u32 %v900_v2, %v899_v61 }
  0x74   : > { %v3958_v48 = vor.u32 %v4881_v35, %v3957_v25  ;;  %853 = vst [vmem:[#allocation2 + $0x180] sm:$0xf] %v852_v63  ;;  %v755_v13 = vsel %vm5363_vm6, %v747_v59, %v754_v38  ;;  %v898_v5 = vrot.slane %v897_v16, 4  ;;  %v6591_v59 = vshrl.u32 %v5486_v8, 16  ;;  %v4317_v44 = vld [vmem:[#allocation2 + $0x138] sm:$0xf] }
  0x75   : > { %437 = vst [vmem:[#allocation2] sm:$0xff] %v5222_v15  ;;  %v903_v7 = vrot.slane %v6590_v20, 5  ;;  %v6592_v25 = vshll.u32 %v5630_v42, 16  ;;  %v914_v21 = vrot.slane %v6593_v58, 4  ;;  %v902_v8 = vrot.slane %v901_v53, 4 }
  0x76   : > { %1850 = vmatmul.bf16.gmra.mxu1 %v3958_v48  ;;  %854 = vst [vmem:[#allocation2 + $0x18c] sm:$0xf] %v755_v13  ;;  %v905_v62 = vrot.slane %v6591_v59, 4  ;;  %v1069_v35 = vsel %vm5955_vm11, %v898_v5, %v1068_v24  ;;  %v1076_v20 = vld [vmem:[#allocation2 + $0x5c] sm:$0xf] }
  0x77   : > { %439 = vst [vmem:[#allocation2 + $0xc] sm:$0xff] %v5222_v15  ;;  %v5967_v14 = vrot.slane %v6592_v25, 5  ;;  %v904_v42 = vsel %vm5925_vm10, %v902_v8, %v903_v7  ;;  %v4859_v25 = vld [vmem:[#allocation2 + $0x1c] sm:$0xf]  ;;  %v3875_v58 = vld [vmem:[#allocation2 + $0x24] sm:$0xf0] }
  0x78   : > { %v4005_v1 = vld [vmem:[#allocation2 + $0x120] sm:$0xf]  ;;  %438 = vst [vmem:[#allocation2 + $0x8] sm:$0xf] %v5222_v15  ;;  %v906_v38 = vor.u32 %v905_v62, %v903_v7  ;;  %v3878_v8 = vor.u32 %v4859_v25, %v3875_v58 }
  0x79   : > { %v4893_v63 = vld [vmem:[#allocation2 + $0x128] sm:$0xf0]  ;;  %1070 = vst [vmem:[#allocation2 + $0x2c] sm:$0xf] %v1069_v35  ;;  %v915_v48 = vor.u32 %v914_v21, %v5967_v14 }
  0x7a   : > { %v4006_v16 = vor.u32 %v4893_v63, %v4005_v1  ;;  %440 = vst [vmem:[#allocation2 + $0x14] sm:$0xf] %v5222_v15  ;;  %v907_v36 = vrot.slane %v906_v38, 4  ;;  %v6596_v38 = vshrl.u32 %v5628_v49, 16 }
  0x7b   : > { %v4053_v61 = vld [vmem:[#allocation2 + $0x180] sm:$0xf]  ;;  %442 = vst [vmem:[#allocation2 + $0x198] sm:$0xff] %v5222_v15  ;;  %v916_v24 = vrot.slane %v915_v48, 4 }
  0x7c   : > { %1870 = vmatmul.bf16.gmra.mxu2 %v4006_v16  ;;  %443 = vst [vmem:[#allocation2 + $0x1a0] sm:$0xf] %v5222_v15  ;;  %v4787_v13 = vld [vmem:[#allocation2 + $0x4] sm:$0xf]  ;;  %v1073_v5 = vsel %vm5955_vm11, %v907_v36, %v1072_v51  ;;  %v908_v63 = vrot.slane %v6596_v38, 4  ;;  %v6598_v51 = vshll.u32 %v5771_v31, 16 }
  0x7d   : > { %v4905_v2 = vld [vmem:[#allocation2 + $0x188] sm:$0xf0]  ;;  %444 = vst [vmem:[#allocation2 + $0x1a4] sm:$0xff] %v5222_v15  ;;  %v1077_v1 = vsel %vm5955_vm11, %v916_v24, %v1076_v20  ;;  %v3881_v24 = vld [vmem:[#allocation2 + $0x20] sm:$0xf] }
  0x7e   : > { %v4054_v59 = vor.u32 %v4905_v2, %v4053_v61  ;;  %445 = vst [vmem:[#allocation2 + $0x1ac] sm:$0xf] %v5222_v15  ;;  %v4163_v53 = vld [vmem:[#allocation2 + $0xc] sm:$0xf0]  ;;  %v6597_v15 = vshll.u32 %v5628_v49, 16  ;;  %v921_v61 = vrot.slane %v6598_v51, 5 }
  0x7f   : > { %v4166_v7 = vor.u32 %v4787_v13, %v4163_v53  ;;  %1071 = vst [vmem:[#allocation2 + $0x38] sm:$0xf] %v904_v42  ;;  %v6599_v42 = vshrl.u32 %v5771_v31, 16  ;;  %v4161_v2 = vld [vmem:[#allocation2] sm:$0xf]  ;;  %v6601_v51 = vshll.u32 %v5765_v6, 16 }
  0x80   : > { %1890 = vmatmul.bf16.gmra.mxu3 %v4054_v59  ;;  %v1134_v21 = vld [vmem:[#allocation2 + $0x2c] sm:$0x8]  ;;  %1074 = vst [vmem:[#allocation2 + $0x44] sm:$0xf] %v1073_v5  ;;  %v909_v48 = vrot.slane %v6597_v15, 5 }
  0x81   : > { %v1135_v35 = vsel %vm5978_vm14, 0, %v1134_v21  ;;  %2571 = vmatmul.bf16.vlgmr.msrb.gmra.mxu0 %v4166_v7  ;;  %1078 = vst [vmem:[#allocation2 + $0x5c] sm:$0xf] %v1077_v1  ;;  %v923_v13 = vrot.slane %v6599_v42, 4  ;;  %v4788_v20 = vld [vmem:[#allocation2 + $0x8] sm:$0xf0] }
  0x82   : > { %1136 = vst [vmem:[#allocation2 + $0x2c] sm:$0x8] %v1135_v35  ;;  %v910_v16 = vor.u32 %v909_v48, %v908_v63  ;;  %v4790_v53 = vld [vmem:[#allocation2 + $0x1c] sm:$0xf]  ;;  %v4175_v7 = vld [vmem:[#allocation2 + $0x24] sm:$0xf0]  ;;  %v4162_v63 = vor.u32 %v4788_v20, %v4161_v2 }
  0x83   : > { %v924_v25 = vor.u32 %v923_v13, %v921_v61  ;;  %v1080_v38 = vld [vmem:[#allocation2 + $0x74] sm:$0xf]  ;;  %v4178_v15 = vor.u32 %v4790_v53, %v4175_v7  ;;  %v3887_v48 = vld [vmem:[#allocation2 + $0x3c] sm:$0xf0]  ;;  %v918_v42 = vrot.slane %v6601_v51, 5 }
  0x84   : > { %v911_v36 = vrot.slane %v910_v16, 4  ;;  %v6600_v16 = vshrl.u32 %v5765_v6, 16  ;;  %v4985_v13 = vld [vmem:[%s6522_s3 + $0x1b0] sm:$0xff] }
  0x85   : > { %v925_v1 = vrot.slane %v924_v25, 4  ;;  %v4857_v2 = vld [vmem:[%s6522_s3 + $0xb0] sm:$0xff]  ;;  %3256 = vmatpush.bf16.msra.mxu2 %v4985_v13  ;;  %v4865_v13 = vld [vmem:[#allocation2 + $0x4c] sm:$0xf] }
  0x86   : > { %1904 = vmatmul.bf16.vlgmr.msrb.gmra.mxu1 %v3878_v8  ;;  %v913_v49 = vsel %vm5925_vm10, %v911_v36, %v5967_v14  ;;  %v4862_v14 = vld [vmem:[#allocation2 + $0x34] sm:$0xf]  ;;  %v917_v36 = vrot.slane %v6600_v16, 4 }
  0x87   : > { %v1137_v5 = vld [vmem:[#allocation2 + $0x44] sm:$0x8]  ;;  %1075 = vst [vmem:[#allocation2 + $0x50] sm:$0xf] %v913_v49  ;;  %v1081_v8 = vsel %vm5955_vm11, %v925_v1, %v1080_v38  ;;  %v3890_v20 = vor.u32 %v4862_v14, %v3887_v48  ;;  %2653 = vmatpush.bf16.msra.mxu1 %v4857_v2  ;;  %v3893_v49 = vld [vmem:[#allocation2 + $0x38] sm:$0xf] }
  0x88   : > { %v1138_v59 = vsel %vm5978_vm14, 0, %v1137_v5  ;;  %v1140_v31 = vld [vmem:[#allocation2 + $0x5c] sm:$0x8]  ;;  %1082 = vst [vmem:[#allocation2 + $0x74] sm:$0xf] %v1081_v8  ;;  %v5001_v5 = vld [vmem:[%s6522_s3 + $0x230] sm:$0xff]  ;;  %v919_v6 = vor.u32 %v918_v42, %v917_v36 }
  0x89   : > { %v4861_v58 = vld [vmem:[#allocation2 + $0x28] sm:$0xf0]  ;;  %1139 = vst [vmem:[#allocation2 + $0x44] sm:$0x8] %v1138_v59  ;;  %v1141_v35 = vsel %vm5978_vm14, 0, %v1140_v31  ;;  %3434 = vmatpush.bf16.msra.mxu0 %v5001_v5  ;;  %v6603_v1 = vshrl.u32 %v5344_v55, 16 }
  0x8a   : > { %v3882_v21 = vor.u32 %v4861_v58, %v3881_v24  ;;  %1142 = vst [vmem:[#allocation2 + $0x5c] sm:$0x8] %v1141_v35  ;;  %v4993_v24 = vld [vmem:[%s6522_s3 + $0x1f0] sm:$0xff]  ;;  %v920_v59 = vrot.slane %v919_v6, 4  ;;  %v4173_v8 = vld [vmem:[#allocation2 + $0x18] sm:$0xf] }
  0x8b   : > { %3345 = vmatpush.bf16.msra.mxu3 %v4993_v24  ;;  %v932_v35 = vrot.slane %v6603_v1, 4  ;;  %v4793_v14 = vld [vmem:[#allocation2 + $0x34] sm:$0xf]  ;;  %v4187_v48 = vld [vmem:[#allocation2 + $0x3c] sm:$0xf0]  ;;  %v6605_v5 = vshll.u32 %v5338_v52, 16 }
  0x8c   : > { %1993 = vmatmul.bf16.vlgmr.msrb.gmra.mxu2 %v3882_v21  ;;  %v922_v58 = vsel %vm5925_vm10, %v920_v59, %v921_v61  ;;  %v6602_v21 = vshll.u32 %v5344_v55, 16  ;;  %v1084_v61 = vld [vmem:[#allocation2 + $0x8c] sm:$0xf]  ;;  %v4190_v42 = vor.u32 %v4793_v14, %v4187_v48  ;;  %v3899_v24 = vld [vmem:[#allocation2 + $0x54] sm:$0xf0]  ;;  %v6604_v55 = vshrl.u32 %v5338_v52, 16 }
  0x8d   : > { %1079 = vst [vmem:[#allocation2 + $0x68] sm:$0xf] %v922_v58  ;;  %v927_v6 = vrot.slane %v6605_v5, 5  ;;  %v3902_v59 = vor.u32 %v4865_v13, %v3899_v24  ;;  %v6606_v1 = vshll.u32 %v5518_v19, 16  ;;  %v4794_v14 = vld [vmem:[#allocation2 + $0x38] sm:$0xf0] }
  0x8e   : > { %v930_v31 = vrot.slane %v6602_v21, 5  ;;  %v926_v2 = vrot.slane %v6604_v55, 4  ;;  %v4796_v48 = vld [vmem:[#allocation2 + $0x4c] sm:$0xf]  ;;  %v4868_v13 = vld [vmem:[#allocation2 + $0x64] sm:$0xf] }
  0x8f   : > { %v1143_v53 = vld [vmem:[#allocation2 + $0x74] sm:$0x8]  ;;  %v939_v52 = vrot.slane %v6606_v1, 5  ;;  %v3911_v24 = vld [vmem:[#allocation2 + $0x6c] sm:$0xf0] }
  0x90   : > { %2482 = vmatmul.bf16.vlgmr.msrb.gmra.mxu3 %v4162_v63  ;;  %v4864_v25 = vld [vmem:[#allocation2 + $0x40] sm:$0xf0]  ;;  %v1144_v7 = vsel %vm5978_vm14, 0, %v1143_v53  ;;  %v933_v63 = vor.u32 %v932_v35, %v930_v31  ;;  %v6607_v35 = vshrl.u32 %v5518_v19, 16  ;;  %v6608_v19 = vshrl.u32 %v5499_v26, 16 }
  0x91   : > { %2576 = vmatmul.bf16.gmra.mxu0 %v4178_v15  ;;  %1145 = vst [vmem:[#allocation2 + $0x74] sm:$0x8] %v1144_v7  ;;  %v3894_v38 = vor.u32 %v4864_v25, %v3893_v49  ;;  %v4791_v15 = vld [vmem:[#allocation2 + $0x20] sm:$0xf0]  ;;  %v3905_v49 = vld [vmem:[#allocation2 + $0x50] sm:$0xf] }
  0x92   : > { %v934_v16 = vrot.slane %v933_v63, 4  ;;  %v4174_v36 = vor.u32 %v4791_v15, %v4173_v8  ;;  %v4867_v25 = vld [vmem:[#allocation2 + $0x58] sm:$0xf0]  ;;  %v4185_v15 = vld [vmem:[#allocation2 + $0x30] sm:$0xf]  ;;  %v935_v55 = vrot.slane %v6608_v19, 4 }
  0x93   : > { %v3906_v63 = vor.u32 %v4867_v25, %v3905_v49  ;;  %v3914_v25 = vor.u32 %v4868_v13, %v3911_v24  ;;  %v1092_v24 = vld [vmem:[#allocation2 + $0xbc] sm:$0xf] }
  0x94   : > { %v1085_v51 = vsel %vm5955_vm11, %v934_v16, %v1084_v61  ;;  %v4199_v16 = vld [vmem:[#allocation2 + $0x54] sm:$0xf0]  ;;  %v1088_v61 = vld [vmem:[#allocation2 + $0xa4] sm:$0xf] }
  0x95   : > { %1086 = vst [vmem:[#allocation2 + $0x8c] sm:$0xf] %v1085_v51 }
  0x96   : > { %1909 = vmatmul.bf16.gmra.mxu1 %v3890_v20  ;;  %v928_v20 = vor.u32 %v927_v6, %v926_v2  ;;  %v6609_v2 = vshll.u32 %v5499_v26, 16  ;;  %v4984_v6 = vld [vmem:[%s6522_s3 + $0x1a8] sm:$0xff] }
  0x97   : > { %v5000_v26 = vld [vmem:[%s6522_s3 + $0x228] sm:$0xff]  ;;  %3257 = vmatpush.bf16.msra.mxu2 %v4984_v6  ;;  %v6612_v6 = vshrl.u32 %v5645_v18, 16 }
  0x98   : > { %v929_v53 = vrot.slane %v928_v20, 4  ;;  %v936_v5 = vrot.slane %v6609_v2, 5  ;;  %v4992_v20 = vld [vmem:[%s6522_s3 + $0x1e8] sm:$0xff]  ;;  %3435 = vmatpush.bf16.msra.mxu0 %v5000_v26  ;;  %v4871_v2 = vld [vmem:[#allocation2 + $0x7c] sm:$0xf] }
  0x99   : > { %3346 = vmatpush.bf16.msra.mxu3 %v4992_v20  ;;  %v944_v20 = vrot.slane %v6612_v6, 4 }
  0x9a   : > { %v931_v58 = vsel %vm5925_vm10, %v929_v53, %v930_v31  ;;  %v937_v49 = vor.u32 %v936_v5, %v935_v55  ;;  %v3923_v5 = vld [vmem:[#allocation2 + $0x84] sm:$0xf0] }
  0x9b   : > { %1083 = vst [vmem:[#allocation2 + $0x80] sm:$0xf] %v931_v58 }
  0x9c   : > { %1998 = vmatmul.bf16.gmra.mxu2 %v3894_v38  ;;  %v1146_v7 = vld [vmem:[#allocation2 + $0x8c] sm:$0x8]  ;;  %v941_v38 = vrot.slane %v6607_v35, 4  ;;  %v938_v58 = vrot.slane %v937_v49, 4 }
  0x9d   : > { %v1147_v21 = vsel %vm5978_vm14, 0, %v1146_v7  ;;  %v3917_v7 = vld [vmem:[#allocation2 + $0x68] sm:$0xf] }
  0x9e   : > { %1148 = vst [vmem:[#allocation2 + $0x8c] sm:$0x8] %v1147_v21  ;;  %v942_v8 = vor.u32 %v941_v38, %v939_v52  ;;  %v4870_v21 = vld [vmem:[#allocation2 + $0x70] sm:$0xf0]  ;;  %v940_v1 = vsel %vm5925_vm10, %v938_v58, %v939_v52  ;;  %v4799_v52 = vld [vmem:[#allocation2 + $0x64] sm:$0xf]  ;;  %v3926_v58 = vor.u32 %v4871_v2, %v3923_v5 }
  0x9f   : > { %1087 = vst [vmem:[#allocation2 + $0x98] sm:$0xf] %v940_v1  ;;  %v4874_v2 = vld [vmem:[#allocation2 + $0x94] sm:$0xf]  ;;  %v3935_v5 = vld [vmem:[#allocation2 + $0x9c] sm:$0xf0] }
  0xa0   : > { %2487 = vmatmul.bf16.gmra.mxu3 %v4174_v36  ;;  %v943_v31 = vrot.slane %v942_v8, 4  ;;  %v4186_v36 = vor.u32 %v4794_v14, %v4185_v15  ;;  %v6611_v15 = vshrl.u32 %v5653_v10, 16 }
  0xa1   : > { %2581 = vmatmul.bf16.gmra.mxu0 %v4190_v42  ;;  %v4202_v42 = vor.u32 %v4796_v48, %v4199_v16  ;;  %v3918_v16 = vor.u32 %v4870_v21, %v3917_v7 }
  0xa2   : > { %v1089_v51 = vsel %vm5955_vm11, %v943_v31, %v1088_v61  ;;  %v950_v14 = vrot.slane %v6611_v15, 4  ;;  %v4197_v61 = vld [vmem:[#allocation2 + $0x48] sm:$0xf]  ;;  %v3929_v1 = vld [vmem:[#allocation2 + $0x80] sm:$0xf] }
  0xa3   : > { %1090 = vst [vmem:[#allocation2 + $0xa4] sm:$0xf] %v1089_v51  ;;  %v4211_v51 = vld [vmem:[#allocation2 + $0x6c] sm:$0xf0] }
  0xa6   : > { %1914 = vmatmul.bf16.gmra.mxu1 %v3902_v59  ;;  %v4856_v59 = vld [vmem:[%s6522_s3 + $0xa8] sm:$0xff] }
  0xa7   : > { %2654 = vmatpush.bf16.msra.mxu1 %v4856_v59  ;;  %v6613_v59 = vshll.u32 %v5645_v18, 16 }
  0xa9   : > { %v945_v26 = vrot.slane %v6613_v59, 5 }
  0xaa   : > { %v1149_v35 = vld [vmem:[#allocation2 + $0xa4] sm:$0x8] }
  0xab   : > { %v6056_v53 = vpop.f32.mrf.mxu0  ;;  %v1150_v38 = vsel %vm5978_vm14, 0, %v1149_v35  ;;  %v4873_v35 = vld [vmem:[#allocation2 + $0x88] sm:$0xf0] }
  0xac   : > { %2003 = vmatmul.bf16.gmra.mxu2 %v3906_v63  ;;  %v6610_v63 = vshll.u32 %v5653_v10, 16  ;;  %1151 = vst [vmem:[#allocation2 + $0xa4] sm:$0x8] %v1150_v38  ;;  %v4214_v10 = vor.u32 %v4799_v52, %v4211_v51  ;;  %v4209_v52 = vld [vmem:[#allocation2 + $0x60] sm:$0xf] }
  0xad   : > { %v6069_v48 = vpop.f32.mrf.mxu1  ;;  %v4800_v51 = vld [vmem:[#allocation2 + $0x68] sm:$0xf0] }
  0xae   : > { %v948_v8 = vrot.slane %v6610_v63, 5 }
  0xb0   : > { %2492 = vmatmul.bf16.gmra.mxu3 %v4186_v36  ;;  %v951_v31 = vor.u32 %v950_v14, %v948_v8  ;;  %v4797_v36 = vld [vmem:[#allocation2 + $0x50] sm:$0xf0]  ;;  %v957_v14 = vrot.slane %v624_v32, 5 }
  0xb1   : > { %2586 = vmatmul.bf16.gmra.mxu0 %v4202_v42  ;;  %v4198_v19 = vor.u32 %v4797_v36, %v4197_v61  ;;  %v3930_v61 = vor.u32 %v4873_v35, %v3929_v1  ;;  %v4855_v1 = vld [vmem:[%s6522_s3 + $0xa0] sm:$0xff] }
  0xb2   : > { %v952_v42 = vrot.slane %v951_v31, 4  ;;  %2655 = vmatpush.bf16.msra.mxu1 %v4855_v1 }
  0xb3   : > { %v6071_v13 = vpop.f32.mrf.mxu0 }
  0xb4   : > { %v1093_v55 = vsel %vm5955_vm11, %v952_v42, %v1092_v24  ;;  %v4223_v42 = vld [vmem:[#allocation2 + $0x84] sm:$0xf0] }
  0xb5   : > { %1094 = vst [vmem:[#allocation2 + $0xbc] sm:$0xf] %v1093_v55  ;;  %v6079_v49 = vpop.f32.mrf.mxu1  ;;  %v6081_v7 = vpop.f32.mrf.mxu2  ;;  %v1096_v55 = vld [vmem:[#allocation2 + $0xd4] sm:$0xf] }
  0xb6   : > { %1919 = vmatmul.bf16.gmra.mxu1 %v3914_v25  ;;  %v946_v25 = vor.u32 %v945_v26, %v944_v20  ;;  %v6614_v20 = vshrl.u32 %v5820_v34, 16  ;;  %v6615_v26 = vshll.u32 %v5820_v34, 16  ;;  %v4999_v34 = vld [vmem:[%s6522_s3 + $0x220] sm:$0xff] }
  0xb7   : > { %3436 = vmatpush.bf16.msra.mxu0 %v4999_v34 }
  0xb8   : > { %v947_v21 = vrot.slane %v946_v25, 4  ;;  %v953_v59 = vrot.slane %v6614_v20, 4  ;;  %v954_v25 = vrot.slane %v6615_v26, 5  ;;  %v4235_v26 = vld [vmem:[#allocation2 + $0x9c] sm:$0xf0] }
  0xba   : > { %v949_v63 = vsel %vm5925_vm10, %v947_v21, %v948_v8  ;;  %v6093_v31 = vpop.f32.mrf.mxu3  ;;  %v4802_v8 = vld [vmem:[#allocation2 + $0x7c] sm:$0xf]  ;;  %v4991_v21 = vld [vmem:[%s6522_s3 + $0x1e0] sm:$0xff] }
  0xbb   : > { %1091 = vst [vmem:[#allocation2 + $0xb0] sm:$0xf] %v949_v63  ;;  %v955_v63 = vor.u32 %v954_v25, %v953_v59  ;;  %3347 = vmatpush.bf16.msra.mxu3 %v4991_v21  ;;  %v4805_v59 = vld [vmem:[#allocation2 + $0x94] sm:$0xf]  ;;  %v1100_v21 = vld [vmem:[#allocation2 + $0xec] sm:$0xf] }
  0xbc   : > { %2008 = vmatmul.bf16.gmra.mxu2 %v3918_v16  ;;  %v1152_v15 = vld [vmem:[#allocation2 + $0xbc] sm:$0x8]  ;;  %v959_v16 = vrot.slane %v621_v47, 4  ;;  %v4226_v47 = vor.u32 %v4802_v8, %v4223_v42  ;;  %v4238_v34 = vor.u32 %v4805_v59, %v4235_v26 }
  0xbd   : > { %v1153_v18 = vsel %vm5978_vm14, 0, %v1152_v15  ;;  %v6099_v29 = vpop.f32.mrf.mxu2  ;;  %v3938_v15 = vor.u32 %v4874_v2, %v3935_v5  ;;  %v4221_v2 = vld [vmem:[#allocation2 + $0x78] sm:$0xf]  ;;  %v4803_v5 = vld [vmem:[#allocation2 + $0x80] sm:$0xf0] }
  0xbe   : > { %v6083_v38 = vpop.f32.mrf.mxu0  ;;  %1154 = vst [vmem:[#allocation2 + $0xbc] sm:$0x8] %v1153_v18  ;;  %v960_v36 = vor.u32 %v959_v16, %v957_v14  ;;  %v956_v18 = vrot.slane %v955_v63, 4  ;;  %v3941_v16 = vld [vmem:[#allocation2 + $0x98] sm:$0xf]  ;;  %v4222_v1 = vor.u32 %v4803_v5, %v4221_v2 }
  0xc0   : > { %2497 = vmatmul.bf16.gmra.mxu3 %v4198_v19  ;;  %v961_v24 = vrot.slane %v960_v36, 4 }
  0xc1   : > { %2591 = vmatmul.bf16.gmra.mxu0 %v4214_v10  ;;  %v4210_v10 = vor.u32 %v4800_v51, %v4209_v52  ;;  %v958_v52 = vsel %vm5925_vm10, %v956_v18, %v957_v14  ;;  %v3947_v18 = vld [vmem:[#allocation2 + $0xb4] sm:$0xf0] }
  0xc2   : > { %v1097_v32 = vsel %vm5955_vm11, %v961_v24, %v1096_v55  ;;  %v6116_v35 = vpop.f32.mrf.mxu3  ;;  %1095 = vst [vmem:[#allocation2 + $0xc8] sm:$0xf] %v958_v52  ;;  %v6616_v24 = vshll.u32 %v5348_v57, 16  ;;  %v6619_v52 = vshll.u32 %v5346_v56, 16  ;;  %v3953_v5 = vld [vmem:[#allocation2 + $0xb0] sm:$0xf] }
  0xc3   : > { %v6095_v19 = vpop.f32.mrf.mxu1  ;;  %1098 = vst [vmem:[#allocation2 + $0xd4] sm:$0xf] %v1097_v32 }
  0xc4   : > { %v966_v55 = vrot.slane %v6616_v24, 5 }
  0xc6   : > { %1924 = vmatmul.bf16.gmra.mxu1 %v3926_v58  ;;  %v6101_v6 = vpop.f32.mrf.mxu0  ;;  %v4983_v58 = vld [vmem:[%s6522_s3 + $0x1a0] sm:$0xff] }
  0xc7   : > { %3258 = vmatpush.bf16.msra.mxu2 %v4983_v58 }
  0xca   : > { %v1155_v51 = vld [vmem:[#allocation2 + $0xd4] sm:$0x8] }
  0xcb   : > { %v6121_v36 = vpop.f32.mrf.mxu1  ;;  %v1156_v42 = vsel %vm5978_vm14, 0, %v1155_v51  ;;  %v963_v51 = vrot.slane %v6619_v52, 5  ;;  %v4247_v52 = vld [vmem:[#allocation2 + $0xb4] sm:$0xf0] }
  0xcc   : > { %2013 = vmatmul.bf16.gmra.mxu2 %v3930_v61  ;;  %v4876_v61 = vld [vmem:[#allocation2 + $0xa0] sm:$0xf0]  ;;  %1157 = vst [vmem:[#allocation2 + $0xd4] sm:$0x8] %v1156_v42 }
  0xce   : > { %v6125_v8 = vpop.f32.mrf.mxu2 }
  0xd0   : > { %2502 = vmatmul.bf16.gmra.mxu3 %v4210_v10  ;;  %v6617_v10 = vshrl.u32 %v5348_v57, 16 }
  0xd1   : > { %2596 = vmatmul.bf16.gmra.mxu0 %v4226_v47  ;;  %v3942_v47 = vor.u32 %v4876_v61, %v3941_v16  ;;  %v6618_v16 = vshrl.u32 %v5346_v56, 16 }
  0xd2   : > { %v968_v32 = vrot.slane %v6617_v10, 4 }
  0xd3   : > { %v6133_v20 = vpop.f32.mrf.mxu0  ;;  %v962_v61 = vrot.slane %v6618_v16, 4  ;;  %v4806_v16 = vld [vmem:[#allocation2 + $0x98] sm:$0xf0] }
  0xd4   : > { %v969_v14 = vor.u32 %v968_v32, %v966_v55 }
  0xd5   : > { %v964_v24 = vor.u32 %v963_v51, %v962_v61 }
  0xd6   : > { %1929 = vmatmul.bf16.gmra.mxu1 %v3938_v15  ;;  %v6135_v25 = vpop.f32.mrf.mxu3  ;;  %v970_v58 = vrot.slane %v969_v14, 4  ;;  %v4877_v15 = vld [vmem:[#allocation2 + $0xac] sm:$0xf]  ;;  %v6145_v42 = vpop.f32.mrf.mxu2  ;;  %v4879_v14 = vld [vmem:[#allocation2 + $0xb8] sm:$0xf0] }
  0xd7   : > { %v3950_v10 = vor.u32 %v4877_v15, %v3947_v18  ;;  %v4233_v18 = vld [vmem:[#allocation2 + $0x90] sm:$0xf] }
  0xd8   : > { %v1101_v57 = vsel %vm5955_vm11, %v970_v58, %v1100_v21  ;;  %v6139_v63 = vpop.f32.mrf.mxu1  ;;  %v6621_v58 = vshll.u32 %v5534_v9, 16 }
  0xd9   : > { %1102 = vst [vmem:[#allocation2 + $0xec] sm:$0xf] %v1101_v57  ;;  %v3954_v57 = vor.u32 %v4879_v14, %v3953_v5  ;;  %v4880_v14 = vld [vmem:[#allocation2 + $0xc4] sm:$0xf] }
  0xda   : > { %v975_v21 = vrot.slane %v6621_v58, 5  ;;  %v6624_v58 = vshrl.u32 %v5520_v41, 16 }
  0xdb   : > { %v6147_v32 = vpop.f32.mrf.mxu0 }
  0xdc   : > { %2018 = vmatmul.bf16.gmra.mxu2 %v3942_v47  ;;  %v965_v47 = vrot.slane %v964_v24, 4 }
  0xde   : > { %v6149_v2 = vpop.f32.mrf.mxu3  ;;  %v967_v59 = vsel %vm5925_vm10, %v965_v47, %v966_v55  ;;  %v4808_v55 = vld [vmem:[#allocation2 + $0xac] sm:$0xf]  ;;  %v4234_v47 = vor.u32 %v4806_v16, %v4233_v18  ;;  %v4990_v18 = vld [vmem:[%s6522_s3 + $0x1d8] sm:$0xff] }
  0xdf   : > { %6620 = vst [vmem:[#allocation3_spill] sm:$0xff] %v6149_v2  ;;  %3348 = vmatpush.bf16.msra.mxu3 %v4990_v18 }
  0xe0   : > { %2507 = vmatmul.bf16.gmra.mxu3 %v4222_v1  ;;  %v1158_v26 = vld [vmem:[#allocation2 + $0xec] sm:$0x8]  ;;  %1099 = vst [vmem:[#allocation2 + $0xe0] sm:$0xf] %v967_v59  ;;  %v6622_v1 = vshrl.u32 %v5534_v9, 16  ;;  %v6159_v61 = vpop.f32.mrf.mxu1 }
  0xe1   : > { %2601 = vmatmul.bf16.gmra.mxu0 %v4238_v34  ;;  %v1159_v56 = vsel %vm5978_vm14, 0, %v1158_v26  ;;  %v4250_v26 = vor.u32 %v4808_v55, %v4247_v52 }
  0xe2   : > { %v977_v34 = vrot.slane %v6622_v1, 4  ;;  %1160 = vst [vmem:[#allocation2 + $0xec] sm:$0x8] %v1159_v56  ;;  %v3959_v56 = vld [vmem:[#allocation2 + $0xcc] sm:$0xf0]  ;;  %v971_v1 = vrot.slane %v6624_v58, 4 }
  0xe3   : > { %v3962_v55 = vor.u32 %v4880_v14, %v3959_v56  ;;  %v4882_v58 = vld [vmem:[#allocation2 + $0xd0] sm:$0xf0] }
  0xe4   : > { %v978_v15 = vor.u32 %v977_v34, %v975_v21  ;;  %v6625_v34 = vshll.u32 %v5520_v41, 16  ;;  %v4854_v41 = vld [vmem:[%s6522_s3 + $0x98] sm:$0xff] }
  0xe5   : > { %2656 = vmatpush.bf16.msra.mxu1 %v4854_v41 }
  0xe6   : > { %1934 = vmatmul.bf16.gmra.mxu1 %v3950_v10  ;;  %v979_v51 = vrot.slane %v978_v15, 4  ;;  %v6161_v24 = vpop.f32.mrf.mxu2  ;;  %v1104_v10 = vld [vmem:[#allocation2 + $0x104] sm:$0xf]  ;;  %v972_v15 = vrot.slane %v6625_v34, 5  ;;  %v6626_v34 = vshll.u32 %v5722_v30, 16 }
  0xe8   : > { %v1105_v59 = vsel %vm5955_vm11, %v979_v51, %v1104_v10  ;;  %v973_v16 = vor.u32 %v972_v15, %v971_v1  ;;  %v4998_v10 = vld [vmem:[%s6522_s3 + $0x218] sm:$0xff]  ;;  %v984_v15 = vrot.slane %v6626_v34, 5 }
  0xe9   : > { %1106 = vst [vmem:[#allocation2 + $0x104] sm:$0xf] %v1105_v59  ;;  %v3965_v59 = vld [vmem:[#allocation2 + $0xc8] sm:$0xf]  ;;  %3437 = vmatpush.bf16.msra.mxu0 %v4998_v10  ;;  %v4259_v10 = vld [vmem:[#allocation2 + $0xcc] sm:$0xf0] }
  0xea   : > { %v974_v51 = vrot.slane %v973_v16, 4  ;;  %v3966_v16 = vor.u32 %v4882_v58, %v3965_v59  ;;  %v4883_v58 = vld [vmem:[#allocation2 + $0xdc] sm:$0xf] }
  0xec   : > { %2023 = vmatmul.bf16.gmra.mxu2 %v3954_v57  ;;  %v6165_v9 = vpop.f32.mrf.mxu0  ;;  %v6167_v5 = vpop.f32.mrf.mxu3  ;;  %v4982_v57 = vld [vmem:[%s6522_s3 + $0x198] sm:$0xff]  ;;  %v976_v14 = vsel %vm5925_vm10, %v974_v51, %v975_v21  ;;  %v4245_v21 = vld [vmem:[#allocation2 + $0xa8] sm:$0xf]  ;;  %v4809_v51 = vld [vmem:[#allocation2 + $0xb0] sm:$0xf0] }
  0xed   : > { %6623 = vst [vmem:[#allocation4_spill] sm:$0xff] %v6167_v5  ;;  %3259 = vmatpush.bf16.msra.mxu2 %v4982_v57  ;;  %v6627_v57 = vshrl.u32 %v5722_v30, 16  ;;  %v4246_v3 = vor.u32 %v4809_v51, %v4245_v21 }
  0xee   : > { %1103 = vst [vmem:[#allocation2 + $0xf8] sm:$0xf] %v976_v14 }
  0xef   : > { %v986_v18 = vrot.slane %v6627_v57, 4  ;;  %v6629_v57 = vshrl.u32 %v5720_v27, 16 }
  0xf0   : > { %2512 = vmatmul.bf16.gmra.mxu3 %v4234_v47  ;;  %v6187_v47 = vpop.f32.mrf.mxu2  ;;  %v1161_v56 = vld [vmem:[#allocation2 + $0x104] sm:$0x8] }
  0xf1   : > { %2606 = vmatmul.bf16.gmra.mxu0 %v4250_v26  ;;  %v1162_v1 = vsel %vm5978_vm14, 0, %v1161_v56  ;;  %v987_v39 = vor.u32 %v986_v18, %v984_v15  ;;  %v1108_v56 = vld [vmem:[#allocation2 + $0x11c] sm:$0xf]  ;;  %v980_v18 = vrot.slane %v6629_v57, 4 }
  0xf2   : > { %1163 = vst [vmem:[#allocation2 + $0x104] sm:$0x8] %v1162_v1  ;;  %v3971_v1 = vld [vmem:[#allocation2 + $0xe4] sm:$0xf0] }
  0xf3   : > { %v6179_v52 = vpop.f32.mrf.mxu1  ;;  %v988_v14 = vrot.slane %v987_v39, 4  ;;  %v6630_v39 = vshll.u32 %v5720_v27, 16  ;;  %v3974_v21 = vor.u32 %v4883_v58, %v3971_v1 }
  0xf4   : > { %v6189_v26 = vpop.f32.mrf.mxu0  ;;  %v6199_v54 = vpop.f32.mrf.mxu3 }
  0xf5   : > { %6628 = vst [vmem:[#allocation5_spill] sm:$0xff] %v6199_v54  ;;  %v1109_v30 = vsel %vm5955_vm11, %v988_v14, %v1108_v56  ;;  %v981_v4 = vrot.slane %v6630_v39, 5  ;;  %v3977_v14 = vld [vmem:[#allocation2 + $0xe0] sm:$0xf]  ;;  %v4885_v56 = vld [vmem:[#allocation2 + $0xe8] sm:$0xf0] }
  0xf6   : > { %1939 = vmatmul.bf16.gmra.mxu1 %v3962_v55  ;;  %v4811_v55 = vld [vmem:[#allocation2 + $0xc4] sm:$0xf]  ;;  %1110 = vst [vmem:[#allocation2 + $0x11c] sm:$0xf] %v1109_v30  ;;  %v3978_v1 = vor.u32 %v4885_v56, %v3977_v14  ;;  %v4814_v39 = vld [vmem:[#allocation2 + $0xdc] sm:$0xf] }
  0xf7   : > { %v4262_v34 = vor.u32 %v4811_v55, %v4259_v10  ;;  %v4886_v56 = vld [vmem:[#allocation2 + $0xf4] sm:$0xf] }
  0xfb   : > { %v6201_v45 = vpop.f32.mrf.mxu1 }
  0xfc   : > { %2028 = vmatmul.bf16.gmra.mxu2 %v3966_v16  ;;  %v982_v16 = vor.u32 %v981_v4, %v980_v18  ;;  %v993_v4 = vrot.slane %v688_v50, 5  ;;  %v4812_v18 = vld [vmem:[#allocation2 + $0xc8] sm:$0xf0] }
  0xfd   : > { %v1164_v0 = vld [vmem:[#allocation2 + $0x11c] sm:$0x8] }
  0xfe   : > { %v6205_v41 = vpop.f32.mrf.mxu0  ;;  %v983_v10 = vrot.slane %v982_v16, 4  ;;  %v1165_v27 = vsel %vm5978_vm14, 0, %v1164_v0  ;;  %v4271_v16 = vld [vmem:[#allocation2 + $0xe4] sm:$0xf0]  ;;  %v1112_v0 = vld [vmem:[#allocation2 + $0x134] sm:$0xf] }
  0xff   : > { %v6207_v59 = vpop.f32.mrf.mxu2  ;;  %1166 = vst [vmem:[#allocation2 + $0x11c] sm:$0x8] %v1165_v27  ;;  %v4274_v50 = vor.u32 %v4814_v39, %v4271_v16 }
 0x100   : > { %2517 = vmatmul.bf16.gmra.mxu3 %v4246_v3  ;;  %v985_v30 = vsel %vm5925_vm10, %v983_v10, %v984_v15  ;;  %v6632_v3 = vshrl.u32 %v5880_v23, 16  ;;  %v4257_v15 = vld [vmem:[#allocation2 + $0xc0] sm:$0xf] }
 0x101   : > { %2611 = vmatmul.bf16.gmra.mxu0 %v4262_v34  ;;  %1107 = vst [vmem:[#allocation2 + $0x110] sm:$0xf] %v985_v30 }
 0x102   : > { %v995_v34 = vrot.slane %v6632_v3, 4 }
 0x103   : > { %v6213_v51 = vpop.f32.mrf.mxu3  ;;  %v1905_v55 = vpop.f32.mrf.mxu1 }
 0x104   : > { %6631 = vst [vmem:[#allocation6_spill] sm:$0xff] %v6213_v51  ;;  %v996_v57 = vor.u32 %v995_v34, %v993_v4  ;;  %v4258_v51 = vor.u32 %v4812_v18, %v4257_v15  ;;  %v1906_v3 = vadd.f32 %v1905_v55, %v6056_v53  ;;  %v3983_v34 = vld [vmem:[#allocation2 + $0xfc] sm:$0xf0]  ;;  %v4981_v15 = vld [vmem:[%s6522_s3 + $0x190] sm:$0xff] }
 0x105   : > { %v4989_v53 = vld [vmem:[%s6522_s3 + $0x1d0] sm:$0xff]  ;;  %v3986_v18 = vor.u32 %v4886_v56, %v3983_v34  ;;  %3260 = vmatpush.bf16.msra.mxu2 %v4981_v15  ;;  %v6636_v56 = vshll.u32 %v5426_v40, 16 }
 0x106   : > { %1944 = vmatmul.bf16.gmra.mxu1 %v3974_v21  ;;  %v6217_v28 = vpop.f32.mrf.mxu0  ;;  %v997_v21 = vrot.slane %v996_v57, 4  ;;  %v6634_v57 = vshrl.u32 %v5876_v11, 16  ;;  %3349 = vmatpush.bf16.msra.mxu3 %v4989_v53 }
 0x107   : > { %v6225_v58 = vpop.f32.mrf.mxu2  ;;  %v1002_v34 = vrot.slane %v6636_v56, 5  ;;  %v1116_v56 = vld [vmem:[#allocation2 + $0x14c] sm:$0xf] }
 0x108   : > { %v1113_v23 = vsel %vm5955_vm11, %v997_v21, %v1112_v0  ;;  %v989_v54 = vrot.slane %v6634_v57, 4  ;;  %v6637_v57 = vshrl.u32 %v5426_v40, 16 }
 0x109   : > { %1114 = vst [vmem:[#allocation2 + $0x134] sm:$0xf] %v1113_v23  ;;  %v3989_v23 = vld [vmem:[#allocation2 + $0xf8] sm:$0xf] }
 0x10b   : > { %v6227_v10 = vpop.f32.mrf.mxu3  ;;  %v1907_v30 = vpop.f32.mrf.mxu1 }
 0x10c   : > { %6633 = vst [vmem:[#allocation7_spill] sm:$0xff] %v6227_v10  ;;  %2033 = vmatmul.bf16.gmra.mxu2 %v3978_v1  ;;  %v6635_v10 = vshll.u32 %v5876_v11, 16  ;;  %v1908_v0 = vadd.f32 %v1907_v30, %v6071_v13  ;;  %v1004_v13 = vrot.slane %v6637_v57, 4  ;;  %v3995_v57 = vld [vmem:[#allocation2 + $0x114] sm:$0xf0] }
 0x10e   : > { %v6232_v27 = vpop.f32.mrf.mxu0  ;;  %v990_v5 = vrot.slane %v6635_v10, 5  ;;  %v4997_v10 = vld [vmem:[%s6522_s3 + $0x210] sm:$0xff]  ;;  %v1005_v53 = vor.u32 %v1004_v13, %v1002_v34  ;;  %v6638_v13 = vshrl.u32 %v5419_v37, 16 }
 0x10f   : > { %v1994_v14 = vpop.f32.mrf.mxu2  ;;  %3438 = vmatpush.bf16.msra.mxu0 %v4997_v10 }
 0x110   : > { %2522 = vmatmul.bf16.gmra.mxu3 %v4258_v51  ;;  %v1995_v1 = vadd.f32 %v1994_v14, %v1906_v3  ;;  %v991_v55 = vor.u32 %v990_v5, %v989_v54  ;;  %v4853_v51 = vld [vmem:[%s6522_s3 + $0x90] sm:$0xff]  ;;  %v1006_v10 = vrot.slane %v1005_v53, 4 }
 0x111   : > { %2616 = vmatmul.bf16.gmra.mxu0 %v4274_v50  ;;  %v4888_v50 = vld [vmem:[#allocation2 + $0x100] sm:$0xf0]  ;;  %v1167_v5 = vld [vmem:[#allocation2 + $0x134] sm:$0x8]  ;;  %2657 = vmatpush.bf16.msra.mxu1 %v4853_v51 }
 0x112   : > { %v992_v21 = vrot.slane %v991_v55, 4  ;;  %v1168_v14 = vsel %vm5978_vm14, 0, %v1167_v5  ;;  %v3990_v15 = vor.u32 %v4888_v50, %v3989_v23  ;;  %v4269_v55 = vld [vmem:[#allocation2 + $0xd8] sm:$0xf] }
 0x113   : > { %v2483_v39 = vpop.f32.mrf.mxu3  ;;  %v1910_v16 = vpop.f32.mrf.mxu1  ;;  %1169 = vst [vmem:[#allocation2 + $0x134] sm:$0x8] %v1168_v14  ;;  %v4889_v14 = vld [vmem:[#allocation2 + $0x10c] sm:$0xf] }
 0x114   : > { %v2484_v11 = vadd.f32 %v2483_v39, %v1995_v1  ;;  %v994_v54 = vsel %vm5925_vm10, %v992_v21, %v993_v4  ;;  %v4817_v39 = vld [vmem:[#allocation2 + $0xf4] sm:$0xf]  ;;  %v4283_v21 = vld [vmem:[#allocation2 + $0xfc] sm:$0xf0]  ;;  %v1911_v51 = vadd.f32 %v1910_v16, %v6083_v38  ;;  %v3998_v38 = vor.u32 %v4889_v14, %v3995_v57 }
 0x115   : > { %1111 = vst [vmem:[#allocation2 + $0x128] sm:$0xf] %v994_v54 }
 0x116   : > { %1949 = vmatmul.bf16.gmra.mxu1 %v3986_v18  ;;  %v6253_v3 = vpop.f32.mrf.mxu0  ;;  %v6262_v30 = vadd.f32 %v6205_v41, %v2484_v11  ;;  %v4815_v18 = vld [vmem:[#allocation2 + $0xe0] sm:$0xf0]  ;;  %v1117_v41 = vsel %vm5955_vm11, %v1006_v10, %v1116_v56  ;;  %v4286_v11 = vor.u32 %v4817_v39, %v4283_v21  ;;  %v4891_v10 = vld [vmem:[#allocation2 + $0x118] sm:$0xf0] }
 0x117   : > { %v1996_v1 = vpop.f32.mrf.mxu2  ;;  %v4270_v40 = vor.u32 %v4815_v18, %v4269_v55  ;;  %1118 = vst [vmem:[#allocation2 + $0x14c] sm:$0xf] %v1117_v41  ;;  %v6640_v41 = vshll.u32 %v5616_v43, 16 }
 0x118   : > { %v1997_v4 = vadd.f32 %v1996_v1, %v1908_v0  ;;  %v998_v1 = vrot.slane %v6638_v13, 4  ;;  %v4281_v13 = vld [vmem:[#allocation2 + $0xf0] sm:$0xf] }
 0x11b   : > { %v2485_v54 = vpop.f32.mrf.mxu3  ;;  %v1912_v5 = vpop.f32.mrf.mxu1 }
 0x11c   : > { %v2486_v2 = vadd.f32 %v2485_v54, %v1997_v4  ;;  %2038 = vmatmul.bf16.gmra.mxu2 %v3990_v15  ;;  %v6639_v4 = vshll.u32 %v5419_v37, 16 }
 0x11e   : > { %v6267_v0 = vpop.f32.mrf.mxu0  ;;  %v6270_v23 = vadd.f32 %v6217_v28, %v2486_v2  ;;  %v999_v15 = vrot.slane %v6639_v4, 5  ;;  %v1913_v28 = vadd.f32 %v1912_v5, %v6101_v6  ;;  %v4001_v2 = vld [vmem:[#allocation2 + $0x110] sm:$0xf]  ;;  %v1170_v56 = vld [vmem:[#allocation2 + $0x14c] sm:$0x8] }
 0x11f   : > { %v1999_v50 = vpop.f32.mrf.mxu2  ;;  %v4002_v14 = vor.u32 %v4891_v10, %v4001_v2  ;;  %v4820_v4 = vld [vmem:[#allocation2 + $0x10c] sm:$0xf] }
 0x120   : > { %2527 = vmatmul.bf16.gmra.mxu3 %v4270_v40  ;;  %v2000_v53 = vadd.f32 %v1999_v50, %v1911_v51  ;;  %v1000_v55 = vor.u32 %v999_v15, %v998_v1  ;;  %v1171_v40 = vsel %vm5978_vm14, 0, %v1170_v56  ;;  %v6641_v51 = vshrl.u32 %v5616_v43, 16  ;;  %v4818_v1 = vld [vmem:[#allocation2 + $0xf8] sm:$0xf0]  ;;  %v4295_v15 = vld [vmem:[#allocation2 + $0x114] sm:$0xf0] }
 0x121   : > { %2621 = vmatmul.bf16.gmra.mxu0 %v4286_v11  ;;  %v1011_v11 = vrot.slane %v6640_v41, 5  ;;  %1172 = vst [vmem:[#allocation2 + $0x14c] sm:$0x8] %v1171_v40  ;;  %v4282_v43 = vor.u32 %v4818_v1, %v4281_v13  ;;  %v4892_v40 = vld [vmem:[#allocation2 + $0x124] sm:$0xf] }
 0x122   : > { %v1001_v39 = vrot.slane %v1000_v55, 4  ;;  %v1013_v50 = vrot.slane %v6641_v51, 4  ;;  %v4007_v41 = vld [vmem:[#allocation2 + $0x12c] sm:$0xf0]  ;;  %v6642_v51 = vshrl.u32 %v5605_v22, 16 }
 0x123   : > { %v2488_v16 = vpop.f32.mrf.mxu3  ;;  %v1915_v18 = vpop.f32.mrf.mxu1 }
 0x124   : > { %v2489_v21 = vadd.f32 %v2488_v16, %v2000_v53  ;;  %v1003_v54 = vsel %vm5925_vm10, %v1001_v39, %v1002_v34  ;;  %v1014_v57 = vor.u32 %v1013_v50, %v1011_v11  ;;  %v1120_v16 = vld [vmem:[#allocation2 + $0x164] sm:$0xf]  ;;  %v1007_v50 = vrot.slane %v6642_v51, 4 }
 0x125   : > { %1115 = vst [vmem:[#allocation2 + $0x140] sm:$0xf] %v1003_v54 }
 0x126   : > { %1954 = vmatmul.bf16.gmra.mxu1 %v3998_v38  ;;  %v6279_v37 = vpop.f32.mrf.mxu0  ;;  %v6288_v6 = vadd.f32 %v6232_v27, %v2489_v21  ;;  %v1015_v53 = vrot.slane %v1014_v57, 4  ;;  %v4298_v21 = vor.u32 %v4820_v4, %v4295_v15  ;;  %v4852_v15 = vld [vmem:[%s6522_s3 + $0x88] sm:$0xff] }
 0x127   : > { %v2001_v5 = vpop.f32.mrf.mxu2  ;;  %2658 = vmatpush.bf16.msra.mxu1 %v4852_v15 }
 0x128   : > { %v2002_v34 = vadd.f32 %v2001_v5, %v1913_v28  ;;  %v1121_v27 = vsel %vm5955_vm11, %v1015_v53, %v1120_v16  ;;  %v1916_v28 = vadd.f32 %v1915_v18, %v6133_v20  ;;  %v4980_v20 = vld [vmem:[%s6522_s3 + $0x188] sm:$0xff] }
 0x129   : > { %1122 = vst [vmem:[#allocation2 + $0x164] sm:$0xf] %v1121_v27  ;;  %3261 = vmatpush.bf16.msra.mxu2 %v4980_v20  ;;  %v4996_v53 = vld [vmem:[%s6522_s3 + $0x208] sm:$0xff]  ;;  %v6644_v27 = vshll.u32 %v5755_v33, 16  ;;  %v4307_v20 = vld [vmem:[#allocation2 + $0x12c] sm:$0xf0] }
 0x12a   : > { %3439 = vmatpush.bf16.msra.mxu0 %v4996_v53 }
 0x12b   : > { %v2490_v55 = vpop.f32.mrf.mxu3  ;;  %v1917_v38 = vpop.f32.mrf.mxu1 }
 0x12c   : > { %v2491_v39 = vadd.f32 %v2490_v55, %v2002_v34  ;;  %2043 = vmatmul.bf16.gmra.mxu2 %v4002_v14  ;;  %v1918_v54 = vadd.f32 %v1917_v38, %v6147_v32  ;;  %v6643_v32 = vshll.u32 %v5605_v22, 16  ;;  %v4010_v14 = vor.u32 %v4892_v40, %v4007_v41  ;;  %v4013_v55 = vld [vmem:[#allocation2 + $0x128] sm:$0xf]  ;;  %v4894_v38 = vld [vmem:[#allocation2 + $0x130] sm:$0xf0] }
 0x12d   : > { %v4014_v51 = vor.u32 %v4894_v38, %v4013_v55  ;;  %v4895_v55 = vld [vmem:[#allocation2 + $0x13c] sm:$0xf]  ;;  %v4019_v38 = vld [vmem:[#allocation2 + $0x144] sm:$0xf0] }
 0x12e   : > { %v6294_v2 = vpop.f32.mrf.mxu0  ;;  %v6297_v10 = vadd.f32 %v6253_v3, %v2491_v39  ;;  %v1008_v5 = vrot.slane %v6643_v32, 5  ;;  %v4988_v3 = vld [vmem:[%s6522_s3 + $0x1c8] sm:$0xff] }
 0x12f   : > { %v2004_v56 = vpop.f32.mrf.mxu2  ;;  %3350 = vmatpush.bf16.msra.mxu3 %v4988_v3  ;;  %v4293_v32 = vld [vmem:[#allocation2 + $0x108] sm:$0xf] }
 0x130   : > { %2532 = vmatmul.bf16.gmra.mxu3 %v4282_v43  ;;  %v2005_v34 = vadd.f32 %v2004_v56, %v1916_v28  ;;  %v1009_v18 = vor.u32 %v1008_v5, %v1007_v50  ;;  %v1173_v39 = vld [vmem:[#allocation2 + $0x164] sm:$0x8]  ;;  %v6645_v28 = vshrl.u32 %v5755_v33, 16  ;;  %v4821_v5 = vld [vmem:[#allocation2 + $0x110] sm:$0xf0] }
 0x131   : > { %2626 = vmatmul.bf16.gmra.mxu0 %v4298_v21  ;;  %v1020_v21 = vrot.slane %v6644_v27, 5  ;;  %v4294_v33 = vor.u32 %v4821_v5, %v4293_v32  ;;  %v4897_v32 = vld [vmem:[#allocation2 + $0x148] sm:$0xf0] }
 0x132   : > { %v1010_v1 = vrot.slane %v1009_v18, 4  ;;  %v1022_v56 = vrot.slane %v6645_v28, 4 }
 0x133   : > { %v2493_v57 = vpop.f32.mrf.mxu3  ;;  %v1920_v13 = vpop.f32.mrf.mxu1 }
 0x134   : > { %v2494_v22 = vadd.f32 %v2493_v57, %v2005_v34  ;;  %v1921_v4 = vadd.f32 %v1920_v13, %v6165_v9  ;;  %v1012_v16 = vsel %vm5925_vm10, %v1010_v1, %v1011_v11  ;;  %v1174_v9 = vsel %vm5978_vm14, 0, %v1173_v39  ;;  %v4823_v34 = vld [vmem:[#allocation2 + $0x124] sm:$0xf]  ;;  %v1124_v57 = vld [vmem:[#allocation2 + $0x17c] sm:$0xf] }
 0x135   : > { %1119 = vst [vmem:[#allocation2 + $0x158] sm:$0xf] %v1012_v16  ;;  %v1023_v50 = vor.u32 %v1022_v56, %v1020_v21  ;;  %v6646_v16 = vshrl.u32 %v5753_v46, 16  ;;  %v4022_v56 = vor.u32 %v4895_v55, %v4019_v38  ;;  %v4826_v55 = vld [vmem:[#allocation2 + $0x13c] sm:$0xf] }
 0x136   : > { %1959 = vmatmul.bf16.gmra.mxu1 %v4010_v14  ;;  %v6318_v43 = vpop.f32.mrf.mxu0  ;;  %v6327_v40 = vadd.f32 %v6267_v0, %v2494_v22  ;;  %1175 = vst [vmem:[#allocation2 + $0x164] sm:$0x8] %v1174_v9  ;;  %v4310_v22 = vor.u32 %v4823_v34, %v4307_v20  ;;  %v6647_v9 = vshll.u32 %v5753_v46, 16  ;;  %v4319_v38 = vld [vmem:[#allocation2 + $0x144] sm:$0xf0] }
 0x137   : > { %v2006_v41 = vpop.f32.mrf.mxu2  ;;  %v1024_v3 = vrot.slane %v1023_v50, 4  ;;  %v1016_v39 = vrot.slane %v6646_v16, 4 }
 0x138   : > { %v2007_v11 = vadd.f32 %v2006_v41, %v1918_v54  ;;  %v1017_v27 = vrot.slane %v6647_v9, 5 }
 0x139   : > { %v1125_v1 = vsel %vm5955_vm11, %v1024_v3, %v1124_v57 }
 0x13a   : > { %1126 = vst [vmem:[#allocation2 + $0x17c] sm:$0xf] %v1125_v1  ;;  %v1018_v28 = vor.u32 %v1017_v27, %v1016_v39  ;;  %v1128_v27 = vld [vmem:[#allocation2 + $0x194] sm:$0xf] }
 0x13b   : > { %v2495_v18 = vpop.f32.mrf.mxu3  ;;  %v1922_v14 = vpop.f32.mrf.mxu1 }
 0x13c   : > { %v2496_v13 = vadd.f32 %v2495_v18, %v2007_v11  ;;  %2048 = vmatmul.bf16.gmra.mxu2 %v4014_v51  ;;  %v1923_v0 = vadd.f32 %v1922_v14, %v6189_v26  ;;  %v1019_v51 = vrot.slane %v1018_v28, 4  ;;  %v6649_v18 = vshrl.u32 %v5895_v17, 16 }
 0x13d   : > { %v4322_v28 = vor.u32 %v4826_v55, %v4319_v38 }
 0x13e   : > { %v6332_v54 = vpop.f32.mrf.mxu0  ;;  %v6335_v15 = vadd.f32 %v6279_v37, %v2496_v13  ;;  %v4025_v37 = vld [vmem:[#allocation2 + $0x140] sm:$0xf]  ;;  %v1021_v5 = vsel %vm5925_vm10, %v1019_v51, %v1020_v21  ;;  %v1031_v14 = vrot.slane %v6649_v18, 4 }
 0x13f   : > { %v2009_v53 = vpop.f32.mrf.mxu2  ;;  %1123 = vst [vmem:[#allocation2 + $0x170] sm:$0xf] %v1021_v5 }
 0x140   : > { %2537 = vmatmul.bf16.gmra.mxu3 %v4294_v33  ;;  %v2010_v26 = vadd.f32 %v2009_v53, %v1921_v4  ;;  %v6648_v4 = vshll.u32 %v5895_v17, 16  ;;  %v4026_v33 = vor.u32 %v4897_v32, %v4025_v37  ;;  %v4824_v53 = vld [vmem:[#allocation2 + $0x128] sm:$0xf0]  ;;  %v4031_v37 = vld [vmem:[#allocation2 + $0x15c] sm:$0xf0]  ;;  %v6650_v32 = vshrl.u32 %v5893_v60, 16 }
 0x141   : > { %2631 = vmatmul.bf16.gmra.mxu0 %v4310_v22  ;;  %v1176_v34 = vld [vmem:[#allocation2 + $0x17c] sm:$0x8]  ;;  %v4305_v22 = vld [vmem:[#allocation2 + $0x120] sm:$0xf] }
 0x142   : > { %v1177_v46 = vsel %vm5978_vm14, 0, %v1176_v34  ;;  %v1029_v3 = vrot.slane %v6648_v4, 5  ;;  %v4306_v17 = vor.u32 %v4824_v53, %v4305_v22  ;;  %v1025_v5 = vrot.slane %v6650_v32, 4  ;;  %v4900_v22 = vld [vmem:[#allocation2 + $0x160] sm:$0xf0] }
 0x143   : > { %v2498_v41 = vpop.f32.mrf.mxu3  ;;  %v1925_v11 = vpop.f32.mrf.mxu1  ;;  %1178 = vst [vmem:[#allocation2 + $0x17c] sm:$0x8] %v1177_v46  ;;  %v6651_v34 = vshll.u32 %v5893_v60, 16 }
 0x144   : > { %v2499_v50 = vadd.f32 %v2498_v41, %v2010_v26  ;;  %v1032_v1 = vor.u32 %v1031_v14, %v1029_v3 }
 0x145   : > { %v1026_v46 = vrot.slane %v6651_v34, 5  ;;  %v4901_v34 = vld [vmem:[#allocation2 + $0x16c] sm:$0xf] }
 0x146   : > { %1964 = vmatmul.bf16.gmra.mxu1 %v4022_v56  ;;  %v6343_v20 = vpop.f32.mrf.mxu0  ;;  %v6352_v57 = vadd.f32 %v6294_v2, %v2499_v50  ;;  %v1033_v16 = vrot.slane %v1032_v1, 4  ;;  %v1926_v56 = vadd.f32 %v1925_v11, %v6069_v48  ;;  %v4898_v50 = vld [vmem:[#allocation2 + $0x154] sm:$0xf]  ;;  %v4979_v48 = vld [vmem:[%s6522_s3 + $0x180] sm:$0xff]  ;;  %v4037_v1 = vld [vmem:[#allocation2 + $0x158] sm:$0xf] }
 0x147   : > { %v2011_v13 = vpop.f32.mrf.mxu2  ;;  %v1027_v11 = vor.u32 %v1026_v46, %v1025_v5  ;;  %v4034_v4 = vor.u32 %v4898_v50, %v4031_v37  ;;  %3262 = vmatpush.bf16.msra.mxu2 %v4979_v48  ;;  %v4043_v46 = vld [vmem:[#allocation2 + $0x174] sm:$0xf0] }
 0x148   : > { %v2012_v21 = vadd.f32 %v2011_v13, %v1923_v0  ;;  %v1129_v2 = vsel %vm5955_vm11, %v1033_v16, %v1128_v27  ;;  %v4046_v48 = vor.u32 %v4901_v34, %v4043_v46 }
 0x149   : > { %1130 = vst [vmem:[#allocation2 + $0x194] sm:$0xf] %v1129_v2  ;;  %v1028_v13 = vrot.slane %v1027_v11, 4  ;;  %v4038_v2 = vor.u32 %v4900_v22, %v4037_v1  ;;  %v4329_v1 = vld [vmem:[#allocation2 + $0x150] sm:$0xf] }
 0x14a   : > { %v4830_v22 = vld [vmem:[#allocation2 + $0x158] sm:$0xf0] }
 0x14b   : > { %v2500_v39 = vpop.f32.mrf.mxu3  ;;  %v1927_v9 = vpop.f32.mrf.mxu1  ;;  %v1030_v53 = vsel %vm5925_vm10, %v1028_v13, %v1029_v3  ;;  %v4827_v3 = vld [vmem:[#allocation2 + $0x140] sm:$0xf0]  ;;  %v4903_v13 = vld [vmem:[#allocation2 + $0x178] sm:$0xf0] }
 0x14c   : > { %v2501_v26 = vadd.f32 %v2500_v39, %v2012_v21  ;;  %2053 = vmatmul.bf16.gmra.mxu2 %v4026_v33  ;;  %v4851_v21 = vld [vmem:[%s6522_s3 + $0x80] sm:$0xff]  ;;  %v1928_v38 = vadd.f32 %v1927_v9, %v6079_v49  ;;  %1127 = vst [vmem:[#allocation2 + $0x188] sm:$0xf] %v1030_v53  ;;  %v4318_v50 = vor.u32 %v4827_v3, %v4317_v44  ;;  %v4832_v53 = vld [vmem:[#allocation2 + $0x16c] sm:$0xf] }
 0x14d   : > { %v4995_v33 = vld [vmem:[%s6522_s3 + $0x200] sm:$0xff]  ;;  %2659 = vmatpush.bf16.msra.mxu1 %v4851_v21 }
 0x14e   : > { %v6357_v0 = vpop.f32.mrf.mxu0  ;;  %v6360_v41 = vadd.f32 %v6318_v43, %v2501_v26  ;;  %v4987_v43 = vld [vmem:[%s6522_s3 + $0x1c0] sm:$0xff]  ;;  %3440 = vmatpush.bf16.msra.mxu0 %v4995_v33 }
 0x14f   : > { %v2014_v51 = vpop.f32.mrf.mxu2  ;;  %3351 = vmatpush.bf16.msra.mxu3 %v4987_v43 }
 0x150   : > { %2542 = vmatmul.bf16.gmra.mxu3 %v4306_v17  ;;  %v2015_v12 = vadd.f32 %v2014_v51, %v1926_v56  ;;  %v1179_v55 = vld [vmem:[#allocation2 + $0x194] sm:$0x8]  ;;  %v4331_v56 = vld [vmem:[#allocation2 + $0x15c] sm:$0xf0] }
 0x151   : > { %2636 = vmatmul.bf16.gmra.mxu0 %v4322_v28  ;;  %v1180_v39 = vsel %vm5978_vm14, 0, %v1179_v55  ;;  %v4829_v28 = vld [vmem:[#allocation2 + $0x154] sm:$0xf]  ;;  %v4343_v55 = vld [vmem:[#allocation2 + $0x174] sm:$0xf0] }
 0x152   : > { %1181 = vst [vmem:[#allocation2 + $0x194] sm:$0x8] %v1180_v39  ;;  %v4334_v37 = vor.u32 %v4829_v28, %v4331_v56  ;;  %v4904_v28 = vld [vmem:[#allocation2 + $0x184] sm:$0xf]  ;;  %v4055_v56 = vld [vmem:[#allocation2 + $0x18c] sm:$0xf0] }
 0x153   : > { %v2503_v18 = vpop.f32.mrf.mxu3  ;;  %v1930_v14 = vpop.f32.mrf.mxu1 }
 0x154   : > { %v2504_v60 = vadd.f32 %v2503_v18, %v2015_v12  ;;  %v1931_v62 = vadd.f32 %v1930_v14, %v6095_v19  ;;  %v4049_v18 = vld [vmem:[#allocation2 + $0x170] sm:$0xf] }
 0x155   : > { %v4050_v33 = vor.u32 %v4903_v13, %v4049_v18  ;;  %v4933_v18 = vld [vmem:[#allocation2 + $0x40] sm:$0xf0] }
 0x156   : > { %1969 = vmatmul.bf16.gmra.mxu1 %v4034_v4  ;;  %v2599_v16 = vpop.f32.mrf.mxu0  ;;  %v6384_v27 = vadd.f32 %v6332_v54, %v2504_v60 }
 0x157   : > { %v2016_v26 = vpop.f32.mrf.mxu2 }
 0x158   : > { %v2017_v17 = vadd.f32 %v2016_v26, %v1928_v38 }
 0x15b   : > { %v2505_v49 = vpop.f32.mrf.mxu3  ;;  %v1932_v9 = vpop.f32.mrf.mxu1 }
 0x15c   : > { %v2506_v51 = vadd.f32 %v2505_v49, %v2017_v17  ;;  %2058 = vmatmul.bf16.gmra.mxu2 %v4038_v2  ;;  %v1933_v60 = vadd.f32 %v1932_v9, %v6121_v36  ;;  %v4330_v17 = vor.u32 %v4830_v22, %v4329_v1  ;;  %v4346_v2 = vor.u32 %v4832_v53, %v4343_v55  ;;  %v4169_v53 = vld [vmem:[#allocation2 + $0x8] sm:$0xf]  ;;  %v4789_v55 = vld [vmem:[#allocation2 + $0x10] sm:$0xf0] }
 0x15d   : > { %v4058_v9 = vor.u32 %v4904_v28, %v4055_v56 }
 0x15e   : > { %v2602_v32 = vpop.f32.mrf.mxu0  ;;  %v6388_v54 = vadd.f32 %v6343_v20, %v2506_v51 }
 0x15f   : > { %v2019_v5 = vpop.f32.mrf.mxu2 }
 0x160   : > { %2547 = vmatmul.bf16.gmra.mxu3 %v4318_v50  ;;  %v2020_v12 = vadd.f32 %v2019_v5, %v1931_v62  ;;  %v4061_v62 = vld [vmem:[#allocation2 + $0x188] sm:$0xf]  ;;  %v4906_v5 = vld [vmem:[#allocation2 + $0x190] sm:$0xf0] }
 0x161   : > { %2641 = vmatmul.bf16.gmra.mxu0 %v4334_v37 }
 0x163   : > { %v2508_v43 = vpop.f32.mrf.mxu3  ;;  %v1935_v11 = vpop.f32.mrf.mxu1 }
 0x164   : > { %v2509_v4 = vadd.f32 %v2508_v43, %v2020_v12  ;;  %v1936_v36 = vadd.f32 %v1935_v11, %v6139_v63  ;;  %v4341_v43 = vld [vmem:[#allocation2 + $0x168] sm:$0xf]  ;;  %v4833_v11 = vld [vmem:[#allocation2 + $0x170] sm:$0xf0] }
 0x166   : > { %1974 = vmatmul.bf16.gmra.mxu1 %v4046_v48  ;;  %v2604_v19 = vpop.f32.mrf.mxu0  ;;  %v6392_v14 = vadd.f32 %v6357_v0, %v2509_v4  ;;  %v4062_v48 = vor.u32 %v4906_v5, %v4061_v62  ;;  %v4505_v4 = vld [vmem:[#allocation2 + $0x38] sm:$0xf]  ;;  %v4936_v62 = vld [vmem:[#allocation2 + $0x58] sm:$0xf0] }
 0x167   : > { %v2021_v20 = vpop.f32.mrf.mxu2 }
 0x168   : > { %v2022_v21 = vadd.f32 %v2021_v20, %v1933_v60 }
 0x16b   : > { %v2510_v38 = vpop.f32.mrf.mxu3  ;;  %v1937_v39 = vpop.f32.mrf.mxu1 }
 0x16c   : > { %v2511_v26 = vadd.f32 %v2510_v38, %v2022_v21  ;;  %2063 = vmatmul.bf16.gmra.mxu2 %v4050_v33  ;;  %v1938_v34 = vadd.f32 %v1937_v39, %v6159_v61  ;;  %v4342_v21 = vor.u32 %v4833_v11, %v4341_v43  ;;  %v4506_v33 = vor.u32 %v4933_v18, %v4505_v4  ;;  %v4181_v4 = vld [vmem:[#allocation2 + $0x20] sm:$0xf]  ;;  %v4792_v18 = vld [vmem:[#allocation2 + $0x28] sm:$0xf0] }
 0x16d   : > { %v4170_v39 = vor.u32 %v4789_v55, %v4169_v53 }
 0x16e   : > { %v2607_v44 = vpop.f32.mrf.mxu0  ;;  %v6395_v3 = vadd.f32 %v2599_v16, %v2511_v26 }
 0x16f   : > { %v2024_v0 = vpop.f32.mrf.mxu2 }
 0x170   : > { %2552 = vmatmul.bf16.gmra.mxu3 %v4330_v17  ;;  %v2025_v49 = vadd.f32 %v2024_v0, %v1936_v36  ;;  %v4497_v36 = vld [vmem:[#allocation2 + $0x30] sm:$0xf]  ;;  %v4932_v0 = vld [vmem:[#allocation2 + $0x38] sm:$0xf0] }
 0x171   : > { %2646 = vmatmul.bf16.gmra.mxu0 %v4346_v2 }
 0x173   : > { %v2513_v51 = vpop.f32.mrf.mxu3  ;;  %v1940_v50 = vpop.f32.mrf.mxu1 }
 0x174   : > { %v2514_v37 = vadd.f32 %v2513_v51, %v2025_v49  ;;  %v1941_v1 = vadd.f32 %v1940_v50, %v6179_v52  ;;  %v4931_v51 = vld [vmem:[#allocation2 + $0x34] sm:$0xf]  ;;  %v4499_v50 = vld [vmem:[#allocation2 + $0x3c] sm:$0xf0] }
 0x176   : > { %1979 = vmatmul.bf16.gmra.mxu1 %v4058_v9  ;;  %v2609_v46 = vpop.f32.mrf.mxu0  ;;  %v6398_v63 = vadd.f32 %v2602_v32, %v2514_v37  ;;  %v4498_v9 = vor.u32 %v4932_v0, %v4497_v36  ;;  %v4517_v37 = vld [vmem:[#allocation2 + $0x50] sm:$0xf]  ;;  %v4939_v36 = vld [vmem:[#allocation2 + $0x70] sm:$0xf0] }
 0x177   : > { %v2026_v16 = vpop.f32.mrf.mxu2 }
 0x178   : > { %v2027_v12 = vadd.f32 %v2026_v16, %v1938_v34 }
 0x17b   : > { %v2515_v13 = vpop.f32.mrf.mxu3  ;;  %v1942_v60 = vpop.f32.mrf.mxu1 }
 0x17c   : > { %v2516_v20 = vadd.f32 %v2515_v13, %v2027_v12  ;;  %2068 = vmatmul.bf16.gmra.mxu2 %v4062_v48  ;;  %v1943_v28 = vadd.f32 %v1942_v60, %v6201_v45  ;;  %v4502_v12 = vor.u32 %v4931_v51, %v4499_v50  ;;  %v4518_v48 = vor.u32 %v4936_v62, %v4517_v37  ;;  %v4193_v37 = vld [vmem:[#allocation2 + $0x38] sm:$0xf]  ;;  %v4795_v62 = vld [vmem:[#allocation2 + $0x40] sm:$0xf0] }
 0x17d   : > { %v4182_v60 = vor.u32 %v4792_v18, %v4181_v4 }
 0x17e   : > { %v2612_v61 = vpop.f32.mrf.mxu0  ;;  %v6401_v22 = vadd.f32 %v2604_v19, %v2516_v20 }
 0x17f   : > { %v2029_v32 = vpop.f32.mrf.mxu2 }
 0x180   : > { %2557 = vmatmul.bf16.gmra.mxu3 %v4342_v21  ;;  %v2030_v38 = vadd.f32 %v2029_v32, %v1941_v1  ;;  %v4509_v1 = vld [vmem:[#allocation2 + $0x48] sm:$0xf]  ;;  %v4935_v32 = vld [vmem:[#allocation2 + $0x50] sm:$0xf0] }
 0x181   : > { %3441 = vmatmul.bf16.vlgmr.msra.gmra.mxu0 %v4506_v33 }
 0x183   : > { %v2518_v26 = vpop.f32.mrf.mxu3  ;;  %v1945_v17 = vpop.f32.mrf.mxu1 }
 0x184   : > { %v2519_v2 = vadd.f32 %v2518_v26, %v2030_v38  ;;  %v1946_v43 = vadd.f32 %v1945_v17, %v6081_v7  ;;  %v4934_v26 = vld [vmem:[#allocation2 + $0x4c] sm:$0xf]  ;;  %v4511_v17 = vld [vmem:[#allocation2 + $0x54] sm:$0xf0] }
 0x186   : > { %2660 = vmatmul.bf16.vlgmr.msra.gmra.mxu1 %v4170_v39  ;;  %v2614_v56 = vpop.f32.mrf.mxu0  ;;  %v6404_v52 = vadd.f32 %v2607_v44, %v2519_v2  ;;  %v4510_v39 = vor.u32 %v4935_v32, %v4509_v1  ;;  %v4529_v2 = vld [vmem:[#allocation2 + $0x68] sm:$0xf]  ;;  %v4942_v1 = vld [vmem:[#allocation2 + $0x88] sm:$0xf0] }
 0x187   : > { %v2031_v19 = vpop.f32.mrf.mxu2 }
 0x188   : > { %v2032_v49 = vadd.f32 %v2031_v19, %v1943_v28 }
 0x18b   : > { %v2520_v5 = vpop.f32.mrf.mxu3  ;;  %v1947_v34 = vpop.f32.mrf.mxu1 }
 0x18c   : > { %v2521_v16 = vadd.f32 %v2520_v5, %v2032_v49  ;;  %3263 = vmatmul.bf16.vlgmr.msra.gmra.mxu2 %v4498_v9  ;;  %v1948_v53 = vadd.f32 %v1947_v34, %v6099_v29  ;;  %v4514_v49 = vor.u32 %v4934_v26, %v4511_v17  ;;  %v4530_v9 = vor.u32 %v4939_v36, %v4529_v2  ;;  %v4205_v2 = vld [vmem:[#allocation2 + $0x50] sm:$0xf]  ;;  %v4798_v36 = vld [vmem:[#allocation2 + $0x58] sm:$0xf0] }
 0x18d   : > { %v4194_v34 = vor.u32 %v4795_v62, %v4193_v37 }
 0x18e   : > { %v2617_v45 = vpop.f32.mrf.mxu0  ;;  %v6407_v11 = vadd.f32 %v2609_v46, %v2521_v16 }
 0x18f   : > { %v2034_v44 = vpop.f32.mrf.mxu2 }
 0x190   : > { %3352 = vmatmul.bf16.vlgmr.msra.gmra.mxu3 %v4502_v12  ;;  %v2035_v13 = vadd.f32 %v2034_v44, %v1946_v43  ;;  %v4521_v43 = vld [vmem:[#allocation2 + $0x60] sm:$0xf]  ;;  %v4938_v44 = vld [vmem:[#allocation2 + $0x68] sm:$0xf0] }
 0x191   : > { %3446 = vmatmul.bf16.gmra.mxu0 %v4518_v48 }
 0x193   : > { %v2523_v20 = vpop.f32.mrf.mxu3  ;;  %v1950_v21 = vpop.f32.mrf.mxu1 }
 0x194   : > { %v2524_v33 = vadd.f32 %v2523_v20, %v2035_v13  ;;  %v1951_v51 = vadd.f32 %v1950_v21, %v6125_v8  ;;  %v4937_v20 = vld [vmem:[#allocation2 + $0x64] sm:$0xf]  ;;  %v4523_v21 = vld [vmem:[#allocation2 + $0x6c] sm:$0xf0] }
 0x196   : > { %2665 = vmatmul.bf16.gmra.mxu1 %v4182_v60  ;;  %v2619_v55 = vpop.f32.mrf.mxu0  ;;  %v6410_v7 = vadd.f32 %v2612_v61, %v2524_v33  ;;  %v4522_v60 = vor.u32 %v4938_v44, %v4521_v43  ;;  %v4541_v33 = vld [vmem:[#allocation2 + $0x80] sm:$0xf]  ;;  %v4945_v43 = vld [vmem:[#allocation2 + $0xa0] sm:$0xf0] }
 0x197   : > { %v2036_v46 = vpop.f32.mrf.mxu2 }
 0x198   : > { %v2037_v38 = vadd.f32 %v2036_v46, %v1948_v53 }
 0x19b   : > { %v2525_v0 = vpop.f32.mrf.mxu3  ;;  %v1952_v28 = vpop.f32.mrf.mxu1 }
 0x19c   : > { %v2526_v19 = vadd.f32 %v2525_v0, %v2037_v38  ;;  %3268 = vmatmul.bf16.gmra.mxu2 %v4510_v39  ;;  %v1953_v4 = vadd.f32 %v1952_v28, %v6145_v42  ;;  %v4526_v38 = vor.u32 %v4937_v20, %v4523_v21  ;;  %v4542_v39 = vor.u32 %v4942_v1, %v4541_v33  ;;  %v4217_v33 = vld [vmem:[#allocation2 + $0x68] sm:$0xf]  ;;  %v4801_v1 = vld [vmem:[#allocation2 + $0x70] sm:$0xf0] }
 0x19d   : > { %v4206_v28 = vor.u32 %v4798_v36, %v4205_v2 }
 0x19e   : > { %v2622_v29 = vpop.f32.mrf.mxu0  ;;  %v6413_v50 = vadd.f32 %v2614_v56, %v2526_v19 }
 0x19f   : > { %v2039_v61 = vpop.f32.mrf.mxu2 }
 0x1a0   : > { %3357 = vmatmul.bf16.gmra.mxu3 %v4514_v49  ;;  %v2040_v5 = vadd.f32 %v2039_v61, %v1951_v51  ;;  %v4533_v51 = vld [vmem:[#allocation2 + $0x78] sm:$0xf]  ;;  %v4941_v61 = vld [vmem:[#allocation2 + $0x80] sm:$0xf0] }
 0x1a1   : > { %3451 = vmatmul.bf16.gmra.mxu0 %v4530_v9 }
 0x1a3   : > { %v2528_v16 = vpop.f32.mrf.mxu3  ;;  %v1955_v12 = vpop.f32.mrf.mxu1 }
 0x1a4   : > { %v2529_v48 = vadd.f32 %v2528_v16, %v2040_v5  ;;  %v1956_v26 = vadd.f32 %v1955_v12, %v6161_v24  ;;  %v4940_v16 = vld [vmem:[#allocation2 + $0x7c] sm:$0xf]  ;;  %v4535_v12 = vld [vmem:[#allocation2 + $0x84] sm:$0xf0] }
 0x1a6   : > { %2670 = vmatmul.bf16.gmra.mxu1 %v4194_v34  ;;  %v2624_v18 = vpop.f32.mrf.mxu0  ;;  %v6416_v8 = vadd.f32 %v2617_v45, %v2529_v48  ;;  %v4534_v34 = vor.u32 %v4941_v61, %v4533_v51  ;;  %v4553_v48 = vld [vmem:[#allocation2 + $0x98] sm:$0xf]  ;;  %v4948_v51 = vld [vmem:[#allocation2 + $0xb8] sm:$0xf0] }
 0x1a7   : > { %v2041_v56 = vpop.f32.mrf.mxu2 }
 0x1a8   : > { %v2042_v13 = vadd.f32 %v2041_v56, %v1953_v4 }
 0x1ab   : > { %v2530_v32 = vpop.f32.mrf.mxu3  ;;  %v1957_v53 = vpop.f32.mrf.mxu1 }
 0x1ac   : > { %v2531_v46 = vadd.f32 %v2530_v32, %v2042_v13  ;;  %3273 = vmatmul.bf16.gmra.mxu2 %v4522_v60  ;;  %v1958_v37 = vadd.f32 %v1957_v53, %v6187_v47  ;;  %v4538_v13 = vor.u32 %v4940_v16, %v4535_v12  ;;  %v4554_v60 = vor.u32 %v4945_v43, %v4553_v48  ;;  %v4229_v48 = vld [vmem:[#allocation2 + $0x80] sm:$0xf]  ;;  %v4804_v43 = vld [vmem:[#allocation2 + $0x88] sm:$0xf0] }
 0x1ad   : > { %v4218_v53 = vor.u32 %v4801_v1, %v4217_v33 }
 0x1ae   : > { %v2627_v42 = vpop.f32.mrf.mxu0  ;;  %v6419_v17 = vadd.f32 %v2619_v55, %v2531_v46 }
 0x1af   : > { %v2044_v45 = vpop.f32.mrf.mxu2 }
 0x1b0   : > { %3362 = vmatmul.bf16.gmra.mxu3 %v4526_v38  ;;  %v2045_v0 = vadd.f32 %v2044_v45, %v1956_v26  ;;  %v4545_v26 = vld [vmem:[#allocation2 + $0x90] sm:$0xf]  ;;  %v4944_v45 = vld [vmem:[#allocation2 + $0x98] sm:$0xf0] }
 0x1b1   : > { %3456 = vmatmul.bf16.gmra.mxu0 %v4542_v39 }
 0x1b3   : > { %v2533_v19 = vpop.f32.mrf.mxu3  ;;  %v1960_v49 = vpop.f32.mrf.mxu1 }
 0x1b4   : > { %v2534_v9 = vadd.f32 %v2533_v19, %v2045_v0  ;;  %v1961_v20 = vadd.f32 %v1960_v49, %v6207_v59  ;;  %v4943_v19 = vld [vmem:[#allocation2 + $0x94] sm:$0xf]  ;;  %v4547_v49 = vld [vmem:[#allocation2 + $0x9c] sm:$0xf0] }
 0x1b6   : > { %2675 = vmatmul.bf16.gmra.mxu1 %v4206_v28  ;;  %v2629_v62 = vpop.f32.mrf.mxu0  ;;  %v6422_v24 = vadd.f32 %v2622_v29, %v2534_v9  ;;  %v4546_v28 = vor.u32 %v4944_v45, %v4545_v26  ;;  %v4565_v9 = vld [vmem:[#allocation2 + $0xb0] sm:$0xf]  ;;  %v4951_v26 = vld [vmem:[#allocation2 + $0xd0] sm:$0xf0] }
 0x1b7   : > { %v2046_v55 = vpop.f32.mrf.mxu2 }
 0x1b8   : > { %v2047_v5 = vadd.f32 %v2046_v55, %v1958_v37 }
 0x1bb   : > { %v2535_v44 = vpop.f32.mrf.mxu3  ;;  %v1962_v4 = vpop.f32.mrf.mxu1 }
 0x1bc   : > { %v2536_v56 = vadd.f32 %v2535_v44, %v2047_v5  ;;  %3278 = vmatmul.bf16.gmra.mxu2 %v4534_v34  ;;  %v1963_v2 = vadd.f32 %v1962_v4, %v6225_v58  ;;  %v4550_v5 = vor.u32 %v4943_v19, %v4547_v49  ;;  %v4566_v34 = vor.u32 %v4948_v51, %v4565_v9  ;;  %v4241_v9 = vld [vmem:[#allocation2 + $0x98] sm:$0xf]  ;;  %v4807_v51 = vld [vmem:[#allocation2 + $0xa0] sm:$0xf0] }
 0x1bd   : > { %v4230_v4 = vor.u32 %v4804_v43, %v4229_v48  ;;  %v6652_v48 = vld [vmem:[#allocation3_spill] sm:$0xff] }
 0x1be   : > { %v2632_v47 = vpop.f32.mrf.mxu0  ;;  %v6425_v21 = vadd.f32 %v2624_v18, %v2536_v56 }
 0x1bf   : > { %v2049_v29 = vpop.f32.mrf.mxu2 }
 0x1c0   : > { %3367 = vmatmul.bf16.gmra.mxu3 %v4538_v13  ;;  %v2050_v32 = vadd.f32 %v2049_v29, %v1961_v20  ;;  %v4557_v20 = vld [vmem:[#allocation2 + $0xa8] sm:$0xf]  ;;  %v4947_v29 = vld [vmem:[#allocation2 + $0xb0] sm:$0xf0] }
 0x1c1   : > { %3461 = vmatmul.bf16.gmra.mxu0 %v4554_v60 }
 0x1c3   : > { %v2538_v46 = vpop.f32.mrf.mxu3  ;;  %v1965_v38 = vpop.f32.mrf.mxu1 }
 0x1c4   : > { %v2539_v39 = vadd.f32 %v2538_v46, %v2050_v32  ;;  %v1966_v16 = vadd.f32 %v1965_v38, %v6093_v31  ;;  %v4946_v46 = vld [vmem:[#allocation2 + $0xac] sm:$0xf]  ;;  %v4559_v38 = vld [vmem:[#allocation2 + $0xb4] sm:$0xf0] }
 0x1c6   : > { %2680 = vmatmul.bf16.gmra.mxu1 %v4218_v53  ;;  %v2634_v36 = vpop.f32.mrf.mxu0  ;;  %v6428_v59 = vadd.f32 %v2627_v42, %v2539_v39  ;;  %v4558_v53 = vor.u32 %v4947_v29, %v4557_v20  ;;  %v4577_v39 = vld [vmem:[#allocation2 + $0xc8] sm:$0xf]  ;;  %v4589_v20 = vld [vmem:[#allocation2 + $0xe0] sm:$0xf]  ;;  %v4954_v29 = vld [vmem:[#allocation2 + $0xe8] sm:$0xf0] }
 0x1c7   : > { %v2051_v18 = vpop.f32.mrf.mxu2 }
 0x1c8   : > { %v2052_v0 = vadd.f32 %v2051_v18, %v1963_v2 }
 0x1cb   : > { %v2540_v61 = vpop.f32.mrf.mxu3  ;;  %v1967_v37 = vpop.f32.mrf.mxu1 }
 0x1cc   : > { %v2541_v55 = vadd.f32 %v2540_v61, %v2052_v0  ;;  %3283 = vmatmul.bf16.gmra.mxu2 %v4546_v28  ;;  %v1968_v33 = vadd.f32 %v1967_v37, %v6116_v35  ;;  %v4562_v0 = vor.u32 %v4946_v46, %v4559_v38  ;;  %v4578_v28 = vor.u32 %v4951_v26, %v4577_v39  ;;  %v6653_v38 = vld [vmem:[#allocation4_spill] sm:$0xff] }
 0x1cd   : > { %v4242_v37 = vor.u32 %v4807_v51, %v4241_v9  ;;  %v4590_v46 = vor.u32 %v4954_v29, %v4589_v20  ;;  %v4581_v51 = vld [vmem:[#allocation2 + $0xd8] sm:$0xf] }
 0x1ce   : > { %v2637_v58 = vpop.f32.mrf.mxu0  ;;  %v6431_v12 = vadd.f32 %v2629_v62, %v2541_v55 }
 0x1cf   : > { %v2054_v42 = vpop.f32.mrf.mxu2 }
 0x1d0   : > { %3372 = vmatmul.bf16.gmra.mxu3 %v4550_v5  ;;  %v2055_v44 = vadd.f32 %v2054_v42, %v1966_v16  ;;  %v4569_v16 = vld [vmem:[#allocation2 + $0xc0] sm:$0xf]  ;;  %v4950_v42 = vld [vmem:[#allocation2 + $0xc8] sm:$0xf0] }
 0x1d1   : > { %3466 = vmatmul.bf16.gmra.mxu0 %v4566_v34 }
 0x1d3   : > { %v2543_v56 = vpop.f32.mrf.mxu3  ;;  %v1970_v13 = vpop.f32.mrf.mxu1 }
 0x1d4   : > { %v2544_v60 = vadd.f32 %v2543_v56, %v2055_v44  ;;  %v1971_v19 = vadd.f32 %v1970_v13, %v6135_v25  ;;  %v4570_v56 = vor.u32 %v4950_v42, %v4569_v16  ;;  %v4949_v13 = vld [vmem:[#allocation2 + $0xc4] sm:$0xf] }
 0x1d6   : > { %2685 = vmatmul.bf16.gmra.mxu1 %v4230_v4  ;;  %v2639_v1 = vpop.f32.mrf.mxu0  ;;  %v6434_v31 = vadd.f32 %v2632_v47, %v2544_v60  ;;  %v4571_v60 = vld [vmem:[#allocation2 + $0xcc] sm:$0xf0] }
 0x1d7   : > { %v2056_v62 = vpop.f32.mrf.mxu2 }
 0x1d8   : > { %v2057_v32 = vadd.f32 %v2056_v62, %v1968_v33 }
 0x1db   : > { %v2545_v45 = vpop.f32.mrf.mxu3  ;;  %v1972_v2 = vpop.f32.mrf.mxu1 }
 0x1dc   : > { %v2546_v18 = vadd.f32 %v2545_v45, %v2057_v32  ;;  %3288 = vmatmul.bf16.gmra.mxu2 %v4558_v53  ;;  %v1973_v43 = vadd.f32 %v1972_v2, %v6652_v48  ;;  %v4574_v53 = vor.u32 %v4949_v13, %v4571_v60  ;;  %v4253_v2 = vld [vmem:[#allocation2 + $0xb0] sm:$0xf]  ;;  %v4952_v48 = vld [vmem:[#allocation2 + $0xdc] sm:$0xf] }
 0x1de   : > { %v2642_v35 = vpop.f32.mrf.mxu0  ;;  %v6437_v49 = vadd.f32 %v2634_v36, %v2546_v18  ;;  %v4810_v18 = vld [vmem:[#allocation2 + $0xb8] sm:$0xf0] }
 0x1df   : > { %v2059_v47 = vpop.f32.mrf.mxu2 }
 0x1e0   : > { %3377 = vmatmul.bf16.gmra.mxu3 %v4562_v0  ;;  %v2060_v61 = vadd.f32 %v2059_v47, %v1971_v19 }
 0x1e1   : > { %3471 = vmatmul.bf16.gmra.mxu0 %v4578_v28  ;;  %v4254_v28 = vor.u32 %v4810_v18, %v4253_v2 }
 0x1e3   : > { %v2548_v55 = vpop.f32.mrf.mxu3  ;;  %v1975_v5 = vpop.f32.mrf.mxu1 }
 0x1e4   : > { %v2549_v34 = vadd.f32 %v2548_v55, %v2060_v61  ;;  %v1976_v39 = vadd.f32 %v1975_v5, %v6653_v38  ;;  %v4953_v61 = vld [vmem:[#allocation2 + $0xe0] sm:$0xf0]  ;;  %v4813_v38 = vld [vmem:[#allocation2 + $0xd0] sm:$0xf0] }
 0x1e5   : > { %v4582_v42 = vor.u32 %v4953_v61, %v4581_v51 }
 0x1e6   : > { %2690 = vmatmul.bf16.gmra.mxu1 %v4242_v37  ;;  %v2644_v44 = vpop.f32.mrf.mxu0  ;;  %v6440_v25 = vadd.f32 %v2637_v58, %v2549_v34  ;;  %v6654_v37 = vld [vmem:[#allocation5_spill] sm:$0xff] }
 0x1e7   : > { %v2061_v36 = vpop.f32.mrf.mxu2 }
 0x1e8   : > { %v2062_v4 = vadd.f32 %v2061_v36, %v1973_v43  ;;  %v4583_v43 = vld [vmem:[#allocation2 + $0xe4] sm:$0xf0]  ;;  %v4601_v36 = vld [vmem:[#allocation2 + $0xf8] sm:$0xf] }
 0x1e9   : > { %v4586_v20 = vor.u32 %v4952_v48, %v4583_v43  ;;  %v4960_v48 = vld [vmem:[#allocation2 + $0x118] sm:$0xf0] }
 0x1eb   : > { %v2550_v33 = vpop.f32.mrf.mxu3  ;;  %v1977_v62 = vpop.f32.mrf.mxu1 }
 0x1ec   : > { %v2551_v32 = vadd.f32 %v2550_v33, %v2062_v4  ;;  %3293 = vmatmul.bf16.gmra.mxu2 %v4570_v56  ;;  %v1978_v55 = vadd.f32 %v1977_v62, %v6654_v37  ;;  %v4957_v4 = vld [vmem:[#allocation2 + $0x100] sm:$0xf0]  ;;  %v6655_v33 = vld [vmem:[#allocation6_spill] sm:$0xff] }
 0x1ed   : > { %v4602_v29 = vor.u32 %v4957_v4, %v4601_v36 }
 0x1ee   : > { %v2647_v26 = vpop.f32.mrf.mxu0  ;;  %v6443_v45 = vadd.f32 %v2639_v1, %v2551_v32 }
 0x1ef   : > { %v2064_v58 = vpop.f32.mrf.mxu2 }
 0x1f0   : > { %3382 = vmatmul.bf16.gmra.mxu3 %v4574_v53  ;;  %v2065_v0 = vadd.f32 %v2064_v58, %v1976_v39 }
 0x1f1   : > { %3476 = vmatmul.bf16.gmra.mxu0 %v4590_v46  ;;  %v4265_v46 = vld [vmem:[#allocation2 + $0xc8] sm:$0xf] }
 0x1f2   : > { %v4266_v58 = vor.u32 %v4813_v38, %v4265_v46  ;;  %v4605_v38 = vld [vmem:[#allocation2 + $0x108] sm:$0xf] }
 0x1f3   : > { %v2553_v19 = vpop.f32.mrf.mxu3  ;;  %v1980_v47 = vpop.f32.mrf.mxu1 }
 0x1f4   : > { %v2554_v9 = vadd.f32 %v2553_v19, %v2065_v0  ;;  %v1981_v32 = vadd.f32 %v1980_v47, %v6655_v33  ;;  %v4956_v19 = vld [vmem:[#allocation2 + $0xf8] sm:$0xf0]  ;;  %v4277_v33 = vld [vmem:[#allocation2 + $0xe0] sm:$0xf] }
 0x1f6   : > { %2695 = vmatmul.bf16.gmra.mxu1 %v4254_v28  ;;  %v2649_v34 = vpop.f32.mrf.mxu0  ;;  %v6446_v5 = vadd.f32 %v2642_v35, %v2554_v9  ;;  %v4593_v28 = vld [vmem:[#allocation2 + $0xf0] sm:$0xf] }
 0x1f7   : > { %v2066_v1 = vpop.f32.mrf.mxu2  ;;  %v6656_v9 = vld [vmem:[#allocation7_spill] sm:$0xff] }
 0x1f8   : > { %v2067_v16 = vadd.f32 %v2066_v1, %v1978_v55  ;;  %v4594_v55 = vor.u32 %v4956_v19, %v4593_v28  ;;  %v4955_v1 = vld [vmem:[#allocation2 + $0xf4] sm:$0xf]  ;;  %v4958_v19 = vld [vmem:[#allocation2 + $0x10c] sm:$0xf] }
 0x1fb   : > { %v2555_v56 = vpop.f32.mrf.mxu3  ;;  %v1982_v13 = vpop.f32.mrf.mxu1 }
 0x1fc   : > { %v2556_v60 = vadd.f32 %v2555_v56, %v2067_v16  ;;  %3298 = vmatmul.bf16.gmra.mxu2 %v4582_v42  ;;  %v1983_v51 = vadd.f32 %v1982_v13, %v6656_v9  ;;  %v4595_v16 = vld [vmem:[#allocation2 + $0xfc] sm:$0xf0]  ;;  %v4613_v42 = vld [vmem:[#allocation2 + $0x110] sm:$0xf]  ;;  %v4607_v9 = vld [vmem:[#allocation2 + $0x114] sm:$0xf0] }
 0x1fd   : > { %v4598_v56 = vor.u32 %v4955_v1, %v4595_v16 }
 0x1fe   : > { %v3442_v62 = vpop.f32.mrf.mxu0  ;;  %v6449_v53 = vadd.f32 %v2644_v44, %v2556_v60  ;;  %v4614_v60 = vor.u32 %v4960_v48, %v4613_v42  ;;  %v4610_v42 = vor.u32 %v4958_v19, %v4607_v9 }
 0x1ff   : > { %v2069_v35 = vpop.f32.mrf.mxu2 }
 0x200   : > { %3387 = vmatmul.bf16.gmra.mxu3 %v4586_v20  ;;  %v2070_v39 = vadd.f32 %v2069_v35, %v1981_v32 }
 0x201   : > { %3481 = vmatmul.bf16.gmra.mxu0 %v4602_v29 }
 0x203   : > { %v2558_v2 = vpop.f32.mrf.mxu3  ;;  %v2661_v18 = vpop.f32.mrf.mxu1 }
 0x204   : > { %v2559_v0 = vadd.f32 %v2558_v2, %v2070_v39  ;;  %v4959_v39 = vld [vmem:[#allocation2 + $0x110] sm:$0xf0]  ;;  %v2662_v1 = vadd.f32 %v2661_v18, %v6262_v30 }
 0x205   : > { %v4606_v28 = vor.u32 %v4959_v39, %v4605_v38 }
 0x206   : > { %2700 = vmatmul.bf16.gmra.mxu1 %v4266_v58  ;;  %v3444_v61 = vpop.f32.mrf.mxu0  ;;  %v6452_v47 = vadd.f32 %v2647_v26, %v2559_v0  ;;  %v4816_v26 = vld [vmem:[#allocation2 + $0xe8] sm:$0xf0] }
 0x207   : > { %v2071_v44 = vpop.f32.mrf.mxu2  ;;  %v4278_v32 = vor.u32 %v4816_v26, %v4277_v33  ;;  %v4819_v33 = vld [vmem:[#allocation2 + $0x100] sm:$0xf0] }
 0x208   : > { %v2072_v37 = vadd.f32 %v2071_v44, %v1983_v51  ;;  %v4963_v44 = vld [vmem:[#allocation2 + $0x130] sm:$0xf0] }
 0x20b   : > { %v2560_v43 = vpop.f32.mrf.mxu3  ;;  %v2663_v36 = vpop.f32.mrf.mxu1 }
 0x20c   : > { %v2561_v4 = vadd.f32 %v2560_v43, %v2072_v37  ;;  %3303 = vmatmul.bf16.gmra.mxu2 %v4594_v55 }
 0x20e   : > { %v3447_v20 = vpop.f32.mrf.mxu0  ;;  %v6454_v29 = vadd.f32 %v2649_v34, %v2561_v4  ;;  %v4625_v34 = vld [vmem:[#allocation2 + $0x128] sm:$0xf]  ;;  %v2664_v4 = vadd.f32 %v2663_v36, %v6270_v23 }
 0x20f   : > { %v3264_v13 = vpop.f32.mrf.mxu2  ;;  %v4626_v48 = vor.u32 %v4963_v44, %v4625_v34 }
 0x210   : > { %3392 = vmatmul.bf16.gmra.mxu3 %v4598_v56 }
 0x211   : > { %3486 = vmatmul.bf16.gmra.mxu0 %v4614_v60 }
 0x213   : > { %v3353_v35 = vpop.f32.mrf.mxu3  ;;  %v2666_v46 = vpop.f32.mrf.mxu1 }
 0x214   : > { %v3354_v58 = vadd.f32 %v3353_v35, %v3264_v13  ;;  %v4289_v13 = vld [vmem:[#allocation2 + $0xf8] sm:$0xf] }
 0x215   : > { %v4290_v30 = vor.u32 %v4819_v33, %v4289_v13 }
 0x216   : > { %2705 = vmatmul.bf16.gmra.mxu1 %v4278_v32  ;;  %v3449_v2 = vpop.f32.mrf.mxu0  ;;  %v3443_v51 = vadd.f32 %v3442_v62, %v3354_v58  ;;  %v4617_v58 = vld [vmem:[#allocation2 + $0x120] sm:$0xf] }
 0x217   : > { %v3266_v0 = vpop.f32.mrf.mxu2 }
 0x218   : > { %v3522_v43 = vadd.f32 %v3443_v51, %v2662_v1  ;;  %v4619_v1 = vld [vmem:[#allocation2 + $0x12c] sm:$0xf0] }
 0x21a   : > { %v3591_v18 = vmul.f32 %v3522_v43, %v3522_v43 }
 0x21b   : > { %v3355_v37 = vpop.f32.mrf.mxu3  ;;  %v2668_v55 = vpop.f32.mrf.mxu1 }
 0x21c   : > { %v3356_v16 = vadd.f32 %v3355_v37, %v3266_v0  ;;  %3308 = vmatmul.bf16.gmra.mxu2 %v4606_v28  ;;  %v4962_v0 = vld [vmem:[#allocation2 + $0x128] sm:$0xf0]  ;;  %v2667_v28 = vadd.f32 %v2666_v46, %v6288_v6  ;;  %v4961_v37 = vld [vmem:[#allocation2 + $0x124] sm:$0xf]  ;;  %v2669_v6 = vadd.f32 %v2668_v55, %v6297_v10 }
 0x21d   : > { %v4618_v44 = vor.u32 %v4962_v0, %v4617_v58  ;;  %v4965_v10 = vld [vmem:[#allocation2 + $0x140] sm:$0xf0] }
 0x21e   : > { %v3445_v56 = vadd.f32 %v3444_v61, %v3356_v16  ;;  %v3452_v60 = vpop.f32.mrf.mxu0 }
 0x21f   : > { %v3269_v26 = vpop.f32.mrf.mxu2 }
 0x220   : > { %v3523_v62 = vadd.f32 %v3445_v56, %v2664_v4  ;;  %3397 = vmatmul.bf16.gmra.mxu3 %v4610_v42 }
 0x221   : > { %3491 = vmatmul.bf16.gmra.mxu0 %v4626_v48  ;;  %v4637_v48 = vld [vmem:[#allocation2 + $0x140] sm:$0xf] }
 0x222   : > { %v3554_v32 = vadd.f32 %v3523_v62, %v3522_v43  ;;  %v3592_v35 = vmul.f32 %v3523_v62, %v3523_v62  ;;  %v5070_v23 = vpack.c.bf16 %v3523_v62, %v3522_v43  ;;  %v4966_v43 = vld [vmem:[#allocation2 + $0x148] sm:$0xf0] }
 0x223   : > { %v3358_v61 = vpop.f32.mrf.mxu3  ;;  %v2671_v36 = vpop.f32.mrf.mxu1  ;;  %v4638_v62 = vor.u32 %v4966_v43, %v4637_v48  ;;  %v4964_v48 = vld [vmem:[#allocation2 + $0x13c] sm:$0xf] }
 0x224   : > { %v3623_v38 = vadd.f32 %v3592_v35, %v3591_v18  ;;  %5071 = vst [vmem:[%s6463_s25] sm:$0xff] %v5070_v23   ;;  %v3359_v39 = vadd.f32 %v3358_v61, %v3269_v26  ;;  %v4622_v26 = vor.u32 %v4961_v37, %v4619_v1  ;;  %v4301_v18 = vld [vmem:[#allocation2 + $0x110] sm:$0xf]  ;;  %v4822_v35 = vld [vmem:[#allocation2 + $0x118] sm:$0xf0] }
 0x225   : > { %v4302_v58 = vor.u32 %v4822_v35, %v4301_v18  ;;  %v4313_v35 = vld [vmem:[#allocation2 + $0x128] sm:$0xf] }
 0x226   : > { %v3448_v19 = vadd.f32 %v3447_v20, %v3359_v39  ;;  %2710 = vmatmul.bf16.gmra.mxu1 %v4290_v30  ;;  %v3454_v9 = vpop.f32.mrf.mxu0 }
 0x227   : > { %v3271_v51 = vpop.f32.mrf.mxu2 }
 0x228   : > { %v3524_v34 = vadd.f32 %v3448_v19, %v2667_v28 }
 0x22a   : > { %v3555_v16 = vadd.f32 %v3554_v32, %v3524_v34  ;;  %v3593_v42 = vmul.f32 %v3524_v34, %v3524_v34 }
 0x22b   : > { %v3360_v4 = vpop.f32.mrf.mxu3  ;;  %v2673_v56 = vpop.f32.mrf.mxu1 }
 0x22c   : > { %v3624_v13 = vadd.f32 %v3623_v38, %v3593_v42  ;;  %v3361_v33 = vadd.f32 %v3360_v4, %v3271_v51  ;;  %3313 = vmatmul.bf16.gmra.mxu2 %v4618_v44  ;;  %v4629_v51 = vld [vmem:[#allocation2 + $0x138] sm:$0xf] }
 0x22d   : > { %v4630_v42 = vor.u32 %v4965_v10, %v4629_v51  ;;  %v4649_v4 = vld [vmem:[#allocation2 + $0x158] sm:$0xf] }
 0x22e   : > { %v3450_v20 = vadd.f32 %v3449_v2, %v3361_v33  ;;  %v3457_v46 = vpop.f32.mrf.mxu0  ;;  %v2672_v2 = vadd.f32 %v2671_v36, %v6327_v40  ;;  %v4969_v33 = vld [vmem:[#allocation2 + $0x160] sm:$0xf0]  ;;  %v2674_v40 = vadd.f32 %v2673_v56, %v6335_v15  ;;  %v4968_v15 = vld [vmem:[#allocation2 + $0x158] sm:$0xf0] }
 0x22f   : > { %v3274_v30 = vpop.f32.mrf.mxu2 }
 0x230   : > { %v3525_v23 = vadd.f32 %v3450_v20, %v2669_v6  ;;  %3402 = vmatmul.bf16.gmra.mxu3 %v4622_v26 }
 0x231   : > { %3496 = vmatmul.bf16.gmra.mxu0 %v4638_v62 }
 0x232   : > { %v3556_v32 = vadd.f32 %v3555_v16, %v3525_v23  ;;  %v3594_v61 = vmul.f32 %v3525_v23, %v3525_v23  ;;  %v5075_v39 = vpack.c.bf16 %v3525_v23, %v3524_v34  ;;  %v4631_v16 = vld [vmem:[#allocation2 + $0x144] sm:$0xf0]  ;;  %v4825_v23 = vld [vmem:[#allocation2 + $0x130] sm:$0xf0] }
 0x233   : > { %v3363_v38 = vpop.f32.mrf.mxu3  ;;  %v2676_v0 = vpop.f32.mrf.mxu1  ;;  %v4634_v20 = vor.u32 %v4964_v48, %v4631_v16  ;;  %v4967_v16 = vld [vmem:[#allocation2 + $0x154] sm:$0xf] }
 0x234   : > { %v3625_v28 = vadd.f32 %v3624_v13, %v3594_v61  ;;  %5162 = vst [vmem:[%s6463_s25 + $0x8] sm:$0xff] %v5075_v39   ;;  %v3364_v19 = vadd.f32 %v3363_v38, %v3274_v30  ;;  %v4650_v30 = vor.u32 %v4969_v33, %v4649_v4  ;;  %v4314_v38 = vor.u32 %v4825_v23, %v4313_v35  ;;  %v4661_v4 = vld [vmem:[#allocation2 + $0x170] sm:$0xf]  ;;  %v4972_v33 = vld [vmem:[#allocation2 + $0x178] sm:$0xf0] }
 0x235   : > { %v4828_v35 = vld [vmem:[#allocation2 + $0x148] sm:$0xf0] }
 0x236   : > { %v3453_v55 = vadd.f32 %v3452_v60, %v3364_v19  ;;  %2715 = vmatmul.bf16.gmra.mxu1 %v4302_v58  ;;  %v3459_v44 = vpop.f32.mrf.mxu0 }
 0x237   : > { %v3276_v37 = vpop.f32.mrf.mxu2 }
 0x238   : > { %v3526_v1 = vadd.f32 %v3453_v55, %v2672_v2  ;;  %v4641_v2 = vld [vmem:[#allocation2 + $0x150] sm:$0xf] }
 0x239   : > { %v4642_v48 = vor.u32 %v4968_v15, %v4641_v2  ;;  %v4653_v2 = vld [vmem:[#allocation2 + $0x168] sm:$0xf] }
 0x23a   : > { %v3557_v43 = vadd.f32 %v3556_v32, %v3526_v1  ;;  %v3595_v34 = vmul.f32 %v3526_v1, %v3526_v1 }
 0x23b   : > { %v3365_v26 = vpop.f32.mrf.mxu3  ;;  %v2678_v13 = vpop.f32.mrf.mxu1 }
 0x23c   : > { %v3626_v62 = vadd.f32 %v3625_v28, %v3595_v34  ;;  %v3366_v6 = vadd.f32 %v3365_v26, %v3276_v37  ;;  %3318 = vmatmul.bf16.gmra.mxu2 %v4630_v42 }
 0x23e   : > { %v3455_v60 = vadd.f32 %v3454_v9, %v3366_v6  ;;  %v3462_v36 = vpop.f32.mrf.mxu0  ;;  %v2677_v9 = vadd.f32 %v2676_v0, %v6352_v57  ;;  %v2679_v57 = vadd.f32 %v2678_v13, %v6360_v41  ;;  %v4971_v41 = vld [vmem:[#allocation2 + $0x170] sm:$0xf0] }
 0x23f   : > { %v3279_v18 = vpop.f32.mrf.mxu2 }
 0x240   : > { %v3527_v61 = vadd.f32 %v3455_v60, %v2674_v40  ;;  %3407 = vmatmul.bf16.gmra.mxu3 %v4634_v20  ;;  %v4662_v40 = vor.u32 %v4972_v33, %v4661_v4 }
 0x241   : > { %3501 = vmatmul.bf16.gmra.mxu0 %v4650_v30 }
 0x242   : > { %v3558_v32 = vadd.f32 %v3557_v43, %v3527_v61  ;;  %v3596_v39 = vmul.f32 %v3527_v61, %v3527_v61  ;;  %v5080_v58 = vpack.c.bf16 %v3527_v61, %v3526_v1  ;;  %v4643_v43 = vld [vmem:[#allocation2 + $0x15c] sm:$0xf0] }
 0x243   : > { %v3368_v28 = vpop.f32.mrf.mxu3  ;;  %v2681_v19 = vpop.f32.mrf.mxu1  ;;  %v4646_v30 = vor.u32 %v4967_v16, %v4643_v43  ;;  %v4655_v16 = vld [vmem:[#allocation2 + $0x174] sm:$0xf0] }
 0x244   : > { %v3627_v51 = vadd.f32 %v3626_v62, %v3596_v39  ;;  %5163 = vst [vmem:[%s6463_s25 + $0x10] sm:$0xff] %v5080_v58   ;;  %v3369_v10 = vadd.f32 %v3368_v28, %v3279_v18  ;;  %v4325_v18 = vld [vmem:[#allocation2 + $0x140] sm:$0xf] }
 0x245   : > { %v4326_v58 = vor.u32 %v4828_v35, %v4325_v18 }
 0x246   : > { %v3458_v56 = vadd.f32 %v3457_v46, %v3369_v10  ;;  %2720 = vmatmul.bf16.gmra.mxu1 %v4314_v38  ;;  %v3464_v55 = vpop.f32.mrf.mxu0 }
 0x247   : > { %v3281_v37 = vpop.f32.mrf.mxu2 }
 0x248   : > { %v3528_v42 = vadd.f32 %v3458_v56, %v2677_v9 }
 0x24a   : > { %v3559_v34 = vadd.f32 %v3558_v32, %v3528_v42  ;;  %v3597_v1 = vmul.f32 %v3528_v42, %v3528_v42 }
 0x24b   : > { %v3370_v26 = vpop.f32.mrf.mxu3  ;;  %v2683_v62 = vpop.f32.mrf.mxu1 }
 0x24c   : > { %v3628_v6 = vadd.f32 %v3627_v51, %v3597_v1  ;;  %v3371_v20 = vadd.f32 %v3370_v26, %v3281_v37  ;;  %3323 = vmatmul.bf16.gmra.mxu2 %v4642_v48  ;;  %v4654_v37 = vor.u32 %v4971_v41, %v4653_v2  ;;  %v4970_v48 = vld [vmem:[#allocation2 + $0x16c] sm:$0xf]  ;;  %v4975_v1 = vld [vmem:[#allocation2 + $0x190] sm:$0xf0] }
 0x24e   : > { %v3460_v46 = vadd.f32 %v3459_v44, %v3371_v20  ;;  %v3467_v0 = vpop.f32.mrf.mxu0  ;;  %v2682_v44 = vadd.f32 %v2681_v19, %v6384_v27  ;;  %v4658_v20 = vor.u32 %v4970_v48, %v4655_v16  ;;  %v2684_v27 = vadd.f32 %v2683_v62, %v6388_v54  ;;  %v4974_v54 = vld [vmem:[#allocation2 + $0x188] sm:$0xf0]  ;;  %v4685_v48 = vld [vmem:[#allocation2 + $0x1a0] sm:$0xf] }
 0x24f   : > { %v3284_v60 = vpop.f32.mrf.mxu2  ;;  %v4978_v16 = vld [vmem:[#allocation2 + $0x1a8] sm:$0xf0] }
 0x250   : > { %v3529_v23 = vadd.f32 %v3460_v46, %v2679_v57  ;;  %3412 = vmatmul.bf16.gmra.mxu3 %v4646_v30  ;;  %v4337_v57 = vld [vmem:[#allocation2 + $0x158] sm:$0xf]  ;;  %v4831_v46 = vld [vmem:[#allocation2 + $0x160] sm:$0xf0] }
 0x251   : > { %3506 = vmatmul.bf16.gmra.mxu0 %v4662_v40 }
 0x252   : > { %v3560_v61 = vadd.f32 %v3559_v34, %v3529_v23  ;;  %v3598_v32 = vmul.f32 %v3529_v23, %v3529_v23  ;;  %v5085_v39 = vpack.c.bf16 %v3529_v23, %v3528_v42  ;;  %v4673_v34 = vld [vmem:[#allocation2 + $0x188] sm:$0xf] }
 0x253   : > { %v3373_v38 = vpop.f32.mrf.mxu3  ;;  %v2686_v28 = vpop.f32.mrf.mxu1  ;;  %v4674_v30 = vor.u32 %v4975_v1, %v4673_v34 }
 0x254   : > { %v3629_v51 = vadd.f32 %v3628_v6, %v3598_v32  ;;  %5164 = vst [vmem:[%s6463_s25 + $0x18] sm:$0xff] %v5085_v39   ;;  %v3374_v10 = vadd.f32 %v3373_v38, %v3284_v60 }
 0x256   : > { %v3463_v13 = vadd.f32 %v3462_v36, %v3374_v10  ;;  %2725 = vmatmul.bf16.gmra.mxu1 %v4326_v58  ;;  %v3469_v15 = vpop.f32.mrf.mxu0 }
 0x257   : > { %v3286_v9 = vpop.f32.mrf.mxu2 }
 0x258   : > { %v3530_v56 = vadd.f32 %v3463_v13, %v2682_v44  ;;  %v4973_v13 = vld [vmem:[#allocation2 + $0x184] sm:$0xf] }
 0x25a   : > { %v3561_v43 = vadd.f32 %v3560_v61, %v3530_v56  ;;  %v3599_v42 = vmul.f32 %v3530_v56, %v3530_v56  ;;  %v4338_v61 = vor.u32 %v4831_v46, %v4337_v57 }
 0x25b   : > { %v3375_v4 = vpop.f32.mrf.mxu3  ;;  %v2688_v33 = vpop.f32.mrf.mxu1 }
 0x25c   : > { %v3630_v26 = vadd.f32 %v3629_v51, %v3599_v42  ;;  %v3376_v6 = vadd.f32 %v3375_v4, %v3286_v9  ;;  %3328 = vmatmul.bf16.gmra.mxu2 %v4654_v37  ;;  %v4665_v51 = vld [vmem:[#allocation2 + $0x180] sm:$0xf]  ;;  %v4667_v9 = vld [vmem:[#allocation2 + $0x18c] sm:$0xf0] }
 0x25d   : > { %v4666_v44 = vor.u32 %v4974_v54, %v4665_v51  ;;  %v4670_v4 = vor.u32 %v4973_v13, %v4667_v9  ;;  %v4976_v54 = vld [vmem:[#allocation2 + $0x19c] sm:$0xf] }
 0x25e   : > { %v3465_v36 = vadd.f32 %v3464_v55, %v3376_v6  ;;  %v3472_v19 = vpop.f32.mrf.mxu0  ;;  %v2687_v55 = vadd.f32 %v2686_v28, %v6392_v14  ;;  %v2689_v14 = vadd.f32 %v2688_v33, %v6395_v3  ;;  %v4977_v3 = vld [vmem:[#allocation2 + $0x1a0] sm:$0xf0] }
 0x25f   : > { %v3289_v40 = vpop.f32.mrf.mxu2 }
 0x260   : > { %v3531_v60 = vadd.f32 %v3465_v36, %v2684_v27  ;;  %3417 = vmatmul.bf16.gmra.mxu3 %v4658_v20  ;;  %v4349_v20 = vld [vmem:[#allocation2 + $0x170] sm:$0xf] }
 0x261   : > { %3511 = vmatmul.bf16.gmra.mxu0 %v4674_v30  ;;  %v4834_v30 = vld [vmem:[#allocation2 + $0x178] sm:$0xf0] }
 0x262   : > { %v3562_v18 = vadd.f32 %v3561_v43, %v3531_v60  ;;  %v3600_v35 = vmul.f32 %v3531_v60, %v3531_v60  ;;  %v5090_v23 = vpack.c.bf16 %v3531_v60, %v3530_v56  ;;  %v4350_v46 = vor.u32 %v4834_v30, %v4349_v20 }
 0x263   : > { %v3378_v32 = vpop.f32.mrf.mxu3  ;;  %v2691_v39 = vpop.f32.mrf.mxu1 }
 0x264   : > { %v3631_v58 = vadd.f32 %v3630_v26, %v3600_v35  ;;  %5165 = vst [vmem:[%s6463_s25 + $0x20] sm:$0xff] %v5090_v23   ;;  %v3379_v38 = vadd.f32 %v3378_v32, %v3289_v40  ;;  %v4686_v26 = vor.u32 %v4978_v16, %v4685_v48 }
 0x266   : > { %v3468_v62 = vadd.f32 %v3467_v0, %v3379_v38  ;;  %2730 = vmatmul.bf16.gmra.mxu1 %v4338_v61  ;;  %v3474_v10 = vpop.f32.mrf.mxu0  ;;  %v4677_v61 = vld [vmem:[#allocation2 + $0x198] sm:$0xf] }
 0x267   : > { %v3291_v2 = vpop.f32.mrf.mxu2  ;;  %v4678_v51 = vor.u32 %v4977_v3, %v4677_v61 }
 0x268   : > { %v3532_v41 = vadd.f32 %v3468_v62, %v2687_v55  ;;  %v4679_v55 = vld [vmem:[#allocation2 + $0x1a4] sm:$0xf0] }
 0x26a   : > { %v3563_v37 = vadd.f32 %v3562_v18, %v3532_v41  ;;  %v3601_v56 = vmul.f32 %v3532_v41, %v3532_v41 }
 0x26b   : > { %v3380_v43 = vpop.f32.mrf.mxu3  ;;  %v2693_v42 = vpop.f32.mrf.mxu1 }
 0x26c   : > { %v3632_v34 = vadd.f32 %v3631_v58, %v3601_v56  ;;  %v3381_v1 = vadd.f32 %v3380_v43, %v3291_v2  ;;  %3333 = vmatmul.bf16.gmra.mxu2 %v4666_v44  ;;  %v2694_v56 = vadd.f32 %v2693_v42, %v6401_v22 }
 0x26e   : > { %v3470_v0 = vadd.f32 %v3469_v15, %v3381_v1  ;;  %v3477_v28 = vpop.f32.mrf.mxu0  ;;  %v2692_v15 = vadd.f32 %v2691_v39, %v6398_v63 }
 0x26f   : > { %v3294_v6 = vpop.f32.mrf.mxu2 }
 0x270   : > { %v3533_v27 = vadd.f32 %v3470_v0, %v2689_v14  ;;  %3422 = vmatmul.bf16.gmra.mxu3 %v4670_v4 }
 0x271   : > { %3516 = vmatmul.bf16.gmra.mxu0 %v4686_v26 }
 0x272   : > { %v3564_v36 = vadd.f32 %v3563_v37, %v3533_v27  ;;  %v3602_v40 = vmul.f32 %v3533_v27, %v3533_v27  ;;  %v5095_v57 = vpack.c.bf16 %v3533_v27, %v3532_v41  ;;  %v4682_v37 = vor.u32 %v4976_v54, %v4679_v55 }
 0x273   : > { %v3383_v60 = vpop.f32.mrf.mxu3  ;;  %v2696_v18 = vpop.f32.mrf.mxu1 }
 0x274   : > { %v3633_v35 = vadd.f32 %v3632_v34, %v3602_v40  ;;  %5166 = vst [vmem:[%s6463_s25 + $0x28] sm:$0xff] %v5095_v57   ;;  %v3384_v23 = vadd.f32 %v3383_v60, %v3294_v6  ;;  %v2697_v0 = vadd.f32 %v2696_v18, %v6404_v52 }
 0x276   : > { %v3473_v33 = vadd.f32 %v3472_v19, %v3384_v23  ;;  %2735 = vmatmul.bf16.gmra.mxu1 %v4350_v46  ;;  %v3479_v32 = vpop.f32.mrf.mxu0 }
 0x277   : > { %v3296_v58 = vpop.f32.mrf.mxu2 }
 0x278   : > { %v3534_v38 = vadd.f32 %v3473_v33, %v2692_v15 }
 0x27a   : > { %v3565_v62 = vadd.f32 %v3564_v36, %v3534_v38  ;;  %v3603_v2 = vmul.f32 %v3534_v38, %v3534_v38 }
 0x27b   : > { %v3385_v41 = vpop.f32.mrf.mxu3  ;;  %v2698_v44 = vpop.f32.mrf.mxu1 }
 0x27c   : > { %v3634_v13 = vadd.f32 %v3633_v35, %v3603_v2  ;;  %v3386_v9 = vadd.f32 %v3385_v41, %v3296_v58  ;;  %3338 = vmatmul.bf16.gmra.mxu2 %v4678_v51  ;;  %v2699_v46 = vadd.f32 %v2698_v44, %v6407_v11 }
 0x27e   : > { %v3475_v63 = vadd.f32 %v3474_v10, %v3386_v9  ;;  %v3482_v19 = vpop.f32.mrf.mxu0 }
 0x27f   : > { %v3299_v39 = vpop.f32.mrf.mxu2 }
 0x280   : > { %v3535_v48 = vadd.f32 %v3475_v63, %v2694_v56  ;;  %3427 = vmatmul.bf16.gmra.mxu3 %v4682_v37 }
 0x282   : > { %v3566_v16 = vadd.f32 %v3565_v62, %v3535_v48  ;;  %v3604_v43 = vmul.f32 %v3535_v48, %v3535_v48  ;;  %v5100_v34 = vpack.c.bf16 %v3535_v48, %v3534_v38 }
 0x283   : > { %v3388_v1 = vpop.f32.mrf.mxu3  ;;  %v2701_v4 = vpop.f32.mrf.mxu1 }
 0x284   : > { %v3635_v26 = vadd.f32 %v3634_v13, %v3604_v43  ;;  %5167 = vst [vmem:[%s6463_s25 + $0x30] sm:$0xff] %v5100_v34   ;;  %v3389_v14 = vadd.f32 %v3388_v1, %v3299_v39  ;;  %v2702_v38 = vadd.f32 %v2701_v4, %v6410_v7 }
 0x286   : > { %v3478_v6 = vadd.f32 %v3477_v28, %v3389_v14  ;;  %v3484_v20 = vpop.f32.mrf.mxu0 }
 0x287   : > { %v3301_v30 = vpop.f32.mrf.mxu2 }
 0x288   : > { %v3536_v27 = vadd.f32 %v3478_v6, %v2697_v0 }
 0x28a   : > { %v3567_v22 = vadd.f32 %v3566_v16, %v3536_v27  ;;  %v3605_v10 = vmul.f32 %v3536_v27, %v3536_v27 }
 0x28b   : > { %v3390_v42 = vpop.f32.mrf.mxu3  ;;  %v2703_v36 = vpop.f32.mrf.mxu1 }
 0x28c   : > { %v3636_v40 = vadd.f32 %v3635_v26, %v3605_v10  ;;  %v3391_v57 = vadd.f32 %v3390_v42, %v3301_v30  ;;  %v2704_v9 = vadd.f32 %v2703_v36, %v6413_v50 }
 0x28e   : > { %v3480_v60 = vadd.f32 %v3479_v32, %v3391_v57  ;;  %v3487_v35 = vpop.f32.mrf.mxu0 }
 0x28f   : > { %v3304_v23 = vpop.f32.mrf.mxu2 }
 0x290   : > { %v3537_v61 = vadd.f32 %v3480_v60, %v2699_v46 }
 0x292   : > { %v3568_v3 = vadd.f32 %v3567_v22, %v3537_v61  ;;  %v3606_v15 = vmul.f32 %v3537_v61, %v3537_v61  ;;  %v5105_v52 = vpack.c.bf16 %v3537_v61, %v3536_v27 }
 0x293   : > { %v3393_v28 = vpop.f32.mrf.mxu3  ;;  %v2706_v18 = vpop.f32.mrf.mxu1 }
 0x294   : > { %v3637_v33 = vadd.f32 %v3636_v40, %v3606_v15  ;;  %5168 = vst [vmem:[%s6463_s25 + $0x38] sm:$0xff] %v5105_v52   ;;  %v3394_v58 = vadd.f32 %v3393_v28, %v3304_v23  ;;  %v2707_v4 = vadd.f32 %v2706_v18, %v6416_v8 }
 0x296   : > { %v3483_v51 = vadd.f32 %v3482_v19, %v3394_v58  ;;  %v3489_v54 = vpop.f32.mrf.mxu0 }
 0x297   : > { %v3306_v55 = vpop.f32.mrf.mxu2 }
 0x298   : > { %v3538_v62 = vadd.f32 %v3483_v51, %v2702_v38 }
 0x29a   : > { %v3569_v2 = vadd.f32 %v3568_v3, %v3538_v62  ;;  %v3607_v11 = vmul.f32 %v3538_v62, %v3538_v62 }
 0x29b   : > { %v3395_v32 = vpop.f32.mrf.mxu3  ;;  %v2708_v41 = vpop.f32.mrf.mxu1 }
 0x29c   : > { %v3638_v44 = vadd.f32 %v3637_v33, %v3607_v11  ;;  %v3396_v13 = vadd.f32 %v3395_v32, %v3306_v55  ;;  %v2709_v42 = vadd.f32 %v2708_v41, %v6419_v17 }
 0x29e   : > { %v3485_v37 = vadd.f32 %v3484_v20, %v3396_v13  ;;  %v3492_v56 = vpop.f32.mrf.mxu0 }
 0x29f   : > { %v3309_v63 = vpop.f32.mrf.mxu2 }
 0x2a0   : > { %v3539_v39 = vadd.f32 %v3485_v37, %v2704_v9 }
 0x2a2   : > { %v3570_v48 = vadd.f32 %v3569_v2, %v3539_v39  ;;  %v3608_v16 = vmul.f32 %v3539_v39, %v3539_v39  ;;  %v5110_v7 = vpack.c.bf16 %v3539_v39, %v3538_v62 }
 0x2a3   : > { %v3398_v19 = vpop.f32.mrf.mxu3  ;;  %v2711_v43 = vpop.f32.mrf.mxu1 }
 0x2a4   : > { %v3639_v34 = vadd.f32 %v3638_v44, %v3608_v16  ;;  %5169 = vst [vmem:[%s6463_s25 + $0x40] sm:$0xff] %v5110_v7   ;;  %v3399_v1 = vadd.f32 %v3398_v19, %v3309_v63  ;;  %v2712_v52 = vadd.f32 %v2711_v43, %v6422_v24 }
 0x2a6   : > { %v3488_v26 = vadd.f32 %v3487_v35, %v3399_v1  ;;  %v3494_v6 = vpop.f32.mrf.mxu0 }
 0x2a7   : > { %v3311_v14 = vpop.f32.mrf.mxu2 }
 0x2a8   : > { %v3540_v0 = vadd.f32 %v3488_v26, %v2707_v4 }
 0x2aa   : > { %v3571_v30 = vadd.f32 %v3570_v48, %v3540_v0  ;;  %v3609_v50 = vmul.f32 %v3540_v0, %v3540_v0 }
 0x2ab   : > { %v3400_v20 = vpop.f32.mrf.mxu3  ;;  %v2713_v27 = vpop.f32.mrf.mxu1 }
 0x2ac   : > { %v3640_v22 = vadd.f32 %v3639_v34, %v3609_v50  ;;  %v3401_v10 = vadd.f32 %v3400_v20, %v3311_v14  ;;  %v2714_v2 = vadd.f32 %v2713_v27, %v6425_v21 }
 0x2ae   : > { %v3490_v36 = vadd.f32 %v3489_v54, %v3401_v10  ;;  %v3497_v8 = vpop.f32.mrf.mxu0 }
 0x2af   : > { %v3314_v40 = vpop.f32.mrf.mxu2 }
 0x2b0   : > { %v3541_v57 = vadd.f32 %v3490_v36, %v2709_v42 }
 0x2b2   : > { %v3572_v46 = vadd.f32 %v3571_v30, %v3541_v57  ;;  %v3610_v60 = vmul.f32 %v3541_v57, %v3541_v57  ;;  %v5115_v23 = vpack.c.bf16 %v3541_v57, %v3540_v0 }
 0x2b3   : > { %v3403_v35 = vpop.f32.mrf.mxu3  ;;  %v2716_v61 = vpop.f32.mrf.mxu1 }
 0x2b4   : > { %v3641_v3 = vadd.f32 %v3640_v22, %v3610_v60  ;;  %5170 = vst [vmem:[%s6463_s25 + $0x48] sm:$0xff] %v5115_v23   ;;  %v3404_v15 = vadd.f32 %v3403_v35, %v3314_v40  ;;  %v2717_v39 = vadd.f32 %v2716_v61, %v6428_v59 }
 0x2b6   : > { %v3493_v28 = vadd.f32 %v3492_v56, %v3404_v15  ;;  %v3499_v62 = vpop.f32.mrf.mxu0 }
 0x2b7   : > { %v3316_v18 = vpop.f32.mrf.mxu2 }
 0x2b8   : > { %v3542_v33 = vadd.f32 %v3493_v28, %v2712_v52 }
 0x2ba   : > { %v3573_v58 = vadd.f32 %v3572_v46, %v3542_v33  ;;  %v3611_v17 = vmul.f32 %v3542_v33, %v3542_v33 }
 0x2bb   : > { %v3405_v38 = vpop.f32.mrf.mxu3  ;;  %v2718_v51 = vpop.f32.mrf.mxu1 }
 0x2bc   : > { %v3642_v54 = vadd.f32 %v3641_v3, %v3611_v17  ;;  %v3406_v55 = vadd.f32 %v3405_v38, %v3316_v18  ;;  %v2719_v26 = vadd.f32 %v2718_v51, %v6431_v12 }
 0x2be   : > { %v3495_v11 = vadd.f32 %v3494_v6, %v3406_v55  ;;  %v3502_v7 = vpop.f32.mrf.mxu0 }
 0x2bf   : > { %v3319_v32 = vpop.f32.mrf.mxu2 }
 0x2c0   : > { %v3543_v41 = vadd.f32 %v3495_v11, %v2714_v2 }
 0x2c2   : > { %v3574_v44 = vadd.f32 %v3573_v58, %v3543_v41  ;;  %v3612_v13 = vmul.f32 %v3543_v41, %v3543_v41  ;;  %v5120_v9 = vpack.c.bf16 %v3543_v41, %v3542_v33 }
 0x2c3   : > { %v3408_v24 = vpop.f32.mrf.mxu3  ;;  %v2721_v63 = vpop.f32.mrf.mxu1 }
 0x2c4   : > { %v3643_v37 = vadd.f32 %v3642_v54, %v3612_v13  ;;  %5171 = vst [vmem:[%s6463_s25 + $0x50] sm:$0xff] %v5120_v9   ;;  %v3409_v56 = vadd.f32 %v3408_v24, %v3319_v32  ;;  %v2722_v36 = vadd.f32 %v2721_v63, %v6434_v31 }
 0x2c6   : > { %v3498_v48 = vadd.f32 %v3497_v8, %v3409_v56  ;;  %v3504_v50 = vpop.f32.mrf.mxu0 }
 0x2c7   : > { %v3321_v16 = vpop.f32.mrf.mxu2 }
 0x2c8   : > { %v3544_v19 = vadd.f32 %v3498_v48, %v2717_v39 }
 0x2ca   : > { %v3575_v43 = vadd.f32 %v3574_v44, %v3544_v19  ;;  %v3613_v21 = vmul.f32 %v3544_v19, %v3544_v19 }
 0x2cb   : > { %v3410_v34 = vpop.f32.mrf.mxu3  ;;  %v2723_v6 = vpop.f32.mrf.mxu1 }
 0x2cc   : > { %v3644_v1 = vadd.f32 %v3643_v37, %v3613_v21  ;;  %v3411_v4 = vadd.f32 %v3410_v34, %v3321_v16  ;;  %v2724_v15 = vadd.f32 %v2723_v6, %v6437_v49 }
 0x2ce   : > { %v3500_v14 = vadd.f32 %v3499_v62, %v3411_v4  ;;  %v3507_v35 = vpop.f32.mrf.mxu0 }
 0x2cf   : > { %v3324_v0 = vpop.f32.mrf.mxu2 }
 0x2d0   : > { %v3545_v30 = vadd.f32 %v3500_v14, %v2719_v26 }
 0x2d2   : > { %v3576_v20 = vadd.f32 %v3575_v43, %v3545_v30  ;;  %v3614_v27 = vmul.f32 %v3545_v30, %v3545_v30  ;;  %v5125_v59 = vpack.c.bf16 %v3545_v30, %v3544_v19 }
 0x2d3   : > { %v3413_v22 = vpop.f32.mrf.mxu3  ;;  %v2726_v60 = vpop.f32.mrf.mxu1 }
 0x2d4   : > { %v3645_v10 = vadd.f32 %v3644_v1, %v3614_v27  ;;  %5172 = vst [vmem:[%s6463_s25 + $0x58] sm:$0xff] %v5125_v59   ;;  %v3414_v42 = vadd.f32 %v3413_v22, %v3324_v0  ;;  %v2727_v62 = vadd.f32 %v2726_v60, %v6440_v25 }
 0x2d6   : > { %v3503_v40 = vadd.f32 %v3502_v7, %v3414_v42  ;;  %v3509_v55 = vpop.f32.mrf.mxu0 }
 0x2d7   : > { %v3326_v57 = vpop.f32.mrf.mxu2 }
 0x2d8   : > { %v3546_v46 = vadd.f32 %v3503_v40, %v2722_v36 }
 0x2da   : > { %v3577_v23 = vadd.f32 %v3576_v20, %v3546_v46  ;;  %v3615_v12 = vmul.f32 %v3546_v46, %v3546_v46 }
 0x2db   : > { %v3415_v8 = vpop.f32.mrf.mxu3  ;;  %v2728_v38 = vpop.f32.mrf.mxu1 }
 0x2dc   : > { %v3646_v61 = vadd.f32 %v3645_v10, %v3615_v12  ;;  %v3416_v3 = vadd.f32 %v3415_v8, %v3326_v57  ;;  %v2729_v37 = vadd.f32 %v2728_v38, %v6443_v45 }
 0x2de   : > { %v3505_v52 = vadd.f32 %v3504_v50, %v3416_v3  ;;  %v3512_v63 = vpop.f32.mrf.mxu0 }
 0x2df   : > { %v3329_v28 = vpop.f32.mrf.mxu2 }
 0x2e0   : > { %v3547_v18 = vadd.f32 %v3505_v52, %v2724_v15 }
 0x2e2   : > { %v3578_v33 = vadd.f32 %v3577_v23, %v3547_v18  ;;  %v3616_v58 = vmul.f32 %v3547_v18, %v3547_v18  ;;  %v5130_v17 = vpack.c.bf16 %v3547_v18, %v3546_v46 }
 0x2e3   : > { %v3418_v31 = vpop.f32.mrf.mxu3  ;;  %v2731_v24 = vpop.f32.mrf.mxu1 }
 0x2e4   : > { %v3647_v51 = vadd.f32 %v3646_v61, %v3616_v58  ;;  %5173 = vst [vmem:[%s6463_s25 + $0x60] sm:$0xff] %v5130_v17   ;;  %v3419_v54 = vadd.f32 %v3418_v31, %v3329_v28  ;;  %v2732_v34 = vadd.f32 %v2731_v24, %v6446_v5 }
 0x2e6   : > { %v3508_v2 = vadd.f32 %v3507_v35, %v3419_v54  ;;  %v3514_v0 = vpop.f32.mrf.mxu0 }
 0x2e7   : > { %v3331_v11 = vpop.f32.mrf.mxu2 }
 0x2e8   : > { %v3548_v32 = vadd.f32 %v3508_v2, %v2727_v62 }
 0x2ea   : > { %v3579_v41 = vadd.f32 %v3578_v33, %v3548_v32  ;;  %v3617_v49 = vmul.f32 %v3548_v32, %v3548_v32 }
 0x2eb   : > { %v3420_v44 = vpop.f32.mrf.mxu3  ;;  %v2733_v4 = vpop.f32.mrf.mxu1 }
 0x2ec   : > { %v3648_v13 = vadd.f32 %v3647_v51, %v3617_v49  ;;  %v3421_v9 = vadd.f32 %v3420_v44, %v3331_v11  ;;  %v2734_v27 = vadd.f32 %v2733_v4, %v6449_v53 }
 0x2ee   : > { %v3510_v56 = vadd.f32 %v3509_v55, %v3421_v9  ;;  %v3517_v57 = vpop.f32.mrf.mxu0 }
 0x2ef   : > { %v3334_v39 = vpop.f32.mrf.mxu2 }
 0x2f0   : > { %v3549_v48 = vadd.f32 %v3510_v56, %v2729_v37 }
 0x2f2   : > { %v3580_v16 = vadd.f32 %v3579_v41, %v3549_v48  ;;  %v3618_v7 = vmul.f32 %v3549_v48, %v3549_v48  ;;  %v5135_v19 = vpack.c.bf16 %v3549_v48, %v3548_v32 }
 0x2f3   : > { %v3423_v25 = vpop.f32.mrf.mxu3  ;;  %v2736_v42 = vpop.f32.mrf.mxu1 }
 0x2f4   : > { %v3649_v43 = vadd.f32 %v3648_v13, %v3618_v7  ;;  %5174 = vst [vmem:[%s6463_s25 + $0x68] sm:$0xff] %v5135_v19   ;;  %v3424_v21 = vadd.f32 %v3423_v25, %v3334_v39  ;;  %v2737_v12 = vadd.f32 %v2736_v42, %v6452_v47 }
 0x2f6   : > { %v3513_v1 = vadd.f32 %v3512_v63, %v3424_v21  ;;  %v3519_v33 = vpop.f32.mrf.mxu0 }
 0x2f7   : > { %v3336_v26 = vpop.f32.mrf.mxu2 }
 0x2f8   : > { %v3550_v14 = vadd.f32 %v3513_v1, %v2732_v34 }
 0x2fa   : > { %v3581_v6 = vadd.f32 %v3580_v16, %v3550_v14  ;;  %v3619_v45 = vmul.f32 %v3550_v14, %v3550_v14 }
 0x2fb   : > { %v3425_v30 = vpop.f32.mrf.mxu3  ;;  %v2738_v15 = vpop.f32.mrf.mxu1 }
 0x2fc   : > { %v3650_v50 = vadd.f32 %v3649_v43, %v3619_v45  ;;  %v3426_v20 = vadd.f32 %v3425_v30, %v3336_v26  ;;  %v2739_v58 = vadd.f32 %v2738_v15, %v6454_v29 }
 0x2fe   : > { %v3515_v59 = vadd.f32 %v3514_v0, %v3426_v20 }
 0x2ff   : > { %v3339_v22 = vpop.f32.mrf.mxu2 }
 0x300   : > { %v3551_v10 = vadd.f32 %v3515_v59, %v2734_v27 }
 0x302   : > { %v3582_v36 = vadd.f32 %v3581_v6, %v3551_v10  ;;  %v3620_v40 = vmul.f32 %v3551_v10, %v3551_v10  ;;  %v5140_v5 = vpack.c.bf16 %v3551_v10, %v3550_v14 }
 0x303   : > { %v3428_v46 = vpop.f32.mrf.mxu3 }
 0x304   : > { %v3651_v60 = vadd.f32 %v3650_v50, %v3620_v40  ;;  %5175 = vst [vmem:[%s6463_s25 + $0x70] sm:$0xff] %v5140_v5   ;;  %v3429_v23 = vadd.f32 %v3428_v46, %v3339_v22 }
 0x306   : > { %v3518_v8 = vadd.f32 %v3517_v57, %v3429_v23 }
 0x307   : > { %v3341_v61 = vpop.f32.mrf.mxu2 }
 0x308   : > { %v3552_v35 = vadd.f32 %v3518_v8, %v2737_v12 }
 0x30a   : > { %v3583_v3 = vadd.f32 %v3582_v36, %v3552_v35  ;;  %v3621_v53 = vmul.f32 %v3552_v35, %v3552_v35 }
 0x30b   : > { %v3430_v52 = vpop.f32.mrf.mxu3 }
 0x30c   : > { %v3652_v28 = vadd.f32 %v3651_v60, %v3621_v53  ;;  %v3431_v18 = vadd.f32 %v3430_v52, %v3341_v61 }
 0x30e   : > { %v3520_v17 = vadd.f32 %v3519_v33, %v3431_v18 }
 0x310   : > { %v3553_v31 = vadd.f32 %v3520_v17, %v2739_v58 }
 0x312   : > { %v3584_v38 = vadd.f32 %v3583_v3, %v3553_v31  ;;  %v3622_v51 = vmul.f32 %v3553_v31, %v3553_v31  ;;  %v5145_v54 = vpack.c.bf16 %v3553_v31, %v3552_v35 }
 0x314   : > { %v3585_v47 = vrot.slane %v3584_v38, 4  ;;  %v3653_v55 = vadd.f32 %v3652_v28, %v3622_v51  ;;  %5176 = vst [vmem:[%s6463_s25 + $0x78] sm:$0xff] %v5145_v54  }
 0x316   : > { %v3586_v62 = vadd.f32 %v3585_v47, %v3584_v38  ;;  %v3654_v2 = vrot.slane %v3653_v55, 4 }
 0x318   : > { %v3587_v11 = vrot.slane %v3586_v62, 2  ;;  %v3655_v32 = vadd.f32 %v3654_v2, %v3653_v55 }
 0x31a   : > { %v3588_v41 = vadd.f32 %v3587_v11, %v3586_v62  ;;  %v3656_v49 = vrot.slane %v3655_v32, 2 }
 0x31c   : > { %v3589_v44 = vrot.slane %v3588_v41, 1  ;;  %v3657_v13 = vadd.f32 %v3656_v49, %v3655_v32 }
 0x31e   : > { %v3658_v9 = vrot.slane %v3657_v13, 1  ;;  %v3590_v29 = vadd.f32 %v3589_v44, %v3588_v41 }
 0x320   : > { %v3659_v24 = vadd.f32 %v3658_v9, %v3657_v13 }
 0x322   : > { %v3661_v37 = vsel %vm447_vm0, %v3590_v29, %v3659_v24 }
 0x323   : > { %3662 = vst [vmem:[%s235_s28] sm:$0x3] %v3661_v37 }
 0x324 PF: > { %s16_s18 = sadd.s32 1, %s5220_s18  }
 0x325   : > { %p13_p4 = scmp.ge.s32.totalorder %s16_s18, 4  }
 0x327   :  { %15 = sbr.rel (!%p13_p4) target bundleno = 1 (0x1), region = 83 }

</bundles_post_ra>
